<compile_context>
chip_gen: v7x
topology: tpu7x:2x2x1
jax: 0.10.0
libtpu: 0.0.40
codegen_flags: <defaults>
</compile_context>

<pallas_src>
import functools
import math

import jax
import jax.numpy as jnp
from jax.experimental import pallas as pl
from jax.experimental.pallas import tpu as pltpu


def _round_up(n, m):
    return -(-n // m) * m


def _fused_lstm_encoder_kernel(x_ref,
                               wih1_ref, whh1_ref, b1_ref,
                               w2_ref, b2_ref,
                               w3_ref, b3_ref,
                               h3_ref,
                               gx1_scr,
                               *, seq_len, batch_pad, hp1, hp2, hp3):
    f32 = jnp.float32
    T, Bp = seq_len, batch_pad
    mxu_dtype = whh1_ref.dtype

    # Hoisted layer-1 input projection (+ folded bias): one batched matmul over the
    # whole sequence, written to VMEM scratch so the unrolled recurrence reads exactly
    # one aligned (Bp, 4*hp1) slice per step instead of holding T*Bp rows in vregs.
    gx1_scr[...] = (
        jnp.dot(x_ref[...], wih1_ref[...], preferred_element_type=f32) + b1_ref[...])

    # Fused, loop-invariant weight slabs: one matmul issue/drain per layer per step.
    w1 = whh1_ref[...]          # (hp1, 4*hp1)
    w2 = w2_ref[...]            # (hp1+hp2, 4*hp2)   rows = [Wih2 ; Whh2]
    w3 = w3_ref[...]            # (hp2+hp3, 4*hp3)   rows = [Wih3 ; Whh3]

    # Hoisted bias broadcasts (JAX does not CSE broadcast_in_dim inside loops).
    bias2 = jnp.broadcast_to(b2_ref[...], (Bp, 4 * hp2))
    bias3 = jnp.broadcast_to(b3_ref[...], (Bp, 4 * hp3))

    def gate_update(g, c, hp):
        # PyTorch gate order i, f, g, o; every gate sits at a 128-aligned lane offset.
        i_g = jax.nn.sigmoid(g[:, 0 * hp:1 * hp])
        f_g = jax.nn.sigmoid(g[:, 1 * hp:2 * hp])
        g_g = jnp.tanh(g[:, 2 * hp:3 * hp])
        o_g = jax.nn.sigmoid(g[:, 3 * hp:4 * hp])
        c_new = f_g * c + i_g * g_g
        h_new = o_g * jnp.tanh(c_new)
        return h_new, c_new

    h1 = jnp.zeros((Bp, hp1), f32); c1 = jnp.zeros((Bp, hp1), f32)
    h2 = jnp.zeros((Bp, hp2), f32); c2 = jnp.zeros((Bp, hp2), f32)
    h3 = jnp.zeros((Bp, hp3), f32); c3 = jnp.zeros((Bp, hp3), f32)
    # Padded hidden lanes of layers 2/3 stay exactly 0: their weight columns, bias
    # lanes and the matching stacked-weight rows are all zero (c_pad stays 0, so
    # h_pad = sigmoid(0)*tanh(0) = 0), hence no contamination of downstream layers.

    # Wavefront: layer-1 step t+1 depends only on h1/c1(t), so the scheduler can
    # overlap layer-2/3 work of step t with layer-1 work of step t+1.
    for t in range(T):
        r0 = t * Bp                                        # sublane-aligned start

        # ---- layer 1: hoisted input proj slice + single fused recurrent matmul ----
        g1 = gx1_scr[r0:r0 + Bp, :] + jnp.dot(
            h1.astype(mxu_dtype), w1, preferred_element_type=f32)
        h1, c1 = gate_update(g1, c1, hp1)

        # ---- layer 2: one fused matmul on stacked [h1(t) | h2(t-1)] ----
        in2 = jnp.concatenate([h1, h2], axis=-1).astype(mxu_dtype)
        g2 = jnp.dot(in2, w2, preferred_element_type=f32) + bias2
        h2, c2 = gate_update(g2, c2, hp2)

        # ---- layer 3: one fused matmul on stacked [h2(t) | h3(t-1)] ----
        in3 = jnp.concatenate([h2, h3], axis=-1).astype(mxu_dtype)
        g3 = jnp.dot(in3, w3, preferred_element_type=f32) + bias3
        h3, c3 = gate_update(g3, c3, hp3)

    h3_ref[...] = h3.astype(h3_ref.dtype)                  # lane-dense (Bp, hp3) store


def _pack_gate_cols(w, hidden, hidden_pad):
    """PyTorch (4H, K) weight -> (K, 4*Hp): gates concatenated along the output/lane
    axis, each gate zero-padded from H to Hp columns (Hp a multiple of 128)."""
    four_h, k = w.shape
    w4 = jnp.asarray(w, jnp.float32).reshape(4, hidden, k).transpose(2, 0, 1)  # (K,4,H)
    w4 = jnp.pad(w4, ((0, 0), (0, 0), (0, hidden_pad - hidden)))
    return w4.reshape(k, 4 * hidden_pad)


def _pack_bias(b_ih, b_hh, hidden, hidden_pad):
    b = (jnp.asarray(b_ih, jnp.float32)
         + jnp.asarray(b_hh, jnp.float32)).reshape(4, hidden)
    b = jnp.pad(b, ((0, 0), (0, hidden_pad - hidden)))
    return b.reshape(1, 4 * hidden_pad)


def _pad_rows(w, rows_pad):
    return jnp.pad(w, ((0, rows_pad - w.shape[0]), (0, 0)))


def lstm_encoder_forward(x_btf, params, *, compute_dtype=jnp.float32):
    """Equivalent of LSTMEncoder.forward: returns hidden_n of lstm3, shape (1, B, E).

    compute_dtype: MXU operand dtype (use jnp.bfloat16 on v6e/v7x; gate math, cell
    state and accumulation stay float32; batch pad widens to 16 automatically).
    """
    B, T, F = x_btf.shape
    H1 = params["lstm1"]["w_hh"].shape[1]
    H2 = params["lstm2"]["w_hh"].shape[1]
    E = params["lstm3"]["w_hh"].shape[1]
    Hp1, Hp2, Hp3 = (_round_up(h, 128) for h in (H1, H2, E))

    # 8 sublanes for 4-byte dtypes, 16 for 2-byte (bf16) so stores stay tile-aligned.
    sub = 8 if jnp.dtype(compute_dtype).itemsize >= 4 else 16
    Bp = _round_up(max(B, sub), sub)

    x_tbf = jnp.transpose(x_btf, (1, 0, 2)).astype(jnp.float32)      # (T, B, F)
    x_tbf = jnp.pad(x_tbf, ((0, 0), (0, Bp - B), (0, 0)))            # (T, Bp, F)
    x_flat = x_tbf.reshape(T * Bp, F).astype(compute_dtype)          # (T*Bp, F)

    p1, p2, p3 = params["lstm1"], params["lstm2"], params["lstm3"]

    # Layer 1: input projection kept separate (hoisted over time inside the kernel).
    wih1 = _pack_gate_cols(p1["w_ih"], H1, Hp1).astype(compute_dtype)          # (F, 4*Hp1)
    whh1 = _pad_rows(_pack_gate_cols(p1["w_hh"], H1, Hp1), Hp1).astype(compute_dtype)
    b1 = _pack_bias(p1["b_ih"], p1["b_hh"], H1, Hp1)

    # Layers 2/3: input + recurrent weights stacked along the contraction axis so the
    # per-step work is a single matmul on [h_prev_layer | h_this_layer].
    w2 = jnp.concatenate(
        [_pad_rows(_pack_gate_cols(p2["w_ih"], H2, Hp2), Hp1),
         _pad_rows(_pack_gate_cols(p2["w_hh"], H2, Hp2), Hp2)],
        axis=0).astype(compute_dtype)                                          # (Hp1+Hp2, 4*Hp2)
    b2 = _pack_bias(p2["b_ih"], p2["b_hh"], H2, Hp2)

    w3 = jnp.concatenate(
        [_pad_rows(_pack_gate_cols(p3["w_ih"], E, Hp3), Hp2),
         _pad_rows(_pack_gate_cols(p3["w_hh"], E, Hp3), Hp3)],
        axis=0).astype(compute_dtype)                                          # (Hp2+Hp3, 4*Hp3)
    b3 = _pack_bias(p3["b_ih"], p3["b_hh"], E, Hp3)

    kernel = functools.partial(_fused_lstm_encoder_kernel,
                               seq_len=T, batch_pad=Bp, hp1=Hp1, hp2=Hp2, hp3=Hp3)

    h3_pad = pl.pallas_call(
        kernel,
        out_shape=jax.ShapeDtypeStruct((Bp, Hp3), jnp.float32),
        in_specs=[pl.BlockSpec(memory_space=pltpu.MemorySpace.VMEM)] * 8,
        out_specs=pl.BlockSpec(memory_space=pltpu.MemorySpace.VMEM),
        scratch_shapes=[
            pltpu.VMEM((T * Bp, 4 * Hp1), jnp.float32),   # hoisted layer-1 gate proj
        ],
        compiler_params=pltpu.CompilerParams(
            vmem_limit_bytes=32 * 1024 * 1024),           # safe on v5e/v6e/v7x
    )(x_flat, wih1, whh1, b1, w2, b2, w3, b3)

    return h3_pad[:B, :E][None, :, :]                     # (1, B, E), drop padding


def init_lstm_params(key, input_size, hidden_size):
    """Deterministic init matching PyTorch LSTM param shapes / U(-1/sqrt(H), 1/sqrt(H))."""
    k = 1.0 / math.sqrt(hidden_size)
    k1, k2, k3, k4 = jax.random.split(key, 4)
    return {
        "w_ih": jax.random.uniform(k1, (4 * hidden_size, input_size), jnp.float32, -k, k),
        "w_hh": jax.random.uniform(k2, (4 * hidden_size, hidden_size), jnp.float32, -k, k),
        "b_ih": jax.random.uniform(k3, (4 * hidden_size,), jnp.float32, -k, k),
        "b_hh": jax.random.uniform(k4, (4 * hidden_size,), jnp.float32, -k, k),
    }


def _reference_lstm_layer(x_tbf, w_ih, w_hh, b_ih, b_hh):
    """Pure-JAX reference (lax.scan), PyTorch gate order / formulas."""
    H = w_hh.shape[1]

    def step(carry, x_t):
        h, c = carry
        gates = x_t @ w_ih.T + h @ w_hh.T + b_ih + b_hh
        i_g = jax.nn.sigmoid(gates[:, 0 * H:1 * H])
        f_g = jax.nn.sigmoid(gates[:, 1 * H:2 * H])
        g_g = jnp.tanh(gates[:, 2 * H:3 * H])
        o_g = jax.nn.sigmoid(gates[:, 3 * H:4 * H])
        c_new = f_g * c + i_g * g_g
        h_new = o_g * jnp.tanh(c_new)
        return (h_new, c_new), h_new

    B = x_tbf.shape[1]
    init = (jnp.zeros((B, H), jnp.float32), jnp.zeros((B, H), jnp.float32))
    (h_T, _), ys = jax.lax.scan(step, init, x_tbf)
    return ys, h_T


def _reference_forward(x_btf, params):
    x = jnp.transpose(x_btf, (1, 0, 2))
    y1, _ = _reference_lstm_layer(x, **params["lstm1"])
    y2, _ = _reference_lstm_layer(y1, **params["lstm2"])
    _, h3 = _reference_lstm_layer(y2, **params["lstm3"])
    return h3[None, :, :]


if __name__ == "__main__":
    # Module hyperparameters (small, consistent with the PyTorch forward pass)
    batch = 2
    seq_len = 8
    n_features = 4
    embedding_dim = 32
    hidden_dim2 = 2 * embedding_dim       # 64
    hidden_dim = 2 * hidden_dim2          # 128

    root = jax.random.PRNGKey(0)
    kx, k1, k2, k3 = jax.random.split(root, 4)

    params = {
        "lstm1": init_lstm_params(k1, n_features, hidden_dim),
        "lstm2": init_lstm_params(k2, hidden_dim, hidden_dim2),
        "lstm3": init_lstm_params(k3, hidden_dim2, embedding_dim),
    }

    x = jax.random.normal(kx, (batch, seq_len, n_features), jnp.float32)

    # f32 path (use compute_dtype=jnp.bfloat16 on v6e/v7x for bf16 MXU operands).
    hidden_n = lstm_encoder_forward(x, params)
    hidden_n = jax.block_until_ready(hidden_n)

    assert hidden_n.shape == (1, batch, embedding_dim)

    ref = _reference_forward(x, params)
    assert jnp.allclose(hidden_n, ref, atol=1e-4, rtol=1e-4)

    print("KERNEL_OK")
</pallas_src>

<mosaic_0001>
module attributes {stable_mosaic.version = 11 : i64} {
  func.func @_fused_lstm_encoder_kernel(%arg0: memref<64x4xf32, #tpu.memory_space<vmem>>, %arg1: memref<4x512xf32, #tpu.memory_space<vmem>>, %arg2: memref<128x512xf32, #tpu.memory_space<vmem>>, %arg3: memref<1x512xf32, #tpu.memory_space<vmem>>, %arg4: memref<256x512xf32, #tpu.memory_space<vmem>>, %arg5: memref<1x512xf32, #tpu.memory_space<vmem>>, %arg6: memref<256x512xf32, #tpu.memory_space<vmem>>, %arg7: memref<1x512xf32, #tpu.memory_space<vmem>>, %arg8: memref<8x128xf32, #tpu.memory_space<vmem>>, %arg9: memref<64x512xf32, #tpu.memory_space<vmem>>) attributes {dimension_semantics = [], scalar_prefetch = 0 : i64, scratch_operands = 1 : i64, tpu.core_type = #tpu.core_type<tc>} {
    %c0 = arith.constant 0 : index
    %c0_0 = arith.constant 0 : index
    %0 = vector.load %arg0[%c0, %c0_0] : memref<64x4xf32, #tpu.memory_space<vmem>>, vector<64x4xf32>
    %c0_1 = arith.constant 0 : index
    %c0_2 = arith.constant 0 : index
    %1 = vector.load %arg1[%c0_1, %c0_2] : memref<4x512xf32, #tpu.memory_space<vmem>>, vector<4x512xf32>
    %cst = arith.constant dense<0.000000e+00> : vector<64x512xf32>
    %2 = tpu.matmul %0, %1, %cst {dimension_numbers = #tpu.dot_dimension_numbers<[1], [0], [0], [1], [0, 0, 1, 1], [], []>} : vector<64x4xf32>, vector<4x512xf32>, vector<64x512xf32> -> vector<64x512xf32>
    %c0_3 = arith.constant 0 : index
    %c0_4 = arith.constant 0 : index
    %3 = vector.load %arg3[%c0_3, %c0_4] : memref<1x512xf32, #tpu.memory_space<vmem>>, vector<1x512xf32>
    %4 = vector.broadcast %3 : vector<1x512xf32> to vector<64x512xf32>
    %5 = arith.addf %2, %4 : vector<64x512xf32>
    %c0_5 = arith.constant 0 : index
    %c0_6 = arith.constant 0 : index
    %6 = vector.load %arg9[%c0_5, %c0_6] : memref<64x512xf32, #tpu.memory_space<vmem>>, vector<64x512xf32>
    tpu.vector_store %arg9[%c0_5, %c0_6], %5 {strides = array<i32>} : memref<64x512xf32, #tpu.memory_space<vmem>>, vector<64x512xf32>,
    %c0_7 = arith.constant 0 : index
    %c0_8 = arith.constant 0 : index
    %7 = vector.load %arg2[%c0_7, %c0_8] : memref<128x512xf32, #tpu.memory_space<vmem>>, vector<128x512xf32>
    %c0_9 = arith.constant 0 : index
    %c0_10 = arith.constant 0 : index
    %8 = vector.load %arg4[%c0_9, %c0_10] : memref<256x512xf32, #tpu.memory_space<vmem>>, vector<256x512xf32>
    %c0_11 = arith.constant 0 : index
    %c0_12 = arith.constant 0 : index
    %9 = vector.load %arg6[%c0_11, %c0_12] : memref<256x512xf32, #tpu.memory_space<vmem>>, vector<256x512xf32>
    %c0_13 = arith.constant 0 : index
    %c0_14 = arith.constant 0 : index
    %10 = vector.load %arg5[%c0_13, %c0_14] : memref<1x512xf32, #tpu.memory_space<vmem>>, vector<1x512xf32>
    %11 = vector.shape_cast %10 : vector<1x512xf32> to vector<1x512xf32>
    %12 = vector.broadcast %11 : vector<1x512xf32> to vector<8x512xf32>
    %c0_15 = arith.constant 0 : index
    %c0_16 = arith.constant 0 : index
    %13 = vector.load %arg7[%c0_15, %c0_16] : memref<1x512xf32, #tpu.memory_space<vmem>>, vector<1x512xf32>
    %14 = vector.shape_cast %13 : vector<1x512xf32> to vector<1x512xf32>
    %15 = vector.broadcast %14 : vector<1x512xf32> to vector<8x512xf32>
    %cst_17 = arith.constant 0.000000e+00 : f32
    %16 = vector.broadcast %cst_17 : f32 to vector<8x128xf32>
    %cst_18 = arith.constant 0.000000e+00 : f32
    %17 = vector.broadcast %cst_18 : f32 to vector<8x128xf32>
    %cst_19 = arith.constant 0.000000e+00 : f32
    %18 = vector.broadcast %cst_19 : f32 to vector<8x128xf32>
    %cst_20 = arith.constant 0.000000e+00 : f32
    %19 = vector.broadcast %cst_20 : f32 to vector<8x128xf32>
    %cst_21 = arith.constant 0.000000e+00 : f32
    %20 = vector.broadcast %cst_21 : f32 to vector<8x128xf32>
    %cst_22 = arith.constant 0.000000e+00 : f32
    %21 = vector.broadcast %cst_22 : f32 to vector<8x128xf32>
    %c0_23 = arith.constant 0 : index
    %c0_24 = arith.constant 0 : index
    %22 = vector.load %arg9[%c0_23, %c0_24] : memref<64x512xf32, #tpu.memory_space<vmem>>, vector<8x512xf32>
    %cst_25 = arith.constant dense<0.000000e+00> : vector<8x512xf32>
    %23 = tpu.matmul %16, %7, %cst_25 {dimension_numbers = #tpu.dot_dimension_numbers<[1], [0], [0], [1], [0, 0, 1, 1], [], []>} : vector<8x128xf32>, vector<128x512xf32>, vector<8x512xf32> -> vector<8x512xf32>
    %24 = arith.addf %22, %23 : vector<8x512xf32>
    %25 = vector.extract_strided_slice %24 {offsets = [0, 0], sizes = [8, 128], strides = [1, 1]} : vector<8x512xf32> to vector<8x128xf32>
    %26 = arith.negf %25 : vector<8x128xf32>
    %27 = math.exp %26 : vector<8x128xf32>
    %cst_26 = arith.constant 1.000000e+00 : f32
    %28 = vector.broadcast %cst_26 : f32 to vector<8x128xf32>
    %29 = arith.addf %28, %27 : vector<8x128xf32>
    %30 = arith.divf %28, %29 : vector<8x128xf32>
    %31 = vector.extract_strided_slice %24 {offsets = [0, 128], sizes = [8, 128], strides = [1, 1]} : vector<8x512xf32> to vector<8x128xf32>
    %32 = arith.negf %31 : vector<8x128xf32>
    %33 = math.exp %32 : vector<8x128xf32>
    %cst_27 = arith.constant 1.000000e+00 : f32
    %34 = vector.broadcast %cst_27 : f32 to vector<8x128xf32>
    %35 = arith.addf %34, %33 : vector<8x128xf32>
    %36 = arith.divf %34, %35 : vector<8x128xf32>
    %37 = vector.extract_strided_slice %24 {offsets = [0, 256], sizes = [8, 128], strides = [1, 1]} : vector<8x512xf32> to vector<8x128xf32>
    %38 = math.tanh %37 : vector<8x128xf32>
    %39 = vector.extract_strided_slice %24 {offsets = [0, 384], sizes = [8, 128], strides = [1, 1]} : vector<8x512xf32> to vector<8x128xf32>
    %40 = arith.negf %39 : vector<8x128xf32>
    %41 = math.exp %40 : vector<8x128xf32>
    %cst_28 = arith.constant 1.000000e+00 : f32
    %42 = vector.broadcast %cst_28 : f32 to vector<8x128xf32>
    %43 = arith.addf %42, %41 : vector<8x128xf32>
    %44 = arith.divf %42, %43 : vector<8x128xf32>
    %45 = arith.mulf %36, %17 : vector<8x128xf32>
    %46 = arith.mulf %30, %38 : vector<8x128xf32>
    %47 = arith.addf %45, %46 : vector<8x128xf32>
    %48 = math.tanh %47 : vector<8x128xf32>
    %49 = arith.mulf %44, %48 : vector<8x128xf32>
    %50 = tpu.concatenate %49, %18 in 1 : vector<8x128xf32>, vector<8x128xf32> -> vector<8x256xf32>
    %cst_29 = arith.constant dense<0.000000e+00> : vector<8x512xf32>
    %51 = tpu.matmul %50, %8, %cst_29 {dimension_numbers = #tpu.dot_dimension_numbers<[1], [0], [0], [1], [0, 0, 1, 1], [], []>} : vector<8x256xf32>, vector<256x512xf32>, vector<8x512xf32> -> vector<8x512xf32>
    %52 = arith.addf %51, %12 : vector<8x512xf32>
    %53 = vector.extract_strided_slice %52 {offsets = [0, 0], sizes = [8, 128], strides = [1, 1]} : vector<8x512xf32> to vector<8x128xf32>
    %54 = arith.negf %53 : vector<8x128xf32>
    %55 = math.exp %54 : vector<8x128xf32>
    %cst_30 = arith.constant 1.000000e+00 : f32
    %56 = vector.broadcast %cst_30 : f32 to vector<8x128xf32>
    %57 = arith.addf %56, %55 : vector<8x128xf32>
    %58 = arith.divf %56, %57 : vector<8x128xf32>
    %59 = vector.extract_strided_slice %52 {offsets = [0, 128], sizes = [8, 128], strides = [1, 1]} : vector<8x512xf32> to vector<8x128xf32>
    %60 = arith.negf %59 : vector<8x128xf32>
    %61 = math.exp %60 : vector<8x128xf32>
    %cst_31 = arith.constant 1.000000e+00 : f32
    %62 = vector.broadcast %cst_31 : f32 to vector<8x128xf32>
    %63 = arith.addf %62, %61 : vector<8x128xf32>
    %64 = arith.divf %62, %63 : vector<8x128xf32>
    %65 = vector.extract_strided_slice %52 {offsets = [0, 256], sizes = [8, 128], strides = [1, 1]} : vector<8x512xf32> to vector<8x128xf32>
    %66 = math.tanh %65 : vector<8x128xf32>
    %67 = vector.extract_strided_slice %52 {offsets = [0, 384], sizes = [8, 128], strides = [1, 1]} : vector<8x512xf32> to vector<8x128xf32>
    %68 = arith.negf %67 : vector<8x128xf32>
    %69 = math.exp %68 : vector<8x128xf32>
    %cst_32 = arith.constant 1.000000e+00 : f32
    %70 = vector.broadcast %cst_32 : f32 to vector<8x128xf32>
    %71 = arith.addf %70, %69 : vector<8x128xf32>
    %72 = arith.divf %70, %71 : vector<8x128xf32>
    %73 = arith.mulf %64, %19 : vector<8x128xf32>
    %74 = arith.mulf %58, %66 : vector<8x128xf32>
    %75 = arith.addf %73, %74 : vector<8x128xf32>
    %76 = math.tanh %75 : vector<8x128xf32>
    %77 = arith.mulf %72, %76 : vector<8x128xf32>
    %78 = tpu.concatenate %77, %20 in 1 : vector<8x128xf32>, vector<8x128xf32> -> vector<8x256xf32>
    %cst_33 = arith.constant dense<0.000000e+00> : vector<8x512xf32>
    %79 = tpu.matmul %78, %9, %cst_33 {dimension_numbers = #tpu.dot_dimension_numbers<[1], [0], [0], [1], [0, 0, 1, 1], [], []>} : vector<8x256xf32>, vector<256x512xf32>, vector<8x512xf32> -> vector<8x512xf32>
    %80 = arith.addf %79, %15 : vector<8x512xf32>
    %81 = vector.extract_strided_slice %80 {offsets = [0, 0], sizes = [8, 128], strides = [1, 1]} : vector<8x512xf32> to vector<8x128xf32>
    %82 = arith.negf %81 : vector<8x128xf32>
    %83 = math.exp %82 : vector<8x128xf32>
    %cst_34 = arith.constant 1.000000e+00 : f32
    %84 = vector.broadcast %cst_34 : f32 to vector<8x128xf32>
    %85 = arith.addf %84, %83 : vector<8x128xf32>
    %86 = arith.divf %84, %85 : vector<8x128xf32>
    %87 = vector.extract_strided_slice %80 {offsets = [0, 128], sizes = [8, 128], strides = [1, 1]} : vector<8x512xf32> to vector<8x128xf32>
    %88 = arith.negf %87 : vector<8x128xf32>
    %89 = math.exp %88 : vector<8x128xf32>
    %cst_35 = arith.constant 1.000000e+00 : f32
    %90 = vector.broadcast %cst_35 : f32 to vector<8x128xf32>
    %91 = arith.addf %90, %89 : vector<8x128xf32>
    %92 = arith.divf %90, %91 : vector<8x128xf32>
    %93 = vector.extract_strided_slice %80 {offsets = [0, 256], sizes = [8, 128], strides = [1, 1]} : vector<8x512xf32> to vector<8x128xf32>
    %94 = math.tanh %93 : vector<8x128xf32>
    %95 = vector.extract_strided_slice %80 {offsets = [0, 384], sizes = [8, 128], strides = [1, 1]} : vector<8x512xf32> to vector<8x128xf32>
    %96 = arith.negf %95 : vector<8x128xf32>
    %97 = math.exp %96 : vector<8x128xf32>
    %cst_36 = arith.constant 1.000000e+00 : f32
    %98 = vector.broadcast %cst_36 : f32 to vector<8x128xf32>
    %99 = arith.addf %98, %97 : vector<8x128xf32>
    %100 = arith.divf %98, %99 : vector<8x128xf32>
    %101 = arith.mulf %92, %21 : vector<8x128xf32>
    %102 = arith.mulf %86, %94 : vector<8x128xf32>
    %103 = arith.addf %101, %102 : vector<8x128xf32>
    %104 = math.tanh %103 : vector<8x128xf32>
    %105 = arith.mulf %100, %104 : vector<8x128xf32>
    %c8 = arith.constant 8 : index
    %c0_37 = arith.constant 0 : index
    %106 = vector.load %arg9[%c8, %c0_37] : memref<64x512xf32, #tpu.memory_space<vmem>>, vector<8x512xf32>
    %cst_38 = arith.constant dense<0.000000e+00> : vector<8x512xf32>
    %107 = tpu.matmul %49, %7, %cst_38 {dimension_numbers = #tpu.dot_dimension_numbers<[1], [0], [0], [1], [0, 0, 1, 1], [], []>} : vector<8x128xf32>, vector<128x512xf32>, vector<8x512xf32> -> vector<8x512xf32>
    %108 = arith.addf %106, %107 : vector<8x512xf32>
    %109 = vector.extract_strided_slice %108 {offsets = [0, 0], sizes = [8, 128], strides = [1, 1]} : vector<8x512xf32> to vector<8x128xf32>
    %110 = arith.negf %109 : vector<8x128xf32>
    %111 = math.exp %110 : vector<8x128xf32>
    %cst_39 = arith.constant 1.000000e+00 : f32
    %112 = vector.broadcast %cst_39 : f32 to vector<8x128xf32>
    %113 = arith.addf %112, %111 : vector<8x128xf32>
    %114 = arith.divf %112, %113 : vector<8x128xf32>
    %115 = vector.extract_strided_slice %108 {offsets = [0, 128], sizes = [8, 128], strides = [1, 1]} : vector<8x512xf32> to vector<8x128xf32>
    %116 = arith.negf %115 : vector<8x128xf32>
    %117 = math.exp %116 : vector<8x128xf32>
    %cst_40 = arith.constant 1.000000e+00 : f32
    %118 = vector.broadcast %cst_40 : f32 to vector<8x128xf32>
    %119 = arith.addf %118, %117 : vector<8x128xf32>
    %120 = arith.divf %118, %119 : vector<8x128xf32>
    %121 = vector.extract_strided_slice %108 {offsets = [0, 256], sizes = [8, 128], strides = [1, 1]} : vector<8x512xf32> to vector<8x128xf32>
    %122 = math.tanh %121 : vector<8x128xf32>
    %123 = vector.extract_strided_slice %108 {offsets = [0, 384], sizes = [8, 128], strides = [1, 1]} : vector<8x512xf32> to vector<8x128xf32>
    %124 = arith.negf %123 : vector<8x128xf32>
    %125 = math.exp %124 : vector<8x128xf32>
    %cst_41 = arith.constant 1.000000e+00 : f32
    %126 = vector.broadcast %cst_41 : f32 to vector<8x128xf32>
    %127 = arith.addf %126, %125 : vector<8x128xf32>
    %128 = arith.divf %126, %127 : vector<8x128xf32>
    %129 = arith.mulf %120, %47 : vector<8x128xf32>
    %130 = arith.mulf %114, %122 : vector<8x128xf32>
    %131 = arith.addf %129, %130 : vector<8x128xf32>
    %132 = math.tanh %131 : vector<8x128xf32>
    %133 = arith.mulf %128, %132 : vector<8x128xf32>
    %134 = tpu.concatenate %133, %77 in 1 : vector<8x128xf32>, vector<8x128xf32> -> vector<8x256xf32>
    %cst_42 = arith.constant dense<0.000000e+00> : vector<8x512xf32>
    %135 = tpu.matmul %134, %8, %cst_42 {dimension_numbers = #tpu.dot_dimension_numbers<[1], [0], [0], [1], [0, 0, 1, 1], [], []>} : vector<8x256xf32>, vector<256x512xf32>, vector<8x512xf32> -> vector<8x512xf32>
    %136 = arith.addf %135, %12 : vector<8x512xf32>
    %137 = vector.extract_strided_slice %136 {offsets = [0, 0], sizes = [8, 128], strides = [1, 1]} : vector<8x512xf32> to vector<8x128xf32>
    %138 = arith.negf %137 : vector<8x128xf32>
    %139 = math.exp %138 : vector<8x128xf32>
    %cst_43 = arith.constant 1.000000e+00 : f32
    %140 = vector.broadcast %cst_43 : f32 to vector<8x128xf32>
    %141 = arith.addf %140, %139 : vector<8x128xf32>
    %142 = arith.divf %140, %141 : vector<8x128xf32>
    %143 = vector.extract_strided_slice %136 {offsets = [0, 128], sizes = [8, 128], strides = [1, 1]} : vector<8x512xf32> to vector<8x128xf32>
    %144 = arith.negf %143 : vector<8x128xf32>
    %145 = math.exp %144 : vector<8x128xf32>
    %cst_44 = arith.constant 1.000000e+00 : f32
    %146 = vector.broadcast %cst_44 : f32 to vector<8x128xf32>
    %147 = arith.addf %146, %145 : vector<8x128xf32>
    %148 = arith.divf %146, %147 : vector<8x128xf32>
    %149 = vector.extract_strided_slice %136 {offsets = [0, 256], sizes = [8, 128], strides = [1, 1]} : vector<8x512xf32> to vector<8x128xf32>
    %150 = math.tanh %149 : vector<8x128xf32>
    %151 = vector.extract_strided_slice %136 {offsets = [0, 384], sizes = [8, 128], strides = [1, 1]} : vector<8x512xf32> to vector<8x128xf32>
    %152 = arith.negf %151 : vector<8x128xf32>
    %153 = math.exp %152 : vector<8x128xf32>
    %cst_45 = arith.constant 1.000000e+00 : f32
    %154 = vector.broadcast %cst_45 : f32 to vector<8x128xf32>
    %155 = arith.addf %154, %153 : vector<8x128xf32>
    %156 = arith.divf %154, %155 : vector<8x128xf32>
    %157 = arith.mulf %148, %75 : vector<8x128xf32>
    %158 = arith.mulf %142, %150 : vector<8x128xf32>
    %159 = arith.addf %157, %158 : vector<8x128xf32>
    %160 = math.tanh %159 : vector<8x128xf32>
    %161 = arith.mulf %156, %160 : vector<8x128xf32>
    %162 = tpu.concatenate %161, %105 in 1 : vector<8x128xf32>, vector<8x128xf32> -> vector<8x256xf32>
    %cst_46 = arith.constant dense<0.000000e+00> : vector<8x512xf32>
    %163 = tpu.matmul %162, %9, %cst_46 {dimension_numbers = #tpu.dot_dimension_numbers<[1], [0], [0], [1], [0, 0, 1, 1], [], []>} : vector<8x256xf32>, vector<256x512xf32>, vector<8x512xf32> -> vector<8x512xf32>
    %164 = arith.addf %163, %15 : vector<8x512xf32>
    %165 = vector.extract_strided_slice %164 {offsets = [0, 0], sizes = [8, 128], strides = [1, 1]} : vector<8x512xf32> to vector<8x128xf32>
    %166 = arith.negf %165 : vector<8x128xf32>
    %167 = math.exp %166 : vector<8x128xf32>
    %cst_47 = arith.constant 1.000000e+00 : f32
    %168 = vector.broadcast %cst_47 : f32 to vector<8x128xf32>
    %169 = arith.addf %168, %167 : vector<8x128xf32>
    %170 = arith.divf %168, %169 : vector<8x128xf32>
    %171 = vector.extract_strided_slice %164 {offsets = [0, 128], sizes = [8, 128], strides = [1, 1]} : vector<8x512xf32> to vector<8x128xf32>
    %172 = arith.negf %171 : vector<8x128xf32>
    %173 = math.exp %172 : vector<8x128xf32>
    %cst_48 = arith.constant 1.000000e+00 : f32
    %174 = vector.broadcast %cst_48 : f32 to vector<8x128xf32>
    %175 = arith.addf %174, %173 : vector<8x128xf32>
    %176 = arith.divf %174, %175 : vector<8x128xf32>
    %177 = vector.extract_strided_slice %164 {offsets = [0, 256], sizes = [8, 128], strides = [1, 1]} : vector<8x512xf32> to vector<8x128xf32>
    %178 = math.tanh %177 : vector<8x128xf32>
    %179 = vector.extract_strided_slice %164 {offsets = [0, 384], sizes = [8, 128], strides = [1, 1]} : vector<8x512xf32> to vector<8x128xf32>
    %180 = arith.negf %179 : vector<8x128xf32>
    %181 = math.exp %180 : vector<8x128xf32>
    %cst_49 = arith.constant 1.000000e+00 : f32
    %182 = vector.broadcast %cst_49 : f32 to vector<8x128xf32>
    %183 = arith.addf %182, %181 : vector<8x128xf32>
    %184 = arith.divf %182, %183 : vector<8x128xf32>
    %185 = arith.mulf %176, %103 : vector<8x128xf32>
    %186 = arith.mulf %170, %178 : vector<8x128xf32>
    %187 = arith.addf %185, %186 : vector<8x128xf32>
    %188 = math.tanh %187 : vector<8x128xf32>
    %189 = arith.mulf %184, %188 : vector<8x128xf32>
    %c16 = arith.constant 16 : index
    %c0_50 = arith.constant 0 : index
    %190 = vector.load %arg9[%c16, %c0_50] : memref<64x512xf32, #tpu.memory_space<vmem>>, vector<8x512xf32>
    %cst_51 = arith.constant dense<0.000000e+00> : vector<8x512xf32>
    %191 = tpu.matmul %133, %7, %cst_51 {dimension_numbers = #tpu.dot_dimension_numbers<[1], [0], [0], [1], [0, 0, 1, 1], [], []>} : vector<8x128xf32>, vector<128x512xf32>, vector<8x512xf32> -> vector<8x512xf32>
    %192 = arith.addf %190, %191 : vector<8x512xf32>
    %193 = vector.extract_strided_slice %192 {offsets = [0, 0], sizes = [8, 128], strides = [1, 1]} : vector<8x512xf32> to vector<8x128xf32>
    %194 = arith.negf %193 : vector<8x128xf32>
    %195 = math.exp %194 : vector<8x128xf32>
    %cst_52 = arith.constant 1.000000e+00 : f32
    %196 = vector.broadcast %cst_52 : f32 to vector<8x128xf32>
    %197 = arith.addf %196, %195 : vector<8x128xf32>
    %198 = arith.divf %196, %197 : vector<8x128xf32>
    %199 = vector.extract_strided_slice %192 {offsets = [0, 128], sizes = [8, 128], strides = [1, 1]} : vector<8x512xf32> to vector<8x128xf32>
    %200 = arith.negf %199 : vector<8x128xf32>
    %201 = math.exp %200 : vector<8x128xf32>
    %cst_53 = arith.constant 1.000000e+00 : f32
    %202 = vector.broadcast %cst_53 : f32 to vector<8x128xf32>
    %203 = arith.addf %202, %201 : vector<8x128xf32>
    %204 = arith.divf %202, %203 : vector<8x128xf32>
    %205 = vector.extract_strided_slice %192 {offsets = [0, 256], sizes = [8, 128], strides = [1, 1]} : vector<8x512xf32> to vector<8x128xf32>
    %206 = math.tanh %205 : vector<8x128xf32>
    %207 = vector.extract_strided_slice %192 {offsets = [0, 384], sizes = [8, 128], strides = [1, 1]} : vector<8x512xf32> to vector<8x128xf32>
    %208 = arith.negf %207 : vector<8x128xf32>
    %209 = math.exp %208 : vector<8x128xf32>
    %cst_54 = arith.constant 1.000000e+00 : f32
    %210 = vector.broadcast %cst_54 : f32 to vector<8x128xf32>
    %211 = arith.addf %210, %209 : vector<8x128xf32>
    %212 = arith.divf %210, %211 : vector<8x128xf32>
    %213 = arith.mulf %204, %131 : vector<8x128xf32>
    %214 = arith.mulf %198, %206 : vector<8x128xf32>
    %215 = arith.addf %213, %214 : vector<8x128xf32>
    %216 = math.tanh %215 : vector<8x128xf32>
    %217 = arith.mulf %212, %216 : vector<8x128xf32>
    %218 = tpu.concatenate %217, %161 in 1 : vector<8x128xf32>, vector<8x128xf32> -> vector<8x256xf32>
    %cst_55 = arith.constant dense<0.000000e+00> : vector<8x512xf32>
    %219 = tpu.matmul %218, %8, %cst_55 {dimension_numbers = #tpu.dot_dimension_numbers<[1], [0], [0], [1], [0, 0, 1, 1], [], []>} : vector<8x256xf32>, vector<256x512xf32>, vector<8x512xf32> -> vector<8x512xf32>
    %220 = arith.addf %219, %12 : vector<8x512xf32>
    %221 = vector.extract_strided_slice %220 {offsets = [0, 0], sizes = [8, 128], strides = [1, 1]} : vector<8x512xf32> to vector<8x128xf32>
    %222 = arith.negf %221 : vector<8x128xf32>
    %223 = math.exp %222 : vector<8x128xf32>
    %cst_56 = arith.constant 1.000000e+00 : f32
    %224 = vector.broadcast %cst_56 : f32 to vector<8x128xf32>
    %225 = arith.addf %224, %223 : vector<8x128xf32>
    %226 = arith.divf %224, %225 : vector<8x128xf32>
    %227 = vector.extract_strided_slice %220 {offsets = [0, 128], sizes = [8, 128], strides = [1, 1]} : vector<8x512xf32> to vector<8x128xf32>
    %228 = arith.negf %227 : vector<8x128xf32>
    %229 = math.exp %228 : vector<8x128xf32>
    %cst_57 = arith.constant 1.000000e+00 : f32
    %230 = vector.broadcast %cst_57 : f32 to vector<8x128xf32>
    %231 = arith.addf %230, %229 : vector<8x128xf32>
    %232 = arith.divf %230, %231 : vector<8x128xf32>
    %233 = vector.extract_strided_slice %220 {offsets = [0, 256], sizes = [8, 128], strides = [1, 1]} : vector<8x512xf32> to vector<8x128xf32>
    %234 = math.tanh %233 : vector<8x128xf32>
    %235 = vector.extract_strided_slice %220 {offsets = [0, 384], sizes = [8, 128], strides = [1, 1]} : vector<8x512xf32> to vector<8x128xf32>
    %236 = arith.negf %235 : vector<8x128xf32>
    %237 = math.exp %236 : vector<8x128xf32>
    %cst_58 = arith.constant 1.000000e+00 : f32
    %238 = vector.broadcast %cst_58 : f32 to vector<8x128xf32>
    %239 = arith.addf %238, %237 : vector<8x128xf32>
    %240 = arith.divf %238, %239 : vector<8x128xf32>
    %241 = arith.mulf %232, %159 : vector<8x128xf32>
    %242 = arith.mulf %226, %234 : vector<8x128xf32>
    %243 = arith.addf %241, %242 : vector<8x128xf32>
    %244 = math.tanh %243 : vector<8x128xf32>
    %245 = arith.mulf %240, %244 : vector<8x128xf32>
    %246 = tpu.concatenate %245, %189 in 1 : vector<8x128xf32>, vector<8x128xf32> -> vector<8x256xf32>
    %cst_59 = arith.constant dense<0.000000e+00> : vector<8x512xf32>
    %247 = tpu.matmul %246, %9, %cst_59 {dimension_numbers = #tpu.dot_dimension_numbers<[1], [0], [0], [1], [0, 0, 1, 1], [], []>} : vector<8x256xf32>, vector<256x512xf32>, vector<8x512xf32> -> vector<8x512xf32>
    %248 = arith.addf %247, %15 : vector<8x512xf32>
    %249 = vector.extract_strided_slice %248 {offsets = [0, 0], sizes = [8, 128], strides = [1, 1]} : vector<8x512xf32> to vector<8x128xf32>
    %250 = arith.negf %249 : vector<8x128xf32>
    %251 = math.exp %250 : vector<8x128xf32>
    %cst_60 = arith.constant 1.000000e+00 : f32
    %252 = vector.broadcast %cst_60 : f32 to vector<8x128xf32>
    %253 = arith.addf %252, %251 : vector<8x128xf32>
    %254 = arith.divf %252, %253 : vector<8x128xf32>
    %255 = vector.extract_strided_slice %248 {offsets = [0, 128], sizes = [8, 128], strides = [1, 1]} : vector<8x512xf32> to vector<8x128xf32>
    %256 = arith.negf %255 : vector<8x128xf32>
    %257 = math.exp %256 : vector<8x128xf32>
    %cst_61 = arith.constant 1.000000e+00 : f32
    %258 = vector.broadcast %cst_61 : f32 to vector<8x128xf32>
    %259 = arith.addf %258, %257 : vector<8x128xf32>
    %260 = arith.divf %258, %259 : vector<8x128xf32>
    %261 = vector.extract_strided_slice %248 {offsets = [0, 256], sizes = [8, 128], strides = [1, 1]} : vector<8x512xf32> to vector<8x128xf32>
    %262 = math.tanh %261 : vector<8x128xf32>
    %263 = vector.extract_strided_slice %248 {offsets = [0, 384], sizes = [8, 128], strides = [1, 1]} : vector<8x512xf32> to vector<8x128xf32>
    %264 = arith.negf %263 : vector<8x128xf32>
    %265 = math.exp %264 : vector<8x128xf32>
    %cst_62 = arith.constant 1.000000e+00 : f32
    %266 = vector.broadcast %cst_62 : f32 to vector<8x128xf32>
    %267 = arith.addf %266, %265 : vector<8x128xf32>
    %268 = arith.divf %266, %267 : vector<8x128xf32>
    %269 = arith.mulf %260, %187 : vector<8x128xf32>
    %270 = arith.mulf %254, %262 : vector<8x128xf32>
    %271 = arith.addf %269, %270 : vector<8x128xf32>
    %272 = math.tanh %271 : vector<8x128xf32>
    %273 = arith.mulf %268, %272 : vector<8x128xf32>
    %c24 = arith.constant 24 : index
    %c0_63 = arith.constant 0 : index
    %274 = vector.load %arg9[%c24, %c0_63] : memref<64x512xf32, #tpu.memory_space<vmem>>, vector<8x512xf32>
    %cst_64 = arith.constant dense<0.000000e+00> : vector<8x512xf32>
    %275 = tpu.matmul %217, %7, %cst_64 {dimension_numbers = #tpu.dot_dimension_numbers<[1], [0], [0], [1], [0, 0, 1, 1], [], []>} : vector<8x128xf32>, vector<128x512xf32>, vector<8x512xf32> -> vector<8x512xf32>
    %276 = arith.addf %274, %275 : vector<8x512xf32>
    %277 = vector.extract_strided_slice %276 {offsets = [0, 0], sizes = [8, 128], strides = [1, 1]} : vector<8x512xf32> to vector<8x128xf32>
    %278 = arith.negf %277 : vector<8x128xf32>
    %279 = math.exp %278 : vector<8x128xf32>
    %cst_65 = arith.constant 1.000000e+00 : f32
    %280 = vector.broadcast %cst_65 : f32 to vector<8x128xf32>
    %281 = arith.addf %280, %279 : vector<8x128xf32>
    %282 = arith.divf %280, %281 : vector<8x128xf32>
    %283 = vector.extract_strided_slice %276 {offsets = [0, 128], sizes = [8, 128], strides = [1, 1]} : vector<8x512xf32> to vector<8x128xf32>
    %284 = arith.negf %283 : vector<8x128xf32>
    %285 = math.exp %284 : vector<8x128xf32>
    %cst_66 = arith.constant 1.000000e+00 : f32
    %286 = vector.broadcast %cst_66 : f32 to vector<8x128xf32>
    %287 = arith.addf %286, %285 : vector<8x128xf32>
    %288 = arith.divf %286, %287 : vector<8x128xf32>
    %289 = vector.extract_strided_slice %276 {offsets = [0, 256], sizes = [8, 128], strides = [1, 1]} : vector<8x512xf32> to vector<8x128xf32>
    %290 = math.tanh %289 : vector<8x128xf32>
    %291 = vector.extract_strided_slice %276 {offsets = [0, 384], sizes = [8, 128], strides = [1, 1]} : vector<8x512xf32> to vector<8x128xf32>
    %292 = arith.negf %291 : vector<8x128xf32>
    %293 = math.exp %292 : vector<8x128xf32>
    %cst_67 = arith.constant 1.000000e+00 : f32
    %294 = vector.broadcast %cst_67 : f32 to vector<8x128xf32>
    %295 = arith.addf %294, %293 : vector<8x128xf32>
    %296 = arith.divf %294, %295 : vector<8x128xf32>
    %297 = arith.mulf %288, %215 : vector<8x128xf32>
    %298 = arith.mulf %282, %290 : vector<8x128xf32>
    %299 = arith.addf %297, %298 : vector<8x128xf32>
    %300 = math.tanh %299 : vector<8x128xf32>
    %301 = arith.mulf %296, %300 : vector<8x128xf32>
    %302 = tpu.concatenate %301, %245 in 1 : vector<8x128xf32>, vector<8x128xf32> -> vector<8x256xf32>
    %cst_68 = arith.constant dense<0.000000e+00> : vector<8x512xf32>
    %303 = tpu.matmul %302, %8, %cst_68 {dimension_numbers = #tpu.dot_dimension_numbers<[1], [0], [0], [1], [0, 0, 1, 1], [], []>} : vector<8x256xf32>, vector<256x512xf32>, vector<8x512xf32> -> vector<8x512xf32>
    %304 = arith.addf %303, %12 : vector<8x512xf32>
    %305 = vector.extract_strided_slice %304 {offsets = [0, 0], sizes = [8, 128], strides = [1, 1]} : vector<8x512xf32> to vector<8x128xf32>
    %306 = arith.negf %305 : vector<8x128xf32>
    %307 = math.exp %306 : vector<8x128xf32>
    %cst_69 = arith.constant 1.000000e+00 : f32
    %308 = vector.broadcast %cst_69 : f32 to vector<8x128xf32>
    %309 = arith.addf %308, %307 : vector<8x128xf32>
    %310 = arith.divf %308, %309 : vector<8x128xf32>
    %311 = vector.extract_strided_slice %304 {offsets = [0, 128], sizes = [8, 128], strides = [1, 1]} : vector<8x512xf32> to vector<8x128xf32>
    %312 = arith.negf %311 : vector<8x128xf32>
    %313 = math.exp %312 : vector<8x128xf32>
    %cst_70 = arith.constant 1.000000e+00 : f32
    %314 = vector.broadcast %cst_70 : f32 to vector<8x128xf32>
    %315 = arith.addf %314, %313 : vector<8x128xf32>
    %316 = arith.divf %314, %315 : vector<8x128xf32>
    %317 = vector.extract_strided_slice %304 {offsets = [0, 256], sizes = [8, 128], strides = [1, 1]} : vector<8x512xf32> to vector<8x128xf32>
    %318 = math.tanh %317 : vector<8x128xf32>
    %319 = vector.extract_strided_slice %304 {offsets = [0, 384], sizes = [8, 128], strides = [1, 1]} : vector<8x512xf32> to vector<8x128xf32>
    %320 = arith.negf %319 : vector<8x128xf32>
    %321 = math.exp %320 : vector<8x128xf32>
    %cst_71 = arith.constant 1.000000e+00 : f32
    %322 = vector.broadcast %cst_71 : f32 to vector<8x128xf32>
    %323 = arith.addf %322, %321 : vector<8x128xf32>
    %324 = arith.divf %322, %323 : vector<8x128xf32>
    %325 = arith.mulf %316, %243 : vector<8x128xf32>
    %326 = arith.mulf %310, %318 : vector<8x128xf32>
    %327 = arith.addf %325, %326 : vector<8x128xf32>
    %328 = math.tanh %327 : vector<8x128xf32>
    %329 = arith.mulf %324, %328 : vector<8x128xf32>
    %330 = tpu.concatenate %329, %273 in 1 : vector<8x128xf32>, vector<8x128xf32> -> vector<8x256xf32>
    %cst_72 = arith.constant dense<0.000000e+00> : vector<8x512xf32>
    %331 = tpu.matmul %330, %9, %cst_72 {dimension_numbers = #tpu.dot_dimension_numbers<[1], [0], [0], [1], [0, 0, 1, 1], [], []>} : vector<8x256xf32>, vector<256x512xf32>, vector<8x512xf32> -> vector<8x512xf32>
    %332 = arith.addf %331, %15 : vector<8x512xf32>
    %333 = vector.extract_strided_slice %332 {offsets = [0, 0], sizes = [8, 128], strides = [1, 1]} : vector<8x512xf32> to vector<8x128xf32>
    %334 = arith.negf %333 : vector<8x128xf32>
    %335 = math.exp %334 : vector<8x128xf32>
    %cst_73 = arith.constant 1.000000e+00 : f32
    %336 = vector.broadcast %cst_73 : f32 to vector<8x128xf32>
    %337 = arith.addf %336, %335 : vector<8x128xf32>
    %338 = arith.divf %336, %337 : vector<8x128xf32>
    %339 = vector.extract_strided_slice %332 {offsets = [0, 128], sizes = [8, 128], strides = [1, 1]} : vector<8x512xf32> to vector<8x128xf32>
    %340 = arith.negf %339 : vector<8x128xf32>
    %341 = math.exp %340 : vector<8x128xf32>
    %cst_74 = arith.constant 1.000000e+00 : f32
    %342 = vector.broadcast %cst_74 : f32 to vector<8x128xf32>
    %343 = arith.addf %342, %341 : vector<8x128xf32>
    %344 = arith.divf %342, %343 : vector<8x128xf32>
    %345 = vector.extract_strided_slice %332 {offsets = [0, 256], sizes = [8, 128], strides = [1, 1]} : vector<8x512xf32> to vector<8x128xf32>
    %346 = math.tanh %345 : vector<8x128xf32>
    %347 = vector.extract_strided_slice %332 {offsets = [0, 384], sizes = [8, 128], strides = [1, 1]} : vector<8x512xf32> to vector<8x128xf32>
    %348 = arith.negf %347 : vector<8x128xf32>
    %349 = math.exp %348 : vector<8x128xf32>
    %cst_75 = arith.constant 1.000000e+00 : f32
    %350 = vector.broadcast %cst_75 : f32 to vector<8x128xf32>
    %351 = arith.addf %350, %349 : vector<8x128xf32>
    %352 = arith.divf %350, %351 : vector<8x128xf32>
    %353 = arith.mulf %344, %271 : vector<8x128xf32>
    %354 = arith.mulf %338, %346 : vector<8x128xf32>
    %355 = arith.addf %353, %354 : vector<8x128xf32>
    %356 = math.tanh %355 : vector<8x128xf32>
    %357 = arith.mulf %352, %356 : vector<8x128xf32>
    %c32 = arith.constant 32 : index
    %c0_76 = arith.constant 0 : index
    %358 = vector.load %arg9[%c32, %c0_76] : memref<64x512xf32, #tpu.memory_space<vmem>>, vector<8x512xf32>
    %cst_77 = arith.constant dense<0.000000e+00> : vector<8x512xf32>
    %359 = tpu.matmul %301, %7, %cst_77 {dimension_numbers = #tpu.dot_dimension_numbers<[1], [0], [0], [1], [0, 0, 1, 1], [], []>} : vector<8x128xf32>, vector<128x512xf32>, vector<8x512xf32> -> vector<8x512xf32>
    %360 = arith.addf %358, %359 : vector<8x512xf32>
    %361 = vector.extract_strided_slice %360 {offsets = [0, 0], sizes = [8, 128], strides = [1, 1]} : vector<8x512xf32> to vector<8x128xf32>
    %362 = arith.negf %361 : vector<8x128xf32>
    %363 = math.exp %362 : vector<8x128xf32>
    %cst_78 = arith.constant 1.000000e+00 : f32
    %364 = vector.broadcast %cst_78 : f32 to vector<8x128xf32>
    %365 = arith.addf %364, %363 : vector<8x128xf32>
    %366 = arith.divf %364, %365 : vector<8x128xf32>
    %367 = vector.extract_strided_slice %360 {offsets = [0, 128], sizes = [8, 128], strides = [1, 1]} : vector<8x512xf32> to vector<8x128xf32>
    %368 = arith.negf %367 : vector<8x128xf32>
    %369 = math.exp %368 : vector<8x128xf32>
    %cst_79 = arith.constant 1.000000e+00 : f32
    %370 = vector.broadcast %cst_79 : f32 to vector<8x128xf32>
    %371 = arith.addf %370, %369 : vector<8x128xf32>
    %372 = arith.divf %370, %371 : vector<8x128xf32>
    %373 = vector.extract_strided_slice %360 {offsets = [0, 256], sizes = [8, 128], strides = [1, 1]} : vector<8x512xf32> to vector<8x128xf32>
    %374 = math.tanh %373 : vector<8x128xf32>
    %375 = vector.extract_strided_slice %360 {offsets = [0, 384], sizes = [8, 128], strides = [1, 1]} : vector<8x512xf32> to vector<8x128xf32>
    %376 = arith.negf %375 : vector<8x128xf32>
    %377 = math.exp %376 : vector<8x128xf32>
    %cst_80 = arith.constant 1.000000e+00 : f32
    %378 = vector.broadcast %cst_80 : f32 to vector<8x128xf32>
    %379 = arith.addf %378, %377 : vector<8x128xf32>
    %380 = arith.divf %378, %379 : vector<8x128xf32>
    %381 = arith.mulf %372, %299 : vector<8x128xf32>
    %382 = arith.mulf %366, %374 : vector<8x128xf32>
    %383 = arith.addf %381, %382 : vector<8x128xf32>
    %384 = math.tanh %383 : vector<8x128xf32>
    %385 = arith.mulf %380, %384 : vector<8x128xf32>
    %386 = tpu.concatenate %385, %329 in 1 : vector<8x128xf32>, vector<8x128xf32> -> vector<8x256xf32>
    %cst_81 = arith.constant dense<0.000000e+00> : vector<8x512xf32>
    %387 = tpu.matmul %386, %8, %cst_81 {dimension_numbers = #tpu.dot_dimension_numbers<[1], [0], [0], [1], [0, 0, 1, 1], [], []>} : vector<8x256xf32>, vector<256x512xf32>, vector<8x512xf32> -> vector<8x512xf32>
    %388 = arith.addf %387, %12 : vector<8x512xf32>
    %389 = vector.extract_strided_slice %388 {offsets = [0, 0], sizes = [8, 128], strides = [1, 1]} : vector<8x512xf32> to vector<8x128xf32>
    %390 = arith.negf %389 : vector<8x128xf32>
    %391 = math.exp %390 : vector<8x128xf32>
    %cst_82 = arith.constant 1.000000e+00 : f32
    %392 = vector.broadcast %cst_82 : f32 to vector<8x128xf32>
    %393 = arith.addf %392, %391 : vector<8x128xf32>
    %394 = arith.divf %392, %393 : vector<8x128xf32>
    %395 = vector.extract_strided_slice %388 {offsets = [0, 128], sizes = [8, 128], strides = [1, 1]} : vector<8x512xf32> to vector<8x128xf32>
    %396 = arith.negf %395 : vector<8x128xf32>
    %397 = math.exp %396 : vector<8x128xf32>
    %cst_83 = arith.constant 1.000000e+00 : f32
    %398 = vector.broadcast %cst_83 : f32 to vector<8x128xf32>
    %399 = arith.addf %398, %397 : vector<8x128xf32>
    %400 = arith.divf %398, %399 : vector<8x128xf32>
    %401 = vector.extract_strided_slice %388 {offsets = [0, 256], sizes = [8, 128], strides = [1, 1]} : vector<8x512xf32> to vector<8x128xf32>
    %402 = math.tanh %401 : vector<8x128xf32>
    %403 = vector.extract_strided_slice %388 {offsets = [0, 384], sizes = [8, 128], strides = [1, 1]} : vector<8x512xf32> to vector<8x128xf32>
    %404 = arith.negf %403 : vector<8x128xf32>
    %405 = math.exp %404 : vector<8x128xf32>
    %cst_84 = arith.constant 1.000000e+00 : f32
    %406 = vector.broadcast %cst_84 : f32 to vector<8x128xf32>
    %407 = arith.addf %406, %405 : vector<8x128xf32>
    %408 = arith.divf %406, %407 : vector<8x128xf32>
    %409 = arith.mulf %400, %327 : vector<8x128xf32>
    %410 = arith.mulf %394, %402 : vector<8x128xf32>
    %411 = arith.addf %409, %410 : vector<8x128xf32>
    %412 = math.tanh %411 : vector<8x128xf32>
    %413 = arith.mulf %408, %412 : vector<8x128xf32>
    %414 = tpu.concatenate %413, %357 in 1 : vector<8x128xf32>, vector<8x128xf32> -> vector<8x256xf32>
    %cst_85 = arith.constant dense<0.000000e+00> : vector<8x512xf32>
    %415 = tpu.matmul %414, %9, %cst_85 {dimension_numbers = #tpu.dot_dimension_numbers<[1], [0], [0], [1], [0, 0, 1, 1], [], []>} : vector<8x256xf32>, vector<256x512xf32>, vector<8x512xf32> -> vector<8x512xf32>
    %416 = arith.addf %415, %15 : vector<8x512xf32>
    %417 = vector.extract_strided_slice %416 {offsets = [0, 0], sizes = [8, 128], strides = [1, 1]} : vector<8x512xf32> to vector<8x128xf32>
    %418 = arith.negf %417 : vector<8x128xf32>
    %419 = math.exp %418 : vector<8x128xf32>
    %cst_86 = arith.constant 1.000000e+00 : f32
    %420 = vector.broadcast %cst_86 : f32 to vector<8x128xf32>
    %421 = arith.addf %420, %419 : vector<8x128xf32>
    %422 = arith.divf %420, %421 : vector<8x128xf32>
    %423 = vector.extract_strided_slice %416 {offsets = [0, 128], sizes = [8, 128], strides = [1, 1]} : vector<8x512xf32> to vector<8x128xf32>
    %424 = arith.negf %423 : vector<8x128xf32>
    %425 = math.exp %424 : vector<8x128xf32>
    %cst_87 = arith.constant 1.000000e+00 : f32
    %426 = vector.broadcast %cst_87 : f32 to vector<8x128xf32>
    %427 = arith.addf %426, %425 : vector<8x128xf32>
    %428 = arith.divf %426, %427 : vector<8x128xf32>
    %429 = vector.extract_strided_slice %416 {offsets = [0, 256], sizes = [8, 128], strides = [1, 1]} : vector<8x512xf32> to vector<8x128xf32>
    %430 = math.tanh %429 : vector<8x128xf32>
    %431 = vector.extract_strided_slice %416 {offsets = [0, 384], sizes = [8, 128], strides = [1, 1]} : vector<8x512xf32> to vector<8x128xf32>
    %432 = arith.negf %431 : vector<8x128xf32>
    %433 = math.exp %432 : vector<8x128xf32>
    %cst_88 = arith.constant 1.000000e+00 : f32
    %434 = vector.broadcast %cst_88 : f32 to vector<8x128xf32>
    %435 = arith.addf %434, %433 : vector<8x128xf32>
    %436 = arith.divf %434, %435 : vector<8x128xf32>
    %437 = arith.mulf %428, %355 : vector<8x128xf32>
    %438 = arith.mulf %422, %430 : vector<8x128xf32>
    %439 = arith.addf %437, %438 : vector<8x128xf32>
    %440 = math.tanh %439 : vector<8x128xf32>
    %441 = arith.mulf %436, %440 : vector<8x128xf32>
    %c40 = arith.constant 40 : index
    %c0_89 = arith.constant 0 : index
    %442 = vector.load %arg9[%c40, %c0_89] : memref<64x512xf32, #tpu.memory_space<vmem>>, vector<8x512xf32>
    %cst_90 = arith.constant dense<0.000000e+00> : vector<8x512xf32>
    %443 = tpu.matmul %385, %7, %cst_90 {dimension_numbers = #tpu.dot_dimension_numbers<[1], [0], [0], [1], [0, 0, 1, 1], [], []>} : vector<8x128xf32>, vector<128x512xf32>, vector<8x512xf32> -> vector<8x512xf32>
    %444 = arith.addf %442, %443 : vector<8x512xf32>
    %445 = vector.extract_strided_slice %444 {offsets = [0, 0], sizes = [8, 128], strides = [1, 1]} : vector<8x512xf32> to vector<8x128xf32>
    %446 = arith.negf %445 : vector<8x128xf32>
    %447 = math.exp %446 : vector<8x128xf32>
    %cst_91 = arith.constant 1.000000e+00 : f32
    %448 = vector.broadcast %cst_91 : f32 to vector<8x128xf32>
    %449 = arith.addf %448, %447 : vector<8x128xf32>
    %450 = arith.divf %448, %449 : vector<8x128xf32>
    %451 = vector.extract_strided_slice %444 {offsets = [0, 128], sizes = [8, 128], strides = [1, 1]} : vector<8x512xf32> to vector<8x128xf32>
    %452 = arith.negf %451 : vector<8x128xf32>
    %453 = math.exp %452 : vector<8x128xf32>
    %cst_92 = arith.constant 1.000000e+00 : f32
    %454 = vector.broadcast %cst_92 : f32 to vector<8x128xf32>
    %455 = arith.addf %454, %453 : vector<8x128xf32>
    %456 = arith.divf %454, %455 : vector<8x128xf32>
    %457 = vector.extract_strided_slice %444 {offsets = [0, 256], sizes = [8, 128], strides = [1, 1]} : vector<8x512xf32> to vector<8x128xf32>
    %458 = math.tanh %457 : vector<8x128xf32>
    %459 = vector.extract_strided_slice %444 {offsets = [0, 384], sizes = [8, 128], strides = [1, 1]} : vector<8x512xf32> to vector<8x128xf32>
    %460 = arith.negf %459 : vector<8x128xf32>
    %461 = math.exp %460 : vector<8x128xf32>
    %cst_93 = arith.constant 1.000000e+00 : f32
    %462 = vector.broadcast %cst_93 : f32 to vector<8x128xf32>
    %463 = arith.addf %462, %461 : vector<8x128xf32>
    %464 = arith.divf %462, %463 : vector<8x128xf32>
    %465 = arith.mulf %456, %383 : vector<8x128xf32>
    %466 = arith.mulf %450, %458 : vector<8x128xf32>
    %467 = arith.addf %465, %466 : vector<8x128xf32>
    %468 = math.tanh %467 : vector<8x128xf32>
    %469 = arith.mulf %464, %468 : vector<8x128xf32>
    %470 = tpu.concatenate %469, %413 in 1 : vector<8x128xf32>, vector<8x128xf32> -> vector<8x256xf32>
    %cst_94 = arith.constant dense<0.000000e+00> : vector<8x512xf32>
    %471 = tpu.matmul %470, %8, %cst_94 {dimension_numbers = #tpu.dot_dimension_numbers<[1], [0], [0], [1], [0, 0, 1, 1], [], []>} : vector<8x256xf32>, vector<256x512xf32>, vector<8x512xf32> -> vector<8x512xf32>
    %472 = arith.addf %471, %12 : vector<8x512xf32>
    %473 = vector.extract_strided_slice %472 {offsets = [0, 0], sizes = [8, 128], strides = [1, 1]} : vector<8x512xf32> to vector<8x128xf32>
    %474 = arith.negf %473 : vector<8x128xf32>
    %475 = math.exp %474 : vector<8x128xf32>
    %cst_95 = arith.constant 1.000000e+00 : f32
    %476 = vector.broadcast %cst_95 : f32 to vector<8x128xf32>
    %477 = arith.addf %476, %475 : vector<8x128xf32>
    %478 = arith.divf %476, %477 : vector<8x128xf32>
    %479 = vector.extract_strided_slice %472 {offsets = [0, 128], sizes = [8, 128], strides = [1, 1]} : vector<8x512xf32> to vector<8x128xf32>
    %480 = arith.negf %479 : vector<8x128xf32>
    %481 = math.exp %480 : vector<8x128xf32>
    %cst_96 = arith.constant 1.000000e+00 : f32
    %482 = vector.broadcast %cst_96 : f32 to vector<8x128xf32>
    %483 = arith.addf %482, %481 : vector<8x128xf32>
    %484 = arith.divf %482, %483 : vector<8x128xf32>
    %485 = vector.extract_strided_slice %472 {offsets = [0, 256], sizes = [8, 128], strides = [1, 1]} : vector<8x512xf32> to vector<8x128xf32>
    %486 = math.tanh %485 : vector<8x128xf32>
    %487 = vector.extract_strided_slice %472 {offsets = [0, 384], sizes = [8, 128], strides = [1, 1]} : vector<8x512xf32> to vector<8x128xf32>
    %488 = arith.negf %487 : vector<8x128xf32>
    %489 = math.exp %488 : vector<8x128xf32>
    %cst_97 = arith.constant 1.000000e+00 : f32
    %490 = vector.broadcast %cst_97 : f32 to vector<8x128xf32>
    %491 = arith.addf %490, %489 : vector<8x128xf32>
    %492 = arith.divf %490, %491 : vector<8x128xf32>
    %493 = arith.mulf %484, %411 : vector<8x128xf32>
    %494 = arith.mulf %478, %486 : vector<8x128xf32>
    %495 = arith.addf %493, %494 : vector<8x128xf32>
    %496 = math.tanh %495 : vector<8x128xf32>
    %497 = arith.mulf %492, %496 : vector<8x128xf32>
    %498 = tpu.concatenate %497, %441 in 1 : vector<8x128xf32>, vector<8x128xf32> -> vector<8x256xf32>
    %cst_98 = arith.constant dense<0.000000e+00> : vector<8x512xf32>
    %499 = tpu.matmul %498, %9, %cst_98 {dimension_numbers = #tpu.dot_dimension_numbers<[1], [0], [0], [1], [0, 0, 1, 1], [], []>} : vector<8x256xf32>, vector<256x512xf32>, vector<8x512xf32> -> vector<8x512xf32>
    %500 = arith.addf %499, %15 : vector<8x512xf32>
    %501 = vector.extract_strided_slice %500 {offsets = [0, 0], sizes = [8, 128], strides = [1, 1]} : vector<8x512xf32> to vector<8x128xf32>
    %502 = arith.negf %501 : vector<8x128xf32>
    %503 = math.exp %502 : vector<8x128xf32>
    %cst_99 = arith.constant 1.000000e+00 : f32
    %504 = vector.broadcast %cst_99 : f32 to vector<8x128xf32>
    %505 = arith.addf %504, %503 : vector<8x128xf32>
    %506 = arith.divf %504, %505 : vector<8x128xf32>
    %507 = vector.extract_strided_slice %500 {offsets = [0, 128], sizes = [8, 128], strides = [1, 1]} : vector<8x512xf32> to vector<8x128xf32>
    %508 = arith.negf %507 : vector<8x128xf32>
    %509 = math.exp %508 : vector<8x128xf32>
    %cst_100 = arith.constant 1.000000e+00 : f32
    %510 = vector.broadcast %cst_100 : f32 to vector<8x128xf32>
    %511 = arith.addf %510, %509 : vector<8x128xf32>
    %512 = arith.divf %510, %511 : vector<8x128xf32>
    %513 = vector.extract_strided_slice %500 {offsets = [0, 256], sizes = [8, 128], strides = [1, 1]} : vector<8x512xf32> to vector<8x128xf32>
    %514 = math.tanh %513 : vector<8x128xf32>
    %515 = vector.extract_strided_slice %500 {offsets = [0, 384], sizes = [8, 128], strides = [1, 1]} : vector<8x512xf32> to vector<8x128xf32>
    %516 = arith.negf %515 : vector<8x128xf32>
    %517 = math.exp %516 : vector<8x128xf32>
    %cst_101 = arith.constant 1.000000e+00 : f32
    %518 = vector.broadcast %cst_101 : f32 to vector<8x128xf32>
    %519 = arith.addf %518, %517 : vector<8x128xf32>
    %520 = arith.divf %518, %519 : vector<8x128xf32>
    %521 = arith.mulf %512, %439 : vector<8x128xf32>
    %522 = arith.mulf %506, %514 : vector<8x128xf32>
    %523 = arith.addf %521, %522 : vector<8x128xf32>
    %524 = math.tanh %523 : vector<8x128xf32>
    %525 = arith.mulf %520, %524 : vector<8x128xf32>
    %c48 = arith.constant 48 : index
    %c0_102 = arith.constant 0 : index
    %526 = vector.load %arg9[%c48, %c0_102] : memref<64x512xf32, #tpu.memory_space<vmem>>, vector<8x512xf32>
    %cst_103 = arith.constant dense<0.000000e+00> : vector<8x512xf32>
    %527 = tpu.matmul %469, %7, %cst_103 {dimension_numbers = #tpu.dot_dimension_numbers<[1], [0], [0], [1], [0, 0, 1, 1], [], []>} : vector<8x128xf32>, vector<128x512xf32>, vector<8x512xf32> -> vector<8x512xf32>
    %528 = arith.addf %526, %527 : vector<8x512xf32>
    %529 = vector.extract_strided_slice %528 {offsets = [0, 0], sizes = [8, 128], strides = [1, 1]} : vector<8x512xf32> to vector<8x128xf32>
    %530 = arith.negf %529 : vector<8x128xf32>
    %531 = math.exp %530 : vector<8x128xf32>
    %cst_104 = arith.constant 1.000000e+00 : f32
    %532 = vector.broadcast %cst_104 : f32 to vector<8x128xf32>
    %533 = arith.addf %532, %531 : vector<8x128xf32>
    %534 = arith.divf %532, %533 : vector<8x128xf32>
    %535 = vector.extract_strided_slice %528 {offsets = [0, 128], sizes = [8, 128], strides = [1, 1]} : vector<8x512xf32> to vector<8x128xf32>
    %536 = arith.negf %535 : vector<8x128xf32>
    %537 = math.exp %536 : vector<8x128xf32>
    %cst_105 = arith.constant 1.000000e+00 : f32
    %538 = vector.broadcast %cst_105 : f32 to vector<8x128xf32>
    %539 = arith.addf %538, %537 : vector<8x128xf32>
    %540 = arith.divf %538, %539 : vector<8x128xf32>
    %541 = vector.extract_strided_slice %528 {offsets = [0, 256], sizes = [8, 128], strides = [1, 1]} : vector<8x512xf32> to vector<8x128xf32>
    %542 = math.tanh %541 : vector<8x128xf32>
    %543 = vector.extract_strided_slice %528 {offsets = [0, 384], sizes = [8, 128], strides = [1, 1]} : vector<8x512xf32> to vector<8x128xf32>
    %544 = arith.negf %543 : vector<8x128xf32>
    %545 = math.exp %544 : vector<8x128xf32>
    %cst_106 = arith.constant 1.000000e+00 : f32
    %546 = vector.broadcast %cst_106 : f32 to vector<8x128xf32>
    %547 = arith.addf %546, %545 : vector<8x128xf32>
    %548 = arith.divf %546, %547 : vector<8x128xf32>
    %549 = arith.mulf %540, %467 : vector<8x128xf32>
    %550 = arith.mulf %534, %542 : vector<8x128xf32>
    %551 = arith.addf %549, %550 : vector<8x128xf32>
    %552 = math.tanh %551 : vector<8x128xf32>
    %553 = arith.mulf %548, %552 : vector<8x128xf32>
    %554 = tpu.concatenate %553, %497 in 1 : vector<8x128xf32>, vector<8x128xf32> -> vector<8x256xf32>
    %cst_107 = arith.constant dense<0.000000e+00> : vector<8x512xf32>
    %555 = tpu.matmul %554, %8, %cst_107 {dimension_numbers = #tpu.dot_dimension_numbers<[1], [0], [0], [1], [0, 0, 1, 1], [], []>} : vector<8x256xf32>, vector<256x512xf32>, vector<8x512xf32> -> vector<8x512xf32>
    %556 = arith.addf %555, %12 : vector<8x512xf32>
    %557 = vector.extract_strided_slice %556 {offsets = [0, 0], sizes = [8, 128], strides = [1, 1]} : vector<8x512xf32> to vector<8x128xf32>
    %558 = arith.negf %557 : vector<8x128xf32>
    %559 = math.exp %558 : vector<8x128xf32>
    %cst_108 = arith.constant 1.000000e+00 : f32
    %560 = vector.broadcast %cst_108 : f32 to vector<8x128xf32>
    %561 = arith.addf %560, %559 : vector<8x128xf32>
    %562 = arith.divf %560, %561 : vector<8x128xf32>
    %563 = vector.extract_strided_slice %556 {offsets = [0, 128], sizes = [8, 128], strides = [1, 1]} : vector<8x512xf32> to vector<8x128xf32>
    %564 = arith.negf %563 : vector<8x128xf32>
    %565 = math.exp %564 : vector<8x128xf32>
    %cst_109 = arith.constant 1.000000e+00 : f32
    %566 = vector.broadcast %cst_109 : f32 to vector<8x128xf32>
    %567 = arith.addf %566, %565 : vector<8x128xf32>
    %568 = arith.divf %566, %567 : vector<8x128xf32>
    %569 = vector.extract_strided_slice %556 {offsets = [0, 256], sizes = [8, 128], strides = [1, 1]} : vector<8x512xf32> to vector<8x128xf32>
    %570 = math.tanh %569 : vector<8x128xf32>
    %571 = vector.extract_strided_slice %556 {offsets = [0, 384], sizes = [8, 128], strides = [1, 1]} : vector<8x512xf32> to vector<8x128xf32>
    %572 = arith.negf %571 : vector<8x128xf32>
    %573 = math.exp %572 : vector<8x128xf32>
    %cst_110 = arith.constant 1.000000e+00 : f32
    %574 = vector.broadcast %cst_110 : f32 to vector<8x128xf32>
    %575 = arith.addf %574, %573 : vector<8x128xf32>
    %576 = arith.divf %574, %575 : vector<8x128xf32>
    %577 = arith.mulf %568, %495 : vector<8x128xf32>
    %578 = arith.mulf %562, %570 : vector<8x128xf32>
    %579 = arith.addf %577, %578 : vector<8x128xf32>
    %580 = math.tanh %579 : vector<8x128xf32>
    %581 = arith.mulf %576, %580 : vector<8x128xf32>
    %582 = tpu.concatenate %581, %525 in 1 : vector<8x128xf32>, vector<8x128xf32> -> vector<8x256xf32>
    %cst_111 = arith.constant dense<0.000000e+00> : vector<8x512xf32>
    %583 = tpu.matmul %582, %9, %cst_111 {dimension_numbers = #tpu.dot_dimension_numbers<[1], [0], [0], [1], [0, 0, 1, 1], [], []>} : vector<8x256xf32>, vector<256x512xf32>, vector<8x512xf32> -> vector<8x512xf32>
    %584 = arith.addf %583, %15 : vector<8x512xf32>
    %585 = vector.extract_strided_slice %584 {offsets = [0, 0], sizes = [8, 128], strides = [1, 1]} : vector<8x512xf32> to vector<8x128xf32>
    %586 = arith.negf %585 : vector<8x128xf32>
    %587 = math.exp %586 : vector<8x128xf32>
    %cst_112 = arith.constant 1.000000e+00 : f32
    %588 = vector.broadcast %cst_112 : f32 to vector<8x128xf32>
    %589 = arith.addf %588, %587 : vector<8x128xf32>
    %590 = arith.divf %588, %589 : vector<8x128xf32>
    %591 = vector.extract_strided_slice %584 {offsets = [0, 128], sizes = [8, 128], strides = [1, 1]} : vector<8x512xf32> to vector<8x128xf32>
    %592 = arith.negf %591 : vector<8x128xf32>
    %593 = math.exp %592 : vector<8x128xf32>
    %cst_113 = arith.constant 1.000000e+00 : f32
    %594 = vector.broadcast %cst_113 : f32 to vector<8x128xf32>
    %595 = arith.addf %594, %593 : vector<8x128xf32>
    %596 = arith.divf %594, %595 : vector<8x128xf32>
    %597 = vector.extract_strided_slice %584 {offsets = [0, 256], sizes = [8, 128], strides = [1, 1]} : vector<8x512xf32> to vector<8x128xf32>
    %598 = math.tanh %597 : vector<8x128xf32>
    %599 = vector.extract_strided_slice %584 {offsets = [0, 384], sizes = [8, 128], strides = [1, 1]} : vector<8x512xf32> to vector<8x128xf32>
    %600 = arith.negf %599 : vector<8x128xf32>
    %601 = math.exp %600 : vector<8x128xf32>
    %cst_114 = arith.constant 1.000000e+00 : f32
    %602 = vector.broadcast %cst_114 : f32 to vector<8x128xf32>
    %603 = arith.addf %602, %601 : vector<8x128xf32>
    %604 = arith.divf %602, %603 : vector<8x128xf32>
    %605 = arith.mulf %596, %523 : vector<8x128xf32>
    %606 = arith.mulf %590, %598 : vector<8x128xf32>
    %607 = arith.addf %605, %606 : vector<8x128xf32>
    %608 = math.tanh %607 : vector<8x128xf32>
    %609 = arith.mulf %604, %608 : vector<8x128xf32>
    %c56 = arith.constant 56 : index
    %c0_115 = arith.constant 0 : index
    %610 = vector.load %arg9[%c56, %c0_115] : memref<64x512xf32, #tpu.memory_space<vmem>>, vector<8x512xf32>
    %cst_116 = arith.constant dense<0.000000e+00> : vector<8x512xf32>
    %611 = tpu.matmul %553, %7, %cst_116 {dimension_numbers = #tpu.dot_dimension_numbers<[1], [0], [0], [1], [0, 0, 1, 1], [], []>} : vector<8x128xf32>, vector<128x512xf32>, vector<8x512xf32> -> vector<8x512xf32>
    %612 = arith.addf %610, %611 : vector<8x512xf32>
    %613 = vector.extract_strided_slice %612 {offsets = [0, 0], sizes = [8, 128], strides = [1, 1]} : vector<8x512xf32> to vector<8x128xf32>
    %614 = arith.negf %613 : vector<8x128xf32>
    %615 = math.exp %614 : vector<8x128xf32>
    %cst_117 = arith.constant 1.000000e+00 : f32
    %616 = vector.broadcast %cst_117 : f32 to vector<8x128xf32>
    %617 = arith.addf %616, %615 : vector<8x128xf32>
    %618 = arith.divf %616, %617 : vector<8x128xf32>
    %619 = vector.extract_strided_slice %612 {offsets = [0, 128], sizes = [8, 128], strides = [1, 1]} : vector<8x512xf32> to vector<8x128xf32>
    %620 = arith.negf %619 : vector<8x128xf32>
    %621 = math.exp %620 : vector<8x128xf32>
    %cst_118 = arith.constant 1.000000e+00 : f32
    %622 = vector.broadcast %cst_118 : f32 to vector<8x128xf32>
    %623 = arith.addf %622, %621 : vector<8x128xf32>
    %624 = arith.divf %622, %623 : vector<8x128xf32>
    %625 = vector.extract_strided_slice %612 {offsets = [0, 256], sizes = [8, 128], strides = [1, 1]} : vector<8x512xf32> to vector<8x128xf32>
    %626 = math.tanh %625 : vector<8x128xf32>
    %627 = vector.extract_strided_slice %612 {offsets = [0, 384], sizes = [8, 128], strides = [1, 1]} : vector<8x512xf32> to vector<8x128xf32>
    %628 = arith.negf %627 : vector<8x128xf32>
    %629 = math.exp %628 : vector<8x128xf32>
    %cst_119 = arith.constant 1.000000e+00 : f32
    %630 = vector.broadcast %cst_119 : f32 to vector<8x128xf32>
    %631 = arith.addf %630, %629 : vector<8x128xf32>
    %632 = arith.divf %630, %631 : vector<8x128xf32>
    %633 = arith.mulf %624, %551 : vector<8x128xf32>
    %634 = arith.mulf %618, %626 : vector<8x128xf32>
    %635 = arith.addf %633, %634 : vector<8x128xf32>
    %636 = math.tanh %635 : vector<8x128xf32>
    %637 = arith.mulf %632, %636 : vector<8x128xf32>
    %638 = tpu.concatenate %637, %581 in 1 : vector<8x128xf32>, vector<8x128xf32> -> vector<8x256xf32>
    %cst_120 = arith.constant dense<0.000000e+00> : vector<8x512xf32>
    %639 = tpu.matmul %638, %8, %cst_120 {dimension_numbers = #tpu.dot_dimension_numbers<[1], [0], [0], [1], [0, 0, 1, 1], [], []>} : vector<8x256xf32>, vector<256x512xf32>, vector<8x512xf32> -> vector<8x512xf32>
    %640 = arith.addf %639, %12 : vector<8x512xf32>
    %641 = vector.extract_strided_slice %640 {offsets = [0, 0], sizes = [8, 128], strides = [1, 1]} : vector<8x512xf32> to vector<8x128xf32>
    %642 = arith.negf %641 : vector<8x128xf32>
    %643 = math.exp %642 : vector<8x128xf32>
    %cst_121 = arith.constant 1.000000e+00 : f32
    %644 = vector.broadcast %cst_121 : f32 to vector<8x128xf32>
    %645 = arith.addf %644, %643 : vector<8x128xf32>
    %646 = arith.divf %644, %645 : vector<8x128xf32>
    %647 = vector.extract_strided_slice %640 {offsets = [0, 128], sizes = [8, 128], strides = [1, 1]} : vector<8x512xf32> to vector<8x128xf32>
    %648 = arith.negf %647 : vector<8x128xf32>
    %649 = math.exp %648 : vector<8x128xf32>
    %cst_122 = arith.constant 1.000000e+00 : f32
    %650 = vector.broadcast %cst_122 : f32 to vector<8x128xf32>
    %651 = arith.addf %650, %649 : vector<8x128xf32>
    %652 = arith.divf %650, %651 : vector<8x128xf32>
    %653 = vector.extract_strided_slice %640 {offsets = [0, 256], sizes = [8, 128], strides = [1, 1]} : vector<8x512xf32> to vector<8x128xf32>
    %654 = math.tanh %653 : vector<8x128xf32>
    %655 = vector.extract_strided_slice %640 {offsets = [0, 384], sizes = [8, 128], strides = [1, 1]} : vector<8x512xf32> to vector<8x128xf32>
    %656 = arith.negf %655 : vector<8x128xf32>
    %657 = math.exp %656 : vector<8x128xf32>
    %cst_123 = arith.constant 1.000000e+00 : f32
    %658 = vector.broadcast %cst_123 : f32 to vector<8x128xf32>
    %659 = arith.addf %658, %657 : vector<8x128xf32>
    %660 = arith.divf %658, %659 : vector<8x128xf32>
    %661 = arith.mulf %652, %579 : vector<8x128xf32>
    %662 = arith.mulf %646, %654 : vector<8x128xf32>
    %663 = arith.addf %661, %662 : vector<8x128xf32>
    %664 = math.tanh %663 : vector<8x128xf32>
    %665 = arith.mulf %660, %664 : vector<8x128xf32>
    %666 = tpu.concatenate %665, %609 in 1 : vector<8x128xf32>, vector<8x128xf32> -> vector<8x256xf32>
    %cst_124 = arith.constant dense<0.000000e+00> : vector<8x512xf32>
    %667 = tpu.matmul %666, %9, %cst_124 {dimension_numbers = #tpu.dot_dimension_numbers<[1], [0], [0], [1], [0, 0, 1, 1], [], []>} : vector<8x256xf32>, vector<256x512xf32>, vector<8x512xf32> -> vector<8x512xf32>
    %668 = arith.addf %667, %15 : vector<8x512xf32>
    %669 = vector.extract_strided_slice %668 {offsets = [0, 0], sizes = [8, 128], strides = [1, 1]} : vector<8x512xf32> to vector<8x128xf32>
    %670 = arith.negf %669 : vector<8x128xf32>
    %671 = math.exp %670 : vector<8x128xf32>
    %cst_125 = arith.constant 1.000000e+00 : f32
    %672 = vector.broadcast %cst_125 : f32 to vector<8x128xf32>
    %673 = arith.addf %672, %671 : vector<8x128xf32>
    %674 = arith.divf %672, %673 : vector<8x128xf32>
    %675 = vector.extract_strided_slice %668 {offsets = [0, 128], sizes = [8, 128], strides = [1, 1]} : vector<8x512xf32> to vector<8x128xf32>
    %676 = arith.negf %675 : vector<8x128xf32>
    %677 = math.exp %676 : vector<8x128xf32>
    %cst_126 = arith.constant 1.000000e+00 : f32
    %678 = vector.broadcast %cst_126 : f32 to vector<8x128xf32>
    %679 = arith.addf %678, %677 : vector<8x128xf32>
    %680 = arith.divf %678, %679 : vector<8x128xf32>
    %681 = vector.extract_strided_slice %668 {offsets = [0, 256], sizes = [8, 128], strides = [1, 1]} : vector<8x512xf32> to vector<8x128xf32>
    %682 = math.tanh %681 : vector<8x128xf32>
    %683 = vector.extract_strided_slice %668 {offsets = [0, 384], sizes = [8, 128], strides = [1, 1]} : vector<8x512xf32> to vector<8x128xf32>
    %684 = arith.negf %683 : vector<8x128xf32>
    %685 = math.exp %684 : vector<8x128xf32>
    %cst_127 = arith.constant 1.000000e+00 : f32
    %686 = vector.broadcast %cst_127 : f32 to vector<8x128xf32>
    %687 = arith.addf %686, %685 : vector<8x128xf32>
    %688 = arith.divf %686, %687 : vector<8x128xf32>
    %689 = arith.mulf %680, %607 : vector<8x128xf32>
    %690 = arith.mulf %674, %682 : vector<8x128xf32>
    %691 = arith.addf %689, %690 : vector<8x128xf32>
    %692 = math.tanh %691 : vector<8x128xf32>
    %693 = arith.mulf %688, %692 : vector<8x128xf32>
    %c0_128 = arith.constant 0 : index
    %c0_129 = arith.constant 0 : index
    %694 = vector.load %arg8[%c0_128, %c0_129] : memref<8x128xf32, #tpu.memory_space<vmem>>, vector<8x128xf32>
    tpu.vector_store %arg8[%c0_128, %c0_129], %693 {strides = array<i32>} : memref<8x128xf32, #tpu.memory_space<vmem>>, vector<8x128xf32>,
    return
  }
}

</mosaic_0001>

<bundles_post_ra>
// kernel: tpu_custom_call.1
= control target key start
LH: loop header
LB: loop body
LE: loop exit
PB: predicated region body
PF: predicated region fallthrough
CT: control target
= control target key end

     0   :  { %13 = vsyncpa [#allocation4], 0  ;;  %s10110_s0 = inlined_call_operand.vmem [shape: f32[64,4], index: 0, kind: input, shape index: {}]   ;;  %s10111_s1 = inlined_call_operand.vmem [shape: f32[4,512], index: 1, kind: input, shape index: {}]   ;;  %s10112_s2 = inlined_call_operand.hbm [shape: f32[128,512], index: 2, kind: input, shape index: {}]   ;;  %s10113_s3 = inlined_call_operand.vmem [shape: f32[1,512], index: 3, kind: input, shape index: {}]   ;;  %s10114_s4 = inlined_call_operand.hbm [shape: f32[256,512], index: 4, kind: input, shape index: {}]   ;;  %s10115_s5 = inlined_call_operand.vmem [shape: f32[1,512], index: 5, kind: input, shape index: {}]   ;;  %s10116_s6 = inlined_call_operand.hbm [shape: f32[256,512], index: 6, kind: input, shape index: {}]   ;;  %s10117_s7 = inlined_call_operand.vmem [shape: f32[1,512], index: 7, kind: input, shape index: {}]   ;;  %s10118_s8 = inlined_call_operand.hbm [shape: f32[8,128], index: 8, kind: output, shape index: {}]  }
   0x1   :  { %14 = vsyncpa [#allocation7], 0 }
   0x2   :  { %15 = vsyncpa [#allocation5], 0  ;;  %s8031_s27 = smov [#allocation6]   ;;  %s8032_s29 = smov [#allocation3]  }
   0x3   :  { %s39_s28 = sshll.u32 %s8031_s27, 4  ;;  %s25_s30 = sshll.u32 %s8032_s29, 4  ;;  %s40_s28 = int_to_ptr.vmem [resolvable:$true] %s39_s28  ;;  %s8083_s30 = int_to_ptr.vmem [resolvable:$true] %s25_s30 }
   0x4   :  { %s7937_s11 = scalar_lea.hbm %s10114_s4, 16384 }
   0x5   :  { %p7938_p0 = scmp.ne.s32.totalorder %s10114_s4, %s7937_s11  ;;  %p7941_p1 = scmp.lt.u32.totalorder %s7937_s11, %s10114_s4 }
   0x7   :  { %p7943_p2 = pnand %p7941_p1, %p7938_p0 }
   0x9   :  { %7946 = shalt.err (!%p7943_p2)
}
   0xa   :  { %s7947_s16 = scalar_lea.vmem %s40_s28, 16384  ;;  %p7952_p4 = scmp.lt.s32.totalorder %s40_s28, %s40_s28 }
   0xb   :  { %p7948_p3 = scmp.ne.s32.totalorder %s40_s28, %s7947_s16  ;;  %p7953_p5 = scmp.lt.s32.totalorder %s7947_s16, %s7947_s16 }
   0xd   :  { %p7954_p6 = por %p7953_p5, %p7952_p4 }
   0xf   :  { %p7955_p7 = pnand %p7954_p6, %p7948_p3 }
  0x11   :  { %7958 = shalt.err (!%p7955_p7)
}
  0x12   :  { %s8033_s17 = smov 512   ;;  %s8034_s18 = smov 32  }
  0x13   :  { %45 = dma.hbm_to_vmem [thread:$0]  %s10114_s4, 16384, %s40_s28, [#allocation7], %s8033_s17, %s8033_s17, %s8034_s18  }
  0x14   :  { %s7959_s23 = scalar_lea.hbm %s10112_s2, 8192 }
  0x15   :  { %p7960_p8 = scmp.ne.s32.totalorder %s10112_s2, %s7959_s23  ;;  %p7963_p9 = scmp.lt.u32.totalorder %s7959_s23, %s10112_s2 }
  0x17   :  { %p7965_p10 = pnand %p7963_p9, %p7960_p8 }
  0x19   :  { %7968 = shalt.err (!%p7965_p10)
}
  0x1a   :  { %s7969_s29 = scalar_lea.vmem %s8083_s30, 8192  ;;  %p7974_p12 = scmp.lt.s32.totalorder %s8083_s30, %s8083_s30 }
  0x1b   :  { %p7970_p11 = scmp.ne.s32.totalorder %s8083_s30, %s7969_s29  ;;  %p7975_p13 = scmp.lt.s32.totalorder %s7969_s29, %s7969_s29 }
  0x1d   :  { %p7976_p0 = por %p7975_p13, %p7974_p12 }
  0x1f   :  { %p7977_p1 = pnand %p7976_p0, %p7970_p11 }
  0x21   :  { %7980 = shalt.err (!%p7977_p1)
}
  0x22   :  { %31 = dma.hbm_to_vmem [thread:$0]  %s10112_s2, 8192, %s8083_s30, [#allocation4], %s8033_s17, %s8033_s17, %s8034_s18  }
  0x23   :  { %s8035_s9 = smov [#allocation8]   ;;  %s7981_s13 = scalar_lea.hbm %s10116_s6, 16384 }
  0x24   :  { %s53_s10 = sshll.u32 %s8035_s9, 4  ;;  %p7982_p2 = scmp.ne.s32.totalorder %s10116_s6, %s7981_s13  ;;  %s54_s10 = int_to_ptr.vmem [resolvable:$true] %s53_s10 }
  0x25   :  { %p7985_p3 = scmp.lt.u32.totalorder %s7981_s13, %s10116_s6 }
  0x27   :  { %p7987_p4 = pnand %p7985_p3, %p7982_p2 }
  0x29   :  { %7990 = shalt.err (!%p7987_p4)
}
  0x2a   :  { %s7991_s20 = scalar_lea.vmem %s54_s10, 16384  ;;  %p7996_p6 = scmp.lt.s32.totalorder %s54_s10, %s54_s10 }
  0x2b   :  { %p7992_p5 = scmp.ne.s32.totalorder %s54_s10, %s7991_s20  ;;  %p7997_p7 = scmp.lt.s32.totalorder %s7991_s20, %s7991_s20 }
  0x2d   :  { %p7998_p8 = por %p7997_p7, %p7996_p6 }
  0x2f   :  { %p7999_p9 = pnand %p7998_p8, %p7992_p5 }
  0x31   :  { %8002 = shalt.err (!%p7999_p9)
}
  0x32   :  { %59 = dma.hbm_to_vmem [thread:$0]  %s10116_s6, 16384, %s54_s10, [#allocation7], %s8033_s17, %s8033_s17, %s8034_s18  }
  0x33   :  { %8025 = dma.done.wait [#allocation4], 8192  }
  0x34   :  { %8026 = vsyncadd [#allocation4], 4294959104 }
  0x35   :  { %8027 = dma.done.wait [#allocation7], 32768  }
  0x36   :  { %8028 = vsyncadd [#allocation7], 4294934528  ;;  %v10119_v0 = vmov 0.0   ;;  %v79_v1 = vld [vmem:[%s10111_s1] sm:$0xff]  ;;  %vm132_vm0 = vcmask 1043456   ;;  %v80_v2 = vld [vmem:[%s10111_s1 + $0x8] sm:$0xff] }
  0x37   :  { %205 = vmatprep.mubr.f32.mxu0 %v10119_v0  ;;  %318 = vmatprep.mubr.f32.mxu1 %v10119_v0  ;;  %v71_v3 = vld [vmem:[%s10110_s0] sm:$0xff]  ;;  %v105_v4 = vcombine.high %v79_v1, %v79_v1  ;;  %v106_v5 = vcombine.high %v80_v2, %v80_v2  ;;  %v400_v6 = vld [vmem:[#allocation3 + $0x8] sm:$0xff]  ;;  %v402_v8 = vld [vmem:[#allocation3 + $0x18] sm:$0xff]  ;;  %vm107_vm1 = vcmask 31744  }
  0x38   :  { %v404_v7 = vld [vmem:[#allocation3 + $0x28] sm:$0xff]  ;;  %v406_v10 = vld [vmem:[#allocation3 + $0x38] sm:$0xff]  ;;  %v399_v11 = vld [vmem:[#allocation3] sm:$0xff] }
  0x39   :  { %v8146_v9 = vpack.c.bf16 %v404_v7, %v400_v6  ;;  %v403_v12 = vld [vmem:[#allocation3 + $0x20] sm:$0xff]  ;;  %4828 = vmatprep.subr.msk.mxu0 %vm132_vm0, %v105_v4  ;;  %4838 = vmatprep.subr.msk.mxu1 %vm132_vm0, %v106_v5  ;;  %v8150_v13 = vpack.c.bf16 %v406_v10, %v402_v8  ;;  %v401_v15 = vld [vmem:[#allocation3 + $0x10] sm:$0xff]  ;;  %v408_v18 = vld [vmem:[#allocation3 + $0x48] sm:$0xff] }
  0x3a   :  { %v8152_v14 = vpack.c.bf16 %v403_v12, %v399_v11  ;;  %v405_v16 = vld [vmem:[#allocation3 + $0x30] sm:$0xff]  ;;  %4829 = vmatpush1.msk.msra.mxu0 %vm132_vm0, %v79_v1  ;;  %4839 = vmatpush1.msk.msra.mxu1 %vm132_vm0, %v80_v2  ;;  %v412_v19 = vld [vmem:[#allocation3 + $0x68] sm:$0xff]  ;;  %v410_v20 = vld [vmem:[#allocation3 + $0x58] sm:$0xff] }
  0x3b   :  { %10406 = vst [vmem:[#allocation13_spill] sm:$0xff] %v8146_v9  ;;  %10407 = vst [vmem:[#allocation14_spill] sm:$0xff] %v8150_v13  ;;  %v8156_v17 = vpack.c.bf16 %v405_v16, %v401_v15  ;;  %4830 = vmatmul.mubr.msk.f32.vlgmr.msra.gmra.mrb[0].mxu0 %vm107_vm1, %v71_v3  ;;  %4840 = vmatmul.mubr.msk.f32.vlgmr.msra.gmra.mrb[0].mxu1 %vm107_vm1, %v71_v3  ;;  %v414_v21 = vld [vmem:[#allocation3 + $0x78] sm:$0xff]  ;;  %v407_v22 = vld [vmem:[#allocation3 + $0x40] sm:$0xff]  ;;  %v8165_v25 = vpack.c.bf16 %v412_v19, %v408_v18 }
  0x3c   :  { %v411_v23 = vld [vmem:[#allocation3 + $0x60] sm:$0xff]  ;;  %4921 = vmatprep.subr.bf16.mxu0 %v8146_v9  ;;  %4953 = vmatprep.subr.bf16.mxu1 %v8150_v13  ;;  %v72_v24 = vld [vmem:[%s10110_s0 + $0x8] sm:$0xff]  ;;  %v8167_v26 = vpack.c.bf16 %v414_v21, %v410_v20  ;;  %v409_v27 = vld [vmem:[#allocation3 + $0x50] sm:$0xff] }
  0x3d   :  { %v413_v28 = vld [vmem:[#allocation3 + $0x70] sm:$0xff]  ;;  %4923 = vmatpush1.bf16.msra.mxu0 %v8152_v14  ;;  %4955 = vmatpush1.bf16.msra.mxu1 %v8156_v17  ;;  %v8171_v29 = vpack.c.bf16 %v411_v23, %v407_v22  ;;  %v416_v31 = vld [vmem:[#allocation3 + $0x88] sm:$0xff]  ;;  %v418_v33 = vld [vmem:[#allocation3 + $0x98] sm:$0xff] }
  0x3e   :  { %v8173_v30 = vpack.c.bf16 %v413_v28, %v409_v27  ;;  %v420_v32 = vld [vmem:[#allocation3 + $0xa8] sm:$0xff]  ;;  %211 = vmatprep.mubr.f32.mxu0 %v10119_v0  ;;  %324 = vmatprep.mubr.f32.mxu1 %v10119_v0  ;;  %v422_v34 = vld [vmem:[#allocation3 + $0xb8] sm:$0xff]  ;;  %v415_v35 = vld [vmem:[#allocation3 + $0x80] sm:$0xff] }
  0x3f   :  { %v419_v36 = vld [vmem:[#allocation3 + $0xa0] sm:$0xff]  ;;  %4831 = vmatmul.mubr.msk.f32.gmra.mrb[2].mxu0 %vm107_vm1, %v72_v24  ;;  %4841 = vmatmul.mubr.msk.f32.gmra.mrb[2].mxu1 %vm107_vm1, %v72_v24  ;;  %v417_v37 = vld [vmem:[#allocation3 + $0x90] sm:$0xff]  ;;  %v8184_v40 = vpack.c.bf16 %v420_v32, %v416_v31  ;;  %v8186_v41 = vpack.c.bf16 %v422_v34, %v418_v33  ;;  %v424_v42 = vld [vmem:[#allocation3 + $0xc8] sm:$0xff] }
  0x40   :  { %v421_v38 = vld [vmem:[#allocation3 + $0xb0] sm:$0xff]  ;;  %4925 = vmatprep.subr.bf16.mxu0 %v8165_v25  ;;  %4957 = vmatprep.subr.bf16.mxu1 %v8167_v26  ;;  %v428_v43 = vld [vmem:[#allocation3 + $0xe8] sm:$0xff]  ;;  %v8190_v44 = vpack.c.bf16 %v419_v36, %v415_v35  ;;  %v426_v46 = vld [vmem:[#allocation3 + $0xd8] sm:$0xff] }
  0x41   :  { %v73_v39 = vld [vmem:[%s10110_s0 + $0x10] sm:$0xff]  ;;  %4927 = vmatpush1.bf16.msra.mxu0 %v8171_v29  ;;  %4959 = vmatpush1.bf16.msra.mxu1 %v8173_v30  ;;  %v8192_v45 = vpack.c.bf16 %v421_v38, %v417_v37  ;;  %v430_v47 = vld [vmem:[#allocation3 + $0xf8] sm:$0xff]  ;;  %v423_v48 = vld [vmem:[#allocation3 + $0xc0] sm:$0xff]  ;;  %v8203_v53 = vpack.c.bf16 %v428_v43, %v424_v42 }
  0x42   :  { %217 = vmatprep.mubr.f32.mxu0 %v10119_v0  ;;  %330 = vmatprep.mubr.f32.mxu1 %v10119_v0  ;;  %v427_v49 = vld [vmem:[#allocation3 + $0xe0] sm:$0xff]  ;;  %v425_v50 = vld [vmem:[#allocation3 + $0xd0] sm:$0xff]  ;;  %v74_v52 = vld [vmem:[%s10110_s0 + $0x18] sm:$0xff]  ;;  %v8205_v54 = vpack.c.bf16 %v430_v47, %v426_v46 }
  0x43   :  { %v429_v51 = vld [vmem:[#allocation3 + $0xf0] sm:$0xff]  ;;  %4832 = vmatmul.mubr.msk.f32.gmra.mrb[4].mxu0 %vm107_vm1, %v73_v39  ;;  %4842 = vmatmul.mubr.msk.f32.gmra.mrb[4].mxu1 %vm107_vm1, %v73_v39  ;;  %v432_v55 = vld [vmem:[#allocation3 + $0x108] sm:$0xff]  ;;  %v8209_v57 = vpack.c.bf16 %v427_v49, %v423_v48  ;;  %v434_v59 = vld [vmem:[#allocation3 + $0x118] sm:$0xff] }
  0x44   :  { %4929 = vmatprep.subr.bf16.mxu0 %v8184_v40  ;;  %4961 = vmatprep.subr.bf16.mxu1 %v8186_v41  ;;  %v436_v56 = vld [vmem:[#allocation3 + $0x128] sm:$0xff]  ;;  %v8211_v58 = vpack.c.bf16 %v429_v51, %v425_v50  ;;  %v438_v60 = vld [vmem:[#allocation3 + $0x138] sm:$0xff]  ;;  %v431_v61 = vld [vmem:[#allocation3 + $0x100] sm:$0xff] }
  0x45   :  { %4931 = vmatpush1.bf16.msra.mxu0 %v8190_v44  ;;  %4963 = vmatpush1.bf16.msra.mxu1 %v8192_v45  ;;  %v435_v62 = vld [vmem:[#allocation3 + $0x120] sm:$0xff]  ;;  %v433_v63 = vld [vmem:[#allocation3 + $0x110] sm:$0xff]  ;;  %v8222_v3 = vpack.c.bf16 %v436_v56, %v432_v55  ;;  %v8224_v4 = vpack.c.bf16 %v438_v60, %v434_v59  ;;  %v440_v5 = vld [vmem:[#allocation3 + $0x148] sm:$0xff] }
  0x46   :  { %223 = vmatprep.mubr.f32.mxu0 %v10119_v0  ;;  %336 = vmatprep.mubr.f32.mxu1 %v10119_v0  ;;  %v437_v1 = vld [vmem:[#allocation3 + $0x130] sm:$0xff]  ;;  %v75_v2 = vld [vmem:[%s10110_s0 + $0x20] sm:$0xff]  ;;  %v444_v6 = vld [vmem:[#allocation3 + $0x168] sm:$0xff]  ;;  %v8228_v7 = vpack.c.bf16 %v435_v62, %v431_v61 }
  0x47   :  { %4833 = vmatmul.mubr.msk.f32.gmra.mrb[6].mxu0 %vm107_vm1, %v74_v52  ;;  %4843 = vmatmul.mubr.msk.f32.gmra.mrb[6].mxu1 %vm107_vm1, %v74_v52  ;;  %v8230_v8 = vpack.c.bf16 %v437_v1, %v433_v63  ;;  %v442_v10 = vld [vmem:[#allocation3 + $0x158] sm:$0xff]  ;;  %v439_v12 = vld [vmem:[#allocation3 + $0x140] sm:$0xff]  ;;  %v441_v16 = vld [vmem:[#allocation3 + $0x150] sm:$0xff]  ;;  %v8241_v20 = vpack.c.bf16 %v444_v6, %v440_v5 }
  0x48   :  { %4933 = vmatprep.subr.bf16.mxu0 %v8203_v53  ;;  %4965 = vmatprep.subr.bf16.mxu1 %v8205_v54  ;;  %v446_v11 = vld [vmem:[#allocation3 + $0x178] sm:$0xff]  ;;  %v443_v15 = vld [vmem:[#allocation3 + $0x160] sm:$0xff]  ;;  %v445_v18 = vld [vmem:[#allocation3 + $0x170] sm:$0xff] }
  0x49   :  { %4935 = vmatpush1.bf16.msra.mxu0 %v8209_v57  ;;  %4967 = vmatpush1.bf16.msra.mxu1 %v8211_v58  ;;  %v76_v19 = vld [vmem:[%s10110_s0 + $0x28] sm:$0xff]  ;;  %v8243_v21 = vpack.c.bf16 %v446_v11, %v442_v10  ;;  %v8247_v24 = vpack.c.bf16 %v443_v15, %v439_v12  ;;  %v8249_v27 = vpack.c.bf16 %v445_v18, %v441_v16  ;;  %v450_v28 = vld [vmem:[#allocation3 + $0x198] sm:$0xff]  ;;  %v447_v32 = vld [vmem:[#allocation3 + $0x180] sm:$0xff] }
  0x4a   :  { %229 = vmatprep.mubr.f32.mxu0 %v10119_v0  ;;  %342 = vmatprep.mubr.f32.mxu1 %v10119_v0  ;;  %v448_v22 = vld [vmem:[#allocation3 + $0x188] sm:$0xff]  ;;  %v454_v31 = vld [vmem:[#allocation3 + $0x1b8] sm:$0xff]  ;;  %v451_v33 = vld [vmem:[#allocation3 + $0x1a0] sm:$0xff] }
  0x4b   :  { %4834 = vmatmul.mubr.msk.f32.gmra.mrb[8].mxu0 %vm107_vm1, %v75_v2  ;;  %4844 = vmatmul.mubr.msk.f32.gmra.mrb[8].mxu1 %vm107_vm1, %v75_v2  ;;  %v452_v23 = vld [vmem:[#allocation3 + $0x1a8] sm:$0xff]  ;;  %v449_v34 = vld [vmem:[#allocation3 + $0x190] sm:$0xff]  ;;  %v8262_v38 = vpack.c.bf16 %v454_v31, %v450_v28  ;;  %v8266_v43 = vpack.c.bf16 %v451_v33, %v447_v32  ;;  %v458_v47 = vld [vmem:[#allocation3 + $0x1d8] sm:$0xff] }
  0x4c   :  { %4937 = vmatprep.subr.bf16.mxu0 %v8222_v3  ;;  %4969 = vmatprep.subr.bf16.mxu1 %v8224_v4  ;;  %v453_v35 = vld [vmem:[#allocation3 + $0x1b0] sm:$0xff]  ;;  %v8260_v37 = vpack.c.bf16 %v452_v23, %v448_v22  ;;  %v456_v39 = vld [vmem:[#allocation3 + $0x1c8] sm:$0xff]  ;;  %v462_v48 = vld [vmem:[#allocation3 + $0x1f8] sm:$0xff] }
  0x4d   :  { %4939 = vmatpush1.bf16.msra.mxu0 %v8228_v7  ;;  %4971 = vmatpush1.bf16.msra.mxu1 %v8230_v8  ;;  %v77_v36 = vld [vmem:[%s10110_s0 + $0x30] sm:$0xff]  ;;  %v460_v42 = vld [vmem:[#allocation3 + $0x1e8] sm:$0xff]  ;;  %v8268_v46 = vpack.c.bf16 %v453_v35, %v449_v34  ;;  %v455_v49 = vld [vmem:[#allocation3 + $0x1c0] sm:$0xff]  ;;  %v8281_v60 = vpack.c.bf16 %v462_v48, %v458_v47 }
  0x4e   :  { %235 = vmatprep.mubr.f32.mxu0 %v10119_v0  ;;  %348 = vmatprep.mubr.f32.mxu1 %v10119_v0  ;;  %v459_v50 = vld [vmem:[#allocation3 + $0x1e0] sm:$0xff]  ;;  %v457_v51 = vld [vmem:[#allocation3 + $0x1d0] sm:$0xff]  ;;  %v78_v55 = vld [vmem:[%s10110_s0 + $0x38] sm:$0xff]  ;;  %v8279_v59 = vpack.c.bf16 %v460_v42, %v456_v39 }
  0x4f   :  { %4835 = vmatmul.mubr.msk.f32.gmra.mrb[10].mxu0 %vm107_vm1, %v76_v19  ;;  %4845 = vmatmul.mubr.msk.f32.gmra.mrb[10].mxu1 %vm107_vm1, %v76_v19  ;;  %v461_v52 = vld [vmem:[#allocation3 + $0x1f0] sm:$0xff]  ;;  %v464_v56 = vld [vmem:[#allocation6 + $0x8] sm:$0xff]  ;;  %v466_v62 = vld [vmem:[#allocation6 + $0x18] sm:$0xff]  ;;  %v8285_v1 = vpack.c.bf16 %v459_v50, %v455_v49 }
  0x50   :  { %4941 = vmatprep.subr.bf16.mxu0 %v8241_v20  ;;  %4973 = vmatprep.subr.bf16.mxu1 %v8243_v21  ;;  %v468_v61 = vld [vmem:[#allocation6 + $0x28] sm:$0xff]  ;;  %v470_v63 = vld [vmem:[#allocation6 + $0x38] sm:$0xff]  ;;  %v8287_v2 = vpack.c.bf16 %v461_v52, %v457_v51  ;;  %v463_v5 = vld [vmem:[#allocation6] sm:$0xff] }
  0x51   :  { %4943 = vmatpush1.bf16.msra.mxu0 %v8247_v24  ;;  %4975 = vmatpush1.bf16.msra.mxu1 %v8249_v27  ;;  %10408 = vst [vmem:[#allocation15_spill] sm:$0xff] %v8285_v1  ;;  %v467_v6 = vld [vmem:[#allocation6 + $0x20] sm:$0xff]  ;;  %v465_v10 = vld [vmem:[#allocation6 + $0x10] sm:$0xff]  ;;  %v472_v12 = vld [vmem:[#allocation6 + $0x48] sm:$0xff]  ;;  %v8293_v15 = vpack.c.bf16 %v468_v61, %v464_v56  ;;  %v8295_v16 = vpack.c.bf16 %v470_v63, %v466_v62 }
  0x52   :  { %241 = vmatprep.mubr.f32.mxu0 %v10119_v0  ;;  %354 = vmatprep.mubr.f32.mxu1 %v10119_v0  ;;  %10409 = vst [vmem:[#allocation16_spill] sm:$0xff] %v8287_v2  ;;  %v469_v11 = vld [vmem:[#allocation6 + $0x30] sm:$0xff]  ;;  %v476_v18 = vld [vmem:[#allocation6 + $0x68] sm:$0xff]  ;;  %v474_v19 = vld [vmem:[#allocation6 + $0x58] sm:$0xff]  ;;  %v8301_v23 = vpack.c.bf16 %v467_v6, %v463_v5 }
  0x53   :  { %4836 = vmatmul.mubr.msk.f32.gmra.mrb[12].mxu0 %vm107_vm1, %v77_v36  ;;  %4846 = vmatmul.mubr.msk.f32.gmra.mrb[12].mxu1 %vm107_vm1, %v77_v36  ;;  %10410 = vst [vmem:[#allocation17_spill] sm:$0xff] %v8293_v15  ;;  %10411 = vst [vmem:[#allocation18_spill] sm:$0xff] %v8295_v16  ;;  %v478_v22 = vld [vmem:[#allocation6 + $0x78] sm:$0xff]  ;;  %v8303_v28 = vpack.c.bf16 %v469_v11, %v465_v10  ;;  %v471_v31 = vld [vmem:[#allocation6 + $0x40] sm:$0xff]  ;;  %v8307_v33 = vpack.c.bf16 %v476_v18, %v472_v12 }
  0x54   :  { %4945 = vmatprep.subr.bf16.mxu0 %v8260_v37  ;;  %4977 = vmatprep.subr.bf16.mxu1 %v8262_v38  ;;  %10412 = vst [vmem:[#allocation19_spill] sm:$0xff] %v8301_v23  ;;  %v475_v32 = vld [vmem:[#allocation6 + $0x60] sm:$0xff]  ;;  %v8309_v34 = vpack.c.bf16 %v478_v22, %v474_v19  ;;  %v473_v35 = vld [vmem:[#allocation6 + $0x50] sm:$0xff]  ;;  %v480_v39 = vld [vmem:[#allocation6 + $0x88] sm:$0xff] }
  0x55   :  { %4947 = vmatpush1.bf16.msra.mxu0 %v8266_v43  ;;  %4979 = vmatpush1.bf16.msra.mxu1 %v8268_v46  ;;  %10413 = vst [vmem:[#allocation20_spill] sm:$0xff] %v8303_v28  ;;  %10414 = vst [vmem:[#allocation21_spill] sm:$0xff] %v8307_v33  ;;  %v477_v36 = vld [vmem:[#allocation6 + $0x70] sm:$0xff]  ;;  %v484_v42 = vld [vmem:[#allocation6 + $0xa8] sm:$0xff]  ;;  %v8317_v49 = vpack.c.bf16 %v475_v32, %v471_v31 }
  0x56   :  { %247 = vmatprep.mubr.f32.mxu0 %v10119_v0  ;;  %360 = vmatprep.mubr.f32.mxu1 %v10119_v0  ;;  %10415 = vst [vmem:[#allocation22_spill] sm:$0xff] %v8309_v34  ;;  %v482_v47 = vld [vmem:[#allocation6 + $0x98] sm:$0xff]  ;;  %v8319_v50 = vpack.c.bf16 %v477_v36, %v473_v35  ;;  %v479_v51 = vld [vmem:[#allocation6 + $0x80] sm:$0xff]  ;;  %v481_v61 = vld [vmem:[#allocation6 + $0x90] sm:$0xff] }
  0x57   :  { %4837 = vmatmul.mubr.msk.f32.gmra.mrb[14].mxu0 %vm107_vm1, %v78_v55  ;;  %4847 = vmatmul.mubr.msk.f32.gmra.mrb[14].mxu1 %vm107_vm1, %v78_v55  ;;  %v486_v48 = vld [vmem:[#allocation6 + $0xb8] sm:$0xff]  ;;  %10416 = vst [vmem:[#allocation23_spill] sm:$0xff] %v8317_v49  ;;  %v483_v52 = vld [vmem:[#allocation6 + $0xa0] sm:$0xff]  ;;  %v8323_v55 = vpack.c.bf16 %v484_v42, %v480_v39  ;;  %v485_v62 = vld [vmem:[#allocation6 + $0xb0] sm:$0xff] }
  0x58   :  { %4949 = vmatprep.subr.bf16.mxu0 %v8279_v59  ;;  %4981 = vmatprep.subr.bf16.mxu1 %v8281_v60  ;;  %10417 = vst [vmem:[#allocation24_spill] sm:$0xff] %v8319_v50  ;;  %v8325_v56 = vpack.c.bf16 %v486_v48, %v482_v47  ;;  %v488_v63 = vld [vmem:[#allocation6 + $0xc8] sm:$0xff]  ;;  %v490_v6 = vld [vmem:[#allocation6 + $0xd8] sm:$0xff]  ;;  %v8331_v11 = vpack.c.bf16 %v483_v52, %v479_v51  ;;  %v487_v18 = vld [vmem:[#allocation6 + $0xc0] sm:$0xff] }
  0x59   :  { %4951 = vmatpush1.bf16.msra.mxu0 %v8285_v1  ;;  %4983 = vmatpush1.bf16.msra.mxu1 %v8287_v2  ;;  %10418 = vst [vmem:[#allocation25_spill] sm:$0xff] %v8323_v55  ;;  %v492_v5 = vld [vmem:[#allocation6 + $0xe8] sm:$0xff]  ;;  %v494_v10 = vld [vmem:[#allocation6 + $0xf8] sm:$0xff]  ;;  %v8333_v12 = vpack.c.bf16 %v485_v62, %v481_v61  ;;  %v491_v19 = vld [vmem:[#allocation6 + $0xe0] sm:$0xff] }
  0x5a   :  { %831 = vmatprep.mubr.f32.mxu0 %v10119_v0  ;;  %902 = vmatprep.mubr.f32.mxu1 %v10119_v0  ;;  %10419 = vst [vmem:[#allocation26_spill] sm:$0xff] %v8325_v56  ;;  %10420 = vst [vmem:[#allocation27_spill] sm:$0xff] %v8331_v11  ;;  %v8337_v22 = vpack.c.bf16 %v492_v5, %v488_v63  ;;  %v8339_v31 = vpack.c.bf16 %v494_v10, %v490_v6  ;;  %v489_v32 = vld [vmem:[#allocation6 + $0xd0] sm:$0xff]  ;;  %v496_v36 = vld [vmem:[#allocation6 + $0x108] sm:$0xff] }
  0x5b   :  { %4985 = vmatprep.subr.bf16.mxu0 %v8293_v15  ;;  %5049 = vmatprep.subr.bf16.mxu1 %v8295_v16  ;;  %10421 = vst [vmem:[#allocation28_spill] sm:$0xff] %v8333_v12  ;;  %v493_v35 = vld [vmem:[#allocation6 + $0xf0] sm:$0xff]  ;;  %v500_v39 = vld [vmem:[#allocation6 + $0x128] sm:$0xff]  ;;  %v498_v42 = vld [vmem:[#allocation6 + $0x118] sm:$0xff]  ;;  %v8343_v48 = vpack.c.bf16 %v491_v19, %v487_v18 }
  0x5c   :  { %832 = vmatmul.mubr.f32.vlgmr.msra.gmra.mrb[0].mxu0 %v10119_v0  ;;  %903 = vmatmul.mubr.f32.vlgmr.msra.gmra.mrb[0].mxu1 %v10119_v0  ;;  %10422 = vst [vmem:[#allocation29_spill] sm:$0xff] %v8337_v22  ;;  %10423 = vst [vmem:[#allocation30_spill] sm:$0xff] %v8339_v31  ;;  %v502_v47 = vld [vmem:[#allocation6 + $0x138] sm:$0xff]  ;;  %v8345_v51 = vpack.c.bf16 %v493_v35, %v489_v32  ;;  %v8349_v52 = vpack.c.bf16 %v500_v39, %v496_v36  ;;  %v495_v62 = vld [vmem:[#allocation6 + $0x100] sm:$0xff] }
  0x5d   :  { %4987 = vmatpush1.bf16.msra.mxu0 %v8301_v23  ;;  %5051 = vmatpush1.bf16.msra.mxu1 %v8303_v28  ;;  %10424 = vst [vmem:[#allocation31_spill] sm:$0xff] %v8343_v48  ;;  %v8351_v61 = vpack.c.bf16 %v502_v47, %v498_v42  ;;  %v499_v63 = vld [vmem:[#allocation6 + $0x120] sm:$0xff]  ;;  %v497_v5 = vld [vmem:[#allocation6 + $0x110] sm:$0xff]  ;;  %v504_v19 = vld [vmem:[#allocation6 + $0x148] sm:$0xff] }
  0x5e   :  { %4989 = vmatprep.subr.bf16.mxu0 %v8307_v33  ;;  %5053 = vmatprep.subr.bf16.mxu1 %v8309_v34  ;;  %10425 = vst [vmem:[#allocation32_spill] sm:$0xff] %v8345_v51  ;;  %10426 = vst [vmem:[#allocation33_spill] sm:$0xff] %v8349_v52  ;;  %v8357_v6 = vpack.c.bf16 %v499_v63, %v495_v62  ;;  %v501_v10 = vld [vmem:[#allocation6 + $0x130] sm:$0xff]  ;;  %v508_v32 = vld [vmem:[#allocation6 + $0x168] sm:$0xff] }
  0x5f   :  { %1001 = vmatprep.mubr.f32.mxu0 %v10119_v0  ;;  %1072 = vmatprep.mubr.f32.mxu1 %v10119_v0  ;;  %10427 = vst [vmem:[#allocation34_spill] sm:$0xff] %v8351_v61  ;;  %v8359_v18 = vpack.c.bf16 %v501_v10, %v497_v5  ;;  %v506_v35 = vld [vmem:[#allocation6 + $0x158] sm:$0xff]  ;;  %v8363_v36 = vpack.c.bf16 %v508_v32, %v504_v19  ;;  %v503_v42 = vld [vmem:[#allocation6 + $0x140] sm:$0xff]  ;;  %v505_v62 = vld [vmem:[#allocation6 + $0x150] sm:$0xff] }
  0x60   :  { %10428 = vst [vmem:[#allocation35_spill] sm:$0xff] %v8357_v6  ;;  %v510_v39 = vld [vmem:[#allocation6 + $0x178] sm:$0xff]  ;;  %v507_v47 = vld [vmem:[#allocation6 + $0x160] sm:$0xff]  ;;  %v509_v63 = vld [vmem:[#allocation6 + $0x170] sm:$0xff] }
  0x61   :  { %4991 = vmatpush1.bf16.msra.mxu0 %v8317_v49  ;;  %5055 = vmatpush1.bf16.msra.mxu1 %v8319_v50  ;;  %10429 = vst [vmem:[#allocation36_spill] sm:$0xff] %v8359_v18  ;;  %10430 = vst [vmem:[#allocation37_spill] sm:$0xff] %v8363_v36  ;;  %v8365_v0 = vpack.c.bf16 %v510_v39, %v506_v35  ;;  %v8370_v5 = vpack.c.bf16 %v509_v63, %v505_v62  ;;  %v512_v10 = vld [vmem:[#allocation6 + $0x188] sm:$0xff]  ;;  %v514_v32 = vld [vmem:[#allocation6 + $0x198] sm:$0xff] }
  0x62   :  { %4993 = vmatprep.subr.bf16.mxu0 %v8323_v55  ;;  %5057 = vmatprep.subr.bf16.mxu1 %v8325_v56  ;;  %v516_v19 = vld [vmem:[#allocation6 + $0x1a8] sm:$0xff]  ;;  %v518_v35 = vld [vmem:[#allocation6 + $0x1b8] sm:$0xff]  ;;  %v511_v39 = vld [vmem:[#allocation6 + $0x180] sm:$0xff] }
  0x63   :  { %10431 = vst [vmem:[#allocation38_spill] sm:$0xff] %v8365_v0  ;;  %10433 = vst [vmem:[#allocation40_spill] sm:$0xff] %v8370_v5  ;;  %v513_v62 = vld [vmem:[#allocation6 + $0x190] sm:$0xff]  ;;  %v608_v55 = vld [vmem:[#allocation8 + $0x88] sm:$0xff] }
  0x64   :  { %v517_v63 = vld [vmem:[#allocation6 + $0x1b0] sm:$0xff]  ;;  %v612_v50 = vld [vmem:[#allocation8 + $0xa8] sm:$0xff]  ;;  %v610_v49 = vld [vmem:[#allocation8 + $0x98] sm:$0xff] }
  0x65   :  { %4995 = vmatpush1.bf16.msra.mxu0 %v8331_v11  ;;  %5059 = vmatpush1.bf16.msra.mxu1 %v8333_v12  ;;  %v614_v34 = vld [vmem:[#allocation8 + $0xb8] sm:$0xff] }
  0x66   :  { %4997 = vmatprep.subr.bf16.mxu0 %v8337_v22  ;;  %5061 = vmatprep.subr.bf16.mxu1 %v8339_v31  ;;  %v626_v33 = vld [vmem:[#allocation8 + $0x118] sm:$0xff] }
  0x69   :  { %4999 = vmatpush1.bf16.msra.mxu0 %v8343_v48  ;;  %5063 = vmatpush1.bf16.msra.mxu1 %v8345_v51  ;;  %v582_v51 = vld [vmem:[#allocation6 + $0x3b8] sm:$0xff] }
  0x6a   :  { %5001 = vmatprep.subr.bf16.mxu0 %v8349_v52  ;;  %5065 = vmatprep.subr.bf16.mxu1 %v8351_v61  ;;  %v8367_v61 = vpack.c.bf16 %v507_v47, %v503_v42  ;;  %v515_v42 = vld [vmem:[#allocation6 + $0x1a0] sm:$0xff]  ;;  %v8377_v47 = vpack.c.bf16 %v518_v35, %v514_v32  ;;  %v526_v32 = vld [vmem:[#allocation6 + $0x1f8] sm:$0xff] }
  0x6b   :  { %v519_v35 = vld [vmem:[#allocation6 + $0x1c0] sm:$0xff]  ;;  %v578_v52 = vld [vmem:[#allocation6 + $0x398] sm:$0xff] }
  0x6c   :  { %10432 = vst [vmem:[#allocation39_spill] sm:$0xff] %v8367_v61  ;;  %10435 = vst [vmem:[#allocation42_spill] sm:$0xff] %v8377_v47 }
  0x6d   :  { %5003 = vmatpush1.bf16.msra.mxu0 %v8357_v6  ;;  %5067 = vmatpush1.bf16.msra.mxu1 %v8359_v18  ;;  %v8375_v18 = vpack.c.bf16 %v516_v19, %v512_v10  ;;  %v8379_v6 = vpack.c.bf16 %v515_v42, %v511_v39  ;;  %v524_v10 = vld [vmem:[#allocation6 + $0x1e8] sm:$0xff]  ;;  %v522_v19 = vld [vmem:[#allocation6 + $0x1d8] sm:$0xff]  ;;  %v523_v39 = vld [vmem:[#allocation6 + $0x1e0] sm:$0xff] }
  0x6e   :  { %5005 = vmatprep.subr.bf16.mxu0 %v8363_v36  ;;  %5069 = vmatprep.subr.bf16.mxu1 %v8365_v0  ;;  %v8382_v0 = vpack.c.bf16 %v517_v63, %v513_v62  ;;  %v8389_v42 = vpack.c.bf16 %v526_v32, %v522_v19  ;;  %v8391_v36 = vpack.c.bf16 %v523_v39, %v519_v35  ;;  %v521_v62 = vld [vmem:[#allocation6 + $0x1d0] sm:$0xff]  ;;  %v534_v19 = vld [vmem:[#allocation6 + $0x238] sm:$0xff]  ;;  %v527_v32 = vld [vmem:[#allocation6 + $0x200] sm:$0xff] }
  0x6f   :  { %10434 = vst [vmem:[#allocation41_spill] sm:$0xff] %v8375_v18  ;;  %10436 = vst [vmem:[#allocation43_spill] sm:$0xff] %v8379_v6  ;;  %v525_v63 = vld [vmem:[#allocation6 + $0x1f0] sm:$0xff]  ;;  %v531_v35 = vld [vmem:[#allocation6 + $0x220] sm:$0xff] }
  0x70   :  { %10437 = vst [vmem:[#allocation44_spill] sm:$0xff] %v8382_v0  ;;  %10439 = vst [vmem:[#allocation46_spill] sm:$0xff] %v8389_v42 }
  0x71   :  { %5007 = vmatpush1.bf16.msra.mxu0 %v8367_v61  ;;  %5071 = vmatpush1.bf16.msra.mxu1 %v8370_v5  ;;  %v520_v5 = vld [vmem:[#allocation6 + $0x1c8] sm:$0xff]  ;;  %10440 = vst [vmem:[#allocation47_spill] sm:$0xff] %v8391_v36 }
  0x72   :  { %5009 = vmatprep.subr.bf16.mxu0 %v8375_v18  ;;  %5073 = vmatprep.subr.bf16.mxu1 %v8377_v47  ;;  %v8387_v61 = vpack.c.bf16 %v524_v10, %v520_v5  ;;  %v8394_v47 = vpack.c.bf16 %v525_v63, %v521_v62  ;;  %v532_v5 = vld [vmem:[#allocation6 + $0x228] sm:$0xff]  ;;  %v530_v10 = vld [vmem:[#allocation6 + $0x218] sm:$0xff]  ;;  %v8403_v18 = vpack.c.bf16 %v531_v35, %v527_v32  ;;  %v529_v62 = vld [vmem:[#allocation6 + $0x210] sm:$0xff] }
  0x73   :  { %v8401_v39 = vpack.c.bf16 %v534_v19, %v530_v10  ;;  %v533_v63 = vld [vmem:[#allocation6 + $0x230] sm:$0xff]  ;;  %v542_v10 = vld [vmem:[#allocation6 + $0x278] sm:$0xff]  ;;  %v535_v19 = vld [vmem:[#allocation6 + $0x240] sm:$0xff] }
  0x74   :  { %10438 = vst [vmem:[#allocation45_spill] sm:$0xff] %v8387_v61  ;;  %10441 = vst [vmem:[#allocation48_spill] sm:$0xff] %v8394_v47  ;;  %v539_v32 = vld [vmem:[#allocation6 + $0x260] sm:$0xff] }
  0x75   :  { %5011 = vmatpush1.bf16.msra.mxu0 %v8379_v6  ;;  %5075 = vmatpush1.bf16.msra.mxu1 %v8382_v0  ;;  %v528_v0 = vld [vmem:[#allocation6 + $0x208] sm:$0xff]  ;;  %10443 = vst [vmem:[#allocation50_spill] sm:$0xff] %v8401_v39  ;;  %10444 = vst [vmem:[#allocation51_spill] sm:$0xff] %v8403_v18 }
  0x76   :  { %5013 = vmatprep.subr.bf16.mxu0 %v8387_v61  ;;  %5077 = vmatprep.subr.bf16.mxu1 %v8389_v42  ;;  %v8399_v6 = vpack.c.bf16 %v532_v5, %v528_v0  ;;  %v8406_v42 = vpack.c.bf16 %v533_v63, %v529_v62  ;;  %v540_v0 = vld [vmem:[#allocation6 + $0x268] sm:$0xff]  ;;  %v538_v5 = vld [vmem:[#allocation6 + $0x258] sm:$0xff]  ;;  %v8415_v61 = vpack.c.bf16 %v539_v32, %v535_v19  ;;  %v537_v62 = vld [vmem:[#allocation6 + $0x250] sm:$0xff] }
  0x77   :  { %v8413_v35 = vpack.c.bf16 %v542_v10, %v538_v5  ;;  %v541_v63 = vld [vmem:[#allocation6 + $0x270] sm:$0xff]  ;;  %v550_v5 = vld [vmem:[#allocation6 + $0x2b8] sm:$0xff]  ;;  %v543_v10 = vld [vmem:[#allocation6 + $0x280] sm:$0xff] }
  0x78   :  { %10442 = vst [vmem:[#allocation49_spill] sm:$0xff] %v8399_v6  ;;  %10445 = vst [vmem:[#allocation52_spill] sm:$0xff] %v8406_v42  ;;  %v547_v19 = vld [vmem:[#allocation6 + $0x2a0] sm:$0xff] }
  0x79   :  { %5015 = vmatpush1.bf16.msra.mxu0 %v8391_v36  ;;  %5079 = vmatpush1.bf16.msra.mxu1 %v8394_v47  ;;  %v536_v47 = vld [vmem:[#allocation6 + $0x248] sm:$0xff]  ;;  %10447 = vst [vmem:[#allocation54_spill] sm:$0xff] %v8413_v35  ;;  %10448 = vst [vmem:[#allocation55_spill] sm:$0xff] %v8415_v61 }
  0x7a   :  { %5017 = vmatprep.subr.bf16.mxu0 %v8399_v6  ;;  %5081 = vmatprep.subr.bf16.mxu1 %v8401_v39  ;;  %v8411_v36 = vpack.c.bf16 %v540_v0, %v536_v47  ;;  %v8418_v39 = vpack.c.bf16 %v541_v63, %v537_v62  ;;  %v548_v47 = vld [vmem:[#allocation6 + $0x2a8] sm:$0xff]  ;;  %v546_v0 = vld [vmem:[#allocation6 + $0x298] sm:$0xff]  ;;  %v8427_v6 = vpack.c.bf16 %v547_v19, %v543_v10  ;;  %v545_v62 = vld [vmem:[#allocation6 + $0x290] sm:$0xff] }
  0x7b   :  { %v8425_v32 = vpack.c.bf16 %v550_v5, %v546_v0  ;;  %v549_v63 = vld [vmem:[#allocation6 + $0x2b0] sm:$0xff]  ;;  %v558_v0 = vld [vmem:[#allocation6 + $0x2f8] sm:$0xff]  ;;  %v551_v5 = vld [vmem:[#allocation6 + $0x2c0] sm:$0xff] }
  0x7c   :  { %10446 = vst [vmem:[#allocation53_spill] sm:$0xff] %v8411_v36  ;;  %10449 = vst [vmem:[#allocation56_spill] sm:$0xff] %v8418_v39  ;;  %v555_v10 = vld [vmem:[#allocation6 + $0x2e0] sm:$0xff] }
  0x7d   :  { %5019 = vmatpush1.bf16.msra.mxu0 %v8403_v18  ;;  %5083 = vmatpush1.bf16.msra.mxu1 %v8406_v42  ;;  %v544_v42 = vld [vmem:[#allocation6 + $0x288] sm:$0xff]  ;;  %10451 = vst [vmem:[#allocation58_spill] sm:$0xff] %v8425_v32  ;;  %10452 = vst [vmem:[#allocation59_spill] sm:$0xff] %v8427_v6 }
  0x7e   :  { %5021 = vmatprep.subr.bf16.mxu0 %v8411_v36  ;;  %5085 = vmatprep.subr.bf16.mxu1 %v8413_v35  ;;  %v8423_v18 = vpack.c.bf16 %v548_v47, %v544_v42  ;;  %v8430_v35 = vpack.c.bf16 %v549_v63, %v545_v62  ;;  %v556_v42 = vld [vmem:[#allocation6 + $0x2e8] sm:$0xff]  ;;  %v554_v47 = vld [vmem:[#allocation6 + $0x2d8] sm:$0xff]  ;;  %v8439_v36 = vpack.c.bf16 %v555_v10, %v551_v5  ;;  %v553_v62 = vld [vmem:[#allocation6 + $0x2d0] sm:$0xff] }
  0x7f   :  { %v8437_v19 = vpack.c.bf16 %v558_v0, %v554_v47  ;;  %v557_v63 = vld [vmem:[#allocation6 + $0x2f0] sm:$0xff]  ;;  %v566_v47 = vld [vmem:[#allocation6 + $0x338] sm:$0xff]  ;;  %v559_v0 = vld [vmem:[#allocation6 + $0x300] sm:$0xff] }
  0x80   :  { %10450 = vst [vmem:[#allocation57_spill] sm:$0xff] %v8423_v18  ;;  %10453 = vst [vmem:[#allocation60_spill] sm:$0xff] %v8430_v35  ;;  %v563_v5 = vld [vmem:[#allocation6 + $0x320] sm:$0xff] }
  0x81   :  { %5023 = vmatpush1.bf16.msra.mxu0 %v8415_v61  ;;  %5087 = vmatpush1.bf16.msra.mxu1 %v8418_v39  ;;  %v552_v39 = vld [vmem:[#allocation6 + $0x2c8] sm:$0xff]  ;;  %10455 = vst [vmem:[#allocation62_spill] sm:$0xff] %v8437_v19  ;;  %10456 = vst [vmem:[#allocation63_spill] sm:$0xff] %v8439_v36 }
  0x82   :  { %5025 = vmatprep.subr.bf16.mxu0 %v8423_v18  ;;  %5089 = vmatprep.subr.bf16.mxu1 %v8425_v32  ;;  %v8435_v61 = vpack.c.bf16 %v556_v42, %v552_v39  ;;  %v8442_v32 = vpack.c.bf16 %v557_v63, %v553_v62  ;;  %v564_v39 = vld [vmem:[#allocation6 + $0x328] sm:$0xff]  ;;  %v562_v42 = vld [vmem:[#allocation6 + $0x318] sm:$0xff]  ;;  %v8451_v18 = vpack.c.bf16 %v563_v5, %v559_v0  ;;  %v561_v62 = vld [vmem:[#allocation6 + $0x310] sm:$0xff] }
  0x83   :  { %v8449_v10 = vpack.c.bf16 %v566_v47, %v562_v42  ;;  %v565_v63 = vld [vmem:[#allocation6 + $0x330] sm:$0xff]  ;;  %v574_v42 = vld [vmem:[#allocation6 + $0x378] sm:$0xff]  ;;  %v567_v47 = vld [vmem:[#allocation6 + $0x340] sm:$0xff] }
  0x84   :  { %10454 = vst [vmem:[#allocation61_spill] sm:$0xff] %v8435_v61  ;;  %10457 = vst [vmem:[#allocation64_spill] sm:$0xff] %v8442_v32  ;;  %v571_v0 = vld [vmem:[#allocation6 + $0x360] sm:$0xff] }
  0x85   :  { %5027 = vmatpush1.bf16.msra.mxu0 %v8427_v6  ;;  %5091 = vmatpush1.bf16.msra.mxu1 %v8430_v35  ;;  %v560_v35 = vld [vmem:[#allocation6 + $0x308] sm:$0xff]  ;;  %10459 = vst [vmem:[#allocation66_spill] sm:$0xff] %v8449_v10  ;;  %10460 = vst [vmem:[#allocation67_spill] sm:$0xff] %v8451_v18 }
  0x86   :  { %5029 = vmatprep.subr.bf16.mxu0 %v8435_v61  ;;  %5093 = vmatprep.subr.bf16.mxu1 %v8437_v19  ;;  %v8447_v6 = vpack.c.bf16 %v564_v39, %v560_v35  ;;  %v8454_v19 = vpack.c.bf16 %v565_v63, %v561_v62  ;;  %v572_v35 = vld [vmem:[#allocation6 + $0x368] sm:$0xff]  ;;  %v570_v39 = vld [vmem:[#allocation6 + $0x358] sm:$0xff]  ;;  %v8463_v61 = vpack.c.bf16 %v571_v0, %v567_v47  ;;  %v569_v62 = vld [vmem:[#allocation6 + $0x350] sm:$0xff] }
  0x87   :  { %v8461_v5 = vpack.c.bf16 %v574_v42, %v570_v39  ;;  %v573_v63 = vld [vmem:[#allocation6 + $0x370] sm:$0xff]  ;;  %v575_v39 = vld [vmem:[#allocation6 + $0x380] sm:$0xff] }
  0x88   :  { %10458 = vst [vmem:[#allocation65_spill] sm:$0xff] %v8447_v6  ;;  %10461 = vst [vmem:[#allocation68_spill] sm:$0xff] %v8454_v19  ;;  %v579_v42 = vld [vmem:[#allocation6 + $0x3a0] sm:$0xff]  ;;  %v577_v47 = vld [vmem:[#allocation6 + $0x390] sm:$0xff] }
  0x89   :  { %5031 = vmatpush1.bf16.msra.mxu0 %v8439_v36  ;;  %5095 = vmatpush1.bf16.msra.mxu1 %v8442_v32  ;;  %v568_v32 = vld [vmem:[#allocation6 + $0x348] sm:$0xff]  ;;  %10463 = vst [vmem:[#allocation70_spill] sm:$0xff] %v8461_v5  ;;  %10464 = vst [vmem:[#allocation71_spill] sm:$0xff] %v8463_v61  ;;  %v8475_v0 = vpack.c.bf16 %v579_v42, %v575_v39  ;;  %v589_v39 = vld [vmem:[#allocation6 + $0x3f0] sm:$0xff] }
  0x8a   :  { %5033 = vmatprep.subr.bf16.mxu0 %v8447_v6  ;;  %5097 = vmatprep.subr.bf16.mxu1 %v8449_v10  ;;  %v8459_v36 = vpack.c.bf16 %v572_v35, %v568_v32  ;;  %v576_v6 = vld [vmem:[#allocation6 + $0x388] sm:$0xff]  ;;  %v8472_v35 = vpack.c.bf16 %v582_v51, %v578_v52  ;;  %v586_v51 = vld [vmem:[#allocation6 + $0x3d8] sm:$0xff] }
  0x8b   :  { %v580_v10 = vld [vmem:[#allocation6 + $0x3a8] sm:$0xff]  ;;  %10468 = vst [vmem:[#allocation75_spill] sm:$0xff] %v8475_v0  ;;  %v590_v52 = vld [vmem:[#allocation6 + $0x3f8] sm:$0xff] }
  0x8c   :  { %10462 = vst [vmem:[#allocation69_spill] sm:$0xff] %v8459_v36  ;;  %v8470_v32 = vpack.c.bf16 %v580_v10, %v576_v6  ;;  %10467 = vst [vmem:[#allocation74_spill] sm:$0xff] %v8472_v35  ;;  %v583_v10 = vld [vmem:[#allocation6 + $0x3c0] sm:$0xff] }
  0x8d   :  { %5035 = vmatpush1.bf16.msra.mxu0 %v8451_v18  ;;  %5099 = vmatpush1.bf16.msra.mxu1 %v8454_v19  ;;  %v8466_v18 = vpack.c.bf16 %v573_v63, %v569_v62  ;;  %v581_v62 = vld [vmem:[#allocation6 + $0x3b0] sm:$0xff]  ;;  %v584_v63 = vld [vmem:[#allocation6 + $0x3c8] sm:$0xff]  ;;  %v587_v19 = vld [vmem:[#allocation6 + $0x3e0] sm:$0xff] }
  0x8e   :  { %5037 = vmatprep.subr.bf16.mxu0 %v8459_v36  ;;  %5101 = vmatprep.subr.bf16.mxu1 %v8461_v5  ;;  %10466 = vst [vmem:[#allocation73_spill] sm:$0xff] %v8470_v32  ;;  %v588_v36 = vld [vmem:[#allocation6 + $0x3e8] sm:$0xff]  ;;  %v8479_v5 = vpack.c.bf16 %v581_v62, %v577_v47  ;;  %v8486_v42 = vpack.c.bf16 %v587_v19, %v583_v10 }
  0x8f   :  { %10465 = vst [vmem:[#allocation72_spill] sm:$0xff] %v8466_v18  ;;  %v8481_v6 = vpack.c.bf16 %v588_v36, %v584_v63  ;;  %v592_v36 = vld [vmem:[#allocation8 + $0x8] sm:$0xff]  ;;  %v594_v63 = vld [vmem:[#allocation8 + $0x18] sm:$0xff] }
  0x90   :  { %10469 = vst [vmem:[#allocation76_spill] sm:$0xff] %v8479_v5  ;;  %10472 = vst [vmem:[#allocation79_spill] sm:$0xff] %v8486_v42  ;;  %v596_v62 = vld [vmem:[#allocation8 + $0x28] sm:$0xff] }
  0x91   :  { %5039 = vmatpush1.bf16.msra.mxu0 %v8463_v61  ;;  %5103 = vmatpush1.bf16.msra.mxu1 %v8466_v18  ;;  %10470 = vst [vmem:[#allocation77_spill] sm:$0xff] %v8481_v6  ;;  %v8483_v61 = vpack.c.bf16 %v590_v52, %v586_v51  ;;  %v585_v18 = vld [vmem:[#allocation6 + $0x3d0] sm:$0xff]  ;;  %v8495_v51 = vpack.c.bf16 %v596_v62, %v592_v36  ;;  %v598_v52 = vld [vmem:[#allocation8 + $0x38] sm:$0xff] }
  0x92   :  { %5041 = vmatprep.subr.bf16.mxu0 %v8470_v32  ;;  %5105 = vmatprep.subr.bf16.mxu1 %v8472_v35  ;;  %v8490_v47 = vpack.c.bf16 %v589_v39, %v585_v18  ;;  %v8497_v19 = vpack.c.bf16 %v598_v52, %v594_v63  ;;  %v83_v18 = vlaneseq }
  0x93   :  { %10471 = vst [vmem:[#allocation78_spill] sm:$0xff] %v8483_v61  ;;  %10474 = vst [vmem:[#allocation81_spill] sm:$0xff] %v8495_v51 }
  0x94   :  { %10473 = vst [vmem:[#allocation80_spill] sm:$0xff] %v8490_v47  ;;  %10475 = vst [vmem:[#allocation82_spill] sm:$0xff] %v8497_v19  ;;  %v84_v10 = vshrl.u32 %v83_v18, 7 }
  0x95   :  { %5043 = vmatpush1.bf16.msra.mxu0 %v8475_v0  ;;  %5107 = vmatpush1.bf16.msra.mxu1 %v8479_v5 }
  0x96   :  { %5045 = vmatprep.subr.bf16.mxu0 %v8481_v6  ;;  %5109 = vmatprep.subr.bf16.mxu1 %v8483_v61  ;;  %v8501_v39 = vsub.s32 0, %v84_v10  ;;  %v8521_v32 = vsub.s32 2, %v84_v10 }
  0x99   :  { %5047 = vmatpush1.bf16.msra.mxu0 %v8486_v42  ;;  %5111 = vmatpush1.bf16.msra.mxu1 %v8490_v47  ;;  %v81_v47 = vld [vmem:[%s10113_s3] sm:$0xf]  ;;  %v8506_v42 = vsub.s32 1, %v84_v10 }
  0x9a   :  { %5113 = vmatprep.subr.bf16.mxu0 %v8495_v51  ;;  %5177 = vmatprep.subr.bf16.mxu1 %v8497_v19  ;;  %v8509_v36 = vrot.slane %v81_v47, %v8501_v39  ;;  %v8514_v51 = vsub.s32 3, %v84_v10  ;;  %v8525_v31 = vrot.slane %v81_v47, %v8521_v32 }
  0x9b   :  { %v8512_v62 = vrot.slane %v81_v47, %v8506_v42 }
  0x9c   :  { %10476 = vst [vmem:[#allocation83_spill] sm:$0xff] %v8509_v36  ;;  %v8519_v35 = vrot.slane %v81_v47, %v8514_v51  ;;  %10479 = vst [vmem:[#allocation86_spill] sm:$0xff] %v8525_v31 }
  0x9d   :  { %10477 = vst [vmem:[#allocation84_spill] sm:$0xff] %v8512_v62 }
  0x9e   :  { %10478 = vst [vmem:[#allocation85_spill] sm:$0xff] %v8519_v35 }
 0x12f   :  { %v833_v63 = vpop.f32.mrb[0].mxu0  ;;  %v904_v52 = vpop.f32.mrb[0].mxu1 }
 0x130   :  { %v7480_v18 = vadd.f32 %v833_v63, %v8509_v36  ;;  %v835_v19 = vpop.f32.mrb[1].mxu0  ;;  %v906_v61 = vpop.f32.mrb[1].mxu1  ;;  %v7496_v63 = vadd.f32 %v904_v52, %v8525_v31  ;;  %v595_v52 = vld [vmem:[#allocation8 + $0x20] sm:$0xff] }
 0x131   :  { %v7481_v6 = vadd.f32 %v835_v19, %v8512_v62  ;;  %v7497_v48 = vadd.f32 %v906_v61, %v8519_v35 }
 0x132   :  { %v4848_v5 = vmul.f32 -1.442695, %v7480_v18 }
 0x133   :  { %v4849_v0 = vmul.f32 -1.442695, %v7481_v6  ;;  %v4850_v22 = vmul.f32 -1.442695, %v7497_v48  ;;  %v591_v48 = vld [vmem:[#allocation8] sm:$0xff] }
 0x134   :  { %7553 = vpow2.f32 %v4848_v5  ;;  %v8531_v56 = vpack.c.bf16 %v595_v52, %v591_v48  ;;  %v607_v48 = vld [vmem:[#allocation8 + $0x80] sm:$0xff] }
 0x135   :  { %7555 = vpow2.f32 %v4849_v0  ;;  %v611_v52 = vld [vmem:[#allocation8 + $0xa0] sm:$0xff] }
 0x136   :  { %7557 = vpow2.f32 %v4850_v22  ;;  %v597_v22 = vld [vmem:[#allocation8 + $0x30] sm:$0xff]  ;;  %10481 = vst [vmem:[#allocation88_spill] sm:$0xff] %v8531_v56 }
 0x137   :  { %7559 = vtanh.f32 %v7496_v63  ;;  %v600_v63 = vld [vmem:[#allocation8 + $0x48] sm:$0xff] }
 0x13e   :  { %v7554_v36 = vpop.eup %7553 }
 0x13f   :  { %v7556_v12 = vpop.eup %7555  ;;  %v916_v19 = vadd.f32 1.0, %v7554_v36  ;;  %v593_v36 = vld [vmem:[#allocation8 + $0x10] sm:$0xff] }
 0x140   :  { %v922_v6 = vadd.f32 1.0, %v7556_v12  ;;  %v7558_v5 = vpop.eup %7557  ;;  %v604_v12 = vld [vmem:[#allocation8 + $0x68] sm:$0xff] }
 0x141   :  { %7561 = vrcp.f32 %v916_v19  ;;  %v7560_v10 = vpop.eup %7559  ;;  %v929_v61 = vadd.f32 1.0, %v7558_v5  ;;  %v602_v19 = vld [vmem:[#allocation8 + $0x58] sm:$0xff]  ;;  %v599_v5 = vld [vmem:[#allocation8 + $0x40] sm:$0xff] }
 0x142   :  { %7563 = vrcp.f32 %v922_v6  ;;  %v606_v6 = vld [vmem:[#allocation8 + $0x78] sm:$0xff] }
 0x143   :  { %7565 = vrcp.f32 %v929_v61  ;;  %v601_v61 = vld [vmem:[#allocation8 + $0x50] sm:$0xff] }
 0x14b   :  { %v7562_v18 = vpop.eup %7561 }
 0x14c   :  { %v7564_v0 = vpop.eup %7563  ;;  %v933_v62 = vmul.f32 %v7562_v18, %v7560_v10  ;;  %v8533_v10 = vpack.c.bf16 %v597_v22, %v593_v36  ;;  %v8537_v18 = vpack.c.bf16 %v604_v12, %v600_v63  ;;  %v8551_v36 = vpack.c.bf16 %v612_v50, %v608_v55  ;;  %v609_v63 = vld [vmem:[#allocation8 + $0x90] sm:$0xff] }
 0x14d   :  { %v932_v35 = vmul.f32 0.0, %v7564_v0  ;;  %v7566_v31 = vpop.eup %7565  ;;  %v8539_v0 = vpack.c.bf16 %v606_v6, %v602_v19  ;;  %v8553_v22 = vpack.c.bf16 %v614_v34, %v610_v49  ;;  %v613_v12 = vld [vmem:[#allocation8 + $0xb0] sm:$0xff]  ;;  %v616_v19 = vld [vmem:[#allocation8 + $0xc8] sm:$0xff]  ;;  %v615_v34 = vld [vmem:[#allocation8 + $0xc0] sm:$0xff] }
 0x14e   :  { %10482 = vst [vmem:[#allocation89_spill] sm:$0xff] %v8533_v10  ;;  %10483 = vst [vmem:[#allocation90_spill] sm:$0xff] %v8537_v18  ;;  %v620_v6 = vld [vmem:[#allocation8 + $0xe8] sm:$0xff]  ;;  %v8561_v50 = vpack.c.bf16 %v613_v12, %v609_v63  ;;  %v619_v49 = vld [vmem:[#allocation8 + $0xe0] sm:$0xff] }
 0x14f   :  { %v8528_v47 = vadd.f32 %v933_v62, %v932_v35  ;;  %v603_v35 = vld [vmem:[#allocation8 + $0x60] sm:$0xff]  ;;  %10484 = vst [vmem:[#allocation91_spill] sm:$0xff] %v8539_v0  ;;  %10487 = vst [vmem:[#allocation94_spill] sm:$0xff] %v8551_v36  ;;  %v8565_v55 = vpack.c.bf16 %v620_v6, %v616_v19  ;;  %v625_v19 = vld [vmem:[#allocation8 + $0x110] sm:$0xff] }
 0x150   :  { %10488 = vst [vmem:[#allocation95_spill] sm:$0xff] %v8553_v22  ;;  %10491 = vst [vmem:[#allocation97_spill] sm:$0xff] %v8561_v50  ;;  %v623_v63 = vld [vmem:[#allocation8 + $0x100] sm:$0xff]  ;;  %v629_v6 = vld [vmem:[#allocation8 + $0x130] sm:$0xff] }
 0x151   :  { %10480 = vst [vmem:[#allocation87_spill] sm:$0xff] %v8528_v47  ;;  %7567 = vtanh.f32 %v8528_v47  ;;  %v605_v47 = vld [vmem:[#allocation8 + $0x70] sm:$0xff]  ;;  %10492 = vst [vmem:[#allocation98_spill] sm:$0xff] %v8565_v55  ;;  %v627_v12 = vld [vmem:[#allocation8 + $0x120] sm:$0xff] }
 0x15b   :  { %v7568_v11 = vpop.eup %7567 }
 0x15c   :  { %v8535_v62 = vmul.f32 %v7568_v11, %v7566_v31  ;;  %v8545_v11 = vpack.c.bf16 %v603_v35, %v599_v5  ;;  %v8547_v31 = vpack.c.bf16 %v605_v47, %v601_v61  ;;  %v10489_v5 = vmov 0.0   ;;  %v617_v61 = vld [vmem:[#allocation8 + $0xd0] sm:$0xff] }
 0x15d   :  { %v8559_v47 = vpack.c.bf16 %v611_v52, %v607_v48  ;;  %v8571_v48 = vpack.c.bf16 %v619_v49, %v615_v34  ;;  %v8583_v34 = vpack.c.bf16 %v627_v12, %v623_v63  ;;  %v638_v49 = vld [vmem:[#allocation8 + $0x178] sm:$0xff] }
 0x15e   :  { %1002 = vmatmul.mubr.f32.vlgmr.msra.gmra.mrb[16].mxu0 %v8535_v62  ;;  %1073 = vmatmul.mubr.f32.vlgmr.msra.gmra.mrb[16].mxu1 %v8535_v62  ;;  %10485 = vst [vmem:[#allocation92_spill] sm:$0xff] %v8545_v11  ;;  %10486 = vst [vmem:[#allocation93_spill] sm:$0xff] %v8547_v31 }
 0x15f   :  { %5115 = vmatpush1.bf16.msra.mxu0 %v8531_v56  ;;  %5179 = vmatpush1.bf16.msra.mxu1 %v8533_v10  ;;  %v618_v56 = vld [vmem:[#allocation8 + $0xd8] sm:$0xff]  ;;  %10490 = vst [vmem:[#allocation96_spill] sm:$0xff] %v8559_v47  ;;  %10494 = vst [vmem:[#allocation100_spill] sm:$0xff] %v8571_v48 }
 0x160   :  { %5117 = vmatprep.subr.bf16.mxu0 %v8537_v18  ;;  %5181 = vmatprep.subr.bf16.mxu1 %v8539_v0  ;;  %v622_v10 = vld [vmem:[#allocation8 + $0xf8] sm:$0xff]  ;;  %v621_v0 = vld [vmem:[#allocation8 + $0xf0] sm:$0xff]  ;;  %v624_v18 = vld [vmem:[#allocation8 + $0x108] sm:$0xff]  ;;  %10498 = vst [vmem:[#allocation104_spill] sm:$0xff] %v8583_v34 }
 0x161   :  { %1167 = vmatprep.mubr.f32.mxu0 %v10489_v5  ;;  %1238 = vmatprep.mubr.f32.mxu1 %v10489_v5  ;;  %v8567_v35 = vpack.c.bf16 %v622_v10, %v618_v56  ;;  %v8573_v52 = vpack.c.bf16 %v621_v0, %v617_v61  ;;  %v8585_v0 = vpack.c.bf16 %v629_v6, %v625_v19  ;;  %v631_v61 = vld [vmem:[#allocation8 + $0x140] sm:$0xff]  ;;  %v633_v19 = vld [vmem:[#allocation8 + $0x150] sm:$0xff] }
 0x162   :  { %v637_v6 = vld [vmem:[#allocation8 + $0x170] sm:$0xff] }
 0x163   :  { %5119 = vmatpush1.bf16.msra.mxu0 %v8545_v11  ;;  %5183 = vmatpush1.bf16.msra.mxu1 %v8547_v31  ;;  %10493 = vst [vmem:[#allocation99_spill] sm:$0xff] %v8567_v35  ;;  %v628_v11 = vld [vmem:[#allocation8 + $0x128] sm:$0xff]  ;;  %v630_v31 = vld [vmem:[#allocation8 + $0x138] sm:$0xff]  ;;  %10495 = vst [vmem:[#allocation101_spill] sm:$0xff] %v8573_v52 }
 0x164   :  { %5121 = vmatprep.subr.bf16.mxu0 %v8551_v36  ;;  %5185 = vmatprep.subr.bf16.mxu1 %v8553_v22  ;;  %v8577_v56 = vpack.c.bf16 %v628_v11, %v624_v18  ;;  %v8579_v10 = vpack.c.bf16 %v630_v31, %v626_v33  ;;  %10499 = vst [vmem:[#allocation105_spill] sm:$0xff] %v8585_v0  ;;  %v632_v33 = vld [vmem:[#allocation8 + $0x148] sm:$0xff]  ;;  %v634_v11 = vld [vmem:[#allocation8 + $0x158] sm:$0xff] }
 0x165   :  { %v636_v18 = vld [vmem:[#allocation8 + $0x168] sm:$0xff]  ;;  %v8593_v63 = vpack.c.bf16 %v638_v49, %v634_v11  ;;  %v646_v11 = vld [vmem:[#allocation8 + $0x1b8] sm:$0xff]  ;;  %v643_v49 = vld [vmem:[#allocation8 + $0x1a0] sm:$0xff] }
 0x166   :  { %10496 = vst [vmem:[#allocation102_spill] sm:$0xff] %v8577_v56  ;;  %10497 = vst [vmem:[#allocation103_spill] sm:$0xff] %v8579_v10  ;;  %v8591_v31 = vpack.c.bf16 %v636_v18, %v632_v33  ;;  %v644_v33 = vld [vmem:[#allocation8 + $0x1a8] sm:$0xff]  ;;  %v642_v18 = vld [vmem:[#allocation8 + $0x198] sm:$0xff] }
 0x167   :  { %5123 = vmatpush1.bf16.msra.mxu0 %v8559_v47  ;;  %5187 = vmatpush1.bf16.msra.mxu1 %v8561_v50  ;;  %10501 = vst [vmem:[#allocation107_spill] sm:$0xff] %v8593_v63 }
 0x168   :  { %5125 = vmatprep.subr.bf16.mxu0 %v8565_v55  ;;  %5189 = vmatprep.subr.bf16.mxu1 %v8567_v35  ;;  %10500 = vst [vmem:[#allocation106_spill] sm:$0xff] %v8591_v31  ;;  %v710_v35 = vld [vmem:[#allocation8 + $0x3b8] sm:$0xff] }
 0x16b   :  { %5127 = vmatpush1.bf16.msra.mxu0 %v8571_v48  ;;  %5191 = vmatpush1.bf16.msra.mxu1 %v8573_v52  ;;  %v635_v52 = vld [vmem:[#allocation8 + $0x160] sm:$0xff]  ;;  %v706_v48 = vld [vmem:[#allocation8 + $0x398] sm:$0xff] }
 0x16c   :  { %5129 = vmatprep.subr.bf16.mxu0 %v8577_v56  ;;  %5193 = vmatprep.subr.bf16.mxu1 %v8579_v10  ;;  %v8595_v12 = vpack.c.bf16 %v635_v52, %v631_v61  ;;  %v8598_v10 = vpack.c.bf16 %v637_v6, %v633_v19  ;;  %v639_v52 = vld [vmem:[#allocation8 + $0x180] sm:$0xff]  ;;  %v8605_v61 = vpack.c.bf16 %v646_v11, %v642_v18  ;;  %v641_v19 = vld [vmem:[#allocation8 + $0x190] sm:$0xff]  ;;  %v654_v18 = vld [vmem:[#allocation8 + $0x1f8] sm:$0xff] }
 0x16d   :  { %v8607_v56 = vpack.c.bf16 %v643_v49, %v639_v52  ;;  %v645_v6 = vld [vmem:[#allocation8 + $0x1b0] sm:$0xff]  ;;  %v647_v11 = vld [vmem:[#allocation8 + $0x1c0] sm:$0xff] }
 0x16e   :  { %10502 = vst [vmem:[#allocation108_spill] sm:$0xff] %v8595_v12  ;;  %10503 = vst [vmem:[#allocation109_spill] sm:$0xff] %v8598_v10  ;;  %v651_v52 = vld [vmem:[#allocation8 + $0x1e0] sm:$0xff] }
 0x16f   :  { %5131 = vmatpush1.bf16.msra.mxu0 %v8583_v34  ;;  %5195 = vmatpush1.bf16.msra.mxu1 %v8585_v0  ;;  %v640_v0 = vld [vmem:[#allocation8 + $0x188] sm:$0xff]  ;;  %10505 = vst [vmem:[#allocation111_spill] sm:$0xff] %v8605_v61  ;;  %10506 = vst [vmem:[#allocation112_spill] sm:$0xff] %v8607_v56 }
 0x170   :  { %5133 = vmatprep.subr.bf16.mxu0 %v8591_v31  ;;  %5197 = vmatprep.subr.bf16.mxu1 %v8593_v63  ;;  %v8603_v34 = vpack.c.bf16 %v644_v33, %v640_v0  ;;  %v8610_v63 = vpack.c.bf16 %v645_v6, %v641_v19  ;;  %v652_v0 = vld [vmem:[#allocation8 + $0x1e8] sm:$0xff]  ;;  %v650_v33 = vld [vmem:[#allocation8 + $0x1d8] sm:$0xff]  ;;  %v8619_v31 = vpack.c.bf16 %v651_v52, %v647_v11  ;;  %v649_v19 = vld [vmem:[#allocation8 + $0x1d0] sm:$0xff] }
 0x171   :  { %v8617_v49 = vpack.c.bf16 %v654_v18, %v650_v33  ;;  %v653_v6 = vld [vmem:[#allocation8 + $0x1f0] sm:$0xff]  ;;  %v662_v33 = vld [vmem:[#allocation8 + $0x238] sm:$0xff]  ;;  %v655_v18 = vld [vmem:[#allocation8 + $0x200] sm:$0xff] }
 0x172   :  { %10504 = vst [vmem:[#allocation110_spill] sm:$0xff] %v8603_v34  ;;  %10507 = vst [vmem:[#allocation113_spill] sm:$0xff] %v8610_v63  ;;  %v659_v11 = vld [vmem:[#allocation8 + $0x220] sm:$0xff] }
 0x173   :  { %5135 = vmatpush1.bf16.msra.mxu0 %v8595_v12  ;;  %5199 = vmatpush1.bf16.msra.mxu1 %v8598_v10  ;;  %v648_v10 = vld [vmem:[#allocation8 + $0x1c8] sm:$0xff]  ;;  %10509 = vst [vmem:[#allocation115_spill] sm:$0xff] %v8617_v49  ;;  %10510 = vst [vmem:[#allocation116_spill] sm:$0xff] %v8619_v31 }
 0x174   :  { %5137 = vmatprep.subr.bf16.mxu0 %v8603_v34  ;;  %5201 = vmatprep.subr.bf16.mxu1 %v8605_v61  ;;  %v8615_v12 = vpack.c.bf16 %v652_v0, %v648_v10  ;;  %v8622_v61 = vpack.c.bf16 %v653_v6, %v649_v19  ;;  %v660_v10 = vld [vmem:[#allocation8 + $0x228] sm:$0xff]  ;;  %v658_v0 = vld [vmem:[#allocation8 + $0x218] sm:$0xff]  ;;  %v8631_v34 = vpack.c.bf16 %v659_v11, %v655_v18  ;;  %v657_v19 = vld [vmem:[#allocation8 + $0x210] sm:$0xff] }
 0x175   :  { %v8629_v52 = vpack.c.bf16 %v662_v33, %v658_v0  ;;  %v661_v6 = vld [vmem:[#allocation8 + $0x230] sm:$0xff]  ;;  %v670_v0 = vld [vmem:[#allocation8 + $0x278] sm:$0xff]  ;;  %v663_v33 = vld [vmem:[#allocation8 + $0x240] sm:$0xff] }
 0x176   :  { %10508 = vst [vmem:[#allocation114_spill] sm:$0xff] %v8615_v12  ;;  %10511 = vst [vmem:[#allocation117_spill] sm:$0xff] %v8622_v61  ;;  %v667_v18 = vld [vmem:[#allocation8 + $0x260] sm:$0xff] }
 0x177   :  { %5139 = vmatpush1.bf16.msra.mxu0 %v8607_v56  ;;  %5203 = vmatpush1.bf16.msra.mxu1 %v8610_v63  ;;  %v656_v63 = vld [vmem:[#allocation8 + $0x208] sm:$0xff]  ;;  %10513 = vst [vmem:[#allocation119_spill] sm:$0xff] %v8629_v52  ;;  %10514 = vst [vmem:[#allocation120_spill] sm:$0xff] %v8631_v34 }
 0x178   :  { %5141 = vmatprep.subr.bf16.mxu0 %v8615_v12  ;;  %5205 = vmatprep.subr.bf16.mxu1 %v8617_v49  ;;  %v8627_v56 = vpack.c.bf16 %v660_v10, %v656_v63  ;;  %v8634_v49 = vpack.c.bf16 %v661_v6, %v657_v19  ;;  %v668_v63 = vld [vmem:[#allocation8 + $0x268] sm:$0xff]  ;;  %v666_v10 = vld [vmem:[#allocation8 + $0x258] sm:$0xff]  ;;  %v8643_v12 = vpack.c.bf16 %v667_v18, %v663_v33  ;;  %v665_v19 = vld [vmem:[#allocation8 + $0x250] sm:$0xff] }
 0x179   :  { %v8641_v11 = vpack.c.bf16 %v670_v0, %v666_v10  ;;  %v669_v6 = vld [vmem:[#allocation8 + $0x270] sm:$0xff]  ;;  %v678_v10 = vld [vmem:[#allocation8 + $0x2b8] sm:$0xff]  ;;  %v671_v0 = vld [vmem:[#allocation8 + $0x280] sm:$0xff] }
 0x17a   :  { %10512 = vst [vmem:[#allocation118_spill] sm:$0xff] %v8627_v56  ;;  %10515 = vst [vmem:[#allocation121_spill] sm:$0xff] %v8634_v49  ;;  %v675_v33 = vld [vmem:[#allocation8 + $0x2a0] sm:$0xff] }
 0x17b   :  { %5143 = vmatpush1.bf16.msra.mxu0 %v8619_v31  ;;  %5207 = vmatpush1.bf16.msra.mxu1 %v8622_v61  ;;  %v664_v61 = vld [vmem:[#allocation8 + $0x248] sm:$0xff]  ;;  %10517 = vst [vmem:[#allocation123_spill] sm:$0xff] %v8641_v11  ;;  %10518 = vst [vmem:[#allocation124_spill] sm:$0xff] %v8643_v12 }
 0x17c   :  { %5145 = vmatprep.subr.bf16.mxu0 %v8627_v56  ;;  %5209 = vmatprep.subr.bf16.mxu1 %v8629_v52  ;;  %v8639_v31 = vpack.c.bf16 %v668_v63, %v664_v61  ;;  %v8646_v52 = vpack.c.bf16 %v669_v6, %v665_v19  ;;  %v676_v61 = vld [vmem:[#allocation8 + $0x2a8] sm:$0xff]  ;;  %v674_v63 = vld [vmem:[#allocation8 + $0x298] sm:$0xff]  ;;  %v8655_v56 = vpack.c.bf16 %v675_v33, %v671_v0  ;;  %v673_v19 = vld [vmem:[#allocation8 + $0x290] sm:$0xff] }
 0x17d   :  { %v8653_v18 = vpack.c.bf16 %v678_v10, %v674_v63  ;;  %v677_v6 = vld [vmem:[#allocation8 + $0x2b0] sm:$0xff]  ;;  %v686_v63 = vld [vmem:[#allocation8 + $0x2f8] sm:$0xff]  ;;  %v679_v10 = vld [vmem:[#allocation8 + $0x2c0] sm:$0xff] }
 0x17e   :  { %10516 = vst [vmem:[#allocation122_spill] sm:$0xff] %v8639_v31  ;;  %10519 = vst [vmem:[#allocation125_spill] sm:$0xff] %v8646_v52  ;;  %v683_v0 = vld [vmem:[#allocation8 + $0x2e0] sm:$0xff] }
 0x17f   :  { %5147 = vmatpush1.bf16.msra.mxu0 %v8631_v34  ;;  %5211 = vmatpush1.bf16.msra.mxu1 %v8634_v49  ;;  %v672_v49 = vld [vmem:[#allocation8 + $0x288] sm:$0xff]  ;;  %10521 = vst [vmem:[#allocation127_spill] sm:$0xff] %v8653_v18  ;;  %10522 = vst [vmem:[#allocation128_spill] sm:$0xff] %v8655_v56 }
 0x180   :  { %5149 = vmatprep.subr.bf16.mxu0 %v8639_v31  ;;  %5213 = vmatprep.subr.bf16.mxu1 %v8641_v11  ;;  %v8651_v34 = vpack.c.bf16 %v676_v61, %v672_v49  ;;  %v8658_v11 = vpack.c.bf16 %v677_v6, %v673_v19  ;;  %v684_v49 = vld [vmem:[#allocation8 + $0x2e8] sm:$0xff]  ;;  %v682_v61 = vld [vmem:[#allocation8 + $0x2d8] sm:$0xff]  ;;  %v8667_v31 = vpack.c.bf16 %v683_v0, %v679_v10  ;;  %v681_v19 = vld [vmem:[#allocation8 + $0x2d0] sm:$0xff] }
 0x181   :  { %v8665_v33 = vpack.c.bf16 %v686_v63, %v682_v61  ;;  %v685_v6 = vld [vmem:[#allocation8 + $0x2f0] sm:$0xff]  ;;  %v694_v61 = vld [vmem:[#allocation8 + $0x338] sm:$0xff]  ;;  %v687_v63 = vld [vmem:[#allocation8 + $0x300] sm:$0xff] }
 0x182   :  { %10520 = vst [vmem:[#allocation126_spill] sm:$0xff] %v8651_v34  ;;  %10523 = vst [vmem:[#allocation129_spill] sm:$0xff] %v8658_v11  ;;  %v691_v10 = vld [vmem:[#allocation8 + $0x320] sm:$0xff] }
 0x183   :  { %5151 = vmatpush1.bf16.msra.mxu0 %v8643_v12  ;;  %5215 = vmatpush1.bf16.msra.mxu1 %v8646_v52  ;;  %v680_v52 = vld [vmem:[#allocation8 + $0x2c8] sm:$0xff]  ;;  %10525 = vst [vmem:[#allocation131_spill] sm:$0xff] %v8665_v33  ;;  %10526 = vst [vmem:[#allocation132_spill] sm:$0xff] %v8667_v31 }
 0x184   :  { %5153 = vmatprep.subr.bf16.mxu0 %v8651_v34  ;;  %5217 = vmatprep.subr.bf16.mxu1 %v8653_v18  ;;  %v8663_v12 = vpack.c.bf16 %v684_v49, %v680_v52  ;;  %v8670_v18 = vpack.c.bf16 %v685_v6, %v681_v19  ;;  %v692_v52 = vld [vmem:[#allocation8 + $0x328] sm:$0xff]  ;;  %v690_v49 = vld [vmem:[#allocation8 + $0x318] sm:$0xff]  ;;  %v8679_v34 = vpack.c.bf16 %v691_v10, %v687_v63  ;;  %v689_v19 = vld [vmem:[#allocation8 + $0x310] sm:$0xff] }
 0x185   :  { %v8677_v0 = vpack.c.bf16 %v694_v61, %v690_v49  ;;  %v693_v6 = vld [vmem:[#allocation8 + $0x330] sm:$0xff]  ;;  %v702_v49 = vld [vmem:[#allocation8 + $0x378] sm:$0xff]  ;;  %v695_v61 = vld [vmem:[#allocation8 + $0x340] sm:$0xff] }
 0x186   :  { %10524 = vst [vmem:[#allocation130_spill] sm:$0xff] %v8663_v12  ;;  %10527 = vst [vmem:[#allocation133_spill] sm:$0xff] %v8670_v18  ;;  %v699_v63 = vld [vmem:[#allocation8 + $0x360] sm:$0xff] }
 0x187   :  { %5155 = vmatpush1.bf16.msra.mxu0 %v8655_v56  ;;  %5219 = vmatpush1.bf16.msra.mxu1 %v8658_v11  ;;  %v688_v11 = vld [vmem:[#allocation8 + $0x308] sm:$0xff]  ;;  %10529 = vst [vmem:[#allocation135_spill] sm:$0xff] %v8677_v0  ;;  %10530 = vst [vmem:[#allocation136_spill] sm:$0xff] %v8679_v34 }
 0x188   :  { %5157 = vmatprep.subr.bf16.mxu0 %v8663_v12  ;;  %5221 = vmatprep.subr.bf16.mxu1 %v8665_v33  ;;  %v8675_v56 = vpack.c.bf16 %v692_v52, %v688_v11  ;;  %v8682_v33 = vpack.c.bf16 %v693_v6, %v689_v19  ;;  %v700_v11 = vld [vmem:[#allocation8 + $0x368] sm:$0xff]  ;;  %v698_v52 = vld [vmem:[#allocation8 + $0x358] sm:$0xff]  ;;  %v8691_v12 = vpack.c.bf16 %v699_v63, %v695_v61  ;;  %v697_v19 = vld [vmem:[#allocation8 + $0x350] sm:$0xff] }
 0x189   :  { %v8689_v10 = vpack.c.bf16 %v702_v49, %v698_v52  ;;  %v701_v6 = vld [vmem:[#allocation8 + $0x370] sm:$0xff]  ;;  %v703_v52 = vld [vmem:[#allocation8 + $0x380] sm:$0xff] }
 0x18a   :  { %10528 = vst [vmem:[#allocation134_spill] sm:$0xff] %v8675_v56  ;;  %10531 = vst [vmem:[#allocation137_spill] sm:$0xff] %v8682_v33  ;;  %v707_v49 = vld [vmem:[#allocation8 + $0x3a0] sm:$0xff]  ;;  %v705_v61 = vld [vmem:[#allocation8 + $0x390] sm:$0xff] }
 0x18b   :  { %5159 = vmatpush1.bf16.msra.mxu0 %v8667_v31  ;;  %5223 = vmatpush1.bf16.msra.mxu1 %v8670_v18  ;;  %v696_v18 = vld [vmem:[#allocation8 + $0x348] sm:$0xff]  ;;  %10533 = vst [vmem:[#allocation139_spill] sm:$0xff] %v8689_v10  ;;  %10534 = vst [vmem:[#allocation140_spill] sm:$0xff] %v8691_v12  ;;  %v8703_v63 = vpack.c.bf16 %v707_v49, %v703_v52  ;;  %v717_v52 = vld [vmem:[#allocation8 + $0x3f0] sm:$0xff] }
 0x18c   :  { %5161 = vmatprep.subr.bf16.mxu0 %v8675_v56  ;;  %5225 = vmatprep.subr.bf16.mxu1 %v8677_v0  ;;  %v8687_v31 = vpack.c.bf16 %v700_v11, %v696_v18  ;;  %v704_v56 = vld [vmem:[#allocation8 + $0x388] sm:$0xff]  ;;  %v8700_v11 = vpack.c.bf16 %v710_v35, %v706_v48  ;;  %v714_v35 = vld [vmem:[#allocation8 + $0x3d8] sm:$0xff] }
 0x18d   :  { %v708_v0 = vld [vmem:[#allocation8 + $0x3a8] sm:$0xff]  ;;  %10538 = vst [vmem:[#allocation144_spill] sm:$0xff] %v8703_v63  ;;  %v718_v48 = vld [vmem:[#allocation8 + $0x3f8] sm:$0xff] }
 0x18e   :  { %10532 = vst [vmem:[#allocation138_spill] sm:$0xff] %v8687_v31  ;;  %v8698_v18 = vpack.c.bf16 %v708_v0, %v704_v56  ;;  %10537 = vst [vmem:[#allocation143_spill] sm:$0xff] %v8700_v11  ;;  %v711_v0 = vld [vmem:[#allocation8 + $0x3c0] sm:$0xff] }
 0x18f   :  { %5163 = vmatpush1.bf16.msra.mxu0 %v8679_v34  ;;  %5227 = vmatpush1.bf16.msra.mxu1 %v8682_v33  ;;  %v8694_v34 = vpack.c.bf16 %v701_v6, %v697_v19  ;;  %v709_v19 = vld [vmem:[#allocation8 + $0x3b0] sm:$0xff]  ;;  %v712_v6 = vld [vmem:[#allocation8 + $0x3c8] sm:$0xff]  ;;  %v715_v33 = vld [vmem:[#allocation8 + $0x3e0] sm:$0xff] }
 0x190   :  { %5165 = vmatprep.subr.bf16.mxu0 %v8687_v31  ;;  %5229 = vmatprep.subr.bf16.mxu1 %v8689_v10  ;;  %10536 = vst [vmem:[#allocation142_spill] sm:$0xff] %v8698_v18  ;;  %v716_v31 = vld [vmem:[#allocation8 + $0x3e8] sm:$0xff]  ;;  %v8707_v10 = vpack.c.bf16 %v709_v19, %v705_v61  ;;  %v8714_v49 = vpack.c.bf16 %v715_v33, %v711_v0 }
 0x191   :  { %10535 = vst [vmem:[#allocation141_spill] sm:$0xff] %v8694_v34  ;;  %v8709_v56 = vpack.c.bf16 %v716_v31, %v712_v6  ;;  %v719_v31 = vld [vmem:[%s10115_s5] sm:$0xf] }
 0x192   :  { %10539 = vst [vmem:[#allocation145_spill] sm:$0xff] %v8707_v10  ;;  %10542 = vst [vmem:[#allocation148_spill] sm:$0xff] %v8714_v49  ;;  %v8729_v33 = vrot.slane %v719_v31, %v8501_v39 }
 0x193   :  { %5167 = vmatpush1.bf16.msra.mxu0 %v8691_v12  ;;  %5231 = vmatpush1.bf16.msra.mxu1 %v8694_v34  ;;  %10540 = vst [vmem:[#allocation146_spill] sm:$0xff] %v8709_v56  ;;  %v8711_v12 = vpack.c.bf16 %v718_v48, %v714_v35  ;;  %v713_v34 = vld [vmem:[#allocation8 + $0x3d0] sm:$0xff] }
 0x194   :  { %5169 = vmatprep.subr.bf16.mxu0 %v8698_v18  ;;  %5233 = vmatprep.subr.bf16.mxu1 %v8700_v11  ;;  %v8718_v61 = vpack.c.bf16 %v717_v52, %v713_v34  ;;  %10544 = vst [vmem:[#allocation150_spill] sm:$0xff] %v8729_v33  ;;  %v8732_v34 = vrot.slane %v719_v31, %v8506_v42 }
 0x195   :  { %10541 = vst [vmem:[#allocation147_spill] sm:$0xff] %v8711_v12 }
 0x196   :  { %10543 = vst [vmem:[#allocation149_spill] sm:$0xff] %v8718_v61  ;;  %10545 = vst [vmem:[#allocation151_spill] sm:$0xff] %v8732_v34 }
 0x197   :  { %5171 = vmatpush1.bf16.msra.mxu0 %v8703_v63  ;;  %5235 = vmatpush1.bf16.msra.mxu1 %v8707_v10 }
 0x198   :  { %5173 = vmatprep.subr.bf16.mxu0 %v8709_v56  ;;  %5237 = vmatprep.subr.bf16.mxu1 %v8711_v12  ;;  %v8741_v12 = vrot.slane %v719_v31, %v8521_v32 }
 0x19b   :  { %5175 = vmatpush1.bf16.msra.mxu0 %v8714_v49  ;;  %5239 = vmatpush1.bf16.msra.mxu1 %v8718_v61  ;;  %v8737_v61 = vrot.slane %v719_v31, %v8514_v51 }
 0x19c   :  { %5241 = vmatprep.subr.bf16.mxu0 %v8146_v9  ;;  %5273 = vmatprep.subr.bf16.mxu1 %v8150_v13 }
 0x19d   :  { %10546 = vst [vmem:[#allocation152_spill] sm:$0xff] %v8737_v61 }
 0x231   :  { %v1003_v19 = vpop.f32.mrb[16].mxu0  ;;  %v1074_v6 = vpop.f32.mrb[16].mxu1 }
 0x232   :  { %v1004_v35 = vadd.f32 %v1003_v19, %v8729_v33  ;;  %v1005_v48 = vpop.f32.mrb[17].mxu0  ;;  %v1076_v0 = vpop.f32.mrb[17].mxu1  ;;  %v1075_v10 = vadd.f32 %v1074_v6, %v8741_v12 }
 0x233   :  { %v1006_v52 = vadd.f32 %v1005_v48, %v8732_v34  ;;  %v1077_v49 = vadd.f32 %v1076_v0, %v8737_v61 }
 0x234   :  { %v4851_v9 = vmul.f32 -1.442695, %v1004_v35 }
 0x235   :  { %v4852_v13 = vmul.f32 -1.442695, %v1006_v52  ;;  %v4853_v56 = vmul.f32 -1.442695, %v1077_v49 }
 0x236   :  { %7569 = vpow2.f32 %v4851_v9 }
 0x237   :  { %7571 = vpow2.f32 %v4852_v13 }
 0x238   :  { %7573 = vpow2.f32 %v4853_v56  ;;  %v10549_v56 = vld [vmem:[#allocation23_spill] sm:$0xff] }
 0x239   :  { %7575 = vtanh.f32 %v1075_v10  ;;  %v10547_v10 = vld [vmem:[#allocation21_spill] sm:$0xff] }
 0x240   :  { %v7570_v19 = vpop.eup %7569 }
 0x241   :  { %v7572_v33 = vpop.eup %7571  ;;  %v1082_v63 = vadd.f32 1.0, %v7570_v19 }
 0x242   :  { %v1088_v35 = vadd.f32 1.0, %v7572_v33  ;;  %v7574_v48 = vpop.eup %7573  ;;  %v10551_v33 = vld [vmem:[#allocation25_spill] sm:$0xff] }
 0x243   :  { %7577 = vrcp.f32 %v1082_v63  ;;  %v7576_v52 = vpop.eup %7575  ;;  %v1095_v0 = vadd.f32 1.0, %v7574_v48  ;;  %v10548_v63 = vld [vmem:[#allocation22_spill] sm:$0xff]  ;;  %v10555_v48 = vld [vmem:[#allocation29_spill] sm:$0xff] }
 0x244   :  { %7579 = vrcp.f32 %v1088_v35  ;;  %v10553_v35 = vld [vmem:[#allocation27_spill] sm:$0xff] }
 0x245   :  { %7581 = vrcp.f32 %v1095_v0  ;;  %v10559_v0 = vld [vmem:[#allocation33_spill] sm:$0xff] }
 0x24d   :  { %v7578_v9 = vpop.eup %7577 }
 0x24e   :  { %v7580_v13 = vpop.eup %7579  ;;  %v1099_v34 = vmul.f32 %v7578_v9, %v7576_v52  ;;  %v10556_v52 = vld [vmem:[#allocation30_spill] sm:$0xff]  ;;  %v10557_v9 = vld [vmem:[#allocation31_spill] sm:$0xff] }
 0x24f   :  { %v1098_v61 = vmul.f32 0.0, %v7580_v13  ;;  %v7582_v49 = vpop.eup %7581  ;;  %v10558_v13 = vld [vmem:[#allocation32_spill] sm:$0xff] }
 0x251   :  { %v8744_v31 = vadd.f32 %v1099_v34, %v1098_v61  ;;  %v10550_v61 = vld [vmem:[#allocation24_spill] sm:$0xff]  ;;  %v10552_v34 = vld [vmem:[#allocation26_spill] sm:$0xff] }
 0x253   :  { %7583 = vtanh.f32 %v8744_v31 }
 0x25d   :  { %v7584_v6 = vpop.eup %7583 }
 0x25e   :  { %v1102_v19 = vmul.f32 %v7584_v6, %v7582_v49  ;;  %v10560_v49 = vld [vmem:[#allocation34_spill] sm:$0xff]  ;;  %v10561_v6 = vld [vmem:[#allocation35_spill] sm:$0xff] }
 0x260   :  { %1168 = vmatmul.mubr.f32.vlgmr.msra.gmra.mrb[18].mxu0 %v1102_v19  ;;  %1239 = vmatmul.mubr.f32.vlgmr.msra.gmra.mrb[18].mxu1 %v1102_v19 }
 0x261   :  { %5243 = vmatpush1.bf16.msra.mxu0 %v8152_v14  ;;  %5275 = vmatpush1.bf16.msra.mxu1 %v8156_v17 }
 0x262   :  { %5245 = vmatprep.subr.bf16.mxu0 %v8165_v25  ;;  %5277 = vmatprep.subr.bf16.mxu1 %v8167_v26 }
 0x263   :  { %1337 = vmatprep.mubr.f32.mxu0 %v10489_v5  ;;  %1408 = vmatprep.mubr.f32.mxu1 %v10489_v5 }
 0x265   :  { %5247 = vmatpush1.bf16.msra.mxu0 %v8171_v29  ;;  %5279 = vmatpush1.bf16.msra.mxu1 %v8173_v30 }
 0x266   :  { %5249 = vmatprep.subr.bf16.mxu0 %v8184_v40  ;;  %5281 = vmatprep.subr.bf16.mxu1 %v8186_v41 }
 0x269   :  { %5251 = vmatpush1.bf16.msra.mxu0 %v8190_v44  ;;  %5283 = vmatpush1.bf16.msra.mxu1 %v8192_v45 }
 0x26a   :  { %5253 = vmatprep.subr.bf16.mxu0 %v8203_v53  ;;  %5285 = vmatprep.subr.bf16.mxu1 %v8205_v54 }
 0x26d   :  { %5255 = vmatpush1.bf16.msra.mxu0 %v8209_v57  ;;  %5287 = vmatpush1.bf16.msra.mxu1 %v8211_v58 }
 0x26e   :  { %5257 = vmatprep.subr.bf16.mxu0 %v8222_v3  ;;  %5289 = vmatprep.subr.bf16.mxu1 %v8224_v4 }
 0x271   :  { %5259 = vmatpush1.bf16.msra.mxu0 %v8228_v7  ;;  %5291 = vmatpush1.bf16.msra.mxu1 %v8230_v8 }
 0x272   :  { %5261 = vmatprep.subr.bf16.mxu0 %v8241_v20  ;;  %5293 = vmatprep.subr.bf16.mxu1 %v8243_v21 }
 0x275   :  { %5263 = vmatpush1.bf16.msra.mxu0 %v8247_v24  ;;  %5295 = vmatpush1.bf16.msra.mxu1 %v8249_v27 }
 0x276   :  { %5265 = vmatprep.subr.bf16.mxu0 %v8260_v37  ;;  %5297 = vmatprep.subr.bf16.mxu1 %v8262_v38 }
 0x279   :  { %5267 = vmatpush1.bf16.msra.mxu0 %v8266_v43  ;;  %5299 = vmatpush1.bf16.msra.mxu1 %v8268_v46 }
 0x27a   :  { %5269 = vmatprep.subr.bf16.mxu0 %v8279_v59  ;;  %5301 = vmatprep.subr.bf16.mxu1 %v8281_v60 }
 0x27d   :  { %5271 = vmatpush1.bf16.msra.mxu0 %v8285_v1  ;;  %5303 = vmatpush1.bf16.msra.mxu1 %v8287_v2 }
 0x27e   :  { %5305 = vmatprep.subr.bf16.mxu0 %v8293_v15  ;;  %5369 = vmatprep.subr.bf16.mxu1 %v8295_v16 }
 0x280   :  { %1338 = vmatmul.mubr.f32.vlgmr.msra.gmra.mrb[2].mxu0 %v8535_v62  ;;  %1409 = vmatmul.mubr.f32.vlgmr.msra.gmra.mrb[2].mxu1 %v8535_v62  ;;  %v10554_v62 = vld [vmem:[#allocation28_spill] sm:$0xff] }
 0x281   :  { %1507 = vmatprep.mubr.f32.mxu0 %v1102_v19  ;;  %1578 = vmatprep.mubr.f32.mxu1 %v1102_v19  ;;  %v10562_v19 = vld [vmem:[#allocation36_spill] sm:$0xff] }
 0x282   :  { %5307 = vmatpush1.bf16.msra.mxu0 %v8301_v23  ;;  %5371 = vmatpush1.bf16.msra.mxu1 %v8303_v28 }
 0x283   :  { %5309 = vmatprep.subr.bf16.mxu0 %v10547_v10  ;;  %5373 = vmatprep.subr.bf16.mxu1 %v10548_v63 }
 0x286   :  { %5311 = vmatpush1.bf16.msra.mxu0 %v10549_v56  ;;  %5375 = vmatpush1.bf16.msra.mxu1 %v10550_v61 }
 0x287   :  { %5313 = vmatprep.subr.bf16.mxu0 %v10551_v33  ;;  %5377 = vmatprep.subr.bf16.mxu1 %v10552_v34  ;;  %v10563_v34 = vld [vmem:[#allocation37_spill] sm:$0xff] }
 0x28a   :  { %5315 = vmatpush1.bf16.msra.mxu0 %v10553_v35  ;;  %5379 = vmatpush1.bf16.msra.mxu1 %v10554_v62  ;;  %v10564_v35 = vld [vmem:[#allocation38_spill] sm:$0xff]  ;;  %v10565_v62 = vld [vmem:[#allocation39_spill] sm:$0xff] }
 0x28b   :  { %5317 = vmatprep.subr.bf16.mxu0 %v10555_v48  ;;  %5381 = vmatprep.subr.bf16.mxu1 %v10556_v52  ;;  %v10566_v48 = vld [vmem:[#allocation40_spill] sm:$0xff]  ;;  %v10567_v52 = vld [vmem:[#allocation41_spill] sm:$0xff] }
 0x28e   :  { %5319 = vmatpush1.bf16.msra.mxu0 %v10557_v9  ;;  %5383 = vmatpush1.bf16.msra.mxu1 %v10558_v13  ;;  %v10568_v9 = vld [vmem:[#allocation42_spill] sm:$0xff]  ;;  %v10569_v13 = vld [vmem:[#allocation43_spill] sm:$0xff] }
 0x28f   :  { %5321 = vmatprep.subr.bf16.mxu0 %v10559_v0  ;;  %5385 = vmatprep.subr.bf16.mxu1 %v10560_v49  ;;  %v10570_v0 = vld [vmem:[#allocation44_spill] sm:$0xff]  ;;  %v10571_v49 = vld [vmem:[#allocation45_spill] sm:$0xff] }
 0x292   :  { %5323 = vmatpush1.bf16.msra.mxu0 %v10561_v6  ;;  %5387 = vmatpush1.bf16.msra.mxu1 %v10562_v19  ;;  %v10572_v6 = vld [vmem:[#allocation46_spill] sm:$0xff]  ;;  %v10573_v19 = vld [vmem:[#allocation47_spill] sm:$0xff] }
 0x293   :  { %5325 = vmatprep.subr.bf16.mxu0 %v10563_v34  ;;  %5389 = vmatprep.subr.bf16.mxu1 %v10564_v35  ;;  %v10574_v34 = vld [vmem:[#allocation48_spill] sm:$0xff]  ;;  %v10575_v35 = vld [vmem:[#allocation49_spill] sm:$0xff] }
 0x296   :  { %5327 = vmatpush1.bf16.msra.mxu0 %v10565_v62  ;;  %5391 = vmatpush1.bf16.msra.mxu1 %v10566_v48  ;;  %v10576_v62 = vld [vmem:[#allocation50_spill] sm:$0xff]  ;;  %v10577_v48 = vld [vmem:[#allocation51_spill] sm:$0xff] }
 0x297   :  { %5329 = vmatprep.subr.bf16.mxu0 %v10567_v52  ;;  %5393 = vmatprep.subr.bf16.mxu1 %v10568_v9  ;;  %v10578_v52 = vld [vmem:[#allocation52_spill] sm:$0xff]  ;;  %v10579_v9 = vld [vmem:[#allocation53_spill] sm:$0xff] }
 0x29a   :  { %5331 = vmatpush1.bf16.msra.mxu0 %v10569_v13  ;;  %5395 = vmatpush1.bf16.msra.mxu1 %v10570_v0  ;;  %v10580_v13 = vld [vmem:[#allocation54_spill] sm:$0xff]  ;;  %v10581_v0 = vld [vmem:[#allocation55_spill] sm:$0xff] }
 0x29b   :  { %5333 = vmatprep.subr.bf16.mxu0 %v10571_v49  ;;  %5397 = vmatprep.subr.bf16.mxu1 %v10572_v6  ;;  %v10582_v49 = vld [vmem:[#allocation56_spill] sm:$0xff]  ;;  %v10583_v6 = vld [vmem:[#allocation57_spill] sm:$0xff] }
 0x29e   :  { %5335 = vmatpush1.bf16.msra.mxu0 %v10573_v19  ;;  %5399 = vmatpush1.bf16.msra.mxu1 %v10574_v34  ;;  %v10584_v19 = vld [vmem:[#allocation58_spill] sm:$0xff]  ;;  %v10585_v34 = vld [vmem:[#allocation59_spill] sm:$0xff] }
 0x29f   :  { %5337 = vmatprep.subr.bf16.mxu0 %v10575_v35  ;;  %5401 = vmatprep.subr.bf16.mxu1 %v10576_v62  ;;  %v10586_v35 = vld [vmem:[#allocation60_spill] sm:$0xff]  ;;  %v10587_v62 = vld [vmem:[#allocation61_spill] sm:$0xff] }
 0x2a2   :  { %5339 = vmatpush1.bf16.msra.mxu0 %v10577_v48  ;;  %5403 = vmatpush1.bf16.msra.mxu1 %v10578_v52  ;;  %v10588_v48 = vld [vmem:[#allocation62_spill] sm:$0xff]  ;;  %v10589_v52 = vld [vmem:[#allocation63_spill] sm:$0xff] }
 0x2a3   :  { %5341 = vmatprep.subr.bf16.mxu0 %v10579_v9  ;;  %5405 = vmatprep.subr.bf16.mxu1 %v10580_v13  ;;  %v10590_v9 = vld [vmem:[#allocation64_spill] sm:$0xff]  ;;  %v10591_v13 = vld [vmem:[#allocation65_spill] sm:$0xff] }
 0x2a6   :  { %5343 = vmatpush1.bf16.msra.mxu0 %v10581_v0  ;;  %5407 = vmatpush1.bf16.msra.mxu1 %v10582_v49  ;;  %v10592_v0 = vld [vmem:[#allocation66_spill] sm:$0xff]  ;;  %v10593_v49 = vld [vmem:[#allocation67_spill] sm:$0xff] }
 0x2a7   :  { %5345 = vmatprep.subr.bf16.mxu0 %v10583_v6  ;;  %5409 = vmatprep.subr.bf16.mxu1 %v10584_v19  ;;  %v10594_v6 = vld [vmem:[#allocation68_spill] sm:$0xff]  ;;  %v10595_v19 = vld [vmem:[#allocation69_spill] sm:$0xff] }
 0x2aa   :  { %5347 = vmatpush1.bf16.msra.mxu0 %v10585_v34  ;;  %5411 = vmatpush1.bf16.msra.mxu1 %v10586_v35  ;;  %v10596_v34 = vld [vmem:[#allocation70_spill] sm:$0xff]  ;;  %v10597_v35 = vld [vmem:[#allocation71_spill] sm:$0xff] }
 0x2ab   :  { %5349 = vmatprep.subr.bf16.mxu0 %v10587_v62  ;;  %5413 = vmatprep.subr.bf16.mxu1 %v10588_v48  ;;  %v10598_v62 = vld [vmem:[#allocation72_spill] sm:$0xff]  ;;  %v10599_v48 = vld [vmem:[#allocation73_spill] sm:$0xff] }
 0x2ae   :  { %5351 = vmatpush1.bf16.msra.mxu0 %v10589_v52  ;;  %5415 = vmatpush1.bf16.msra.mxu1 %v10590_v9  ;;  %v10600_v52 = vld [vmem:[#allocation74_spill] sm:$0xff]  ;;  %v10601_v9 = vld [vmem:[#allocation75_spill] sm:$0xff] }
 0x2af   :  { %5353 = vmatprep.subr.bf16.mxu0 %v10591_v13  ;;  %5417 = vmatprep.subr.bf16.mxu1 %v10592_v0  ;;  %v10602_v13 = vld [vmem:[#allocation76_spill] sm:$0xff]  ;;  %v10603_v0 = vld [vmem:[#allocation77_spill] sm:$0xff] }
 0x2b2   :  { %5355 = vmatpush1.bf16.msra.mxu0 %v10593_v49  ;;  %5419 = vmatpush1.bf16.msra.mxu1 %v10594_v6  ;;  %v10604_v49 = vld [vmem:[#allocation78_spill] sm:$0xff]  ;;  %v10605_v6 = vld [vmem:[#allocation79_spill] sm:$0xff] }
 0x2b3   :  { %5357 = vmatprep.subr.bf16.mxu0 %v10595_v19  ;;  %5421 = vmatprep.subr.bf16.mxu1 %v10596_v34  ;;  %v10606_v19 = vld [vmem:[#allocation80_spill] sm:$0xff]  ;;  %v10607_v34 = vld [vmem:[#allocation81_spill] sm:$0xff] }
 0x2b6   :  { %5359 = vmatpush1.bf16.msra.mxu0 %v10597_v35  ;;  %5423 = vmatpush1.bf16.msra.mxu1 %v10598_v62  ;;  %v10608_v35 = vld [vmem:[#allocation82_spill] sm:$0xff] }
 0x2b7   :  { %5361 = vmatprep.subr.bf16.mxu0 %v10599_v48  ;;  %5425 = vmatprep.subr.bf16.mxu1 %v10600_v52  ;;  %v741_v52 = vld [vmem:[%s10117_s7] sm:$0xf]  ;;  %s8037_s7 = smov [#allocation9]  }
 0x2b8   :  { %v8859_v33 = vrot.slane %v741_v52, %v8521_v32  ;;  %v10612_v32 = vld [vmem:[#allocation83_spill] sm:$0xff]  ;;  %s4818_s20 = sshll.u32 %s8037_s7, 4  ;;  %s4819_s20 = int_to_ptr.vmem [resolvable:$true] %s4818_s20 }
 0x2b9   :  { %s8003_s2 = scalar_lea.vmem %s4819_s20, 128  ;;  %p8008_p11 = scmp.lt.s32.totalorder %s4819_s20, %s4819_s20 }
 0x2ba   :  { %5363 = vmatpush1.bf16.msra.mxu0 %v10601_v9  ;;  %5427 = vmatpush1.bf16.msra.mxu1 %v10602_v13  ;;  %v8851_v9 = vrot.slane %v741_v52, %v8501_v39  ;;  %v8854_v13 = vrot.slane %v741_v52, %v8506_v42  ;;  %10611 = vst [vmem:[#allocation155_spill] sm:$0xff] %v8859_v33  ;;  %p8004_p10 = scmp.ne.s32.totalorder %s4819_s20, %s8003_s2  ;;  %p8009_p12 = scmp.lt.s32.totalorder %s8003_s2, %s8003_s2 }
 0x2bb   :  { %5365 = vmatprep.subr.bf16.mxu0 %v10603_v0  ;;  %5429 = vmatprep.subr.bf16.mxu1 %v10604_v49 }
 0x2bc   :  { %10609 = vst [vmem:[#allocation153_spill] sm:$0xff] %v8851_v9  ;;  %10610 = vst [vmem:[#allocation154_spill] sm:$0xff] %v8854_v13  ;;  %p8010_p13 = por %p8009_p12, %p8008_p11 }
 0x2be   :  { %5367 = vmatpush1.bf16.msra.mxu0 %v10605_v6  ;;  %5431 = vmatpush1.bf16.msra.mxu1 %v10606_v19  ;;  %p8011_p0 = pnand %p8010_p13, %p8004_p10 }
 0x2bf   :  { %5433 = vmatprep.subr.bf16.mxu0 %v10607_v34  ;;  %5497 = vmatprep.subr.bf16.mxu1 %v10608_v35 }
 0x333   :  { %v1169_v0 = vpop.f32.mrb[18].mxu0  ;;  %v1240_v49 = vpop.f32.mrb[18].mxu1 }
 0x334   :  { %v1170_v6 = vadd.f32 %v1169_v0, %v8851_v9  ;;  %v1171_v48 = vpop.f32.mrb[19].mxu0  ;;  %v1242_v19 = vpop.f32.mrb[19].mxu1  ;;  %v1241_v39 = vadd.f32 %v1240_v49, %v8859_v33  ;;  %v10613_v33 = vld [vmem:[#allocation84_spill] sm:$0xff] }
 0x335   :  { %v1172_v34 = vadd.f32 %v1171_v48, %v8854_v13 }
 0x336   :  { %v4854_v62 = vmul.f32 -1.442695, %v1170_v6 }
 0x337   :  { %v4855_v35 = vmul.f32 -1.442695, %v1172_v34 }
 0x338   :  { %7585 = vpow2.f32 %v4854_v62 }
 0x339   :  { %7587 = vpow2.f32 %v4855_v35 }
 0x33a   :  { %7589 = vtanh.f32 %v1241_v39 }
 0x342   :  { %v7586_v61 = vpop.eup %7585 }
 0x343   :  { %v7588_v42 = vpop.eup %7587  ;;  %v1248_v56 = vadd.f32 1.0, %v7586_v61  ;;  %v8867_v61 = vrot.slane %v741_v52, %v8514_v51 }
 0x344   :  { %v1254_v63 = vadd.f32 1.0, %v7588_v42  ;;  %v7590_v0 = vpop.eup %7589 }
 0x345   :  { %7591 = vrcp.f32 %v1248_v56 }
 0x346   :  { %7593 = vrcp.f32 %v1254_v63 }
 0x34f   :  { %v7592_v9 = vpop.eup %7591 }
 0x350   :  { %v7594_v10 = vpop.eup %7593  ;;  %v1265_v48 = vmul.f32 %v7592_v9, %v7590_v0  ;;  %v1243_v9 = vadd.f32 %v1242_v19, %v8867_v61 }
 0x351   :  { %v1264_v6 = vmul.f32 0.0, %v7594_v10  ;;  %v10614_v10 = vld [vmem:[#allocation85_spill] sm:$0xff] }
 0x352   :  { %v4856_v42 = vmul.f32 -1.442695, %v1243_v9 }
 0x353   :  { %v8862_v34 = vadd.f32 %v1265_v48, %v1264_v6  ;;  %v1339_v35 = vpop.f32.mrb[2].mxu0  ;;  %v1410_v62 = vpop.f32.mrb[2].mxu1  ;;  %v10615_v48 = vld [vmem:[#allocation86_spill] sm:$0xff] }
 0x354   :  { %v7482_v13 = vadd.f32 %v1339_v35, %v10612_v32  ;;  %v1341_v28 = vpop.f32.mrb[3].mxu0  ;;  %v1412_v49 = vpop.f32.mrb[3].mxu1  ;;  %v7498_v6 = vadd.f32 %v1410_v62, %v10615_v48 }
 0x355   :  { %v7483_v23 = vadd.f32 %v1341_v28, %v10613_v33  ;;  %v7499_v39 = vadd.f32 %v1412_v49, %v10614_v10 }
 0x356   :  { %v4857_v56 = vmul.f32 -1.442695, %v7482_v13 }
 0x357   :  { %v4858_v63 = vmul.f32 -1.442695, %v7483_v23  ;;  %v4859_v0 = vmul.f32 -1.442695, %v7499_v39 }
 0x358   :  { %7595 = vpow2.f32 %v4857_v56 }
 0x359   :  { %7597 = vpow2.f32 %v4858_v63  ;;  %v10616_v63 = vld [vmem:[#allocation87_spill] sm:$0xff] }
 0x35a   :  { %7599 = vpow2.f32 %v4856_v42 }
 0x35b   :  { %7601 = vpow2.f32 %v4859_v0 }
 0x35c   :  { %7603 = vtanh.f32 %v7498_v6 }
 0x362   :  { %v7596_v35 = vpop.eup %7595 }
 0x363   :  { %v7598_v32 = vpop.eup %7597  ;;  %v1422_v16 = vadd.f32 1.0, %v7596_v35 }
 0x364   :  { %v1428_v28 = vadd.f32 1.0, %v7598_v32  ;;  %v7600_v23 = vpop.eup %7599 }
 0x365   :  { %7605 = vrcp.f32 %v1422_v16  ;;  %v7602_v51 = vpop.eup %7601  ;;  %v1261_v39 = vadd.f32 1.0, %v7600_v23  ;;  %v10618_v23 = vld [vmem:[#allocation89_spill] sm:$0xff] }
 0x366   :  { %7607 = vrcp.f32 %v1428_v28  ;;  %v7604_v52 = vpop.eup %7603  ;;  %v1435_v49 = vadd.f32 1.0, %v7602_v51  ;;  %v10617_v28 = vld [vmem:[#allocation88_spill] sm:$0xff]  ;;  %v10619_v51 = vld [vmem:[#allocation90_spill] sm:$0xff] }
 0x367   :  { %7609 = vtanh.f32 %v8862_v34 }
 0x368   :  { %7611 = vrcp.f32 %v1435_v49  ;;  %v10624_v49 = vld [vmem:[#allocation100_spill] sm:$0xff] }
 0x36f   :  { %v7606_v13 = vpop.eup %7605 }
 0x370   :  { %v7608_v19 = vpop.eup %7607  ;;  %v1439_v56 = vmul.f32 %v7606_v13, %v7604_v52  ;;  %v10620_v52 = vld [vmem:[#allocation91_spill] sm:$0xff]  ;;  %v10621_v13 = vld [vmem:[#allocation92_spill] sm:$0xff] }
 0x371   :  { %v1438_v9 = vmul.f32 %v7608_v19, %v10616_v63  ;;  %v7610_v16 = vpop.eup %7609  ;;  %v10622_v19 = vld [vmem:[#allocation93_spill] sm:$0xff] }
 0x372   :  { %v7612_v32 = vpop.eup %7611  ;;  %v10625_v63 = vld [vmem:[#allocation101_spill] sm:$0xff] }
 0x373   :  { %v8874_v62 = vadd.f32 %v1439_v56, %v1438_v9  ;;  %v10623_v56 = vld [vmem:[#allocation99_spill] sm:$0xff]  ;;  %v10626_v9 = vld [vmem:[#allocation102_spill] sm:$0xff] }
 0x375   :  { %7613 = vtanh.f32 %v8874_v62 }
 0x376   :  { %7615 = vrcp.f32 %v1261_v39  ;;  %v10627_v39 = vld [vmem:[#allocation103_spill] sm:$0xff] }
 0x37f   :  { %v7614_v42 = vpop.eup %7613 }
 0x380   :  { %v7616_v0 = vpop.eup %7615  ;;  %v8877_v6 = vmul.f32 %v7614_v42, %v7612_v32  ;;  %v10629_v32 = vld [vmem:[#allocation105_spill] sm:$0xff]  ;;  %v10630_v42 = vld [vmem:[#allocation106_spill] sm:$0xff] }
 0x381   :  { %v1268_v35 = vmul.f32 %v7616_v0, %v7610_v16  ;;  %v10628_v16 = vld [vmem:[#allocation104_spill] sm:$0xff]  ;;  %v10631_v0 = vld [vmem:[#allocation107_spill] sm:$0xff] }
 0x382   :  { %1508 = vmatmul.mubr.f32.vlgmr.msra.gmra.mrb[20].mxu0 %v8877_v6  ;;  %1579 = vmatmul.mubr.f32.vlgmr.msra.gmra.mrb[20].mxu1 %v8877_v6 }
 0x383   :  { %1673 = vmatprep.mubr.f32.mxu0 %v1268_v35  ;;  %1744 = vmatprep.mubr.f32.mxu1 %v1268_v35  ;;  %v10632_v35 = vld [vmem:[#allocation108_spill] sm:$0xff] }
 0x384   :  { %5435 = vmatpush1.bf16.msra.mxu0 %v10617_v28  ;;  %5499 = vmatpush1.bf16.msra.mxu1 %v10618_v23 }
 0x385   :  { %5437 = vmatprep.subr.bf16.mxu0 %v10619_v51  ;;  %5501 = vmatprep.subr.bf16.mxu1 %v10620_v52 }
 0x388   :  { %5439 = vmatpush1.bf16.msra.mxu0 %v10621_v13  ;;  %5503 = vmatpush1.bf16.msra.mxu1 %v10622_v19 }
 0x389   :  { %5441 = vmatprep.subr.bf16.mxu0 %v8551_v36  ;;  %5505 = vmatprep.subr.bf16.mxu1 %v8553_v22 }
 0x38c   :  { %5443 = vmatpush1.bf16.msra.mxu0 %v8559_v47  ;;  %5507 = vmatpush1.bf16.msra.mxu1 %v8561_v50  ;;  %v10675_v50 = vld [vmem:[#allocation151_spill] sm:$0xff] }
 0x38d   :  { %5445 = vmatprep.subr.bf16.mxu0 %v8565_v55  ;;  %5509 = vmatprep.subr.bf16.mxu1 %v10623_v56  ;;  %v10633_v55 = vld [vmem:[#allocation109_spill] sm:$0xff]  ;;  %v10634_v56 = vld [vmem:[#allocation110_spill] sm:$0xff] }
 0x390   :  { %5447 = vmatpush1.bf16.msra.mxu0 %v10624_v49  ;;  %5511 = vmatpush1.bf16.msra.mxu1 %v10625_v63  ;;  %v10635_v49 = vld [vmem:[#allocation111_spill] sm:$0xff]  ;;  %v10636_v63 = vld [vmem:[#allocation112_spill] sm:$0xff] }
 0x391   :  { %5449 = vmatprep.subr.bf16.mxu0 %v10626_v9  ;;  %5513 = vmatprep.subr.bf16.mxu1 %v10627_v39  ;;  %v10637_v9 = vld [vmem:[#allocation113_spill] sm:$0xff]  ;;  %v10638_v39 = vld [vmem:[#allocation114_spill] sm:$0xff] }
 0x394   :  { %5451 = vmatpush1.bf16.msra.mxu0 %v10628_v16  ;;  %5515 = vmatpush1.bf16.msra.mxu1 %v10629_v32  ;;  %v10639_v16 = vld [vmem:[#allocation115_spill] sm:$0xff]  ;;  %v10640_v32 = vld [vmem:[#allocation116_spill] sm:$0xff] }
 0x395   :  { %5453 = vmatprep.subr.bf16.mxu0 %v10630_v42  ;;  %5517 = vmatprep.subr.bf16.mxu1 %v10631_v0  ;;  %v10641_v42 = vld [vmem:[#allocation117_spill] sm:$0xff]  ;;  %v10642_v0 = vld [vmem:[#allocation118_spill] sm:$0xff] }
 0x398   :  { %5455 = vmatpush1.bf16.msra.mxu0 %v10632_v35  ;;  %5519 = vmatpush1.bf16.msra.mxu1 %v10633_v55  ;;  %v10643_v35 = vld [vmem:[#allocation119_spill] sm:$0xff]  ;;  %v10644_v55 = vld [vmem:[#allocation120_spill] sm:$0xff] }
 0x399   :  { %5457 = vmatprep.subr.bf16.mxu0 %v10634_v56  ;;  %5521 = vmatprep.subr.bf16.mxu1 %v10635_v49  ;;  %v10645_v56 = vld [vmem:[#allocation121_spill] sm:$0xff]  ;;  %v10646_v49 = vld [vmem:[#allocation122_spill] sm:$0xff] }
 0x39c   :  { %5459 = vmatpush1.bf16.msra.mxu0 %v10636_v63  ;;  %5523 = vmatpush1.bf16.msra.mxu1 %v10637_v9  ;;  %v10647_v63 = vld [vmem:[#allocation123_spill] sm:$0xff]  ;;  %v10648_v9 = vld [vmem:[#allocation124_spill] sm:$0xff] }
 0x39d   :  { %5461 = vmatprep.subr.bf16.mxu0 %v10638_v39  ;;  %5525 = vmatprep.subr.bf16.mxu1 %v10639_v16  ;;  %v10649_v39 = vld [vmem:[#allocation125_spill] sm:$0xff]  ;;  %v10650_v16 = vld [vmem:[#allocation126_spill] sm:$0xff] }
 0x3a0   :  { %5463 = vmatpush1.bf16.msra.mxu0 %v10640_v32  ;;  %5527 = vmatpush1.bf16.msra.mxu1 %v10641_v42  ;;  %v10651_v32 = vld [vmem:[#allocation127_spill] sm:$0xff]  ;;  %v10652_v42 = vld [vmem:[#allocation128_spill] sm:$0xff] }
 0x3a1   :  { %5465 = vmatprep.subr.bf16.mxu0 %v10642_v0  ;;  %5529 = vmatprep.subr.bf16.mxu1 %v10643_v35  ;;  %v10653_v0 = vld [vmem:[#allocation129_spill] sm:$0xff]  ;;  %v10654_v35 = vld [vmem:[#allocation130_spill] sm:$0xff] }
 0x3a4   :  { %5467 = vmatpush1.bf16.msra.mxu0 %v10644_v55  ;;  %5531 = vmatpush1.bf16.msra.mxu1 %v10645_v56  ;;  %v10655_v55 = vld [vmem:[#allocation131_spill] sm:$0xff]  ;;  %v10656_v56 = vld [vmem:[#allocation132_spill] sm:$0xff] }
 0x3a5   :  { %5469 = vmatprep.subr.bf16.mxu0 %v10646_v49  ;;  %5533 = vmatprep.subr.bf16.mxu1 %v10647_v63  ;;  %v10657_v49 = vld [vmem:[#allocation133_spill] sm:$0xff]  ;;  %v10658_v63 = vld [vmem:[#allocation134_spill] sm:$0xff] }
 0x3a8   :  { %5471 = vmatpush1.bf16.msra.mxu0 %v10648_v9  ;;  %5535 = vmatpush1.bf16.msra.mxu1 %v10649_v39  ;;  %v10659_v9 = vld [vmem:[#allocation135_spill] sm:$0xff]  ;;  %v10660_v39 = vld [vmem:[#allocation136_spill] sm:$0xff] }
 0x3a9   :  { %5473 = vmatprep.subr.bf16.mxu0 %v10650_v16  ;;  %5537 = vmatprep.subr.bf16.mxu1 %v10651_v32  ;;  %v10661_v16 = vld [vmem:[#allocation137_spill] sm:$0xff]  ;;  %v10662_v32 = vld [vmem:[#allocation138_spill] sm:$0xff] }
 0x3ac   :  { %5475 = vmatpush1.bf16.msra.mxu0 %v10652_v42  ;;  %5539 = vmatpush1.bf16.msra.mxu1 %v10653_v0  ;;  %v10663_v42 = vld [vmem:[#allocation139_spill] sm:$0xff]  ;;  %v10664_v0 = vld [vmem:[#allocation140_spill] sm:$0xff] }
 0x3ad   :  { %5477 = vmatprep.subr.bf16.mxu0 %v10654_v35  ;;  %5541 = vmatprep.subr.bf16.mxu1 %v10655_v55  ;;  %v10665_v35 = vld [vmem:[#allocation141_spill] sm:$0xff] }
 0x3b0   :  { %5479 = vmatpush1.bf16.msra.mxu0 %v10656_v56  ;;  %5543 = vmatpush1.bf16.msra.mxu1 %v10657_v49  ;;  %v10666_v49 = vld [vmem:[#allocation144_spill] sm:$0xff]  ;;  %v10674_v56 = vld [vmem:[#allocation150_spill] sm:$0xff] }
 0x3b1   :  { %5481 = vmatprep.subr.bf16.mxu0 %v10658_v63  ;;  %5545 = vmatprep.subr.bf16.mxu1 %v10659_v9  ;;  %v10667_v63 = vld [vmem:[#allocation145_spill] sm:$0xff]  ;;  %v10668_v9 = vld [vmem:[#allocation146_spill] sm:$0xff] }
 0x3b4   :  { %5483 = vmatpush1.bf16.msra.mxu0 %v10660_v39  ;;  %5547 = vmatpush1.bf16.msra.mxu1 %v10661_v16  ;;  %v10669_v39 = vld [vmem:[#allocation147_spill] sm:$0xff]  ;;  %v10670_v16 = vld [vmem:[#allocation148_spill] sm:$0xff] }
 0x3b5   :  { %5485 = vmatprep.subr.bf16.mxu0 %v10662_v32  ;;  %5549 = vmatprep.subr.bf16.mxu1 %v10663_v42  ;;  %v10671_v32 = vld [vmem:[#allocation149_spill] sm:$0xff] }
 0x3b6   :  { %v10672_v42 = vld [vmem:[#allocation13_spill] sm:$0xff] }
 0x3b8   :  { %5487 = vmatpush1.bf16.msra.mxu0 %v10664_v0  ;;  %5551 = vmatpush1.bf16.msra.mxu1 %v10665_v35  ;;  %v10673_v0 = vld [vmem:[#allocation14_spill] sm:$0xff] }
 0x3b9   :  { %5489 = vmatprep.subr.bf16.mxu0 %v8698_v18  ;;  %5553 = vmatprep.subr.bf16.mxu1 %v8700_v11 }
 0x3bc   :  { %5491 = vmatpush1.bf16.msra.mxu0 %v10666_v49  ;;  %5555 = vmatpush1.bf16.msra.mxu1 %v10667_v63 }
 0x3bd   :  { %5493 = vmatprep.subr.bf16.mxu0 %v10668_v9  ;;  %5557 = vmatprep.subr.bf16.mxu1 %v10669_v39  ;;  %v10676_v39 = vld [vmem:[#allocation152_spill] sm:$0xff] }
 0x3c0   :  { %5495 = vmatpush1.bf16.msra.mxu0 %v10670_v16  ;;  %5559 = vmatpush1.bf16.msra.mxu1 %v10671_v32 }
 0x3c1   :  { %5561 = vmatprep.subr.bf16.mxu0 %v10672_v42  ;;  %5593 = vmatprep.subr.bf16.mxu1 %v10673_v0 }
 0x455   :  { %v1509_v35 = vpop.f32.mrb[20].mxu0  ;;  %v1580_v18 = vpop.f32.mrb[20].mxu1 }
 0x456   :  { %v1510_v11 = vadd.f32 %v1509_v35, %v10674_v56  ;;  %v1511_v55 = vpop.f32.mrb[21].mxu0  ;;  %v1582_v49 = vpop.f32.mrb[21].mxu1  ;;  %v1581_v32 = vadd.f32 %v1580_v18, %v8741_v12 }
 0x457   :  { %v1512_v63 = vadd.f32 %v1511_v55, %v10675_v50  ;;  %v1583_v16 = vadd.f32 %v1582_v49, %v10676_v39 }
 0x458   :  { %v4860_v47 = vmul.f32 -1.442695, %v1510_v11 }
 0x459   :  { %v4861_v9 = vmul.f32 -1.442695, %v1512_v63  ;;  %v4862_v22 = vmul.f32 -1.442695, %v1583_v16 }
 0x45a   :  { %7617 = vpow2.f32 %v4860_v47 }
 0x45b   :  { %7619 = vpow2.f32 %v4861_v9 }
 0x45c   :  { %7621 = vpow2.f32 %v4862_v22 }
 0x45d   :  { %7623 = vtanh.f32 %v1581_v32  ;;  %v10681_v32 = vld [vmem:[#allocation22_spill] sm:$0xff] }
 0x464   :  { %v7618_v42 = vpop.eup %7617 }
 0x465   :  { %v7620_v36 = vpop.eup %7619  ;;  %v1588_v0 = vadd.f32 1.0, %v7618_v42  ;;  %v10682_v42 = vld [vmem:[#allocation23_spill] sm:$0xff] }
 0x466   :  { %v1594_v19 = vadd.f32 1.0, %v7620_v36  ;;  %v7622_v35 = vpop.eup %7621  ;;  %v10677_v36 = vld [vmem:[#allocation18_spill] sm:$0xff] }
 0x467   :  { %7625 = vrcp.f32 %v1588_v0  ;;  %v7624_v56 = vpop.eup %7623  ;;  %v1601_v47 = vadd.f32 1.0, %v7622_v35  ;;  %v10683_v0 = vld [vmem:[#allocation24_spill] sm:$0xff]  ;;  %v10684_v35 = vld [vmem:[#allocation25_spill] sm:$0xff] }
 0x468   :  { %7627 = vrcp.f32 %v1594_v19  ;;  %v10679_v19 = vld [vmem:[#allocation20_spill] sm:$0xff] }
 0x469   :  { %7629 = vrcp.f32 %v1601_v47  ;;  %v10689_v47 = vld [vmem:[#allocation30_spill] sm:$0xff] }
 0x471   :  { %v7626_v55 = vpop.eup %7625 }
 0x472   :  { %v7628_v11 = vpop.eup %7627  ;;  %v1605_v63 = vmul.f32 %v7626_v55, %v7624_v56  ;;  %v10680_v56 = vld [vmem:[#allocation21_spill] sm:$0xff]  ;;  %v10685_v55 = vld [vmem:[#allocation26_spill] sm:$0xff] }
 0x473   :  { %v1604_v9 = vmul.f32 %v7628_v11, %v8744_v31  ;;  %v7630_v18 = vpop.eup %7629  ;;  %v10678_v31 = vld [vmem:[#allocation19_spill] sm:$0xff] }
 0x474   :  { %v10686_v11 = vld [vmem:[#allocation27_spill] sm:$0xff] }
 0x475   :  { %v8950_v49 = vadd.f32 %v1605_v63, %v1604_v9  ;;  %v10688_v63 = vld [vmem:[#allocation29_spill] sm:$0xff]  ;;  %v10690_v9 = vld [vmem:[#allocation31_spill] sm:$0xff] }
 0x477   :  { %7631 = vtanh.f32 %v8950_v49 }
 0x481   :  { %v7632_v16 = vpop.eup %7631 }
 0x482   :  { %v1608_v22 = vmul.f32 %v7632_v16, %v7630_v18  ;;  %v10691_v18 = vld [vmem:[#allocation32_spill] sm:$0xff]  ;;  %v10692_v16 = vld [vmem:[#allocation33_spill] sm:$0xff] }
 0x484   :  { %1674 = vmatmul.mubr.f32.vlgmr.msra.gmra.mrb[22].mxu0 %v1608_v22  ;;  %1745 = vmatmul.mubr.f32.vlgmr.msra.gmra.mrb[22].mxu1 %v1608_v22 }
 0x485   :  { %5563 = vmatpush1.bf16.msra.mxu0 %v8152_v14  ;;  %5595 = vmatpush1.bf16.msra.mxu1 %v8156_v17 }
 0x486   :  { %5565 = vmatprep.subr.bf16.mxu0 %v8165_v25  ;;  %5597 = vmatprep.subr.bf16.mxu1 %v8167_v26 }
 0x487   :  { %1843 = vmatprep.mubr.f32.mxu0 %v10489_v5  ;;  %1914 = vmatprep.mubr.f32.mxu1 %v10489_v5 }
 0x489   :  { %5567 = vmatpush1.bf16.msra.mxu0 %v8171_v29  ;;  %5599 = vmatpush1.bf16.msra.mxu1 %v8173_v30 }
 0x48a   :  { %5569 = vmatprep.subr.bf16.mxu0 %v8184_v40  ;;  %5601 = vmatprep.subr.bf16.mxu1 %v8186_v41 }
 0x48d   :  { %5571 = vmatpush1.bf16.msra.mxu0 %v8190_v44  ;;  %5603 = vmatpush1.bf16.msra.mxu1 %v8192_v45 }
 0x48e   :  { %5573 = vmatprep.subr.bf16.mxu0 %v8203_v53  ;;  %5605 = vmatprep.subr.bf16.mxu1 %v8205_v54 }
 0x491   :  { %5575 = vmatpush1.bf16.msra.mxu0 %v8209_v57  ;;  %5607 = vmatpush1.bf16.msra.mxu1 %v8211_v58 }
 0x492   :  { %5577 = vmatprep.subr.bf16.mxu0 %v8222_v3  ;;  %5609 = vmatprep.subr.bf16.mxu1 %v8224_v4 }
 0x495   :  { %5579 = vmatpush1.bf16.msra.mxu0 %v8228_v7  ;;  %5611 = vmatpush1.bf16.msra.mxu1 %v8230_v8 }
 0x496   :  { %5581 = vmatprep.subr.bf16.mxu0 %v8241_v20  ;;  %5613 = vmatprep.subr.bf16.mxu1 %v8243_v21 }
 0x499   :  { %5583 = vmatpush1.bf16.msra.mxu0 %v8247_v24  ;;  %5615 = vmatpush1.bf16.msra.mxu1 %v8249_v27 }
 0x49a   :  { %5585 = vmatprep.subr.bf16.mxu0 %v8260_v37  ;;  %5617 = vmatprep.subr.bf16.mxu1 %v8262_v38 }
 0x49d   :  { %5587 = vmatpush1.bf16.msra.mxu0 %v8266_v43  ;;  %5619 = vmatpush1.bf16.msra.mxu1 %v8268_v46 }
 0x49e   :  { %5589 = vmatprep.subr.bf16.mxu0 %v8279_v59  ;;  %5621 = vmatprep.subr.bf16.mxu1 %v8281_v60 }
 0x4a1   :  { %5591 = vmatpush1.bf16.msra.mxu0 %v8285_v1  ;;  %5623 = vmatpush1.bf16.msra.mxu1 %v8287_v2 }
 0x4a2   :  { %5625 = vmatprep.subr.bf16.mxu0 %v8293_v15  ;;  %5689 = vmatprep.subr.bf16.mxu1 %v10677_v36 }
 0x4a4   :  { %1844 = vmatmul.mubr.f32.vlgmr.msra.gmra.mrb[4].mxu0 %v8877_v6  ;;  %1915 = vmatmul.mubr.f32.vlgmr.msra.gmra.mrb[4].mxu1 %v8877_v6  ;;  %v10687_v6 = vld [vmem:[#allocation28_spill] sm:$0xff] }
 0x4a5   :  { %2013 = vmatprep.mubr.f32.mxu0 %v1608_v22  ;;  %2084 = vmatprep.mubr.f32.mxu1 %v1608_v22  ;;  %v10693_v22 = vld [vmem:[#allocation34_spill] sm:$0xff] }
 0x4a6   :  { %5627 = vmatpush1.bf16.msra.mxu0 %v10678_v31  ;;  %5691 = vmatpush1.bf16.msra.mxu1 %v10679_v19 }
 0x4a7   :  { %5629 = vmatprep.subr.bf16.mxu0 %v10680_v56  ;;  %5693 = vmatprep.subr.bf16.mxu1 %v10681_v32  ;;  %v10743_v56 = vld [vmem:[#allocation154_spill] sm:$0xff] }
 0x4aa   :  { %5631 = vmatpush1.bf16.msra.mxu0 %v10682_v42  ;;  %5695 = vmatpush1.bf16.msra.mxu1 %v10683_v0  ;;  %v10694_v0 = vld [vmem:[#allocation35_spill] sm:$0xff]  ;;  %v10742_v42 = vld [vmem:[#allocation153_spill] sm:$0xff] }
 0x4ab   :  { %5633 = vmatprep.subr.bf16.mxu0 %v10684_v35  ;;  %5697 = vmatprep.subr.bf16.mxu1 %v10685_v55  ;;  %v10695_v35 = vld [vmem:[#allocation36_spill] sm:$0xff]  ;;  %v10696_v55 = vld [vmem:[#allocation37_spill] sm:$0xff] }
 0x4ae   :  { %5635 = vmatpush1.bf16.msra.mxu0 %v10686_v11  ;;  %5699 = vmatpush1.bf16.msra.mxu1 %v10687_v6  ;;  %v10697_v11 = vld [vmem:[#allocation38_spill] sm:$0xff]  ;;  %v10698_v6 = vld [vmem:[#allocation39_spill] sm:$0xff] }
 0x4af   :  { %5637 = vmatprep.subr.bf16.mxu0 %v10688_v63  ;;  %5701 = vmatprep.subr.bf16.mxu1 %v10689_v47  ;;  %v10699_v63 = vld [vmem:[#allocation40_spill] sm:$0xff]  ;;  %v10700_v47 = vld [vmem:[#allocation41_spill] sm:$0xff] }
 0x4b2   :  { %5639 = vmatpush1.bf16.msra.mxu0 %v10690_v9  ;;  %5703 = vmatpush1.bf16.msra.mxu1 %v10691_v18  ;;  %v10701_v9 = vld [vmem:[#allocation42_spill] sm:$0xff]  ;;  %v10702_v18 = vld [vmem:[#allocation43_spill] sm:$0xff] }
 0x4b3   :  { %5641 = vmatprep.subr.bf16.mxu0 %v10692_v16  ;;  %5705 = vmatprep.subr.bf16.mxu1 %v10693_v22  ;;  %v10703_v16 = vld [vmem:[#allocation44_spill] sm:$0xff]  ;;  %v10704_v22 = vld [vmem:[#allocation45_spill] sm:$0xff] }
 0x4b6   :  { %5643 = vmatpush1.bf16.msra.mxu0 %v10694_v0  ;;  %5707 = vmatpush1.bf16.msra.mxu1 %v10695_v35  ;;  %v10705_v0 = vld [vmem:[#allocation46_spill] sm:$0xff]  ;;  %v10706_v35 = vld [vmem:[#allocation47_spill] sm:$0xff] }
 0x4b7   :  { %5645 = vmatprep.subr.bf16.mxu0 %v10696_v55  ;;  %5709 = vmatprep.subr.bf16.mxu1 %v10697_v11  ;;  %v10707_v55 = vld [vmem:[#allocation48_spill] sm:$0xff]  ;;  %v10708_v11 = vld [vmem:[#allocation49_spill] sm:$0xff] }
 0x4ba   :  { %5647 = vmatpush1.bf16.msra.mxu0 %v10698_v6  ;;  %5711 = vmatpush1.bf16.msra.mxu1 %v10699_v63  ;;  %v10709_v6 = vld [vmem:[#allocation50_spill] sm:$0xff]  ;;  %v10710_v63 = vld [vmem:[#allocation51_spill] sm:$0xff] }
 0x4bb   :  { %5649 = vmatprep.subr.bf16.mxu0 %v10700_v47  ;;  %5713 = vmatprep.subr.bf16.mxu1 %v10701_v9  ;;  %v10711_v47 = vld [vmem:[#allocation52_spill] sm:$0xff]  ;;  %v10712_v9 = vld [vmem:[#allocation53_spill] sm:$0xff] }
 0x4be   :  { %5651 = vmatpush1.bf16.msra.mxu0 %v10702_v18  ;;  %5715 = vmatpush1.bf16.msra.mxu1 %v10703_v16  ;;  %v10713_v18 = vld [vmem:[#allocation54_spill] sm:$0xff]  ;;  %v10714_v16 = vld [vmem:[#allocation55_spill] sm:$0xff] }
 0x4bf   :  { %5653 = vmatprep.subr.bf16.mxu0 %v10704_v22  ;;  %5717 = vmatprep.subr.bf16.mxu1 %v10705_v0  ;;  %v10715_v22 = vld [vmem:[#allocation56_spill] sm:$0xff]  ;;  %v10716_v0 = vld [vmem:[#allocation57_spill] sm:$0xff] }
 0x4c2   :  { %5655 = vmatpush1.bf16.msra.mxu0 %v10706_v35  ;;  %5719 = vmatpush1.bf16.msra.mxu1 %v10707_v55  ;;  %v10717_v35 = vld [vmem:[#allocation58_spill] sm:$0xff]  ;;  %v10718_v55 = vld [vmem:[#allocation59_spill] sm:$0xff] }
 0x4c3   :  { %5657 = vmatprep.subr.bf16.mxu0 %v10708_v11  ;;  %5721 = vmatprep.subr.bf16.mxu1 %v10709_v6  ;;  %v10719_v11 = vld [vmem:[#allocation60_spill] sm:$0xff]  ;;  %v10720_v6 = vld [vmem:[#allocation61_spill] sm:$0xff] }
 0x4c6   :  { %5659 = vmatpush1.bf16.msra.mxu0 %v10710_v63  ;;  %5723 = vmatpush1.bf16.msra.mxu1 %v10711_v47  ;;  %v10721_v63 = vld [vmem:[#allocation62_spill] sm:$0xff]  ;;  %v10722_v47 = vld [vmem:[#allocation63_spill] sm:$0xff] }
 0x4c7   :  { %5661 = vmatprep.subr.bf16.mxu0 %v10712_v9  ;;  %5725 = vmatprep.subr.bf16.mxu1 %v10713_v18  ;;  %v10723_v9 = vld [vmem:[#allocation64_spill] sm:$0xff]  ;;  %v10724_v18 = vld [vmem:[#allocation65_spill] sm:$0xff] }
 0x4ca   :  { %5663 = vmatpush1.bf16.msra.mxu0 %v10714_v16  ;;  %5727 = vmatpush1.bf16.msra.mxu1 %v10715_v22  ;;  %v10725_v16 = vld [vmem:[#allocation66_spill] sm:$0xff]  ;;  %v10726_v22 = vld [vmem:[#allocation67_spill] sm:$0xff] }
 0x4cb   :  { %5665 = vmatprep.subr.bf16.mxu0 %v10716_v0  ;;  %5729 = vmatprep.subr.bf16.mxu1 %v10717_v35  ;;  %v10727_v0 = vld [vmem:[#allocation68_spill] sm:$0xff]  ;;  %v10728_v35 = vld [vmem:[#allocation69_spill] sm:$0xff] }
 0x4ce   :  { %5667 = vmatpush1.bf16.msra.mxu0 %v10718_v55  ;;  %5731 = vmatpush1.bf16.msra.mxu1 %v10719_v11  ;;  %v10729_v55 = vld [vmem:[#allocation70_spill] sm:$0xff]  ;;  %v10730_v11 = vld [vmem:[#allocation71_spill] sm:$0xff] }
 0x4cf   :  { %5669 = vmatprep.subr.bf16.mxu0 %v10720_v6  ;;  %5733 = vmatprep.subr.bf16.mxu1 %v10721_v63  ;;  %v10731_v6 = vld [vmem:[#allocation72_spill] sm:$0xff]  ;;  %v10732_v63 = vld [vmem:[#allocation73_spill] sm:$0xff] }
 0x4d2   :  { %5671 = vmatpush1.bf16.msra.mxu0 %v10722_v47  ;;  %5735 = vmatpush1.bf16.msra.mxu1 %v10723_v9  ;;  %v10733_v47 = vld [vmem:[#allocation74_spill] sm:$0xff]  ;;  %v10734_v9 = vld [vmem:[#allocation75_spill] sm:$0xff] }
 0x4d3   :  { %5673 = vmatprep.subr.bf16.mxu0 %v10724_v18  ;;  %5737 = vmatprep.subr.bf16.mxu1 %v10725_v16  ;;  %v10735_v18 = vld [vmem:[#allocation76_spill] sm:$0xff]  ;;  %v10736_v16 = vld [vmem:[#allocation77_spill] sm:$0xff] }
 0x4d6   :  { %5675 = vmatpush1.bf16.msra.mxu0 %v10726_v22  ;;  %5739 = vmatpush1.bf16.msra.mxu1 %v10727_v0  ;;  %v10737_v22 = vld [vmem:[#allocation78_spill] sm:$0xff]  ;;  %v10738_v0 = vld [vmem:[#allocation79_spill] sm:$0xff] }
 0x4d7   :  { %5677 = vmatprep.subr.bf16.mxu0 %v10728_v35  ;;  %5741 = vmatprep.subr.bf16.mxu1 %v10729_v55  ;;  %v10739_v35 = vld [vmem:[#allocation80_spill] sm:$0xff]  ;;  %v10740_v55 = vld [vmem:[#allocation81_spill] sm:$0xff] }
 0x4da   :  { %5679 = vmatpush1.bf16.msra.mxu0 %v10730_v11  ;;  %5743 = vmatpush1.bf16.msra.mxu1 %v10731_v6  ;;  %v10741_v11 = vld [vmem:[#allocation82_spill] sm:$0xff] }
 0x4db   :  { %5681 = vmatprep.subr.bf16.mxu0 %v10732_v63  ;;  %5745 = vmatprep.subr.bf16.mxu1 %v10733_v47 }
 0x4de   :  { %5683 = vmatpush1.bf16.msra.mxu0 %v10734_v9  ;;  %5747 = vmatpush1.bf16.msra.mxu1 %v10735_v18 }
 0x4df   :  { %5685 = vmatprep.subr.bf16.mxu0 %v10736_v16  ;;  %5749 = vmatprep.subr.bf16.mxu1 %v10737_v22  ;;  %v10744_v22 = vld [vmem:[#allocation155_spill] sm:$0xff] }
 0x4e2   :  { %5687 = vmatpush1.bf16.msra.mxu0 %v10738_v0  ;;  %5751 = vmatpush1.bf16.msra.mxu1 %v10739_v35 }
 0x4e3   :  { %5753 = vmatprep.subr.bf16.mxu0 %v10740_v55  ;;  %5817 = vmatprep.subr.bf16.mxu1 %v10741_v11 }
 0x557   :  { %v1675_v6 = vpop.f32.mrb[22].mxu0  ;;  %v1746_v63 = vpop.f32.mrb[22].mxu1 }
 0x558   :  { %v1676_v47 = vadd.f32 %v1675_v6, %v10742_v42  ;;  %v1677_v32 = vpop.f32.mrb[23].mxu0  ;;  %v1748_v9 = vpop.f32.mrb[23].mxu1  ;;  %v1747_v0 = vadd.f32 %v1746_v63, %v10744_v22 }
 0x559   :  { %v1678_v18 = vadd.f32 %v1677_v32, %v10743_v56 }
 0x55a   :  { %v4863_v19 = vmul.f32 -1.442695, %v1676_v47 }
 0x55b   :  { %v4864_v16 = vmul.f32 -1.442695, %v1678_v18 }
 0x55c   :  { %7633 = vpow2.f32 %v4863_v19  ;;  %v10745_v19 = vld [vmem:[#allocation83_spill] sm:$0xff] }
 0x55d   :  { %7635 = vpow2.f32 %v4864_v16 }
 0x55e   :  { %7637 = vtanh.f32 %v1747_v0 }
 0x566   :  { %v7634_v31 = vpop.eup %7633 }
 0x567   :  { %v7636_v35 = vpop.eup %7635  ;;  %v1754_v36 = vadd.f32 1.0, %v7634_v31 }
 0x568   :  { %v1760_v55 = vadd.f32 1.0, %v7636_v35  ;;  %v7638_v11 = vpop.eup %7637 }
 0x569   :  { %7639 = vrcp.f32 %v1754_v36  ;;  %v1749_v36 = vadd.f32 %v1748_v9, %v8867_v61 }
 0x56a   :  { %7641 = vrcp.f32 %v1760_v55 }
 0x56b   :  { %v4865_v55 = vmul.f32 -1.442695, %v1749_v36 }
 0x573   :  { %v7640_v15 = vpop.eup %7639 }
 0x574   :  { %v7642_v6 = vpop.eup %7641  ;;  %v1771_v42 = vmul.f32 %v7640_v15, %v7638_v11 }
 0x575   :  { %v1770_v2 = vmul.f32 %v7642_v6, %v8862_v34 }
 0x577   :  { %v1845_v32 = vpop.f32.mrb[4].mxu0  ;;  %v1916_v47 = vpop.f32.mrb[4].mxu1  ;;  %v9057_v18 = vadd.f32 %v1771_v42, %v1770_v2 }
 0x578   :  { %v7484_v16 = vadd.f32 %v1845_v32, %v10745_v19  ;;  %v1847_v63 = vpop.f32.mrb[5].mxu0  ;;  %v1918_v22 = vpop.f32.mrb[5].mxu1  ;;  %v7500_v11 = vadd.f32 %v1916_v47, %v10615_v48 }
 0x579   :  { %v7485_v31 = vadd.f32 %v1847_v63, %v10613_v33  ;;  %v7501_v15 = vadd.f32 %v1918_v22, %v10614_v10 }
 0x57a   :  { %v4866_v0 = vmul.f32 -1.442695, %v7484_v16 }
 0x57b   :  { %v4867_v35 = vmul.f32 -1.442695, %v7485_v31  ;;  %v4868_v34 = vmul.f32 -1.442695, %v7501_v15 }
 0x57c   :  { %7643 = vpow2.f32 %v4866_v0 }
 0x57d   :  { %7645 = vpow2.f32 %v4867_v35 }
 0x57e   :  { %7647 = vpow2.f32 %v4865_v55 }
 0x57f   :  { %7649 = vpow2.f32 %v4868_v34 }
 0x580   :  { %7651 = vtanh.f32 %v7500_v11 }
 0x586   :  { %v7644_v2 = vpop.eup %7643 }
 0x587   :  { %v7646_v42 = vpop.eup %7645  ;;  %v1928_v6 = vadd.f32 1.0, %v7644_v2 }
 0x588   :  { %v1934_v32 = vadd.f32 1.0, %v7646_v42  ;;  %v7648_v16 = vpop.eup %7647 }
 0x589   :  { %7653 = vrcp.f32 %v1928_v6  ;;  %v7650_v63 = vpop.eup %7649  ;;  %v1767_v15 = vadd.f32 1.0, %v7648_v16  ;;  %v10748_v16 = vld [vmem:[#allocation95_spill] sm:$0xff] }
 0x58a   :  { %7655 = vrcp.f32 %v1934_v32  ;;  %v7652_v31 = vpop.eup %7651  ;;  %v1941_v22 = vadd.f32 1.0, %v7650_v63  ;;  %v10747_v32 = vld [vmem:[#allocation94_spill] sm:$0xff]  ;;  %v10749_v63 = vld [vmem:[#allocation96_spill] sm:$0xff] }
 0x58b   :  { %7657 = vtanh.f32 %v9057_v18 }
 0x58c   :  { %7659 = vrcp.f32 %v1941_v22  ;;  %v10754_v22 = vld [vmem:[#allocation101_spill] sm:$0xff] }
 0x593   :  { %v7654_v0 = vpop.eup %7653 }
 0x594   :  { %v7656_v9 = vpop.eup %7655  ;;  %v1945_v35 = vmul.f32 %v7654_v0, %v7652_v31  ;;  %v10750_v31 = vld [vmem:[#allocation97_spill] sm:$0xff]  ;;  %v10751_v0 = vld [vmem:[#allocation98_spill] sm:$0xff] }
 0x595   :  { %v1944_v36 = vmul.f32 %v7656_v9, %v8874_v62  ;;  %v7658_v55 = vpop.eup %7657  ;;  %v10746_v62 = vld [vmem:[#allocation93_spill] sm:$0xff]  ;;  %v10752_v9 = vld [vmem:[#allocation99_spill] sm:$0xff] }
 0x596   :  { %v7660_v34 = vpop.eup %7659 }
 0x597   :  { %v9065_v47 = vadd.f32 %v1945_v35, %v1944_v36  ;;  %v10753_v35 = vld [vmem:[#allocation100_spill] sm:$0xff]  ;;  %v10755_v36 = vld [vmem:[#allocation102_spill] sm:$0xff] }
 0x599   :  { %7661 = vtanh.f32 %v9065_v47 }
 0x59a   :  { %7663 = vrcp.f32 %v1767_v15  ;;  %v10756_v15 = vld [vmem:[#allocation103_spill] sm:$0xff] }
 0x5a3   :  { %v7662_v11 = vpop.eup %7661 }
 0x5a4   :  { %v7664_v2 = vpop.eup %7663  ;;  %v9069_v42 = vmul.f32 %v7662_v11, %v7660_v34  ;;  %v10758_v34 = vld [vmem:[#allocation105_spill] sm:$0xff]  ;;  %v10759_v11 = vld [vmem:[#allocation106_spill] sm:$0xff] }
 0x5a5   :  { %v1774_v6 = vmul.f32 %v7664_v2, %v7658_v55  ;;  %v10757_v55 = vld [vmem:[#allocation104_spill] sm:$0xff]  ;;  %v10760_v2 = vld [vmem:[#allocation107_spill] sm:$0xff] }
 0x5a6   :  { %2014 = vmatmul.mubr.f32.vlgmr.msra.gmra.mrb[24].mxu0 %v9069_v42  ;;  %2085 = vmatmul.mubr.f32.vlgmr.msra.gmra.mrb[24].mxu1 %v9069_v42 }
 0x5a7   :  { %2179 = vmatprep.mubr.f32.mxu0 %v1774_v6  ;;  %2250 = vmatprep.mubr.f32.mxu1 %v1774_v6  ;;  %v10761_v6 = vld [vmem:[#allocation108_spill] sm:$0xff] }
 0x5a8   :  { %5755 = vmatpush1.bf16.msra.mxu0 %v10617_v28  ;;  %5819 = vmatpush1.bf16.msra.mxu1 %v10618_v23 }
 0x5a9   :  { %5757 = vmatprep.subr.bf16.mxu0 %v10619_v51  ;;  %5821 = vmatprep.subr.bf16.mxu1 %v10620_v52 }
 0x5ac   :  { %5759 = vmatpush1.bf16.msra.mxu0 %v10621_v13  ;;  %5823 = vmatpush1.bf16.msra.mxu1 %v10746_v62 }
 0x5ad   :  { %5761 = vmatprep.subr.bf16.mxu0 %v10747_v32  ;;  %5825 = vmatprep.subr.bf16.mxu1 %v10748_v16 }
 0x5b0   :  { %5763 = vmatpush1.bf16.msra.mxu0 %v10749_v63  ;;  %5827 = vmatpush1.bf16.msra.mxu1 %v10750_v31  ;;  %v10805_v31 = vld [vmem:[#allocation150_spill] sm:$0xff] }
 0x5b1   :  { %5765 = vmatprep.subr.bf16.mxu0 %v10751_v0  ;;  %5829 = vmatprep.subr.bf16.mxu1 %v10752_v9  ;;  %v10762_v0 = vld [vmem:[#allocation109_spill] sm:$0xff]  ;;  %v10763_v9 = vld [vmem:[#allocation110_spill] sm:$0xff] }
 0x5b4   :  { %5767 = vmatpush1.bf16.msra.mxu0 %v10753_v35  ;;  %5831 = vmatpush1.bf16.msra.mxu1 %v10754_v22  ;;  %v10764_v35 = vld [vmem:[#allocation111_spill] sm:$0xff]  ;;  %v10765_v22 = vld [vmem:[#allocation112_spill] sm:$0xff] }
 0x5b5   :  { %5769 = vmatprep.subr.bf16.mxu0 %v10755_v36  ;;  %5833 = vmatprep.subr.bf16.mxu1 %v10756_v15  ;;  %v10766_v36 = vld [vmem:[#allocation113_spill] sm:$0xff]  ;;  %v10767_v15 = vld [vmem:[#allocation114_spill] sm:$0xff] }
 0x5b8   :  { %5771 = vmatpush1.bf16.msra.mxu0 %v10757_v55  ;;  %5835 = vmatpush1.bf16.msra.mxu1 %v10758_v34  ;;  %v10768_v55 = vld [vmem:[#allocation115_spill] sm:$0xff]  ;;  %v10769_v34 = vld [vmem:[#allocation116_spill] sm:$0xff] }
 0x5b9   :  { %5773 = vmatprep.subr.bf16.mxu0 %v10759_v11  ;;  %5837 = vmatprep.subr.bf16.mxu1 %v10760_v2  ;;  %v10770_v11 = vld [vmem:[#allocation117_spill] sm:$0xff]  ;;  %v10771_v2 = vld [vmem:[#allocation118_spill] sm:$0xff] }
 0x5bc   :  { %5775 = vmatpush1.bf16.msra.mxu0 %v10761_v6  ;;  %5839 = vmatpush1.bf16.msra.mxu1 %v10762_v0  ;;  %v10772_v6 = vld [vmem:[#allocation119_spill] sm:$0xff]  ;;  %v10773_v0 = vld [vmem:[#allocation120_spill] sm:$0xff] }
 0x5bd   :  { %5777 = vmatprep.subr.bf16.mxu0 %v10763_v9  ;;  %5841 = vmatprep.subr.bf16.mxu1 %v10764_v35  ;;  %v10774_v9 = vld [vmem:[#allocation121_spill] sm:$0xff]  ;;  %v10775_v35 = vld [vmem:[#allocation122_spill] sm:$0xff] }
 0x5c0   :  { %5779 = vmatpush1.bf16.msra.mxu0 %v10765_v22  ;;  %5843 = vmatpush1.bf16.msra.mxu1 %v10766_v36  ;;  %v10776_v22 = vld [vmem:[#allocation123_spill] sm:$0xff]  ;;  %v10777_v36 = vld [vmem:[#allocation124_spill] sm:$0xff] }
 0x5c1   :  { %5781 = vmatprep.subr.bf16.mxu0 %v10767_v15  ;;  %5845 = vmatprep.subr.bf16.mxu1 %v10768_v55  ;;  %v10778_v15 = vld [vmem:[#allocation125_spill] sm:$0xff]  ;;  %v10779_v55 = vld [vmem:[#allocation126_spill] sm:$0xff] }
 0x5c4   :  { %5783 = vmatpush1.bf16.msra.mxu0 %v10769_v34  ;;  %5847 = vmatpush1.bf16.msra.mxu1 %v10770_v11  ;;  %v10780_v34 = vld [vmem:[#allocation127_spill] sm:$0xff]  ;;  %v10781_v11 = vld [vmem:[#allocation128_spill] sm:$0xff] }
 0x5c5   :  { %5785 = vmatprep.subr.bf16.mxu0 %v10771_v2  ;;  %5849 = vmatprep.subr.bf16.mxu1 %v10772_v6  ;;  %v10782_v2 = vld [vmem:[#allocation129_spill] sm:$0xff]  ;;  %v10783_v6 = vld [vmem:[#allocation130_spill] sm:$0xff] }
 0x5c8   :  { %5787 = vmatpush1.bf16.msra.mxu0 %v10773_v0  ;;  %5851 = vmatpush1.bf16.msra.mxu1 %v10774_v9  ;;  %v10784_v0 = vld [vmem:[#allocation131_spill] sm:$0xff]  ;;  %v10785_v9 = vld [vmem:[#allocation132_spill] sm:$0xff] }
 0x5c9   :  { %5789 = vmatprep.subr.bf16.mxu0 %v10775_v35  ;;  %5853 = vmatprep.subr.bf16.mxu1 %v10776_v22  ;;  %v10786_v35 = vld [vmem:[#allocation133_spill] sm:$0xff]  ;;  %v10787_v22 = vld [vmem:[#allocation134_spill] sm:$0xff] }
 0x5cc   :  { %5791 = vmatpush1.bf16.msra.mxu0 %v10777_v36  ;;  %5855 = vmatpush1.bf16.msra.mxu1 %v10778_v15  ;;  %v10788_v36 = vld [vmem:[#allocation135_spill] sm:$0xff]  ;;  %v10789_v15 = vld [vmem:[#allocation136_spill] sm:$0xff] }
 0x5cd   :  { %5793 = vmatprep.subr.bf16.mxu0 %v10779_v55  ;;  %5857 = vmatprep.subr.bf16.mxu1 %v10780_v34  ;;  %v10790_v55 = vld [vmem:[#allocation137_spill] sm:$0xff]  ;;  %v10791_v34 = vld [vmem:[#allocation138_spill] sm:$0xff] }
 0x5d0   :  { %5795 = vmatpush1.bf16.msra.mxu0 %v10781_v11  ;;  %5859 = vmatpush1.bf16.msra.mxu1 %v10782_v2  ;;  %v10792_v11 = vld [vmem:[#allocation139_spill] sm:$0xff]  ;;  %v10793_v2 = vld [vmem:[#allocation140_spill] sm:$0xff] }
 0x5d1   :  { %5797 = vmatprep.subr.bf16.mxu0 %v10783_v6  ;;  %5861 = vmatprep.subr.bf16.mxu1 %v10784_v0  ;;  %v10794_v6 = vld [vmem:[#allocation141_spill] sm:$0xff]  ;;  %v10795_v0 = vld [vmem:[#allocation142_spill] sm:$0xff] }
 0x5d4   :  { %5799 = vmatpush1.bf16.msra.mxu0 %v10785_v9  ;;  %5863 = vmatpush1.bf16.msra.mxu1 %v10786_v35  ;;  %v10796_v9 = vld [vmem:[#allocation143_spill] sm:$0xff]  ;;  %v10797_v35 = vld [vmem:[#allocation144_spill] sm:$0xff] }
 0x5d5   :  { %5801 = vmatprep.subr.bf16.mxu0 %v10787_v22  ;;  %5865 = vmatprep.subr.bf16.mxu1 %v10788_v36  ;;  %v10798_v22 = vld [vmem:[#allocation145_spill] sm:$0xff]  ;;  %v10799_v36 = vld [vmem:[#allocation146_spill] sm:$0xff] }
 0x5d8   :  { %5803 = vmatpush1.bf16.msra.mxu0 %v10789_v15  ;;  %5867 = vmatpush1.bf16.msra.mxu1 %v10790_v55  ;;  %v10800_v15 = vld [vmem:[#allocation147_spill] sm:$0xff]  ;;  %v10801_v55 = vld [vmem:[#allocation148_spill] sm:$0xff] }
 0x5d9   :  { %5805 = vmatprep.subr.bf16.mxu0 %v10791_v34  ;;  %5869 = vmatprep.subr.bf16.mxu1 %v10792_v11  ;;  %v10802_v34 = vld [vmem:[#allocation149_spill] sm:$0xff] }
 0x5da   :  { %v10803_v11 = vld [vmem:[#allocation13_spill] sm:$0xff] }
 0x5dc   :  { %5807 = vmatpush1.bf16.msra.mxu0 %v10793_v2  ;;  %5871 = vmatpush1.bf16.msra.mxu1 %v10794_v6  ;;  %v10804_v2 = vld [vmem:[#allocation14_spill] sm:$0xff] }
 0x5dd   :  { %5809 = vmatprep.subr.bf16.mxu0 %v10795_v0  ;;  %5873 = vmatprep.subr.bf16.mxu1 %v10796_v9 }
 0x5e0   :  { %5811 = vmatpush1.bf16.msra.mxu0 %v10797_v35  ;;  %5875 = vmatpush1.bf16.msra.mxu1 %v10798_v22 }
 0x5e1   :  { %5813 = vmatprep.subr.bf16.mxu0 %v10799_v36  ;;  %5877 = vmatprep.subr.bf16.mxu1 %v10800_v15 }
 0x5e4   :  { %5815 = vmatpush1.bf16.msra.mxu0 %v10801_v55  ;;  %5879 = vmatpush1.bf16.msra.mxu1 %v10802_v34 }
 0x5e5   :  { %5881 = vmatprep.subr.bf16.mxu0 %v10803_v11  ;;  %5913 = vmatprep.subr.bf16.mxu1 %v10804_v2 }
 0x679   :  { %v2015_v6 = vpop.f32.mrb[24].mxu0  ;;  %v2086_v0 = vpop.f32.mrb[24].mxu1 }
 0x67a   :  { %v2016_v9 = vadd.f32 %v2015_v6, %v10805_v31  ;;  %v2017_v63 = vpop.f32.mrb[25].mxu0  ;;  %v2088_v35 = vpop.f32.mrb[25].mxu1  ;;  %v2087_v34 = vadd.f32 %v2086_v0, %v8741_v12 }
 0x67b   :  { %v2018_v22 = vadd.f32 %v2017_v63, %v10675_v50  ;;  %v2089_v55 = vadd.f32 %v2088_v35, %v10676_v39 }
 0x67c   :  { %v4869_v16 = vmul.f32 -1.442695, %v2016_v9 }
 0x67d   :  { %v4870_v36 = vmul.f32 -1.442695, %v2018_v22  ;;  %v4871_v15 = vmul.f32 -1.442695, %v2089_v55 }
 0x67e   :  { %7665 = vpow2.f32 %v4869_v16 }
 0x67f   :  { %7667 = vpow2.f32 %v4870_v36 }
 0x680   :  { %7669 = vpow2.f32 %v4871_v15 }
 0x681   :  { %7671 = vtanh.f32 %v2087_v34  ;;  %v10810_v34 = vld [vmem:[#allocation20_spill] sm:$0xff] }
 0x688   :  { %v7666_v11 = vpop.eup %7665 }
 0x689   :  { %v7668_v32 = vpop.eup %7667  ;;  %v2094_v2 = vadd.f32 1.0, %v7666_v11  ;;  %v10811_v11 = vld [vmem:[#allocation21_spill] sm:$0xff] }
 0x68a   :  { %v2100_v62 = vadd.f32 1.0, %v7668_v32  ;;  %v7670_v6 = vpop.eup %7669  ;;  %v10808_v32 = vld [vmem:[#allocation18_spill] sm:$0xff] }
 0x68b   :  { %7673 = vrcp.f32 %v2094_v2  ;;  %v7672_v31 = vpop.eup %7671  ;;  %v2107_v16 = vadd.f32 1.0, %v7670_v6  ;;  %v10812_v2 = vld [vmem:[#allocation22_spill] sm:$0xff]  ;;  %v10813_v6 = vld [vmem:[#allocation23_spill] sm:$0xff] }
 0x68c   :  { %7675 = vrcp.f32 %v2100_v62  ;;  %v10807_v62 = vld [vmem:[#allocation17_spill] sm:$0xff] }
 0x68d   :  { %7677 = vrcp.f32 %v2107_v16  ;;  %v10817_v16 = vld [vmem:[#allocation27_spill] sm:$0xff] }
 0x695   :  { %v7674_v63 = vpop.eup %7673 }
 0x696   :  { %v7676_v9 = vpop.eup %7675  ;;  %v2111_v22 = vmul.f32 %v7674_v63, %v7672_v31  ;;  %v10809_v31 = vld [vmem:[#allocation19_spill] sm:$0xff]  ;;  %v10814_v63 = vld [vmem:[#allocation24_spill] sm:$0xff] }
 0x697   :  { %v2110_v36 = vmul.f32 %v7676_v9, %v8950_v49  ;;  %v7678_v0 = vpop.eup %7677  ;;  %v10806_v49 = vld [vmem:[#allocation16_spill] sm:$0xff]  ;;  %v10815_v9 = vld [vmem:[#allocation25_spill] sm:$0xff] }
 0x699   :  { %v9142_v35 = vadd.f32 %v2111_v22, %v2110_v36  ;;  %v10816_v22 = vld [vmem:[#allocation26_spill] sm:$0xff]  ;;  %v10819_v36 = vld [vmem:[#allocation29_spill] sm:$0xff] }
 0x69b   :  { %7679 = vtanh.f32 %v9142_v35 }
 0x6a5   :  { %v7680_v55 = vpop.eup %7679 }
 0x6a6   :  { %v2114_v15 = vmul.f32 %v7680_v55, %v7678_v0  ;;  %v10820_v0 = vld [vmem:[#allocation30_spill] sm:$0xff]  ;;  %v10821_v55 = vld [vmem:[#allocation31_spill] sm:$0xff] }
 0x6a8   :  { %2180 = vmatmul.mubr.f32.vlgmr.msra.gmra.mrb[26].mxu0 %v2114_v15  ;;  %2251 = vmatmul.mubr.f32.vlgmr.msra.gmra.mrb[26].mxu1 %v2114_v15 }
 0x6a9   :  { %5883 = vmatpush1.bf16.msra.mxu0 %v8152_v14  ;;  %5915 = vmatpush1.bf16.msra.mxu1 %v8156_v17 }
 0x6aa   :  { %5885 = vmatprep.subr.bf16.mxu0 %v8165_v25  ;;  %5917 = vmatprep.subr.bf16.mxu1 %v8167_v26 }
 0x6ab   :  { %2349 = vmatprep.mubr.f32.mxu0 %v10489_v5  ;;  %2420 = vmatprep.mubr.f32.mxu1 %v10489_v5 }
 0x6ad   :  { %5887 = vmatpush1.bf16.msra.mxu0 %v8171_v29  ;;  %5919 = vmatpush1.bf16.msra.mxu1 %v8173_v30 }
 0x6ae   :  { %5889 = vmatprep.subr.bf16.mxu0 %v8184_v40  ;;  %5921 = vmatprep.subr.bf16.mxu1 %v8186_v41 }
 0x6b1   :  { %5891 = vmatpush1.bf16.msra.mxu0 %v8190_v44  ;;  %5923 = vmatpush1.bf16.msra.mxu1 %v8192_v45 }
 0x6b2   :  { %5893 = vmatprep.subr.bf16.mxu0 %v8203_v53  ;;  %5925 = vmatprep.subr.bf16.mxu1 %v8205_v54 }
 0x6b5   :  { %5895 = vmatpush1.bf16.msra.mxu0 %v8209_v57  ;;  %5927 = vmatpush1.bf16.msra.mxu1 %v8211_v58 }
 0x6b6   :  { %5897 = vmatprep.subr.bf16.mxu0 %v8222_v3  ;;  %5929 = vmatprep.subr.bf16.mxu1 %v8224_v4 }
 0x6b9   :  { %5899 = vmatpush1.bf16.msra.mxu0 %v8228_v7  ;;  %5931 = vmatpush1.bf16.msra.mxu1 %v8230_v8 }
 0x6ba   :  { %5901 = vmatprep.subr.bf16.mxu0 %v8241_v20  ;;  %5933 = vmatprep.subr.bf16.mxu1 %v8243_v21 }
 0x6bd   :  { %5903 = vmatpush1.bf16.msra.mxu0 %v8247_v24  ;;  %5935 = vmatpush1.bf16.msra.mxu1 %v8249_v27 }
 0x6be   :  { %5905 = vmatprep.subr.bf16.mxu0 %v8260_v37  ;;  %5937 = vmatprep.subr.bf16.mxu1 %v8262_v38 }
 0x6c1   :  { %5907 = vmatpush1.bf16.msra.mxu0 %v8266_v43  ;;  %5939 = vmatpush1.bf16.msra.mxu1 %v8268_v46 }
 0x6c2   :  { %5909 = vmatprep.subr.bf16.mxu0 %v8279_v59  ;;  %5941 = vmatprep.subr.bf16.mxu1 %v8281_v60 }
 0x6c5   :  { %5911 = vmatpush1.bf16.msra.mxu0 %v8285_v1  ;;  %5943 = vmatpush1.bf16.msra.mxu1 %v10806_v49 }
 0x6c6   :  { %5945 = vmatprep.subr.bf16.mxu0 %v10807_v62  ;;  %6009 = vmatprep.subr.bf16.mxu1 %v10808_v32 }
 0x6c8   :  { %2350 = vmatmul.mubr.f32.vlgmr.msra.gmra.mrb[6].mxu0 %v9069_v42  ;;  %2421 = vmatmul.mubr.f32.vlgmr.msra.gmra.mrb[6].mxu1 %v9069_v42  ;;  %v10818_v42 = vld [vmem:[#allocation28_spill] sm:$0xff] }
 0x6c9   :  { %2519 = vmatprep.mubr.f32.mxu0 %v2114_v15  ;;  %2590 = vmatprep.mubr.f32.mxu1 %v2114_v15  ;;  %v10822_v15 = vld [vmem:[#allocation32_spill] sm:$0xff] }
 0x6ca   :  { %5947 = vmatpush1.bf16.msra.mxu0 %v10809_v31  ;;  %6011 = vmatpush1.bf16.msra.mxu1 %v10810_v34 }
 0x6cb   :  { %5949 = vmatprep.subr.bf16.mxu0 %v10811_v11  ;;  %6013 = vmatprep.subr.bf16.mxu1 %v10812_v2  ;;  %v10823_v2 = vld [vmem:[#allocation33_spill] sm:$0xff] }
 0x6cc   :  { %v10873_v11 = vld [vmem:[#allocation153_spill] sm:$0xff] }
 0x6ce   :  { %5951 = vmatpush1.bf16.msra.mxu0 %v10813_v6  ;;  %6015 = vmatpush1.bf16.msra.mxu1 %v10814_v63  ;;  %v10824_v6 = vld [vmem:[#allocation34_spill] sm:$0xff]  ;;  %v10825_v63 = vld [vmem:[#allocation35_spill] sm:$0xff] }
 0x6cf   :  { %5953 = vmatprep.subr.bf16.mxu0 %v10815_v9  ;;  %6017 = vmatprep.subr.bf16.mxu1 %v10816_v22  ;;  %v10826_v9 = vld [vmem:[#allocation36_spill] sm:$0xff]  ;;  %v10827_v22 = vld [vmem:[#allocation37_spill] sm:$0xff] }
 0x6d2   :  { %5955 = vmatpush1.bf16.msra.mxu0 %v10817_v16  ;;  %6019 = vmatpush1.bf16.msra.mxu1 %v10818_v42  ;;  %v10828_v16 = vld [vmem:[#allocation38_spill] sm:$0xff]  ;;  %v10829_v42 = vld [vmem:[#allocation39_spill] sm:$0xff] }
 0x6d3   :  { %5957 = vmatprep.subr.bf16.mxu0 %v10819_v36  ;;  %6021 = vmatprep.subr.bf16.mxu1 %v10820_v0  ;;  %v10830_v36 = vld [vmem:[#allocation40_spill] sm:$0xff]  ;;  %v10831_v0 = vld [vmem:[#allocation41_spill] sm:$0xff] }
 0x6d6   :  { %5959 = vmatpush1.bf16.msra.mxu0 %v10821_v55  ;;  %6023 = vmatpush1.bf16.msra.mxu1 %v10822_v15  ;;  %v10832_v55 = vld [vmem:[#allocation42_spill] sm:$0xff]  ;;  %v10833_v15 = vld [vmem:[#allocation43_spill] sm:$0xff] }
 0x6d7   :  { %5961 = vmatprep.subr.bf16.mxu0 %v10823_v2  ;;  %6025 = vmatprep.subr.bf16.mxu1 %v10824_v6  ;;  %v10834_v2 = vld [vmem:[#allocation44_spill] sm:$0xff]  ;;  %v10835_v6 = vld [vmem:[#allocation45_spill] sm:$0xff] }
 0x6da   :  { %5963 = vmatpush1.bf16.msra.mxu0 %v10825_v63  ;;  %6027 = vmatpush1.bf16.msra.mxu1 %v10826_v9  ;;  %v10836_v63 = vld [vmem:[#allocation46_spill] sm:$0xff]  ;;  %v10837_v9 = vld [vmem:[#allocation47_spill] sm:$0xff] }
 0x6db   :  { %5965 = vmatprep.subr.bf16.mxu0 %v10827_v22  ;;  %6029 = vmatprep.subr.bf16.mxu1 %v10828_v16  ;;  %v10838_v22 = vld [vmem:[#allocation48_spill] sm:$0xff]  ;;  %v10839_v16 = vld [vmem:[#allocation49_spill] sm:$0xff] }
 0x6de   :  { %5967 = vmatpush1.bf16.msra.mxu0 %v10829_v42  ;;  %6031 = vmatpush1.bf16.msra.mxu1 %v10830_v36  ;;  %v10840_v42 = vld [vmem:[#allocation50_spill] sm:$0xff]  ;;  %v10841_v36 = vld [vmem:[#allocation51_spill] sm:$0xff] }
 0x6df   :  { %5969 = vmatprep.subr.bf16.mxu0 %v10831_v0  ;;  %6033 = vmatprep.subr.bf16.mxu1 %v10832_v55  ;;  %v10842_v0 = vld [vmem:[#allocation52_spill] sm:$0xff]  ;;  %v10843_v55 = vld [vmem:[#allocation53_spill] sm:$0xff] }
 0x6e2   :  { %5971 = vmatpush1.bf16.msra.mxu0 %v10833_v15  ;;  %6035 = vmatpush1.bf16.msra.mxu1 %v10834_v2  ;;  %v10844_v15 = vld [vmem:[#allocation54_spill] sm:$0xff]  ;;  %v10845_v2 = vld [vmem:[#allocation55_spill] sm:$0xff] }
 0x6e3   :  { %5973 = vmatprep.subr.bf16.mxu0 %v10835_v6  ;;  %6037 = vmatprep.subr.bf16.mxu1 %v10836_v63  ;;  %v10846_v6 = vld [vmem:[#allocation56_spill] sm:$0xff]  ;;  %v10847_v63 = vld [vmem:[#allocation57_spill] sm:$0xff] }
 0x6e6   :  { %5975 = vmatpush1.bf16.msra.mxu0 %v10837_v9  ;;  %6039 = vmatpush1.bf16.msra.mxu1 %v10838_v22  ;;  %v10848_v9 = vld [vmem:[#allocation58_spill] sm:$0xff]  ;;  %v10849_v22 = vld [vmem:[#allocation59_spill] sm:$0xff] }
 0x6e7   :  { %5977 = vmatprep.subr.bf16.mxu0 %v10839_v16  ;;  %6041 = vmatprep.subr.bf16.mxu1 %v10840_v42  ;;  %v10850_v16 = vld [vmem:[#allocation60_spill] sm:$0xff]  ;;  %v10851_v42 = vld [vmem:[#allocation61_spill] sm:$0xff] }
 0x6ea   :  { %5979 = vmatpush1.bf16.msra.mxu0 %v10841_v36  ;;  %6043 = vmatpush1.bf16.msra.mxu1 %v10842_v0  ;;  %v10852_v36 = vld [vmem:[#allocation62_spill] sm:$0xff]  ;;  %v10853_v0 = vld [vmem:[#allocation63_spill] sm:$0xff] }
 0x6eb   :  { %5981 = vmatprep.subr.bf16.mxu0 %v10843_v55  ;;  %6045 = vmatprep.subr.bf16.mxu1 %v10844_v15  ;;  %v10854_v55 = vld [vmem:[#allocation64_spill] sm:$0xff]  ;;  %v10855_v15 = vld [vmem:[#allocation65_spill] sm:$0xff] }
 0x6ee   :  { %5983 = vmatpush1.bf16.msra.mxu0 %v10845_v2  ;;  %6047 = vmatpush1.bf16.msra.mxu1 %v10846_v6  ;;  %v10856_v2 = vld [vmem:[#allocation66_spill] sm:$0xff]  ;;  %v10857_v6 = vld [vmem:[#allocation67_spill] sm:$0xff] }
 0x6ef   :  { %5985 = vmatprep.subr.bf16.mxu0 %v10847_v63  ;;  %6049 = vmatprep.subr.bf16.mxu1 %v10848_v9  ;;  %v10858_v63 = vld [vmem:[#allocation68_spill] sm:$0xff]  ;;  %v10859_v9 = vld [vmem:[#allocation69_spill] sm:$0xff] }
 0x6f2   :  { %5987 = vmatpush1.bf16.msra.mxu0 %v10849_v22  ;;  %6051 = vmatpush1.bf16.msra.mxu1 %v10850_v16  ;;  %v10860_v22 = vld [vmem:[#allocation70_spill] sm:$0xff]  ;;  %v10861_v16 = vld [vmem:[#allocation71_spill] sm:$0xff] }
 0x6f3   :  { %5989 = vmatprep.subr.bf16.mxu0 %v10851_v42  ;;  %6053 = vmatprep.subr.bf16.mxu1 %v10852_v36  ;;  %v10862_v42 = vld [vmem:[#allocation72_spill] sm:$0xff]  ;;  %v10863_v36 = vld [vmem:[#allocation73_spill] sm:$0xff] }
 0x6f6   :  { %5991 = vmatpush1.bf16.msra.mxu0 %v10853_v0  ;;  %6055 = vmatpush1.bf16.msra.mxu1 %v10854_v55  ;;  %v10864_v0 = vld [vmem:[#allocation74_spill] sm:$0xff]  ;;  %v10865_v55 = vld [vmem:[#allocation75_spill] sm:$0xff] }
 0x6f7   :  { %5993 = vmatprep.subr.bf16.mxu0 %v10855_v15  ;;  %6057 = vmatprep.subr.bf16.mxu1 %v10856_v2  ;;  %v10866_v15 = vld [vmem:[#allocation76_spill] sm:$0xff]  ;;  %v10867_v2 = vld [vmem:[#allocation77_spill] sm:$0xff] }
 0x6fa   :  { %5995 = vmatpush1.bf16.msra.mxu0 %v10857_v6  ;;  %6059 = vmatpush1.bf16.msra.mxu1 %v10858_v63  ;;  %v10868_v6 = vld [vmem:[#allocation78_spill] sm:$0xff]  ;;  %v10869_v63 = vld [vmem:[#allocation79_spill] sm:$0xff] }
 0x6fb   :  { %5997 = vmatprep.subr.bf16.mxu0 %v10859_v9  ;;  %6061 = vmatprep.subr.bf16.mxu1 %v10860_v22  ;;  %v10870_v9 = vld [vmem:[#allocation80_spill] sm:$0xff]  ;;  %v10871_v22 = vld [vmem:[#allocation81_spill] sm:$0xff] }
 0x6fe   :  { %5999 = vmatpush1.bf16.msra.mxu0 %v10861_v16  ;;  %6063 = vmatpush1.bf16.msra.mxu1 %v10862_v42  ;;  %v10872_v16 = vld [vmem:[#allocation82_spill] sm:$0xff] }
 0x6ff   :  { %6001 = vmatprep.subr.bf16.mxu0 %v10863_v36  ;;  %6065 = vmatprep.subr.bf16.mxu1 %v10864_v0 }
 0x702   :  { %6003 = vmatpush1.bf16.msra.mxu0 %v10865_v55  ;;  %6067 = vmatpush1.bf16.msra.mxu1 %v10866_v15 }
 0x703   :  { %6005 = vmatprep.subr.bf16.mxu0 %v10867_v2  ;;  %6069 = vmatprep.subr.bf16.mxu1 %v10868_v6  ;;  %v10874_v6 = vld [vmem:[#allocation155_spill] sm:$0xff] }
 0x706   :  { %6007 = vmatpush1.bf16.msra.mxu0 %v10869_v63  ;;  %6071 = vmatpush1.bf16.msra.mxu1 %v10870_v9 }
 0x707   :  { %6073 = vmatprep.subr.bf16.mxu0 %v10871_v22  ;;  %6137 = vmatprep.subr.bf16.mxu1 %v10872_v16 }
 0x77b   :  { %v2181_v42 = vpop.f32.mrb[26].mxu0  ;;  %v2252_v36 = vpop.f32.mrb[26].mxu1 }
 0x77c   :  { %v2182_v0 = vadd.f32 %v2181_v42, %v10873_v11  ;;  %v2183_v34 = vpop.f32.mrb[27].mxu0  ;;  %v2254_v55 = vpop.f32.mrb[27].mxu1  ;;  %v2253_v63 = vadd.f32 %v2252_v36, %v10874_v6 }
 0x77d   :  { %v2184_v15 = vadd.f32 %v2183_v34, %v10743_v56 }
 0x77e   :  { %v4872_v31 = vmul.f32 -1.442695, %v2182_v0 }
 0x77f   :  { %v4873_v2 = vmul.f32 -1.442695, %v2184_v15 }
 0x780   :  { %7681 = vpow2.f32 %v4872_v31 }
 0x781   :  { %7683 = vpow2.f32 %v4873_v2 }
 0x782   :  { %7685 = vtanh.f32 %v2253_v63 }
 0x78a   :  { %v7682_v32 = vpop.eup %7681 }
 0x78b   :  { %v7684_v9 = vpop.eup %7683  ;;  %v2260_v62 = vadd.f32 1.0, %v7682_v32 }
 0x78c   :  { %v2266_v22 = vadd.f32 1.0, %v7684_v9  ;;  %v7686_v16 = vpop.eup %7685 }
 0x78d   :  { %7687 = vrcp.f32 %v2260_v62  ;;  %v2255_v62 = vadd.f32 %v2254_v55, %v8867_v61 }
 0x78e   :  { %7689 = vrcp.f32 %v2266_v22 }
 0x78f   :  { %v4874_v22 = vmul.f32 -1.442695, %v2255_v62 }
 0x797   :  { %v7688_v49 = vpop.eup %7687 }
 0x798   :  { %v7690_v42 = vpop.eup %7689  ;;  %v2277_v11 = vmul.f32 %v7688_v49, %v7686_v16 }
 0x799   :  { %v2276_v1 = vmul.f32 %v7690_v42, %v9057_v18 }
 0x79b   :  { %v2351_v34 = vpop.f32.mrb[6].mxu0  ;;  %v2422_v0 = vpop.f32.mrb[6].mxu1  ;;  %v9249_v15 = vadd.f32 %v2277_v11, %v2276_v1 }
 0x79c   :  { %v7486_v31 = vadd.f32 %v2351_v34, %v10745_v19  ;;  %v2353_v2 = vpop.f32.mrb[7].mxu0  ;;  %v2424_v36 = vpop.f32.mrb[7].mxu1  ;;  %v7502_v16 = vadd.f32 %v2422_v0, %v10615_v48 }
 0x79d   :  { %v7487_v32 = vadd.f32 %v2353_v2, %v10613_v33  ;;  %v7503_v49 = vadd.f32 %v2424_v36, %v10614_v10 }
 0x79e   :  { %v4875_v63 = vmul.f32 -1.442695, %v7486_v31 }
 0x79f   :  { %v4876_v9 = vmul.f32 -1.442695, %v7487_v32  ;;  %v4877_v18 = vmul.f32 -1.442695, %v7503_v49 }
 0x7a0   :  { %7691 = vpow2.f32 %v4875_v63 }
 0x7a1   :  { %7693 = vpow2.f32 %v4876_v9 }
 0x7a2   :  { %7695 = vpow2.f32 %v4874_v22 }
 0x7a3   :  { %7697 = vpow2.f32 %v4877_v18 }
 0x7a4   :  { %7699 = vtanh.f32 %v7502_v16 }
 0x7aa   :  { %v7692_v1 = vpop.eup %7691 }
 0x7ab   :  { %v7694_v11 = vpop.eup %7693  ;;  %v2434_v42 = vadd.f32 1.0, %v7692_v1 }
 0x7ac   :  { %v2440_v34 = vadd.f32 1.0, %v7694_v11  ;;  %v7696_v31 = vpop.eup %7695 }
 0x7ad   :  { %7701 = vrcp.f32 %v2434_v42  ;;  %v7698_v2 = vpop.eup %7697  ;;  %v2273_v49 = vadd.f32 1.0, %v7696_v31  ;;  %v10877_v31 = vld [vmem:[#allocation95_spill] sm:$0xff] }
 0x7ae   :  { %7703 = vrcp.f32 %v2440_v34  ;;  %v7700_v32 = vpop.eup %7699  ;;  %v2447_v36 = vadd.f32 1.0, %v7698_v2  ;;  %v10876_v34 = vld [vmem:[#allocation94_spill] sm:$0xff]  ;;  %v10878_v2 = vld [vmem:[#allocation96_spill] sm:$0xff] }
 0x7af   :  { %7705 = vtanh.f32 %v9249_v15 }
 0x7b0   :  { %7707 = vrcp.f32 %v2447_v36  ;;  %v10883_v36 = vld [vmem:[#allocation101_spill] sm:$0xff] }
 0x7b7   :  { %v7702_v63 = vpop.eup %7701 }
 0x7b8   :  { %v7704_v55 = vpop.eup %7703  ;;  %v2451_v9 = vmul.f32 %v7702_v63, %v7700_v32  ;;  %v10879_v32 = vld [vmem:[#allocation97_spill] sm:$0xff]  ;;  %v10880_v63 = vld [vmem:[#allocation98_spill] sm:$0xff] }
 0x7b9   :  { %v2450_v62 = vmul.f32 %v7704_v55, %v9065_v47  ;;  %v7706_v22 = vpop.eup %7705  ;;  %v10875_v47 = vld [vmem:[#allocation93_spill] sm:$0xff]  ;;  %v10881_v55 = vld [vmem:[#allocation99_spill] sm:$0xff] }
 0x7ba   :  { %v7708_v18 = vpop.eup %7707 }
 0x7bb   :  { %v9257_v0 = vadd.f32 %v2451_v9, %v2450_v62  ;;  %v10882_v9 = vld [vmem:[#allocation100_spill] sm:$0xff]  ;;  %v10884_v62 = vld [vmem:[#allocation102_spill] sm:$0xff] }
 0x7bd   :  { %7709 = vtanh.f32 %v9257_v0 }
 0x7be   :  { %7711 = vrcp.f32 %v2273_v49  ;;  %v10885_v49 = vld [vmem:[#allocation103_spill] sm:$0xff] }
 0x7c7   :  { %v7710_v16 = vpop.eup %7709 }
 0x7c8   :  { %v7712_v1 = vpop.eup %7711  ;;  %v9261_v11 = vmul.f32 %v7710_v16, %v7708_v18  ;;  %v10887_v18 = vld [vmem:[#allocation105_spill] sm:$0xff]  ;;  %v10888_v16 = vld [vmem:[#allocation106_spill] sm:$0xff] }
 0x7c9   :  { %v2280_v42 = vmul.f32 %v7712_v1, %v7706_v22  ;;  %v10886_v22 = vld [vmem:[#allocation104_spill] sm:$0xff]  ;;  %v10889_v1 = vld [vmem:[#allocation107_spill] sm:$0xff] }
 0x7ca   :  { %2520 = vmatmul.mubr.f32.vlgmr.msra.gmra.mrb[28].mxu0 %v9261_v11  ;;  %2591 = vmatmul.mubr.f32.vlgmr.msra.gmra.mrb[28].mxu1 %v9261_v11 }
 0x7cb   :  { %2685 = vmatprep.mubr.f32.mxu0 %v2280_v42  ;;  %2756 = vmatprep.mubr.f32.mxu1 %v2280_v42  ;;  %v10890_v42 = vld [vmem:[#allocation108_spill] sm:$0xff] }
 0x7cc   :  { %6075 = vmatpush1.bf16.msra.mxu0 %v10617_v28  ;;  %6139 = vmatpush1.bf16.msra.mxu1 %v10618_v23 }
 0x7cd   :  { %6077 = vmatprep.subr.bf16.mxu0 %v10619_v51  ;;  %6141 = vmatprep.subr.bf16.mxu1 %v10620_v52 }
 0x7d0   :  { %6079 = vmatpush1.bf16.msra.mxu0 %v10621_v13  ;;  %6143 = vmatpush1.bf16.msra.mxu1 %v10875_v47 }
 0x7d1   :  { %6081 = vmatprep.subr.bf16.mxu0 %v10876_v34  ;;  %6145 = vmatprep.subr.bf16.mxu1 %v10877_v31 }
 0x7d4   :  { %6083 = vmatpush1.bf16.msra.mxu0 %v10878_v2  ;;  %6147 = vmatpush1.bf16.msra.mxu1 %v10879_v32  ;;  %v10934_v32 = vld [vmem:[#allocation150_spill] sm:$0xff] }
 0x7d5   :  { %6085 = vmatprep.subr.bf16.mxu0 %v10880_v63  ;;  %6149 = vmatprep.subr.bf16.mxu1 %v10881_v55  ;;  %v10891_v63 = vld [vmem:[#allocation109_spill] sm:$0xff]  ;;  %v10892_v55 = vld [vmem:[#allocation110_spill] sm:$0xff] }
 0x7d8   :  { %6087 = vmatpush1.bf16.msra.mxu0 %v10882_v9  ;;  %6151 = vmatpush1.bf16.msra.mxu1 %v10883_v36  ;;  %v10893_v9 = vld [vmem:[#allocation111_spill] sm:$0xff]  ;;  %v10894_v36 = vld [vmem:[#allocation112_spill] sm:$0xff] }
 0x7d9   :  { %6089 = vmatprep.subr.bf16.mxu0 %v10884_v62  ;;  %6153 = vmatprep.subr.bf16.mxu1 %v10885_v49  ;;  %v10895_v62 = vld [vmem:[#allocation113_spill] sm:$0xff]  ;;  %v10896_v49 = vld [vmem:[#allocation114_spill] sm:$0xff] }
 0x7dc   :  { %6091 = vmatpush1.bf16.msra.mxu0 %v10886_v22  ;;  %6155 = vmatpush1.bf16.msra.mxu1 %v10887_v18  ;;  %v10897_v22 = vld [vmem:[#allocation115_spill] sm:$0xff]  ;;  %v10898_v18 = vld [vmem:[#allocation116_spill] sm:$0xff] }
 0x7dd   :  { %6093 = vmatprep.subr.bf16.mxu0 %v10888_v16  ;;  %6157 = vmatprep.subr.bf16.mxu1 %v10889_v1  ;;  %v10899_v16 = vld [vmem:[#allocation117_spill] sm:$0xff]  ;;  %v10900_v1 = vld [vmem:[#allocation118_spill] sm:$0xff] }
 0x7e0   :  { %6095 = vmatpush1.bf16.msra.mxu0 %v10890_v42  ;;  %6159 = vmatpush1.bf16.msra.mxu1 %v10891_v63  ;;  %v10901_v42 = vld [vmem:[#allocation119_spill] sm:$0xff]  ;;  %v10902_v63 = vld [vmem:[#allocation120_spill] sm:$0xff] }
 0x7e1   :  { %6097 = vmatprep.subr.bf16.mxu0 %v10892_v55  ;;  %6161 = vmatprep.subr.bf16.mxu1 %v10893_v9  ;;  %v10903_v55 = vld [vmem:[#allocation121_spill] sm:$0xff]  ;;  %v10904_v9 = vld [vmem:[#allocation122_spill] sm:$0xff] }
 0x7e4   :  { %6099 = vmatpush1.bf16.msra.mxu0 %v10894_v36  ;;  %6163 = vmatpush1.bf16.msra.mxu1 %v10895_v62  ;;  %v10905_v36 = vld [vmem:[#allocation123_spill] sm:$0xff]  ;;  %v10906_v62 = vld [vmem:[#allocation124_spill] sm:$0xff] }
 0x7e5   :  { %6101 = vmatprep.subr.bf16.mxu0 %v10896_v49  ;;  %6165 = vmatprep.subr.bf16.mxu1 %v10897_v22  ;;  %v10907_v49 = vld [vmem:[#allocation125_spill] sm:$0xff]  ;;  %v10908_v22 = vld [vmem:[#allocation126_spill] sm:$0xff] }
 0x7e8   :  { %6103 = vmatpush1.bf16.msra.mxu0 %v10898_v18  ;;  %6167 = vmatpush1.bf16.msra.mxu1 %v10899_v16  ;;  %v10909_v18 = vld [vmem:[#allocation127_spill] sm:$0xff]  ;;  %v10910_v16 = vld [vmem:[#allocation128_spill] sm:$0xff] }
 0x7e9   :  { %6105 = vmatprep.subr.bf16.mxu0 %v10900_v1  ;;  %6169 = vmatprep.subr.bf16.mxu1 %v10901_v42  ;;  %v10911_v1 = vld [vmem:[#allocation129_spill] sm:$0xff]  ;;  %v10912_v42 = vld [vmem:[#allocation130_spill] sm:$0xff] }
 0x7ec   :  { %6107 = vmatpush1.bf16.msra.mxu0 %v10902_v63  ;;  %6171 = vmatpush1.bf16.msra.mxu1 %v10903_v55  ;;  %v10913_v63 = vld [vmem:[#allocation131_spill] sm:$0xff]  ;;  %v10914_v55 = vld [vmem:[#allocation132_spill] sm:$0xff] }
 0x7ed   :  { %6109 = vmatprep.subr.bf16.mxu0 %v10904_v9  ;;  %6173 = vmatprep.subr.bf16.mxu1 %v10905_v36  ;;  %v10915_v9 = vld [vmem:[#allocation133_spill] sm:$0xff]  ;;  %v10916_v36 = vld [vmem:[#allocation134_spill] sm:$0xff] }
 0x7f0   :  { %6111 = vmatpush1.bf16.msra.mxu0 %v10906_v62  ;;  %6175 = vmatpush1.bf16.msra.mxu1 %v10907_v49  ;;  %v10917_v62 = vld [vmem:[#allocation135_spill] sm:$0xff]  ;;  %v10918_v49 = vld [vmem:[#allocation136_spill] sm:$0xff] }
 0x7f1   :  { %6113 = vmatprep.subr.bf16.mxu0 %v10908_v22  ;;  %6177 = vmatprep.subr.bf16.mxu1 %v10909_v18  ;;  %v10919_v22 = vld [vmem:[#allocation137_spill] sm:$0xff]  ;;  %v10920_v18 = vld [vmem:[#allocation138_spill] sm:$0xff] }
 0x7f4   :  { %6115 = vmatpush1.bf16.msra.mxu0 %v10910_v16  ;;  %6179 = vmatpush1.bf16.msra.mxu1 %v10911_v1  ;;  %v10921_v16 = vld [vmem:[#allocation139_spill] sm:$0xff]  ;;  %v10922_v1 = vld [vmem:[#allocation140_spill] sm:$0xff] }
 0x7f5   :  { %6117 = vmatprep.subr.bf16.mxu0 %v10912_v42  ;;  %6181 = vmatprep.subr.bf16.mxu1 %v10913_v63  ;;  %v10923_v42 = vld [vmem:[#allocation141_spill] sm:$0xff]  ;;  %v10924_v63 = vld [vmem:[#allocation142_spill] sm:$0xff] }
 0x7f8   :  { %6119 = vmatpush1.bf16.msra.mxu0 %v10914_v55  ;;  %6183 = vmatpush1.bf16.msra.mxu1 %v10915_v9  ;;  %v10925_v55 = vld [vmem:[#allocation143_spill] sm:$0xff]  ;;  %v10926_v9 = vld [vmem:[#allocation144_spill] sm:$0xff] }
 0x7f9   :  { %6121 = vmatprep.subr.bf16.mxu0 %v10916_v36  ;;  %6185 = vmatprep.subr.bf16.mxu1 %v10917_v62  ;;  %v10927_v36 = vld [vmem:[#allocation145_spill] sm:$0xff]  ;;  %v10928_v62 = vld [vmem:[#allocation146_spill] sm:$0xff] }
 0x7fc   :  { %6123 = vmatpush1.bf16.msra.mxu0 %v10918_v49  ;;  %6187 = vmatpush1.bf16.msra.mxu1 %v10919_v22  ;;  %v10929_v49 = vld [vmem:[#allocation147_spill] sm:$0xff]  ;;  %v10930_v22 = vld [vmem:[#allocation148_spill] sm:$0xff] }
 0x7fd   :  { %6125 = vmatprep.subr.bf16.mxu0 %v10920_v18  ;;  %6189 = vmatprep.subr.bf16.mxu1 %v10921_v16  ;;  %v10931_v18 = vld [vmem:[#allocation149_spill] sm:$0xff] }
 0x7fe   :  { %v10932_v16 = vld [vmem:[#allocation13_spill] sm:$0xff] }
 0x800   :  { %6127 = vmatpush1.bf16.msra.mxu0 %v10922_v1  ;;  %6191 = vmatpush1.bf16.msra.mxu1 %v10923_v42  ;;  %v10933_v1 = vld [vmem:[#allocation14_spill] sm:$0xff] }
 0x801   :  { %6129 = vmatprep.subr.bf16.mxu0 %v10924_v63  ;;  %6193 = vmatprep.subr.bf16.mxu1 %v10925_v55 }
 0x804   :  { %6131 = vmatpush1.bf16.msra.mxu0 %v10926_v9  ;;  %6195 = vmatpush1.bf16.msra.mxu1 %v10927_v36 }
 0x805   :  { %6133 = vmatprep.subr.bf16.mxu0 %v10928_v62  ;;  %6197 = vmatprep.subr.bf16.mxu1 %v10929_v49 }
 0x808   :  { %6135 = vmatpush1.bf16.msra.mxu0 %v10930_v22  ;;  %6199 = vmatpush1.bf16.msra.mxu1 %v10931_v18 }
 0x809   :  { %6201 = vmatprep.subr.bf16.mxu0 %v10932_v16  ;;  %6233 = vmatprep.subr.bf16.mxu1 %v10933_v1 }
 0x89d   :  { %v2521_v42 = vpop.f32.mrb[28].mxu0  ;;  %v2592_v63 = vpop.f32.mrb[28].mxu1 }
 0x89e   :  { %v2522_v55 = vadd.f32 %v2521_v42, %v10934_v32  ;;  %v2523_v2 = vpop.f32.mrb[29].mxu0  ;;  %v2594_v9 = vpop.f32.mrb[29].mxu1  ;;  %v2593_v18 = vadd.f32 %v2592_v63, %v8741_v12 }
 0x89f   :  { %v2524_v36 = vadd.f32 %v2523_v2, %v10675_v50  ;;  %v2595_v22 = vadd.f32 %v2594_v9, %v10676_v39 }
 0x8a0   :  { %v4878_v31 = vmul.f32 -1.442695, %v2522_v55 }
 0x8a1   :  { %v4879_v62 = vmul.f32 -1.442695, %v2524_v36  ;;  %v4880_v49 = vmul.f32 -1.442695, %v2595_v22 }
 0x8a2   :  { %7713 = vpow2.f32 %v4878_v31 }
 0x8a3   :  { %7715 = vpow2.f32 %v4879_v62 }
 0x8a4   :  { %7717 = vpow2.f32 %v4880_v49 }
 0x8a5   :  { %7719 = vtanh.f32 %v2593_v18  ;;  %v10939_v18 = vld [vmem:[#allocation19_spill] sm:$0xff] }
 0x8ac   :  { %v7714_v16 = vpop.eup %7713 }
 0x8ad   :  { %v7716_v34 = vpop.eup %7715  ;;  %v2600_v1 = vadd.f32 1.0, %v7714_v16  ;;  %v10940_v16 = vld [vmem:[#allocation20_spill] sm:$0xff] }
 0x8ae   :  { %v2606_v47 = vadd.f32 1.0, %v7716_v34  ;;  %v7718_v42 = vpop.eup %7717  ;;  %v10937_v34 = vld [vmem:[#allocation17_spill] sm:$0xff] }
 0x8af   :  { %7721 = vrcp.f32 %v2600_v1  ;;  %v7720_v32 = vpop.eup %7719  ;;  %v2613_v31 = vadd.f32 1.0, %v7718_v42  ;;  %v10941_v1 = vld [vmem:[#allocation21_spill] sm:$0xff]  ;;  %v10942_v42 = vld [vmem:[#allocation22_spill] sm:$0xff] }
 0x8b0   :  { %7723 = vrcp.f32 %v2606_v47  ;;  %v10936_v47 = vld [vmem:[#allocation16_spill] sm:$0xff] }
 0x8b1   :  { %7725 = vrcp.f32 %v2613_v31  ;;  %v10946_v31 = vld [vmem:[#allocation26_spill] sm:$0xff] }
 0x8b9   :  { %v7722_v2 = vpop.eup %7721 }
 0x8ba   :  { %v7724_v55 = vpop.eup %7723  ;;  %v2617_v36 = vmul.f32 %v7722_v2, %v7720_v32  ;;  %v10938_v32 = vld [vmem:[#allocation18_spill] sm:$0xff]  ;;  %v10943_v2 = vld [vmem:[#allocation23_spill] sm:$0xff] }
 0x8bb   :  { %v2616_v62 = vmul.f32 %v7724_v55, %v9142_v35  ;;  %v7726_v63 = vpop.eup %7725  ;;  %v10935_v35 = vld [vmem:[#allocation15_spill] sm:$0xff]  ;;  %v10944_v55 = vld [vmem:[#allocation24_spill] sm:$0xff] }
 0x8bd   :  { %v9334_v9 = vadd.f32 %v2617_v36, %v2616_v62  ;;  %v10945_v36 = vld [vmem:[#allocation25_spill] sm:$0xff]  ;;  %v10947_v62 = vld [vmem:[#allocation27_spill] sm:$0xff] }
 0x8bf   :  { %7727 = vtanh.f32 %v9334_v9 }
 0x8c9   :  { %v7728_v22 = vpop.eup %7727 }
 0x8ca   :  { %v2620_v49 = vmul.f32 %v7728_v22, %v7726_v63  ;;  %v10949_v63 = vld [vmem:[#allocation29_spill] sm:$0xff]  ;;  %v10950_v22 = vld [vmem:[#allocation30_spill] sm:$0xff] }
 0x8cc   :  { %2686 = vmatmul.mubr.f32.vlgmr.msra.gmra.mrb[30].mxu0 %v2620_v49  ;;  %2757 = vmatmul.mubr.f32.vlgmr.msra.gmra.mrb[30].mxu1 %v2620_v49 }
 0x8cd   :  { %6203 = vmatpush1.bf16.msra.mxu0 %v8152_v14  ;;  %6235 = vmatpush1.bf16.msra.mxu1 %v8156_v17 }
 0x8ce   :  { %6205 = vmatprep.subr.bf16.mxu0 %v8165_v25  ;;  %6237 = vmatprep.subr.bf16.mxu1 %v8167_v26 }
 0x8cf   :  { %2855 = vmatprep.mubr.f32.mxu0 %v10489_v5  ;;  %2926 = vmatprep.mubr.f32.mxu1 %v10489_v5 }
 0x8d1   :  { %6207 = vmatpush1.bf16.msra.mxu0 %v8171_v29  ;;  %6239 = vmatpush1.bf16.msra.mxu1 %v8173_v30 }
 0x8d2   :  { %6209 = vmatprep.subr.bf16.mxu0 %v8184_v40  ;;  %6241 = vmatprep.subr.bf16.mxu1 %v8186_v41 }
 0x8d5   :  { %6211 = vmatpush1.bf16.msra.mxu0 %v8190_v44  ;;  %6243 = vmatpush1.bf16.msra.mxu1 %v8192_v45 }
 0x8d6   :  { %6213 = vmatprep.subr.bf16.mxu0 %v8203_v53  ;;  %6245 = vmatprep.subr.bf16.mxu1 %v8205_v54 }
 0x8d9   :  { %6215 = vmatpush1.bf16.msra.mxu0 %v8209_v57  ;;  %6247 = vmatpush1.bf16.msra.mxu1 %v8211_v58 }
 0x8da   :  { %6217 = vmatprep.subr.bf16.mxu0 %v8222_v3  ;;  %6249 = vmatprep.subr.bf16.mxu1 %v8224_v4 }
 0x8dd   :  { %6219 = vmatpush1.bf16.msra.mxu0 %v8228_v7  ;;  %6251 = vmatpush1.bf16.msra.mxu1 %v8230_v8 }
 0x8de   :  { %6221 = vmatprep.subr.bf16.mxu0 %v8241_v20  ;;  %6253 = vmatprep.subr.bf16.mxu1 %v8243_v21 }
 0x8e1   :  { %6223 = vmatpush1.bf16.msra.mxu0 %v8247_v24  ;;  %6255 = vmatpush1.bf16.msra.mxu1 %v8249_v27 }
 0x8e2   :  { %6225 = vmatprep.subr.bf16.mxu0 %v8260_v37  ;;  %6257 = vmatprep.subr.bf16.mxu1 %v8262_v38 }
 0x8e5   :  { %6227 = vmatpush1.bf16.msra.mxu0 %v8266_v43  ;;  %6259 = vmatpush1.bf16.msra.mxu1 %v8268_v46 }
 0x8e6   :  { %6229 = vmatprep.subr.bf16.mxu0 %v8279_v59  ;;  %6261 = vmatprep.subr.bf16.mxu1 %v8281_v60 }
 0x8e9   :  { %6231 = vmatpush1.bf16.msra.mxu0 %v10935_v35  ;;  %6263 = vmatpush1.bf16.msra.mxu1 %v10936_v47 }
 0x8ea   :  { %6265 = vmatprep.subr.bf16.mxu0 %v10937_v34  ;;  %6329 = vmatprep.subr.bf16.mxu1 %v10938_v32 }
 0x8ec   :  { %2856 = vmatmul.mubr.f32.vlgmr.msra.gmra.mrb[8].mxu0 %v9261_v11  ;;  %2927 = vmatmul.mubr.f32.vlgmr.msra.gmra.mrb[8].mxu1 %v9261_v11  ;;  %v10948_v11 = vld [vmem:[#allocation28_spill] sm:$0xff] }
 0x8ed   :  { %3025 = vmatprep.mubr.f32.mxu0 %v2620_v49  ;;  %3096 = vmatprep.mubr.f32.mxu1 %v2620_v49  ;;  %v10951_v49 = vld [vmem:[#allocation31_spill] sm:$0xff] }
 0x8ee   :  { %6267 = vmatpush1.bf16.msra.mxu0 %v10939_v18  ;;  %6331 = vmatpush1.bf16.msra.mxu1 %v10940_v16  ;;  %v11003_v16 = vld [vmem:[#allocation153_spill] sm:$0xff] }
 0x8ef   :  { %6269 = vmatprep.subr.bf16.mxu0 %v10941_v1  ;;  %6333 = vmatprep.subr.bf16.mxu1 %v10942_v42  ;;  %v10952_v1 = vld [vmem:[#allocation32_spill] sm:$0xff]  ;;  %v10953_v42 = vld [vmem:[#allocation33_spill] sm:$0xff] }
 0x8f2   :  { %6271 = vmatpush1.bf16.msra.mxu0 %v10943_v2  ;;  %6335 = vmatpush1.bf16.msra.mxu1 %v10944_v55  ;;  %v10954_v2 = vld [vmem:[#allocation34_spill] sm:$0xff]  ;;  %v10955_v55 = vld [vmem:[#allocation35_spill] sm:$0xff] }
 0x8f3   :  { %6273 = vmatprep.subr.bf16.mxu0 %v10945_v36  ;;  %6337 = vmatprep.subr.bf16.mxu1 %v10946_v31  ;;  %v10956_v36 = vld [vmem:[#allocation36_spill] sm:$0xff]  ;;  %v10957_v31 = vld [vmem:[#allocation37_spill] sm:$0xff] }
 0x8f6   :  { %6275 = vmatpush1.bf16.msra.mxu0 %v10947_v62  ;;  %6339 = vmatpush1.bf16.msra.mxu1 %v10948_v11  ;;  %v10958_v62 = vld [vmem:[#allocation38_spill] sm:$0xff]  ;;  %v10959_v11 = vld [vmem:[#allocation39_spill] sm:$0xff] }
 0x8f7   :  { %6277 = vmatprep.subr.bf16.mxu0 %v10949_v63  ;;  %6341 = vmatprep.subr.bf16.mxu1 %v10950_v22  ;;  %v10960_v63 = vld [vmem:[#allocation40_spill] sm:$0xff]  ;;  %v10961_v22 = vld [vmem:[#allocation41_spill] sm:$0xff] }
 0x8fa   :  { %6279 = vmatpush1.bf16.msra.mxu0 %v10951_v49  ;;  %6343 = vmatpush1.bf16.msra.mxu1 %v10952_v1  ;;  %v10962_v49 = vld [vmem:[#allocation42_spill] sm:$0xff]  ;;  %v10963_v1 = vld [vmem:[#allocation43_spill] sm:$0xff] }
 0x8fb   :  { %6281 = vmatprep.subr.bf16.mxu0 %v10953_v42  ;;  %6345 = vmatprep.subr.bf16.mxu1 %v10954_v2  ;;  %v10964_v42 = vld [vmem:[#allocation44_spill] sm:$0xff]  ;;  %v10965_v2 = vld [vmem:[#allocation45_spill] sm:$0xff] }
 0x8fe   :  { %6283 = vmatpush1.bf16.msra.mxu0 %v10955_v55  ;;  %6347 = vmatpush1.bf16.msra.mxu1 %v10956_v36  ;;  %v10966_v55 = vld [vmem:[#allocation46_spill] sm:$0xff]  ;;  %v10967_v36 = vld [vmem:[#allocation47_spill] sm:$0xff] }
 0x8ff   :  { %6285 = vmatprep.subr.bf16.mxu0 %v10957_v31  ;;  %6349 = vmatprep.subr.bf16.mxu1 %v10958_v62  ;;  %v10968_v31 = vld [vmem:[#allocation48_spill] sm:$0xff]  ;;  %v10969_v62 = vld [vmem:[#allocation49_spill] sm:$0xff] }
 0x902   :  { %6287 = vmatpush1.bf16.msra.mxu0 %v10959_v11  ;;  %6351 = vmatpush1.bf16.msra.mxu1 %v10960_v63  ;;  %v10970_v11 = vld [vmem:[#allocation50_spill] sm:$0xff]  ;;  %v10971_v63 = vld [vmem:[#allocation51_spill] sm:$0xff] }
 0x903   :  { %6289 = vmatprep.subr.bf16.mxu0 %v10961_v22  ;;  %6353 = vmatprep.subr.bf16.mxu1 %v10962_v49  ;;  %v10972_v22 = vld [vmem:[#allocation52_spill] sm:$0xff]  ;;  %v10973_v49 = vld [vmem:[#allocation53_spill] sm:$0xff] }
 0x906   :  { %6291 = vmatpush1.bf16.msra.mxu0 %v10963_v1  ;;  %6355 = vmatpush1.bf16.msra.mxu1 %v10964_v42  ;;  %v10974_v1 = vld [vmem:[#allocation54_spill] sm:$0xff]  ;;  %v10975_v42 = vld [vmem:[#allocation55_spill] sm:$0xff] }
 0x907   :  { %6293 = vmatprep.subr.bf16.mxu0 %v10965_v2  ;;  %6357 = vmatprep.subr.bf16.mxu1 %v10966_v55  ;;  %v10976_v2 = vld [vmem:[#allocation56_spill] sm:$0xff]  ;;  %v10977_v55 = vld [vmem:[#allocation57_spill] sm:$0xff] }
 0x90a   :  { %6295 = vmatpush1.bf16.msra.mxu0 %v10967_v36  ;;  %6359 = vmatpush1.bf16.msra.mxu1 %v10968_v31  ;;  %v10978_v36 = vld [vmem:[#allocation58_spill] sm:$0xff]  ;;  %v10979_v31 = vld [vmem:[#allocation59_spill] sm:$0xff] }
 0x90b   :  { %6297 = vmatprep.subr.bf16.mxu0 %v10969_v62  ;;  %6361 = vmatprep.subr.bf16.mxu1 %v10970_v11  ;;  %v10980_v62 = vld [vmem:[#allocation60_spill] sm:$0xff]  ;;  %v10981_v11 = vld [vmem:[#allocation61_spill] sm:$0xff] }
 0x90e   :  { %6299 = vmatpush1.bf16.msra.mxu0 %v10971_v63  ;;  %6363 = vmatpush1.bf16.msra.mxu1 %v10972_v22  ;;  %v10982_v63 = vld [vmem:[#allocation62_spill] sm:$0xff]  ;;  %v10983_v22 = vld [vmem:[#allocation63_spill] sm:$0xff] }
 0x90f   :  { %6301 = vmatprep.subr.bf16.mxu0 %v10973_v49  ;;  %6365 = vmatprep.subr.bf16.mxu1 %v10974_v1  ;;  %v10984_v49 = vld [vmem:[#allocation64_spill] sm:$0xff]  ;;  %v10985_v1 = vld [vmem:[#allocation65_spill] sm:$0xff] }
 0x912   :  { %6303 = vmatpush1.bf16.msra.mxu0 %v10975_v42  ;;  %6367 = vmatpush1.bf16.msra.mxu1 %v10976_v2  ;;  %v10986_v42 = vld [vmem:[#allocation66_spill] sm:$0xff]  ;;  %v10987_v2 = vld [vmem:[#allocation67_spill] sm:$0xff] }
 0x913   :  { %6305 = vmatprep.subr.bf16.mxu0 %v10977_v55  ;;  %6369 = vmatprep.subr.bf16.mxu1 %v10978_v36  ;;  %v10988_v55 = vld [vmem:[#allocation68_spill] sm:$0xff]  ;;  %v10989_v36 = vld [vmem:[#allocation69_spill] sm:$0xff] }
 0x916   :  { %6307 = vmatpush1.bf16.msra.mxu0 %v10979_v31  ;;  %6371 = vmatpush1.bf16.msra.mxu1 %v10980_v62  ;;  %v10990_v31 = vld [vmem:[#allocation70_spill] sm:$0xff]  ;;  %v10991_v62 = vld [vmem:[#allocation71_spill] sm:$0xff] }
 0x917   :  { %6309 = vmatprep.subr.bf16.mxu0 %v10981_v11  ;;  %6373 = vmatprep.subr.bf16.mxu1 %v10982_v63  ;;  %v10992_v11 = vld [vmem:[#allocation72_spill] sm:$0xff]  ;;  %v10993_v63 = vld [vmem:[#allocation73_spill] sm:$0xff] }
 0x91a   :  { %6311 = vmatpush1.bf16.msra.mxu0 %v10983_v22  ;;  %6375 = vmatpush1.bf16.msra.mxu1 %v10984_v49  ;;  %v10994_v22 = vld [vmem:[#allocation74_spill] sm:$0xff]  ;;  %v10995_v49 = vld [vmem:[#allocation75_spill] sm:$0xff] }
 0x91b   :  { %6313 = vmatprep.subr.bf16.mxu0 %v10985_v1  ;;  %6377 = vmatprep.subr.bf16.mxu1 %v10986_v42  ;;  %v10996_v1 = vld [vmem:[#allocation76_spill] sm:$0xff]  ;;  %v10997_v42 = vld [vmem:[#allocation77_spill] sm:$0xff] }
 0x91e   :  { %6315 = vmatpush1.bf16.msra.mxu0 %v10987_v2  ;;  %6379 = vmatpush1.bf16.msra.mxu1 %v10988_v55  ;;  %v10998_v2 = vld [vmem:[#allocation78_spill] sm:$0xff]  ;;  %v10999_v55 = vld [vmem:[#allocation79_spill] sm:$0xff] }
 0x91f   :  { %6317 = vmatprep.subr.bf16.mxu0 %v10989_v36  ;;  %6381 = vmatprep.subr.bf16.mxu1 %v10990_v31  ;;  %v11000_v36 = vld [vmem:[#allocation80_spill] sm:$0xff]  ;;  %v11001_v31 = vld [vmem:[#allocation81_spill] sm:$0xff] }
 0x922   :  { %6319 = vmatpush1.bf16.msra.mxu0 %v10991_v62  ;;  %6383 = vmatpush1.bf16.msra.mxu1 %v10992_v11  ;;  %v11002_v62 = vld [vmem:[#allocation82_spill] sm:$0xff] }
 0x923   :  { %6321 = vmatprep.subr.bf16.mxu0 %v10993_v63  ;;  %6385 = vmatprep.subr.bf16.mxu1 %v10994_v22 }
 0x926   :  { %6323 = vmatpush1.bf16.msra.mxu0 %v10995_v49  ;;  %6387 = vmatpush1.bf16.msra.mxu1 %v10996_v1 }
 0x927   :  { %6325 = vmatprep.subr.bf16.mxu0 %v10997_v42  ;;  %6389 = vmatprep.subr.bf16.mxu1 %v10998_v2 }
 0x92a   :  { %6327 = vmatpush1.bf16.msra.mxu0 %v10999_v55  ;;  %6391 = vmatpush1.bf16.msra.mxu1 %v11000_v36 }
 0x92b   :  { %6393 = vmatprep.subr.bf16.mxu0 %v11001_v31  ;;  %6457 = vmatprep.subr.bf16.mxu1 %v11002_v62 }
 0x99f   :  { %v2687_v11 = vpop.f32.mrb[30].mxu0  ;;  %v2758_v63 = vpop.f32.mrb[30].mxu1 }
 0x9a0   :  { %v2688_v22 = vadd.f32 %v2687_v11, %v11003_v16  ;;  %v2689_v18 = vpop.f32.mrb[31].mxu0  ;;  %v2760_v49 = vpop.f32.mrb[31].mxu1  ;;  %v2759_v55 = vadd.f32 %v2758_v63, %v10874_v6 }
 0x9a1   :  { %v2690_v1 = vadd.f32 %v2689_v18, %v10743_v56 }
 0x9a2   :  { %v4881_v32 = vmul.f32 -1.442695, %v2688_v22 }
 0x9a3   :  { %v4882_v42 = vmul.f32 -1.442695, %v2690_v1 }
 0x9a4   :  { %7729 = vpow2.f32 %v4881_v32 }
 0x9a5   :  { %7731 = vpow2.f32 %v4882_v42 }
 0x9a6   :  { %7733 = vtanh.f32 %v2759_v55 }
 0x9ae   :  { %v7730_v2 = vpop.eup %7729 }
 0x9af   :  { %v7732_v36 = vpop.eup %7731  ;;  %v2766_v34 = vadd.f32 1.0, %v7730_v2 }
 0x9b0   :  { %v2772_v31 = vadd.f32 1.0, %v7732_v36  ;;  %v7734_v62 = vpop.eup %7733 }
 0x9b1   :  { %7735 = vrcp.f32 %v2766_v34  ;;  %v2761_v34 = vadd.f32 %v2760_v49, %v8867_v61 }
 0x9b2   :  { %7737 = vrcp.f32 %v2772_v31 }
 0x9b3   :  { %v4883_v31 = vmul.f32 -1.442695, %v2761_v34 }
 0x9bb   :  { %v7736_v47 = vpop.eup %7735 }
 0x9bc   :  { %v7738_v11 = vpop.eup %7737  ;;  %v2783_v16 = vmul.f32 %v7736_v47, %v7734_v62 }
 0x9bd   :  { %v2782_v35 = vmul.f32 %v7738_v11, %v9249_v15 }
 0x9bf   :  { %v2857_v18 = vpop.f32.mrb[8].mxu0  ;;  %v2928_v22 = vpop.f32.mrb[8].mxu1  ;;  %v9441_v1 = vadd.f32 %v2783_v16, %v2782_v35 }
 0x9c0   :  { %v7488_v32 = vadd.f32 %v2857_v18, %v10745_v19  ;;  %v2859_v42 = vpop.f32.mrb[9].mxu0  ;;  %v2930_v63 = vpop.f32.mrb[9].mxu1  ;;  %v7504_v62 = vadd.f32 %v2928_v22, %v10615_v48 }
 0x9c1   :  { %v7489_v2 = vadd.f32 %v2859_v42, %v10613_v33  ;;  %v7505_v47 = vadd.f32 %v2930_v63, %v10614_v10 }
 0x9c2   :  { %v4884_v55 = vmul.f32 -1.442695, %v7488_v32 }
 0x9c3   :  { %v4885_v36 = vmul.f32 -1.442695, %v7489_v2  ;;  %v4886_v15 = vmul.f32 -1.442695, %v7505_v47 }
 0x9c4   :  { %7739 = vpow2.f32 %v4884_v55 }
 0x9c5   :  { %7741 = vpow2.f32 %v4885_v36 }
 0x9c6   :  { %7743 = vpow2.f32 %v4883_v31 }
 0x9c7   :  { %7745 = vpow2.f32 %v4886_v15 }
 0x9c8   :  { %7747 = vtanh.f32 %v7504_v62 }
 0x9ce   :  { %v7740_v35 = vpop.eup %7739 }
 0x9cf   :  { %v7742_v16 = vpop.eup %7741  ;;  %v2940_v11 = vadd.f32 1.0, %v7740_v35 }
 0x9d0   :  { %v2946_v18 = vadd.f32 1.0, %v7742_v16  ;;  %v7744_v32 = vpop.eup %7743 }
 0x9d1   :  { %7749 = vrcp.f32 %v2940_v11  ;;  %v7746_v42 = vpop.eup %7745  ;;  %v2779_v47 = vadd.f32 1.0, %v7744_v32  ;;  %v11006_v32 = vld [vmem:[#allocation95_spill] sm:$0xff] }
 0x9d2   :  { %7751 = vrcp.f32 %v2946_v18  ;;  %v7748_v2 = vpop.eup %7747  ;;  %v2953_v63 = vadd.f32 1.0, %v7746_v42  ;;  %v11005_v18 = vld [vmem:[#allocation94_spill] sm:$0xff]  ;;  %v11007_v42 = vld [vmem:[#allocation96_spill] sm:$0xff] }
 0x9d3   :  { %7753 = vtanh.f32 %v9441_v1 }
 0x9d4   :  { %7755 = vrcp.f32 %v2953_v63  ;;  %v11012_v63 = vld [vmem:[#allocation101_spill] sm:$0xff] }
 0x9db   :  { %v7750_v55 = vpop.eup %7749 }
 0x9dc   :  { %v7752_v49 = vpop.eup %7751  ;;  %v2957_v36 = vmul.f32 %v7750_v55, %v7748_v2  ;;  %v11008_v2 = vld [vmem:[#allocation97_spill] sm:$0xff]  ;;  %v11009_v55 = vld [vmem:[#allocation98_spill] sm:$0xff] }
 0x9dd   :  { %v2956_v34 = vmul.f32 %v7752_v49, %v9257_v0  ;;  %v7754_v31 = vpop.eup %7753  ;;  %v11004_v0 = vld [vmem:[#allocation93_spill] sm:$0xff]  ;;  %v11010_v49 = vld [vmem:[#allocation99_spill] sm:$0xff] }
 0x9de   :  { %v7756_v15 = vpop.eup %7755 }
 0x9df   :  { %v9449_v22 = vadd.f32 %v2957_v36, %v2956_v34  ;;  %v11011_v36 = vld [vmem:[#allocation100_spill] sm:$0xff]  ;;  %v11013_v34 = vld [vmem:[#allocation102_spill] sm:$0xff] }
 0x9e1   :  { %7757 = vtanh.f32 %v9449_v22 }
 0x9e2   :  { %7759 = vrcp.f32 %v2779_v47  ;;  %v11014_v47 = vld [vmem:[#allocation103_spill] sm:$0xff] }
 0x9eb   :  { %v7758_v62 = vpop.eup %7757 }
 0x9ec   :  { %v7760_v35 = vpop.eup %7759  ;;  %v9453_v16 = vmul.f32 %v7758_v62, %v7756_v15  ;;  %v11016_v15 = vld [vmem:[#allocation105_spill] sm:$0xff]  ;;  %v11017_v62 = vld [vmem:[#allocation106_spill] sm:$0xff] }
 0x9ed   :  { %v2786_v11 = vmul.f32 %v7760_v35, %v7754_v31  ;;  %v11015_v31 = vld [vmem:[#allocation104_spill] sm:$0xff]  ;;  %v11018_v35 = vld [vmem:[#allocation107_spill] sm:$0xff] }
 0x9ee   :  { %3026 = vmatmul.mubr.f32.vlgmr.msra.gmra.mrb[32].mxu0 %v9453_v16  ;;  %3097 = vmatmul.mubr.f32.vlgmr.msra.gmra.mrb[32].mxu1 %v9453_v16 }
 0x9ef   :  { %3191 = vmatprep.mubr.f32.mxu0 %v2786_v11  ;;  %3262 = vmatprep.mubr.f32.mxu1 %v2786_v11  ;;  %v11019_v11 = vld [vmem:[#allocation108_spill] sm:$0xff] }
 0x9f0   :  { %6395 = vmatpush1.bf16.msra.mxu0 %v10617_v28  ;;  %6459 = vmatpush1.bf16.msra.mxu1 %v10618_v23 }
 0x9f1   :  { %6397 = vmatprep.subr.bf16.mxu0 %v10619_v51  ;;  %6461 = vmatprep.subr.bf16.mxu1 %v10620_v52 }
 0x9f4   :  { %6399 = vmatpush1.bf16.msra.mxu0 %v10621_v13  ;;  %6463 = vmatpush1.bf16.msra.mxu1 %v11004_v0 }
 0x9f5   :  { %6401 = vmatprep.subr.bf16.mxu0 %v11005_v18  ;;  %6465 = vmatprep.subr.bf16.mxu1 %v11006_v32 }
 0x9f8   :  { %6403 = vmatpush1.bf16.msra.mxu0 %v11007_v42  ;;  %6467 = vmatpush1.bf16.msra.mxu1 %v11008_v2  ;;  %v11063_v2 = vld [vmem:[#allocation150_spill] sm:$0xff] }
 0x9f9   :  { %6405 = vmatprep.subr.bf16.mxu0 %v11009_v55  ;;  %6469 = vmatprep.subr.bf16.mxu1 %v11010_v49  ;;  %v11020_v55 = vld [vmem:[#allocation109_spill] sm:$0xff]  ;;  %v11021_v49 = vld [vmem:[#allocation110_spill] sm:$0xff] }
 0x9fc   :  { %6407 = vmatpush1.bf16.msra.mxu0 %v11011_v36  ;;  %6471 = vmatpush1.bf16.msra.mxu1 %v11012_v63  ;;  %v11022_v36 = vld [vmem:[#allocation111_spill] sm:$0xff]  ;;  %v11023_v63 = vld [vmem:[#allocation112_spill] sm:$0xff] }
 0x9fd   :  { %6409 = vmatprep.subr.bf16.mxu0 %v11013_v34  ;;  %6473 = vmatprep.subr.bf16.mxu1 %v11014_v47  ;;  %v11024_v34 = vld [vmem:[#allocation113_spill] sm:$0xff]  ;;  %v11025_v47 = vld [vmem:[#allocation114_spill] sm:$0xff] }
 0xa00   :  { %6411 = vmatpush1.bf16.msra.mxu0 %v11015_v31  ;;  %6475 = vmatpush1.bf16.msra.mxu1 %v11016_v15  ;;  %v11026_v31 = vld [vmem:[#allocation115_spill] sm:$0xff]  ;;  %v11027_v15 = vld [vmem:[#allocation116_spill] sm:$0xff] }
 0xa01   :  { %6413 = vmatprep.subr.bf16.mxu0 %v11017_v62  ;;  %6477 = vmatprep.subr.bf16.mxu1 %v11018_v35  ;;  %v11028_v62 = vld [vmem:[#allocation117_spill] sm:$0xff]  ;;  %v11029_v35 = vld [vmem:[#allocation118_spill] sm:$0xff] }
 0xa04   :  { %6415 = vmatpush1.bf16.msra.mxu0 %v11019_v11  ;;  %6479 = vmatpush1.bf16.msra.mxu1 %v11020_v55  ;;  %v11030_v11 = vld [vmem:[#allocation119_spill] sm:$0xff]  ;;  %v11031_v55 = vld [vmem:[#allocation120_spill] sm:$0xff] }
 0xa05   :  { %6417 = vmatprep.subr.bf16.mxu0 %v11021_v49  ;;  %6481 = vmatprep.subr.bf16.mxu1 %v11022_v36  ;;  %v11032_v49 = vld [vmem:[#allocation121_spill] sm:$0xff]  ;;  %v11033_v36 = vld [vmem:[#allocation122_spill] sm:$0xff] }
 0xa08   :  { %6419 = vmatpush1.bf16.msra.mxu0 %v11023_v63  ;;  %6483 = vmatpush1.bf16.msra.mxu1 %v11024_v34  ;;  %v11034_v63 = vld [vmem:[#allocation123_spill] sm:$0xff]  ;;  %v11035_v34 = vld [vmem:[#allocation124_spill] sm:$0xff] }
 0xa09   :  { %6421 = vmatprep.subr.bf16.mxu0 %v11025_v47  ;;  %6485 = vmatprep.subr.bf16.mxu1 %v11026_v31  ;;  %v11036_v47 = vld [vmem:[#allocation125_spill] sm:$0xff]  ;;  %v11037_v31 = vld [vmem:[#allocation126_spill] sm:$0xff] }
 0xa0c   :  { %6423 = vmatpush1.bf16.msra.mxu0 %v11027_v15  ;;  %6487 = vmatpush1.bf16.msra.mxu1 %v11028_v62  ;;  %v11038_v15 = vld [vmem:[#allocation127_spill] sm:$0xff]  ;;  %v11039_v62 = vld [vmem:[#allocation128_spill] sm:$0xff] }
 0xa0d   :  { %6425 = vmatprep.subr.bf16.mxu0 %v11029_v35  ;;  %6489 = vmatprep.subr.bf16.mxu1 %v11030_v11  ;;  %v11040_v35 = vld [vmem:[#allocation129_spill] sm:$0xff]  ;;  %v11041_v11 = vld [vmem:[#allocation130_spill] sm:$0xff] }
 0xa10   :  { %6427 = vmatpush1.bf16.msra.mxu0 %v11031_v55  ;;  %6491 = vmatpush1.bf16.msra.mxu1 %v11032_v49  ;;  %v11042_v55 = vld [vmem:[#allocation131_spill] sm:$0xff]  ;;  %v11043_v49 = vld [vmem:[#allocation132_spill] sm:$0xff] }
 0xa11   :  { %6429 = vmatprep.subr.bf16.mxu0 %v11033_v36  ;;  %6493 = vmatprep.subr.bf16.mxu1 %v11034_v63  ;;  %v11044_v36 = vld [vmem:[#allocation133_spill] sm:$0xff]  ;;  %v11045_v63 = vld [vmem:[#allocation134_spill] sm:$0xff] }
 0xa14   :  { %6431 = vmatpush1.bf16.msra.mxu0 %v11035_v34  ;;  %6495 = vmatpush1.bf16.msra.mxu1 %v11036_v47  ;;  %v11046_v34 = vld [vmem:[#allocation135_spill] sm:$0xff]  ;;  %v11047_v47 = vld [vmem:[#allocation136_spill] sm:$0xff] }
 0xa15   :  { %6433 = vmatprep.subr.bf16.mxu0 %v11037_v31  ;;  %6497 = vmatprep.subr.bf16.mxu1 %v11038_v15  ;;  %v11048_v31 = vld [vmem:[#allocation137_spill] sm:$0xff]  ;;  %v11049_v15 = vld [vmem:[#allocation138_spill] sm:$0xff] }
 0xa18   :  { %6435 = vmatpush1.bf16.msra.mxu0 %v11039_v62  ;;  %6499 = vmatpush1.bf16.msra.mxu1 %v11040_v35  ;;  %v11050_v62 = vld [vmem:[#allocation139_spill] sm:$0xff]  ;;  %v11051_v35 = vld [vmem:[#allocation140_spill] sm:$0xff] }
 0xa19   :  { %6437 = vmatprep.subr.bf16.mxu0 %v11041_v11  ;;  %6501 = vmatprep.subr.bf16.mxu1 %v11042_v55  ;;  %v11052_v11 = vld [vmem:[#allocation141_spill] sm:$0xff]  ;;  %v11053_v55 = vld [vmem:[#allocation142_spill] sm:$0xff] }
 0xa1c   :  { %6439 = vmatpush1.bf16.msra.mxu0 %v11043_v49  ;;  %6503 = vmatpush1.bf16.msra.mxu1 %v11044_v36  ;;  %v11054_v49 = vld [vmem:[#allocation143_spill] sm:$0xff]  ;;  %v11055_v36 = vld [vmem:[#allocation144_spill] sm:$0xff] }
 0xa1d   :  { %6441 = vmatprep.subr.bf16.mxu0 %v11045_v63  ;;  %6505 = vmatprep.subr.bf16.mxu1 %v11046_v34  ;;  %v11056_v63 = vld [vmem:[#allocation145_spill] sm:$0xff]  ;;  %v11057_v34 = vld [vmem:[#allocation146_spill] sm:$0xff] }
 0xa20   :  { %6443 = vmatpush1.bf16.msra.mxu0 %v11047_v47  ;;  %6507 = vmatpush1.bf16.msra.mxu1 %v11048_v31  ;;  %v11058_v47 = vld [vmem:[#allocation147_spill] sm:$0xff]  ;;  %v11059_v31 = vld [vmem:[#allocation148_spill] sm:$0xff] }
 0xa21   :  { %6445 = vmatprep.subr.bf16.mxu0 %v11049_v15  ;;  %6509 = vmatprep.subr.bf16.mxu1 %v11050_v62  ;;  %v11060_v15 = vld [vmem:[#allocation149_spill] sm:$0xff] }
 0xa22   :  { %v11061_v62 = vld [vmem:[#allocation13_spill] sm:$0xff] }
 0xa24   :  { %6447 = vmatpush1.bf16.msra.mxu0 %v11051_v35  ;;  %6511 = vmatpush1.bf16.msra.mxu1 %v11052_v11  ;;  %v11062_v35 = vld [vmem:[#allocation14_spill] sm:$0xff] }
 0xa25   :  { %6449 = vmatprep.subr.bf16.mxu0 %v11053_v55  ;;  %6513 = vmatprep.subr.bf16.mxu1 %v11054_v49 }
 0xa28   :  { %6451 = vmatpush1.bf16.msra.mxu0 %v11055_v36  ;;  %6515 = vmatpush1.bf16.msra.mxu1 %v11056_v63 }
 0xa29   :  { %6453 = vmatprep.subr.bf16.mxu0 %v11057_v34  ;;  %6517 = vmatprep.subr.bf16.mxu1 %v11058_v47 }
 0xa2c   :  { %6455 = vmatpush1.bf16.msra.mxu0 %v11059_v31  ;;  %6519 = vmatpush1.bf16.msra.mxu1 %v11060_v15 }
 0xa2d   :  { %6521 = vmatprep.subr.bf16.mxu0 %v11061_v62  ;;  %6553 = vmatprep.subr.bf16.mxu1 %v11062_v35 }
 0xac1   :  { %v3027_v11 = vpop.f32.mrb[32].mxu0  ;;  %v3098_v55 = vpop.f32.mrb[32].mxu1 }
 0xac2   :  { %v3028_v49 = vadd.f32 %v3027_v11, %v11063_v2  ;;  %v3029_v42 = vpop.f32.mrb[33].mxu0  ;;  %v3100_v36 = vpop.f32.mrb[33].mxu1  ;;  %v3099_v15 = vadd.f32 %v3098_v55, %v8741_v12 }
 0xac3   :  { %v3030_v63 = vadd.f32 %v3029_v42, %v10675_v50  ;;  %v3101_v31 = vadd.f32 %v3100_v36, %v10676_v39 }
 0xac4   :  { %v4887_v32 = vmul.f32 -1.442695, %v3028_v49 }
 0xac5   :  { %v4888_v34 = vmul.f32 -1.442695, %v3030_v63  ;;  %v4889_v47 = vmul.f32 -1.442695, %v3101_v31 }
 0xac6   :  { %7761 = vpow2.f32 %v4887_v32 }
 0xac7   :  { %7763 = vpow2.f32 %v4888_v34 }
 0xac8   :  { %7765 = vpow2.f32 %v4889_v47 }
 0xac9   :  { %7767 = vtanh.f32 %v3099_v15  ;;  %v11068_v15 = vld [vmem:[#allocation19_spill] sm:$0xff] }
 0xad0   :  { %v7762_v62 = vpop.eup %7761 }
 0xad1   :  { %v7764_v18 = vpop.eup %7763  ;;  %v3106_v35 = vadd.f32 1.0, %v7762_v62  ;;  %v11069_v62 = vld [vmem:[#allocation20_spill] sm:$0xff] }
 0xad2   :  { %v3112_v0 = vadd.f32 1.0, %v7764_v18  ;;  %v7766_v11 = vpop.eup %7765  ;;  %v11066_v18 = vld [vmem:[#allocation17_spill] sm:$0xff] }
 0xad3   :  { %7769 = vrcp.f32 %v3106_v35  ;;  %v7768_v2 = vpop.eup %7767  ;;  %v3119_v32 = vadd.f32 1.0, %v7766_v11  ;;  %v11070_v35 = vld [vmem:[#allocation21_spill] sm:$0xff]  ;;  %v11071_v11 = vld [vmem:[#allocation22_spill] sm:$0xff] }
 0xad4   :  { %7771 = vrcp.f32 %v3112_v0  ;;  %v11065_v0 = vld [vmem:[#allocation16_spill] sm:$0xff] }
 0xad5   :  { %7773 = vrcp.f32 %v3119_v32  ;;  %v11075_v32 = vld [vmem:[#allocation26_spill] sm:$0xff] }
 0xadd   :  { %v7770_v42 = vpop.eup %7769 }
 0xade   :  { %v7772_v49 = vpop.eup %7771  ;;  %v3123_v63 = vmul.f32 %v7770_v42, %v7768_v2  ;;  %v11067_v2 = vld [vmem:[#allocation18_spill] sm:$0xff]  ;;  %v11072_v42 = vld [vmem:[#allocation23_spill] sm:$0xff] }
 0xadf   :  { %v3122_v34 = vmul.f32 %v7772_v49, %v9334_v9  ;;  %v7774_v55 = vpop.eup %7773  ;;  %v11064_v9 = vld [vmem:[#allocation15_spill] sm:$0xff]  ;;  %v11073_v49 = vld [vmem:[#allocation24_spill] sm:$0xff] }
 0xae1   :  { %v9526_v36 = vadd.f32 %v3123_v63, %v3122_v34  ;;  %v11074_v63 = vld [vmem:[#allocation25_spill] sm:$0xff]  ;;  %v11076_v34 = vld [vmem:[#allocation27_spill] sm:$0xff] }
 0xae3   :  { %7775 = vtanh.f32 %v9526_v36 }
 0xaed   :  { %v7776_v31 = vpop.eup %7775 }
 0xaee   :  { %v3126_v47 = vmul.f32 %v7776_v31, %v7774_v55  ;;  %v11078_v55 = vld [vmem:[#allocation29_spill] sm:$0xff]  ;;  %v11079_v31 = vld [vmem:[#allocation30_spill] sm:$0xff] }
 0xaf0   :  { %3192 = vmatmul.mubr.f32.vlgmr.msra.gmra.mrb[34].mxu0 %v3126_v47  ;;  %3263 = vmatmul.mubr.f32.vlgmr.msra.gmra.mrb[34].mxu1 %v3126_v47 }
 0xaf1   :  { %6523 = vmatpush1.bf16.msra.mxu0 %v8152_v14  ;;  %6555 = vmatpush1.bf16.msra.mxu1 %v8156_v17 }
 0xaf2   :  { %6525 = vmatprep.subr.bf16.mxu0 %v8165_v25  ;;  %6557 = vmatprep.subr.bf16.mxu1 %v8167_v26 }
 0xaf3   :  { %3361 = vmatprep.mubr.f32.mxu0 %v10489_v5  ;;  %3432 = vmatprep.mubr.f32.mxu1 %v10489_v5 }
 0xaf5   :  { %6527 = vmatpush1.bf16.msra.mxu0 %v8171_v29  ;;  %6559 = vmatpush1.bf16.msra.mxu1 %v8173_v30 }
 0xaf6   :  { %6529 = vmatprep.subr.bf16.mxu0 %v8184_v40  ;;  %6561 = vmatprep.subr.bf16.mxu1 %v8186_v41 }
 0xaf9   :  { %6531 = vmatpush1.bf16.msra.mxu0 %v8190_v44  ;;  %6563 = vmatpush1.bf16.msra.mxu1 %v8192_v45 }
 0xafa   :  { %6533 = vmatprep.subr.bf16.mxu0 %v8203_v53  ;;  %6565 = vmatprep.subr.bf16.mxu1 %v8205_v54 }
 0xafd   :  { %6535 = vmatpush1.bf16.msra.mxu0 %v8209_v57  ;;  %6567 = vmatpush1.bf16.msra.mxu1 %v8211_v58 }
 0xafe   :  { %6537 = vmatprep.subr.bf16.mxu0 %v8222_v3  ;;  %6569 = vmatprep.subr.bf16.mxu1 %v8224_v4 }
 0xb01   :  { %6539 = vmatpush1.bf16.msra.mxu0 %v8228_v7  ;;  %6571 = vmatpush1.bf16.msra.mxu1 %v8230_v8 }
 0xb02   :  { %6541 = vmatprep.subr.bf16.mxu0 %v8241_v20  ;;  %6573 = vmatprep.subr.bf16.mxu1 %v8243_v21 }
 0xb05   :  { %6543 = vmatpush1.bf16.msra.mxu0 %v8247_v24  ;;  %6575 = vmatpush1.bf16.msra.mxu1 %v8249_v27 }
 0xb06   :  { %6545 = vmatprep.subr.bf16.mxu0 %v8260_v37  ;;  %6577 = vmatprep.subr.bf16.mxu1 %v8262_v38 }
 0xb09   :  { %6547 = vmatpush1.bf16.msra.mxu0 %v8266_v43  ;;  %6579 = vmatpush1.bf16.msra.mxu1 %v8268_v46 }
 0xb0a   :  { %6549 = vmatprep.subr.bf16.mxu0 %v8279_v59  ;;  %6581 = vmatprep.subr.bf16.mxu1 %v8281_v60 }
 0xb0d   :  { %6551 = vmatpush1.bf16.msra.mxu0 %v11064_v9  ;;  %6583 = vmatpush1.bf16.msra.mxu1 %v11065_v0 }
 0xb0e   :  { %6585 = vmatprep.subr.bf16.mxu0 %v11066_v18  ;;  %6649 = vmatprep.subr.bf16.mxu1 %v11067_v2 }
 0xb10   :  { %3362 = vmatmul.mubr.f32.vlgmr.msra.gmra.mrb[10].mxu0 %v9453_v16  ;;  %3433 = vmatmul.mubr.f32.vlgmr.msra.gmra.mrb[10].mxu1 %v9453_v16  ;;  %v11077_v16 = vld [vmem:[#allocation28_spill] sm:$0xff] }
 0xb11   :  { %3531 = vmatprep.mubr.f32.mxu0 %v3126_v47  ;;  %3602 = vmatprep.mubr.f32.mxu1 %v3126_v47  ;;  %v11080_v47 = vld [vmem:[#allocation31_spill] sm:$0xff] }
 0xb12   :  { %6587 = vmatpush1.bf16.msra.mxu0 %v11068_v15  ;;  %6651 = vmatpush1.bf16.msra.mxu1 %v11069_v62  ;;  %v11132_v62 = vld [vmem:[#allocation153_spill] sm:$0xff] }
 0xb13   :  { %6589 = vmatprep.subr.bf16.mxu0 %v11070_v35  ;;  %6653 = vmatprep.subr.bf16.mxu1 %v11071_v11  ;;  %v11081_v35 = vld [vmem:[#allocation32_spill] sm:$0xff]  ;;  %v11082_v11 = vld [vmem:[#allocation33_spill] sm:$0xff] }
 0xb16   :  { %6591 = vmatpush1.bf16.msra.mxu0 %v11072_v42  ;;  %6655 = vmatpush1.bf16.msra.mxu1 %v11073_v49  ;;  %v11083_v42 = vld [vmem:[#allocation34_spill] sm:$0xff]  ;;  %v11084_v49 = vld [vmem:[#allocation35_spill] sm:$0xff] }
 0xb17   :  { %6593 = vmatprep.subr.bf16.mxu0 %v11074_v63  ;;  %6657 = vmatprep.subr.bf16.mxu1 %v11075_v32  ;;  %v11085_v63 = vld [vmem:[#allocation36_spill] sm:$0xff]  ;;  %v11086_v32 = vld [vmem:[#allocation37_spill] sm:$0xff] }
 0xb1a   :  { %6595 = vmatpush1.bf16.msra.mxu0 %v11076_v34  ;;  %6659 = vmatpush1.bf16.msra.mxu1 %v11077_v16  ;;  %v11087_v34 = vld [vmem:[#allocation38_spill] sm:$0xff]  ;;  %v11088_v16 = vld [vmem:[#allocation39_spill] sm:$0xff] }
 0xb1b   :  { %6597 = vmatprep.subr.bf16.mxu0 %v11078_v55  ;;  %6661 = vmatprep.subr.bf16.mxu1 %v11079_v31  ;;  %v11089_v55 = vld [vmem:[#allocation40_spill] sm:$0xff]  ;;  %v11090_v31 = vld [vmem:[#allocation41_spill] sm:$0xff] }
 0xb1e   :  { %6599 = vmatpush1.bf16.msra.mxu0 %v11080_v47  ;;  %6663 = vmatpush1.bf16.msra.mxu1 %v11081_v35  ;;  %v11091_v47 = vld [vmem:[#allocation42_spill] sm:$0xff]  ;;  %v11092_v35 = vld [vmem:[#allocation43_spill] sm:$0xff] }
 0xb1f   :  { %6601 = vmatprep.subr.bf16.mxu0 %v11082_v11  ;;  %6665 = vmatprep.subr.bf16.mxu1 %v11083_v42  ;;  %v11093_v11 = vld [vmem:[#allocation44_spill] sm:$0xff]  ;;  %v11094_v42 = vld [vmem:[#allocation45_spill] sm:$0xff] }
 0xb22   :  { %6603 = vmatpush1.bf16.msra.mxu0 %v11084_v49  ;;  %6667 = vmatpush1.bf16.msra.mxu1 %v11085_v63  ;;  %v11095_v49 = vld [vmem:[#allocation46_spill] sm:$0xff]  ;;  %v11096_v63 = vld [vmem:[#allocation47_spill] sm:$0xff] }
 0xb23   :  { %6605 = vmatprep.subr.bf16.mxu0 %v11086_v32  ;;  %6669 = vmatprep.subr.bf16.mxu1 %v11087_v34  ;;  %v11097_v32 = vld [vmem:[#allocation48_spill] sm:$0xff]  ;;  %v11098_v34 = vld [vmem:[#allocation49_spill] sm:$0xff] }
 0xb26   :  { %6607 = vmatpush1.bf16.msra.mxu0 %v11088_v16  ;;  %6671 = vmatpush1.bf16.msra.mxu1 %v11089_v55  ;;  %v11099_v16 = vld [vmem:[#allocation50_spill] sm:$0xff]  ;;  %v11100_v55 = vld [vmem:[#allocation51_spill] sm:$0xff] }
 0xb27   :  { %6609 = vmatprep.subr.bf16.mxu0 %v11090_v31  ;;  %6673 = vmatprep.subr.bf16.mxu1 %v11091_v47  ;;  %v11101_v31 = vld [vmem:[#allocation52_spill] sm:$0xff]  ;;  %v11102_v47 = vld [vmem:[#allocation53_spill] sm:$0xff] }
 0xb2a   :  { %6611 = vmatpush1.bf16.msra.mxu0 %v11092_v35  ;;  %6675 = vmatpush1.bf16.msra.mxu1 %v11093_v11  ;;  %v11103_v35 = vld [vmem:[#allocation54_spill] sm:$0xff]  ;;  %v11104_v11 = vld [vmem:[#allocation55_spill] sm:$0xff] }
 0xb2b   :  { %6613 = vmatprep.subr.bf16.mxu0 %v11094_v42  ;;  %6677 = vmatprep.subr.bf16.mxu1 %v11095_v49  ;;  %v11105_v42 = vld [vmem:[#allocation56_spill] sm:$0xff]  ;;  %v11106_v49 = vld [vmem:[#allocation57_spill] sm:$0xff] }
 0xb2e   :  { %6615 = vmatpush1.bf16.msra.mxu0 %v11096_v63  ;;  %6679 = vmatpush1.bf16.msra.mxu1 %v11097_v32  ;;  %v11107_v63 = vld [vmem:[#allocation58_spill] sm:$0xff]  ;;  %v11108_v32 = vld [vmem:[#allocation59_spill] sm:$0xff] }
 0xb2f   :  { %6617 = vmatprep.subr.bf16.mxu0 %v11098_v34  ;;  %6681 = vmatprep.subr.bf16.mxu1 %v11099_v16  ;;  %v11109_v34 = vld [vmem:[#allocation60_spill] sm:$0xff]  ;;  %v11110_v16 = vld [vmem:[#allocation61_spill] sm:$0xff] }
 0xb32   :  { %6619 = vmatpush1.bf16.msra.mxu0 %v11100_v55  ;;  %6683 = vmatpush1.bf16.msra.mxu1 %v11101_v31  ;;  %v11111_v55 = vld [vmem:[#allocation62_spill] sm:$0xff]  ;;  %v11112_v31 = vld [vmem:[#allocation63_spill] sm:$0xff] }
 0xb33   :  { %6621 = vmatprep.subr.bf16.mxu0 %v11102_v47  ;;  %6685 = vmatprep.subr.bf16.mxu1 %v11103_v35  ;;  %v11113_v47 = vld [vmem:[#allocation64_spill] sm:$0xff]  ;;  %v11114_v35 = vld [vmem:[#allocation65_spill] sm:$0xff] }
 0xb36   :  { %6623 = vmatpush1.bf16.msra.mxu0 %v11104_v11  ;;  %6687 = vmatpush1.bf16.msra.mxu1 %v11105_v42  ;;  %v11115_v11 = vld [vmem:[#allocation66_spill] sm:$0xff]  ;;  %v11116_v42 = vld [vmem:[#allocation67_spill] sm:$0xff] }
 0xb37   :  { %6625 = vmatprep.subr.bf16.mxu0 %v11106_v49  ;;  %6689 = vmatprep.subr.bf16.mxu1 %v11107_v63  ;;  %v11117_v49 = vld [vmem:[#allocation68_spill] sm:$0xff]  ;;  %v11118_v63 = vld [vmem:[#allocation69_spill] sm:$0xff] }
 0xb3a   :  { %6627 = vmatpush1.bf16.msra.mxu0 %v11108_v32  ;;  %6691 = vmatpush1.bf16.msra.mxu1 %v11109_v34  ;;  %v11119_v32 = vld [vmem:[#allocation70_spill] sm:$0xff]  ;;  %v11120_v34 = vld [vmem:[#allocation71_spill] sm:$0xff] }
 0xb3b   :  { %6629 = vmatprep.subr.bf16.mxu0 %v11110_v16  ;;  %6693 = vmatprep.subr.bf16.mxu1 %v11111_v55  ;;  %v11121_v16 = vld [vmem:[#allocation72_spill] sm:$0xff]  ;;  %v11122_v55 = vld [vmem:[#allocation73_spill] sm:$0xff] }
 0xb3e   :  { %6631 = vmatpush1.bf16.msra.mxu0 %v11112_v31  ;;  %6695 = vmatpush1.bf16.msra.mxu1 %v11113_v47  ;;  %v11123_v31 = vld [vmem:[#allocation74_spill] sm:$0xff]  ;;  %v11124_v47 = vld [vmem:[#allocation75_spill] sm:$0xff] }
 0xb3f   :  { %6633 = vmatprep.subr.bf16.mxu0 %v11114_v35  ;;  %6697 = vmatprep.subr.bf16.mxu1 %v11115_v11  ;;  %v11125_v35 = vld [vmem:[#allocation76_spill] sm:$0xff]  ;;  %v11126_v11 = vld [vmem:[#allocation77_spill] sm:$0xff] }
 0xb42   :  { %6635 = vmatpush1.bf16.msra.mxu0 %v11116_v42  ;;  %6699 = vmatpush1.bf16.msra.mxu1 %v11117_v49  ;;  %v11127_v42 = vld [vmem:[#allocation78_spill] sm:$0xff]  ;;  %v11128_v49 = vld [vmem:[#allocation79_spill] sm:$0xff] }
 0xb43   :  { %6637 = vmatprep.subr.bf16.mxu0 %v11118_v63  ;;  %6701 = vmatprep.subr.bf16.mxu1 %v11119_v32  ;;  %v11129_v63 = vld [vmem:[#allocation80_spill] sm:$0xff]  ;;  %v11130_v32 = vld [vmem:[#allocation81_spill] sm:$0xff] }
 0xb46   :  { %6639 = vmatpush1.bf16.msra.mxu0 %v11120_v34  ;;  %6703 = vmatpush1.bf16.msra.mxu1 %v11121_v16  ;;  %v11131_v34 = vld [vmem:[#allocation82_spill] sm:$0xff] }
 0xb47   :  { %6641 = vmatprep.subr.bf16.mxu0 %v11122_v55  ;;  %6705 = vmatprep.subr.bf16.mxu1 %v11123_v31 }
 0xb4a   :  { %6643 = vmatpush1.bf16.msra.mxu0 %v11124_v47  ;;  %6707 = vmatpush1.bf16.msra.mxu1 %v11125_v35 }
 0xb4b   :  { %6645 = vmatprep.subr.bf16.mxu0 %v11126_v11  ;;  %6709 = vmatprep.subr.bf16.mxu1 %v11127_v42 }
 0xb4e   :  { %6647 = vmatpush1.bf16.msra.mxu0 %v11128_v49  ;;  %6711 = vmatpush1.bf16.msra.mxu1 %v11129_v63 }
 0xb4f   :  { %6713 = vmatprep.subr.bf16.mxu0 %v11130_v32  ;;  %6777 = vmatprep.subr.bf16.mxu1 %v11131_v34 }
 0xbc3   :  { %v3193_v16 = vpop.f32.mrb[34].mxu0  ;;  %v3264_v55 = vpop.f32.mrb[34].mxu1 }
 0xbc4   :  { %v3194_v31 = vadd.f32 %v3193_v16, %v11132_v62  ;;  %v3195_v15 = vpop.f32.mrb[35].mxu0  ;;  %v3266_v47 = vpop.f32.mrb[35].mxu1  ;;  %v3265_v49 = vadd.f32 %v3264_v55, %v10874_v6 }
 0xbc5   :  { %v3196_v35 = vadd.f32 %v3195_v15, %v10743_v56 }
 0xbc6   :  { %v4890_v2 = vmul.f32 -1.442695, %v3194_v31 }
 0xbc7   :  { %v4891_v11 = vmul.f32 -1.442695, %v3196_v35 }
 0xbc8   :  { %7777 = vpow2.f32 %v4890_v2 }
 0xbc9   :  { %7779 = vpow2.f32 %v4891_v11 }
 0xbca   :  { %7781 = vtanh.f32 %v3265_v49 }
 0xbd2   :  { %v7778_v42 = vpop.eup %7777 }
 0xbd3   :  { %v7780_v63 = vpop.eup %7779  ;;  %v3272_v18 = vadd.f32 1.0, %v7778_v42 }
 0xbd4   :  { %v3278_v32 = vadd.f32 1.0, %v7780_v63  ;;  %v7782_v34 = vpop.eup %7781 }
 0xbd5   :  { %7783 = vrcp.f32 %v3272_v18  ;;  %v3267_v18 = vadd.f32 %v3266_v47, %v8867_v61 }
 0xbd6   :  { %7785 = vrcp.f32 %v3278_v32 }
 0xbd7   :  { %v4892_v32 = vmul.f32 -1.442695, %v3267_v18 }
 0xbdf   :  { %v7784_v0 = vpop.eup %7783 }
 0xbe0   :  { %v7786_v16 = vpop.eup %7785  ;;  %v3289_v62 = vmul.f32 %v7784_v0, %v7782_v34 }
 0xbe1   :  { %v3288_v9 = vmul.f32 %v7786_v16, %v9441_v1 }
 0xbe3   :  { %v3363_v15 = vpop.f32.mrb[10].mxu0  ;;  %v3434_v31 = vpop.f32.mrb[10].mxu1  ;;  %v9633_v35 = vadd.f32 %v3289_v62, %v3288_v9 }
 0xbe4   :  { %v7490_v2 = vadd.f32 %v3363_v15, %v10745_v19  ;;  %v3365_v11 = vpop.f32.mrb[11].mxu0  ;;  %v3436_v55 = vpop.f32.mrb[11].mxu1  ;;  %v7506_v34 = vadd.f32 %v3434_v31, %v10615_v48 }
 0xbe5   :  { %v7491_v42 = vadd.f32 %v3365_v11, %v10613_v33  ;;  %v7507_v0 = vadd.f32 %v3436_v55, %v10614_v10 }
 0xbe6   :  { %v4893_v49 = vmul.f32 -1.442695, %v7490_v2 }
 0xbe7   :  { %v4894_v63 = vmul.f32 -1.442695, %v7491_v42  ;;  %v4895_v1 = vmul.f32 -1.442695, %v7507_v0 }
 0xbe8   :  { %7787 = vpow2.f32 %v4893_v49 }
 0xbe9   :  { %7789 = vpow2.f32 %v4894_v63 }
 0xbea   :  { %7791 = vpow2.f32 %v4892_v32 }
 0xbeb   :  { %7793 = vpow2.f32 %v4895_v1 }
 0xbec   :  { %7795 = vtanh.f32 %v7506_v34 }
 0xbf2   :  { %v7788_v9 = vpop.eup %7787 }
 0xbf3   :  { %v7790_v62 = vpop.eup %7789  ;;  %v3446_v16 = vadd.f32 1.0, %v7788_v9 }
 0xbf4   :  { %v3452_v15 = vadd.f32 1.0, %v7790_v62  ;;  %v7792_v2 = vpop.eup %7791 }
 0xbf5   :  { %7797 = vrcp.f32 %v3446_v16  ;;  %v7794_v11 = vpop.eup %7793  ;;  %v3285_v0 = vadd.f32 1.0, %v7792_v2  ;;  %v11135_v2 = vld [vmem:[#allocation95_spill] sm:$0xff] }
 0xbf6   :  { %7799 = vrcp.f32 %v3452_v15  ;;  %v7796_v42 = vpop.eup %7795  ;;  %v3459_v55 = vadd.f32 1.0, %v7794_v11  ;;  %v11134_v15 = vld [vmem:[#allocation94_spill] sm:$0xff]  ;;  %v11136_v11 = vld [vmem:[#allocation96_spill] sm:$0xff] }
 0xbf7   :  { %7801 = vtanh.f32 %v9633_v35 }
 0xbf8   :  { %7803 = vrcp.f32 %v3459_v55  ;;  %v11141_v55 = vld [vmem:[#allocation101_spill] sm:$0xff] }
 0xbff   :  { %v7798_v49 = vpop.eup %7797 }
 0xc00   :  { %v7800_v47 = vpop.eup %7799  ;;  %v3463_v63 = vmul.f32 %v7798_v49, %v7796_v42  ;;  %v11137_v42 = vld [vmem:[#allocation97_spill] sm:$0xff]  ;;  %v11138_v49 = vld [vmem:[#allocation98_spill] sm:$0xff] }
 0xc01   :  { %v3462_v18 = vmul.f32 %v7800_v47, %v9449_v22  ;;  %v7802_v32 = vpop.eup %7801  ;;  %v11133_v22 = vld [vmem:[#allocation93_spill] sm:$0xff]  ;;  %v11139_v47 = vld [vmem:[#allocation99_spill] sm:$0xff] }
 0xc02   :  { %v7804_v1 = vpop.eup %7803 }
 0xc03   :  { %v9641_v31 = vadd.f32 %v3463_v63, %v3462_v18  ;;  %v11140_v63 = vld [vmem:[#allocation100_spill] sm:$0xff]  ;;  %v11142_v18 = vld [vmem:[#allocation102_spill] sm:$0xff] }
 0xc05   :  { %7805 = vtanh.f32 %v9641_v31 }
 0xc06   :  { %7807 = vrcp.f32 %v3285_v0  ;;  %v11143_v0 = vld [vmem:[#allocation103_spill] sm:$0xff] }
 0xc0f   :  { %v7806_v34 = vpop.eup %7805 }
 0xc10   :  { %v7808_v9 = vpop.eup %7807  ;;  %v9645_v62 = vmul.f32 %v7806_v34, %v7804_v1  ;;  %v11145_v1 = vld [vmem:[#allocation105_spill] sm:$0xff]  ;;  %v11146_v34 = vld [vmem:[#allocation106_spill] sm:$0xff] }
 0xc11   :  { %v3292_v16 = vmul.f32 %v7808_v9, %v7802_v32  ;;  %v11144_v32 = vld [vmem:[#allocation104_spill] sm:$0xff]  ;;  %v11147_v9 = vld [vmem:[#allocation107_spill] sm:$0xff] }
 0xc12   :  { %3532 = vmatmul.mubr.f32.vlgmr.msra.gmra.mrb[36].mxu0 %v9645_v62  ;;  %3603 = vmatmul.mubr.f32.vlgmr.msra.gmra.mrb[36].mxu1 %v9645_v62 }
 0xc13   :  { %3697 = vmatprep.mubr.f32.mxu0 %v3292_v16  ;;  %3768 = vmatprep.mubr.f32.mxu1 %v3292_v16  ;;  %v11148_v16 = vld [vmem:[#allocation108_spill] sm:$0xff] }
 0xc14   :  { %6715 = vmatpush1.bf16.msra.mxu0 %v10617_v28  ;;  %6779 = vmatpush1.bf16.msra.mxu1 %v10618_v23 }
 0xc15   :  { %6717 = vmatprep.subr.bf16.mxu0 %v10619_v51  ;;  %6781 = vmatprep.subr.bf16.mxu1 %v10620_v52 }
 0xc18   :  { %6719 = vmatpush1.bf16.msra.mxu0 %v10621_v13  ;;  %6783 = vmatpush1.bf16.msra.mxu1 %v11133_v22 }
 0xc19   :  { %6721 = vmatprep.subr.bf16.mxu0 %v11134_v15  ;;  %6785 = vmatprep.subr.bf16.mxu1 %v11135_v2 }
 0xc1c   :  { %6723 = vmatpush1.bf16.msra.mxu0 %v11136_v11  ;;  %6787 = vmatpush1.bf16.msra.mxu1 %v11137_v42  ;;  %v11192_v42 = vld [vmem:[#allocation150_spill] sm:$0xff] }
 0xc1d   :  { %6725 = vmatprep.subr.bf16.mxu0 %v11138_v49  ;;  %6789 = vmatprep.subr.bf16.mxu1 %v11139_v47  ;;  %v11149_v49 = vld [vmem:[#allocation109_spill] sm:$0xff]  ;;  %v11150_v47 = vld [vmem:[#allocation110_spill] sm:$0xff] }
 0xc20   :  { %6727 = vmatpush1.bf16.msra.mxu0 %v11140_v63  ;;  %6791 = vmatpush1.bf16.msra.mxu1 %v11141_v55  ;;  %v11151_v63 = vld [vmem:[#allocation111_spill] sm:$0xff]  ;;  %v11152_v55 = vld [vmem:[#allocation112_spill] sm:$0xff] }
 0xc21   :  { %6729 = vmatprep.subr.bf16.mxu0 %v11142_v18  ;;  %6793 = vmatprep.subr.bf16.mxu1 %v11143_v0  ;;  %v11153_v18 = vld [vmem:[#allocation113_spill] sm:$0xff]  ;;  %v11154_v0 = vld [vmem:[#allocation114_spill] sm:$0xff] }
 0xc24   :  { %6731 = vmatpush1.bf16.msra.mxu0 %v11144_v32  ;;  %6795 = vmatpush1.bf16.msra.mxu1 %v11145_v1  ;;  %v11155_v32 = vld [vmem:[#allocation115_spill] sm:$0xff]  ;;  %v11156_v1 = vld [vmem:[#allocation116_spill] sm:$0xff] }
 0xc25   :  { %6733 = vmatprep.subr.bf16.mxu0 %v11146_v34  ;;  %6797 = vmatprep.subr.bf16.mxu1 %v11147_v9  ;;  %v11157_v34 = vld [vmem:[#allocation117_spill] sm:$0xff]  ;;  %v11158_v9 = vld [vmem:[#allocation118_spill] sm:$0xff] }
 0xc28   :  { %6735 = vmatpush1.bf16.msra.mxu0 %v11148_v16  ;;  %6799 = vmatpush1.bf16.msra.mxu1 %v11149_v49  ;;  %v11159_v16 = vld [vmem:[#allocation119_spill] sm:$0xff]  ;;  %v11160_v49 = vld [vmem:[#allocation120_spill] sm:$0xff] }
 0xc29   :  { %6737 = vmatprep.subr.bf16.mxu0 %v11150_v47  ;;  %6801 = vmatprep.subr.bf16.mxu1 %v11151_v63  ;;  %v11161_v47 = vld [vmem:[#allocation121_spill] sm:$0xff]  ;;  %v11162_v63 = vld [vmem:[#allocation122_spill] sm:$0xff] }
 0xc2c   :  { %6739 = vmatpush1.bf16.msra.mxu0 %v11152_v55  ;;  %6803 = vmatpush1.bf16.msra.mxu1 %v11153_v18  ;;  %v11163_v55 = vld [vmem:[#allocation123_spill] sm:$0xff]  ;;  %v11164_v18 = vld [vmem:[#allocation124_spill] sm:$0xff] }
 0xc2d   :  { %6741 = vmatprep.subr.bf16.mxu0 %v11154_v0  ;;  %6805 = vmatprep.subr.bf16.mxu1 %v11155_v32  ;;  %v11165_v0 = vld [vmem:[#allocation125_spill] sm:$0xff]  ;;  %v11166_v32 = vld [vmem:[#allocation126_spill] sm:$0xff] }
 0xc30   :  { %6743 = vmatpush1.bf16.msra.mxu0 %v11156_v1  ;;  %6807 = vmatpush1.bf16.msra.mxu1 %v11157_v34  ;;  %v11167_v1 = vld [vmem:[#allocation127_spill] sm:$0xff]  ;;  %v11168_v34 = vld [vmem:[#allocation128_spill] sm:$0xff] }
 0xc31   :  { %6745 = vmatprep.subr.bf16.mxu0 %v11158_v9  ;;  %6809 = vmatprep.subr.bf16.mxu1 %v11159_v16  ;;  %v11169_v9 = vld [vmem:[#allocation129_spill] sm:$0xff]  ;;  %v11170_v16 = vld [vmem:[#allocation130_spill] sm:$0xff] }
 0xc34   :  { %6747 = vmatpush1.bf16.msra.mxu0 %v11160_v49  ;;  %6811 = vmatpush1.bf16.msra.mxu1 %v11161_v47  ;;  %v11171_v49 = vld [vmem:[#allocation131_spill] sm:$0xff]  ;;  %v11172_v47 = vld [vmem:[#allocation132_spill] sm:$0xff] }
 0xc35   :  { %6749 = vmatprep.subr.bf16.mxu0 %v11162_v63  ;;  %6813 = vmatprep.subr.bf16.mxu1 %v11163_v55  ;;  %v11173_v63 = vld [vmem:[#allocation133_spill] sm:$0xff]  ;;  %v11174_v55 = vld [vmem:[#allocation134_spill] sm:$0xff] }
 0xc38   :  { %6751 = vmatpush1.bf16.msra.mxu0 %v11164_v18  ;;  %6815 = vmatpush1.bf16.msra.mxu1 %v11165_v0  ;;  %v11175_v18 = vld [vmem:[#allocation135_spill] sm:$0xff]  ;;  %v11176_v0 = vld [vmem:[#allocation136_spill] sm:$0xff] }
 0xc39   :  { %6753 = vmatprep.subr.bf16.mxu0 %v11166_v32  ;;  %6817 = vmatprep.subr.bf16.mxu1 %v11167_v1  ;;  %v11177_v32 = vld [vmem:[#allocation137_spill] sm:$0xff]  ;;  %v11178_v1 = vld [vmem:[#allocation138_spill] sm:$0xff] }
 0xc3c   :  { %6755 = vmatpush1.bf16.msra.mxu0 %v11168_v34  ;;  %6819 = vmatpush1.bf16.msra.mxu1 %v11169_v9  ;;  %v11179_v34 = vld [vmem:[#allocation139_spill] sm:$0xff]  ;;  %v11180_v9 = vld [vmem:[#allocation140_spill] sm:$0xff] }
 0xc3d   :  { %6757 = vmatprep.subr.bf16.mxu0 %v11170_v16  ;;  %6821 = vmatprep.subr.bf16.mxu1 %v11171_v49  ;;  %v11181_v16 = vld [vmem:[#allocation141_spill] sm:$0xff]  ;;  %v11182_v49 = vld [vmem:[#allocation142_spill] sm:$0xff] }
 0xc40   :  { %6759 = vmatpush1.bf16.msra.mxu0 %v11172_v47  ;;  %6823 = vmatpush1.bf16.msra.mxu1 %v11173_v63  ;;  %v11183_v47 = vld [vmem:[#allocation143_spill] sm:$0xff]  ;;  %v11184_v63 = vld [vmem:[#allocation144_spill] sm:$0xff] }
 0xc41   :  { %6761 = vmatprep.subr.bf16.mxu0 %v11174_v55  ;;  %6825 = vmatprep.subr.bf16.mxu1 %v11175_v18  ;;  %v11185_v55 = vld [vmem:[#allocation145_spill] sm:$0xff]  ;;  %v11186_v18 = vld [vmem:[#allocation146_spill] sm:$0xff] }
 0xc44   :  { %6763 = vmatpush1.bf16.msra.mxu0 %v11176_v0  ;;  %6827 = vmatpush1.bf16.msra.mxu1 %v11177_v32  ;;  %v11187_v0 = vld [vmem:[#allocation147_spill] sm:$0xff]  ;;  %v11188_v32 = vld [vmem:[#allocation148_spill] sm:$0xff] }
 0xc45   :  { %6765 = vmatprep.subr.bf16.mxu0 %v11178_v1  ;;  %6829 = vmatprep.subr.bf16.mxu1 %v11179_v34  ;;  %v11189_v1 = vld [vmem:[#allocation149_spill] sm:$0xff] }
 0xc46   :  { %v11190_v34 = vld [vmem:[#allocation13_spill] sm:$0xff] }
 0xc48   :  { %6767 = vmatpush1.bf16.msra.mxu0 %v11180_v9  ;;  %6831 = vmatpush1.bf16.msra.mxu1 %v11181_v16  ;;  %v11191_v9 = vld [vmem:[#allocation14_spill] sm:$0xff] }
 0xc49   :  { %6769 = vmatprep.subr.bf16.mxu0 %v11182_v49  ;;  %6833 = vmatprep.subr.bf16.mxu1 %v11183_v47 }
 0xc4c   :  { %6771 = vmatpush1.bf16.msra.mxu0 %v11184_v63  ;;  %6835 = vmatpush1.bf16.msra.mxu1 %v11185_v55 }
 0xc4d   :  { %6773 = vmatprep.subr.bf16.mxu0 %v11186_v18  ;;  %6837 = vmatprep.subr.bf16.mxu1 %v11187_v0 }
 0xc50   :  { %6775 = vmatpush1.bf16.msra.mxu0 %v11188_v32  ;;  %6839 = vmatpush1.bf16.msra.mxu1 %v11189_v1 }
 0xc51   :  { %6841 = vmatprep.subr.bf16.mxu0 %v11190_v34  ;;  %6873 = vmatprep.subr.bf16.mxu1 %v11191_v9 }
 0xce5   :  { %v3533_v16 = vpop.f32.mrb[36].mxu0  ;;  %v3604_v49 = vpop.f32.mrb[36].mxu1 }
 0xce6   :  { %v3534_v47 = vadd.f32 %v3533_v16, %v11192_v42  ;;  %v3535_v11 = vpop.f32.mrb[37].mxu0  ;;  %v3606_v63 = vpop.f32.mrb[37].mxu1  ;;  %v3605_v1 = vadd.f32 %v3604_v49, %v8741_v12 }
 0xce7   :  { %v3536_v55 = vadd.f32 %v3535_v11, %v10675_v50  ;;  %v3607_v32 = vadd.f32 %v3606_v63, %v10676_v39 }
 0xce8   :  { %v4896_v2 = vmul.f32 -1.442695, %v3534_v47 }
 0xce9   :  { %v4897_v18 = vmul.f32 -1.442695, %v3536_v55  ;;  %v4898_v0 = vmul.f32 -1.442695, %v3607_v32 }
 0xcea   :  { %7809 = vpow2.f32 %v4896_v2 }
 0xceb   :  { %7811 = vpow2.f32 %v4897_v18 }
 0xcec   :  { %7813 = vpow2.f32 %v4898_v0 }
 0xced   :  { %7815 = vtanh.f32 %v3605_v1  ;;  %v11197_v1 = vld [vmem:[#allocation19_spill] sm:$0xff] }
 0xcf4   :  { %v7810_v34 = vpop.eup %7809 }
 0xcf5   :  { %v7812_v15 = vpop.eup %7811  ;;  %v3612_v9 = vadd.f32 1.0, %v7810_v34  ;;  %v11198_v34 = vld [vmem:[#allocation20_spill] sm:$0xff] }
 0xcf6   :  { %v3618_v22 = vadd.f32 1.0, %v7812_v15  ;;  %v7814_v16 = vpop.eup %7813  ;;  %v11195_v15 = vld [vmem:[#allocation17_spill] sm:$0xff] }
 0xcf7   :  { %7817 = vrcp.f32 %v3612_v9  ;;  %v7816_v42 = vpop.eup %7815  ;;  %v3625_v2 = vadd.f32 1.0, %v7814_v16  ;;  %v11199_v9 = vld [vmem:[#allocation21_spill] sm:$0xff]  ;;  %v11200_v16 = vld [vmem:[#allocation22_spill] sm:$0xff] }
 0xcf8   :  { %7819 = vrcp.f32 %v3618_v22  ;;  %v11194_v22 = vld [vmem:[#allocation16_spill] sm:$0xff] }
 0xcf9   :  { %7821 = vrcp.f32 %v3625_v2  ;;  %v11204_v2 = vld [vmem:[#allocation26_spill] sm:$0xff] }
 0xd01   :  { %v7818_v11 = vpop.eup %7817 }
 0xd02   :  { %v7820_v47 = vpop.eup %7819  ;;  %v3629_v55 = vmul.f32 %v7818_v11, %v7816_v42  ;;  %v11196_v42 = vld [vmem:[#allocation18_spill] sm:$0xff]  ;;  %v11201_v11 = vld [vmem:[#allocation23_spill] sm:$0xff] }
 0xd03   :  { %v3628_v18 = vmul.f32 %v7820_v47, %v9526_v36  ;;  %v7822_v49 = vpop.eup %7821  ;;  %v11193_v36 = vld [vmem:[#allocation15_spill] sm:$0xff]  ;;  %v11202_v47 = vld [vmem:[#allocation24_spill] sm:$0xff] }
 0xd05   :  { %v9718_v63 = vadd.f32 %v3629_v55, %v3628_v18  ;;  %v11203_v55 = vld [vmem:[#allocation25_spill] sm:$0xff]  ;;  %v11205_v18 = vld [vmem:[#allocation27_spill] sm:$0xff] }
 0xd07   :  { %7823 = vtanh.f32 %v9718_v63 }
 0xd11   :  { %v7824_v32 = vpop.eup %7823 }
 0xd12   :  { %v3632_v0 = vmul.f32 %v7824_v32, %v7822_v49  ;;  %v11207_v49 = vld [vmem:[#allocation29_spill] sm:$0xff]  ;;  %v11208_v32 = vld [vmem:[#allocation30_spill] sm:$0xff] }
 0xd14   :  { %3698 = vmatmul.mubr.f32.vlgmr.msra.gmra.mrb[38].mxu0 %v3632_v0  ;;  %3769 = vmatmul.mubr.f32.vlgmr.msra.gmra.mrb[38].mxu1 %v3632_v0 }
 0xd15   :  { %6843 = vmatpush1.bf16.msra.mxu0 %v8152_v14  ;;  %6875 = vmatpush1.bf16.msra.mxu1 %v8156_v17 }
 0xd16   :  { %6845 = vmatprep.subr.bf16.mxu0 %v8165_v25  ;;  %6877 = vmatprep.subr.bf16.mxu1 %v8167_v26 }
 0xd17   :  { %3867 = vmatprep.mubr.f32.mxu0 %v10489_v5  ;;  %3938 = vmatprep.mubr.f32.mxu1 %v10489_v5 }
 0xd19   :  { %6847 = vmatpush1.bf16.msra.mxu0 %v8171_v29  ;;  %6879 = vmatpush1.bf16.msra.mxu1 %v8173_v30 }
 0xd1a   :  { %6849 = vmatprep.subr.bf16.mxu0 %v8184_v40  ;;  %6881 = vmatprep.subr.bf16.mxu1 %v8186_v41 }
 0xd1d   :  { %6851 = vmatpush1.bf16.msra.mxu0 %v8190_v44  ;;  %6883 = vmatpush1.bf16.msra.mxu1 %v8192_v45 }
 0xd1e   :  { %6853 = vmatprep.subr.bf16.mxu0 %v8203_v53  ;;  %6885 = vmatprep.subr.bf16.mxu1 %v8205_v54 }
 0xd21   :  { %6855 = vmatpush1.bf16.msra.mxu0 %v8209_v57  ;;  %6887 = vmatpush1.bf16.msra.mxu1 %v8211_v58 }
 0xd22   :  { %6857 = vmatprep.subr.bf16.mxu0 %v8222_v3  ;;  %6889 = vmatprep.subr.bf16.mxu1 %v8224_v4 }
 0xd25   :  { %6859 = vmatpush1.bf16.msra.mxu0 %v8228_v7  ;;  %6891 = vmatpush1.bf16.msra.mxu1 %v8230_v8 }
 0xd26   :  { %6861 = vmatprep.subr.bf16.mxu0 %v8241_v20  ;;  %6893 = vmatprep.subr.bf16.mxu1 %v8243_v21 }
 0xd29   :  { %6863 = vmatpush1.bf16.msra.mxu0 %v8247_v24  ;;  %6895 = vmatpush1.bf16.msra.mxu1 %v8249_v27 }
 0xd2a   :  { %6865 = vmatprep.subr.bf16.mxu0 %v8260_v37  ;;  %6897 = vmatprep.subr.bf16.mxu1 %v8262_v38 }
 0xd2d   :  { %6867 = vmatpush1.bf16.msra.mxu0 %v8266_v43  ;;  %6899 = vmatpush1.bf16.msra.mxu1 %v8268_v46 }
 0xd2e   :  { %6869 = vmatprep.subr.bf16.mxu0 %v8279_v59  ;;  %6901 = vmatprep.subr.bf16.mxu1 %v8281_v60 }
 0xd31   :  { %6871 = vmatpush1.bf16.msra.mxu0 %v11193_v36  ;;  %6903 = vmatpush1.bf16.msra.mxu1 %v11194_v22 }
 0xd32   :  { %6905 = vmatprep.subr.bf16.mxu0 %v11195_v15  ;;  %6969 = vmatprep.subr.bf16.mxu1 %v11196_v42 }
 0xd34   :  { %3868 = vmatmul.mubr.f32.vlgmr.msra.gmra.mrb[12].mxu0 %v9645_v62  ;;  %3939 = vmatmul.mubr.f32.vlgmr.msra.gmra.mrb[12].mxu1 %v9645_v62  ;;  %v11206_v62 = vld [vmem:[#allocation28_spill] sm:$0xff] }
 0xd35   :  { %4037 = vmatprep.mubr.f32.mxu0 %v3632_v0  ;;  %4108 = vmatprep.mubr.f32.mxu1 %v3632_v0  ;;  %v11209_v0 = vld [vmem:[#allocation31_spill] sm:$0xff] }
 0xd36   :  { %6907 = vmatpush1.bf16.msra.mxu0 %v11197_v1  ;;  %6971 = vmatpush1.bf16.msra.mxu1 %v11198_v34  ;;  %v11261_v34 = vld [vmem:[#allocation153_spill] sm:$0xff] }
 0xd37   :  { %6909 = vmatprep.subr.bf16.mxu0 %v11199_v9  ;;  %6973 = vmatprep.subr.bf16.mxu1 %v11200_v16  ;;  %v11210_v9 = vld [vmem:[#allocation32_spill] sm:$0xff]  ;;  %v11211_v16 = vld [vmem:[#allocation33_spill] sm:$0xff] }
 0xd3a   :  { %6911 = vmatpush1.bf16.msra.mxu0 %v11201_v11  ;;  %6975 = vmatpush1.bf16.msra.mxu1 %v11202_v47  ;;  %v11212_v11 = vld [vmem:[#allocation34_spill] sm:$0xff]  ;;  %v11213_v47 = vld [vmem:[#allocation35_spill] sm:$0xff] }
 0xd3b   :  { %6913 = vmatprep.subr.bf16.mxu0 %v11203_v55  ;;  %6977 = vmatprep.subr.bf16.mxu1 %v11204_v2  ;;  %v11214_v55 = vld [vmem:[#allocation36_spill] sm:$0xff]  ;;  %v11215_v2 = vld [vmem:[#allocation37_spill] sm:$0xff] }
 0xd3e   :  { %6915 = vmatpush1.bf16.msra.mxu0 %v11205_v18  ;;  %6979 = vmatpush1.bf16.msra.mxu1 %v11206_v62  ;;  %v11216_v18 = vld [vmem:[#allocation38_spill] sm:$0xff]  ;;  %v11217_v62 = vld [vmem:[#allocation39_spill] sm:$0xff] }
 0xd3f   :  { %6917 = vmatprep.subr.bf16.mxu0 %v11207_v49  ;;  %6981 = vmatprep.subr.bf16.mxu1 %v11208_v32  ;;  %v11218_v49 = vld [vmem:[#allocation40_spill] sm:$0xff]  ;;  %v11219_v32 = vld [vmem:[#allocation41_spill] sm:$0xff] }
 0xd42   :  { %6919 = vmatpush1.bf16.msra.mxu0 %v11209_v0  ;;  %6983 = vmatpush1.bf16.msra.mxu1 %v11210_v9  ;;  %v11220_v0 = vld [vmem:[#allocation42_spill] sm:$0xff]  ;;  %v11221_v9 = vld [vmem:[#allocation43_spill] sm:$0xff] }
 0xd43   :  { %6921 = vmatprep.subr.bf16.mxu0 %v11211_v16  ;;  %6985 = vmatprep.subr.bf16.mxu1 %v11212_v11  ;;  %v11222_v16 = vld [vmem:[#allocation44_spill] sm:$0xff]  ;;  %v11223_v11 = vld [vmem:[#allocation45_spill] sm:$0xff] }
 0xd46   :  { %6923 = vmatpush1.bf16.msra.mxu0 %v11213_v47  ;;  %6987 = vmatpush1.bf16.msra.mxu1 %v11214_v55  ;;  %v11224_v47 = vld [vmem:[#allocation46_spill] sm:$0xff]  ;;  %v11225_v55 = vld [vmem:[#allocation47_spill] sm:$0xff] }
 0xd47   :  { %6925 = vmatprep.subr.bf16.mxu0 %v11215_v2  ;;  %6989 = vmatprep.subr.bf16.mxu1 %v11216_v18  ;;  %v11226_v2 = vld [vmem:[#allocation48_spill] sm:$0xff]  ;;  %v11227_v18 = vld [vmem:[#allocation49_spill] sm:$0xff] }
 0xd4a   :  { %6927 = vmatpush1.bf16.msra.mxu0 %v11217_v62  ;;  %6991 = vmatpush1.bf16.msra.mxu1 %v11218_v49  ;;  %v11228_v62 = vld [vmem:[#allocation50_spill] sm:$0xff]  ;;  %v11229_v49 = vld [vmem:[#allocation51_spill] sm:$0xff] }
 0xd4b   :  { %6929 = vmatprep.subr.bf16.mxu0 %v11219_v32  ;;  %6993 = vmatprep.subr.bf16.mxu1 %v11220_v0  ;;  %v11230_v32 = vld [vmem:[#allocation52_spill] sm:$0xff]  ;;  %v11231_v0 = vld [vmem:[#allocation53_spill] sm:$0xff] }
 0xd4e   :  { %6931 = vmatpush1.bf16.msra.mxu0 %v11221_v9  ;;  %6995 = vmatpush1.bf16.msra.mxu1 %v11222_v16  ;;  %v11232_v9 = vld [vmem:[#allocation54_spill] sm:$0xff]  ;;  %v11233_v16 = vld [vmem:[#allocation55_spill] sm:$0xff] }
 0xd4f   :  { %6933 = vmatprep.subr.bf16.mxu0 %v11223_v11  ;;  %6997 = vmatprep.subr.bf16.mxu1 %v11224_v47  ;;  %v11234_v11 = vld [vmem:[#allocation56_spill] sm:$0xff]  ;;  %v11235_v47 = vld [vmem:[#allocation57_spill] sm:$0xff] }
 0xd52   :  { %6935 = vmatpush1.bf16.msra.mxu0 %v11225_v55  ;;  %6999 = vmatpush1.bf16.msra.mxu1 %v11226_v2  ;;  %v11236_v55 = vld [vmem:[#allocation58_spill] sm:$0xff]  ;;  %v11237_v2 = vld [vmem:[#allocation59_spill] sm:$0xff] }
 0xd53   :  { %6937 = vmatprep.subr.bf16.mxu0 %v11227_v18  ;;  %7001 = vmatprep.subr.bf16.mxu1 %v11228_v62  ;;  %v11238_v18 = vld [vmem:[#allocation60_spill] sm:$0xff]  ;;  %v11239_v62 = vld [vmem:[#allocation61_spill] sm:$0xff] }
 0xd56   :  { %6939 = vmatpush1.bf16.msra.mxu0 %v11229_v49  ;;  %7003 = vmatpush1.bf16.msra.mxu1 %v11230_v32  ;;  %v11240_v49 = vld [vmem:[#allocation62_spill] sm:$0xff]  ;;  %v11241_v32 = vld [vmem:[#allocation63_spill] sm:$0xff] }
 0xd57   :  { %6941 = vmatprep.subr.bf16.mxu0 %v11231_v0  ;;  %7005 = vmatprep.subr.bf16.mxu1 %v11232_v9  ;;  %v11242_v0 = vld [vmem:[#allocation64_spill] sm:$0xff]  ;;  %v11243_v9 = vld [vmem:[#allocation65_spill] sm:$0xff] }
 0xd5a   :  { %6943 = vmatpush1.bf16.msra.mxu0 %v11233_v16  ;;  %7007 = vmatpush1.bf16.msra.mxu1 %v11234_v11  ;;  %v11244_v16 = vld [vmem:[#allocation66_spill] sm:$0xff]  ;;  %v11245_v11 = vld [vmem:[#allocation67_spill] sm:$0xff] }
 0xd5b   :  { %6945 = vmatprep.subr.bf16.mxu0 %v11235_v47  ;;  %7009 = vmatprep.subr.bf16.mxu1 %v11236_v55  ;;  %v11246_v47 = vld [vmem:[#allocation68_spill] sm:$0xff]  ;;  %v11247_v55 = vld [vmem:[#allocation69_spill] sm:$0xff] }
 0xd5e   :  { %6947 = vmatpush1.bf16.msra.mxu0 %v11237_v2  ;;  %7011 = vmatpush1.bf16.msra.mxu1 %v11238_v18  ;;  %v11248_v2 = vld [vmem:[#allocation70_spill] sm:$0xff]  ;;  %v11249_v18 = vld [vmem:[#allocation71_spill] sm:$0xff] }
 0xd5f   :  { %6949 = vmatprep.subr.bf16.mxu0 %v11239_v62  ;;  %7013 = vmatprep.subr.bf16.mxu1 %v11240_v49  ;;  %v11250_v62 = vld [vmem:[#allocation72_spill] sm:$0xff]  ;;  %v11251_v49 = vld [vmem:[#allocation73_spill] sm:$0xff] }
 0xd62   :  { %6951 = vmatpush1.bf16.msra.mxu0 %v11241_v32  ;;  %7015 = vmatpush1.bf16.msra.mxu1 %v11242_v0  ;;  %v11252_v32 = vld [vmem:[#allocation74_spill] sm:$0xff]  ;;  %v11253_v0 = vld [vmem:[#allocation75_spill] sm:$0xff] }
 0xd63   :  { %6953 = vmatprep.subr.bf16.mxu0 %v11243_v9  ;;  %7017 = vmatprep.subr.bf16.mxu1 %v11244_v16  ;;  %v11254_v9 = vld [vmem:[#allocation76_spill] sm:$0xff]  ;;  %v11255_v16 = vld [vmem:[#allocation77_spill] sm:$0xff] }
 0xd66   :  { %6955 = vmatpush1.bf16.msra.mxu0 %v11245_v11  ;;  %7019 = vmatpush1.bf16.msra.mxu1 %v11246_v47  ;;  %v11256_v11 = vld [vmem:[#allocation78_spill] sm:$0xff]  ;;  %v11257_v47 = vld [vmem:[#allocation79_spill] sm:$0xff] }
 0xd67   :  { %6957 = vmatprep.subr.bf16.mxu0 %v11247_v55  ;;  %7021 = vmatprep.subr.bf16.mxu1 %v11248_v2  ;;  %v11258_v55 = vld [vmem:[#allocation80_spill] sm:$0xff]  ;;  %v11259_v2 = vld [vmem:[#allocation81_spill] sm:$0xff] }
 0xd6a   :  { %6959 = vmatpush1.bf16.msra.mxu0 %v11249_v18  ;;  %7023 = vmatpush1.bf16.msra.mxu1 %v11250_v62  ;;  %v11260_v18 = vld [vmem:[#allocation82_spill] sm:$0xff] }
 0xd6b   :  { %6961 = vmatprep.subr.bf16.mxu0 %v11251_v49  ;;  %7025 = vmatprep.subr.bf16.mxu1 %v11252_v32 }
 0xd6e   :  { %6963 = vmatpush1.bf16.msra.mxu0 %v11253_v0  ;;  %7027 = vmatpush1.bf16.msra.mxu1 %v11254_v9 }
 0xd6f   :  { %6965 = vmatprep.subr.bf16.mxu0 %v11255_v16  ;;  %7029 = vmatprep.subr.bf16.mxu1 %v11256_v11 }
 0xd72   :  { %6967 = vmatpush1.bf16.msra.mxu0 %v11257_v47  ;;  %7031 = vmatpush1.bf16.msra.mxu1 %v11258_v55 }
 0xd73   :  { %7033 = vmatprep.subr.bf16.mxu0 %v11259_v2  ;;  %7097 = vmatprep.subr.bf16.mxu1 %v11260_v18 }
 0xde7   :  { %v3699_v62 = vpop.f32.mrb[38].mxu0  ;;  %v3770_v49 = vpop.f32.mrb[38].mxu1 }
 0xde8   :  { %v3700_v32 = vadd.f32 %v3699_v62, %v11261_v34  ;;  %v3701_v1 = vpop.f32.mrb[39].mxu0  ;;  %v3772_v0 = vpop.f32.mrb[39].mxu1  ;;  %v3771_v47 = vadd.f32 %v3770_v49, %v10874_v6 }
 0xde9   :  { %v3702_v9 = vadd.f32 %v3701_v1, %v10743_v56 }
 0xdea   :  { %v4899_v42 = vmul.f32 -1.442695, %v3700_v32 }
 0xdeb   :  { %v4900_v16 = vmul.f32 -1.442695, %v3702_v9 }
 0xdec   :  { %7825 = vpow2.f32 %v4899_v42 }
 0xded   :  { %7827 = vpow2.f32 %v4900_v16 }
 0xdee   :  { %7829 = vtanh.f32 %v3771_v47 }
 0xdf6   :  { %v7826_v11 = vpop.eup %7825 }
 0xdf7   :  { %v7828_v55 = vpop.eup %7827  ;;  %v3778_v15 = vadd.f32 1.0, %v7826_v11 }
 0xdf8   :  { %v3784_v2 = vadd.f32 1.0, %v7828_v55  ;;  %v7830_v18 = vpop.eup %7829 }
 0xdf9   :  { %7831 = vrcp.f32 %v3778_v15  ;;  %v3773_v15 = vadd.f32 %v3772_v0, %v8867_v61 }
 0xdfa   :  { %7833 = vrcp.f32 %v3784_v2 }
 0xdfb   :  { %v4901_v2 = vmul.f32 -1.442695, %v3773_v15 }
 0xe03   :  { %v7832_v22 = vpop.eup %7831 }
 0xe04   :  { %v7834_v62 = vpop.eup %7833  ;;  %v3795_v34 = vmul.f32 %v7832_v22, %v7830_v18 }
 0xe05   :  { %v3794_v36 = vmul.f32 %v7834_v62, %v9633_v35 }
 0xe07   :  { %v3869_v1 = vpop.f32.mrb[12].mxu0  ;;  %v3940_v32 = vpop.f32.mrb[12].mxu1  ;;  %v9825_v9 = vadd.f32 %v3795_v34, %v3794_v36 }
 0xe08   :  { %v7492_v42 = vadd.f32 %v3869_v1, %v10745_v19  ;;  %v3871_v16 = vpop.f32.mrb[13].mxu0  ;;  %v3942_v49 = vpop.f32.mrb[13].mxu1  ;;  %v7508_v18 = vadd.f32 %v3940_v32, %v10615_v48 }
 0xe09   :  { %v7493_v11 = vadd.f32 %v3871_v16, %v10613_v33  ;;  %v7509_v22 = vadd.f32 %v3942_v49, %v10614_v10 }
 0xe0a   :  { %v4902_v47 = vmul.f32 -1.442695, %v7492_v42 }
 0xe0b   :  { %v4903_v55 = vmul.f32 -1.442695, %v7493_v11  ;;  %v4904_v35 = vmul.f32 -1.442695, %v7509_v22 }
 0xe0c   :  { %7835 = vpow2.f32 %v4902_v47 }
 0xe0d   :  { %7837 = vpow2.f32 %v4903_v55 }
 0xe0e   :  { %7839 = vpow2.f32 %v4901_v2 }
 0xe0f   :  { %7841 = vpow2.f32 %v4904_v35 }
 0xe10   :  { %7843 = vtanh.f32 %v7508_v18 }
 0xe16   :  { %v7836_v36 = vpop.eup %7835 }
 0xe17   :  { %v7838_v34 = vpop.eup %7837  ;;  %v3952_v62 = vadd.f32 1.0, %v7836_v36 }
 0xe18   :  { %v3958_v1 = vadd.f32 1.0, %v7838_v34  ;;  %v7840_v42 = vpop.eup %7839 }
 0xe19   :  { %7845 = vrcp.f32 %v3952_v62  ;;  %v7842_v16 = vpop.eup %7841  ;;  %v3791_v22 = vadd.f32 1.0, %v7840_v42  ;;  %v11264_v42 = vld [vmem:[#allocation95_spill] sm:$0xff] }
 0xe1a   :  { %7847 = vrcp.f32 %v3958_v1  ;;  %v7844_v11 = vpop.eup %7843  ;;  %v3965_v49 = vadd.f32 1.0, %v7842_v16  ;;  %v11263_v1 = vld [vmem:[#allocation94_spill] sm:$0xff]  ;;  %v11265_v16 = vld [vmem:[#allocation96_spill] sm:$0xff] }
 0xe1b   :  { %7849 = vtanh.f32 %v9825_v9 }
 0xe1c   :  { %7851 = vrcp.f32 %v3965_v49  ;;  %v11270_v49 = vld [vmem:[#allocation101_spill] sm:$0xff] }
 0xe23   :  { %v7846_v47 = vpop.eup %7845 }
 0xe24   :  { %v7848_v0 = vpop.eup %7847  ;;  %v3969_v55 = vmul.f32 %v7846_v47, %v7844_v11  ;;  %v11266_v11 = vld [vmem:[#allocation97_spill] sm:$0xff]  ;;  %v11267_v47 = vld [vmem:[#allocation98_spill] sm:$0xff] }
 0xe25   :  { %v3968_v15 = vmul.f32 %v7848_v0, %v9641_v31  ;;  %v7850_v2 = vpop.eup %7849  ;;  %v11262_v31 = vld [vmem:[#allocation93_spill] sm:$0xff]  ;;  %v11268_v0 = vld [vmem:[#allocation99_spill] sm:$0xff] }
 0xe26   :  { %v7852_v35 = vpop.eup %7851 }
 0xe27   :  { %v9833_v32 = vadd.f32 %v3969_v55, %v3968_v15  ;;  %v11269_v55 = vld [vmem:[#allocation100_spill] sm:$0xff]  ;;  %v11271_v15 = vld [vmem:[#allocation102_spill] sm:$0xff] }
 0xe29   :  { %7853 = vtanh.f32 %v9833_v32 }
 0xe2a   :  { %7855 = vrcp.f32 %v3791_v22  ;;  %v11272_v22 = vld [vmem:[#allocation103_spill] sm:$0xff] }
 0xe33   :  { %v7854_v18 = vpop.eup %7853 }
 0xe34   :  { %v7856_v36 = vpop.eup %7855  ;;  %v9837_v34 = vmul.f32 %v7854_v18, %v7852_v35  ;;  %v11274_v35 = vld [vmem:[#allocation105_spill] sm:$0xff]  ;;  %v11275_v18 = vld [vmem:[#allocation106_spill] sm:$0xff] }
 0xe35   :  { %v3798_v62 = vmul.f32 %v7856_v36, %v7850_v2  ;;  %v11273_v2 = vld [vmem:[#allocation104_spill] sm:$0xff]  ;;  %v11276_v36 = vld [vmem:[#allocation107_spill] sm:$0xff] }
 0xe36   :  { %4038 = vmatmul.mubr.f32.vlgmr.msra.gmra.mrb[40].mxu0 %v9837_v34  ;;  %4109 = vmatmul.mubr.f32.vlgmr.msra.gmra.mrb[40].mxu1 %v9837_v34 }
 0xe37   :  { %4203 = vmatprep.mubr.f32.mxu0 %v3798_v62  ;;  %4274 = vmatprep.mubr.f32.mxu1 %v3798_v62  ;;  %v11277_v62 = vld [vmem:[#allocation108_spill] sm:$0xff] }
 0xe38   :  { %7035 = vmatpush1.bf16.msra.mxu0 %v10617_v28  ;;  %7099 = vmatpush1.bf16.msra.mxu1 %v10618_v23 }
 0xe39   :  { %7037 = vmatprep.subr.bf16.mxu0 %v10619_v51  ;;  %7101 = vmatprep.subr.bf16.mxu1 %v10620_v52 }
 0xe3c   :  { %7039 = vmatpush1.bf16.msra.mxu0 %v10621_v13  ;;  %7103 = vmatpush1.bf16.msra.mxu1 %v11262_v31 }
 0xe3d   :  { %7041 = vmatprep.subr.bf16.mxu0 %v11263_v1  ;;  %7105 = vmatprep.subr.bf16.mxu1 %v11264_v42 }
 0xe40   :  { %7043 = vmatpush1.bf16.msra.mxu0 %v11265_v16  ;;  %7107 = vmatpush1.bf16.msra.mxu1 %v11266_v11  ;;  %v11321_v11 = vld [vmem:[#allocation150_spill] sm:$0xff] }
 0xe41   :  { %7045 = vmatprep.subr.bf16.mxu0 %v11267_v47  ;;  %7109 = vmatprep.subr.bf16.mxu1 %v11268_v0  ;;  %v11278_v47 = vld [vmem:[#allocation109_spill] sm:$0xff]  ;;  %v11279_v0 = vld [vmem:[#allocation110_spill] sm:$0xff] }
 0xe44   :  { %7047 = vmatpush1.bf16.msra.mxu0 %v11269_v55  ;;  %7111 = vmatpush1.bf16.msra.mxu1 %v11270_v49  ;;  %v11280_v55 = vld [vmem:[#allocation111_spill] sm:$0xff]  ;;  %v11281_v49 = vld [vmem:[#allocation112_spill] sm:$0xff] }
 0xe45   :  { %7049 = vmatprep.subr.bf16.mxu0 %v11271_v15  ;;  %7113 = vmatprep.subr.bf16.mxu1 %v11272_v22  ;;  %v11282_v15 = vld [vmem:[#allocation113_spill] sm:$0xff]  ;;  %v11283_v22 = vld [vmem:[#allocation114_spill] sm:$0xff] }
 0xe48   :  { %7051 = vmatpush1.bf16.msra.mxu0 %v11273_v2  ;;  %7115 = vmatpush1.bf16.msra.mxu1 %v11274_v35  ;;  %v11284_v2 = vld [vmem:[#allocation115_spill] sm:$0xff]  ;;  %v11285_v35 = vld [vmem:[#allocation116_spill] sm:$0xff] }
 0xe49   :  { %7053 = vmatprep.subr.bf16.mxu0 %v11275_v18  ;;  %7117 = vmatprep.subr.bf16.mxu1 %v11276_v36  ;;  %v11286_v18 = vld [vmem:[#allocation117_spill] sm:$0xff]  ;;  %v11287_v36 = vld [vmem:[#allocation118_spill] sm:$0xff] }
 0xe4c   :  { %7055 = vmatpush1.bf16.msra.mxu0 %v11277_v62  ;;  %7119 = vmatpush1.bf16.msra.mxu1 %v11278_v47  ;;  %v11288_v62 = vld [vmem:[#allocation119_spill] sm:$0xff]  ;;  %v11289_v47 = vld [vmem:[#allocation120_spill] sm:$0xff] }
 0xe4d   :  { %7057 = vmatprep.subr.bf16.mxu0 %v11279_v0  ;;  %7121 = vmatprep.subr.bf16.mxu1 %v11280_v55  ;;  %v11290_v0 = vld [vmem:[#allocation121_spill] sm:$0xff]  ;;  %v11291_v55 = vld [vmem:[#allocation122_spill] sm:$0xff] }
 0xe50   :  { %7059 = vmatpush1.bf16.msra.mxu0 %v11281_v49  ;;  %7123 = vmatpush1.bf16.msra.mxu1 %v11282_v15  ;;  %v11292_v49 = vld [vmem:[#allocation123_spill] sm:$0xff]  ;;  %v11293_v15 = vld [vmem:[#allocation124_spill] sm:$0xff] }
 0xe51   :  { %7061 = vmatprep.subr.bf16.mxu0 %v11283_v22  ;;  %7125 = vmatprep.subr.bf16.mxu1 %v11284_v2  ;;  %v11294_v22 = vld [vmem:[#allocation125_spill] sm:$0xff]  ;;  %v11295_v2 = vld [vmem:[#allocation126_spill] sm:$0xff] }
 0xe54   :  { %7063 = vmatpush1.bf16.msra.mxu0 %v11285_v35  ;;  %7127 = vmatpush1.bf16.msra.mxu1 %v11286_v18  ;;  %v11296_v35 = vld [vmem:[#allocation127_spill] sm:$0xff]  ;;  %v11297_v18 = vld [vmem:[#allocation128_spill] sm:$0xff] }
 0xe55   :  { %7065 = vmatprep.subr.bf16.mxu0 %v11287_v36  ;;  %7129 = vmatprep.subr.bf16.mxu1 %v11288_v62  ;;  %v11298_v36 = vld [vmem:[#allocation129_spill] sm:$0xff]  ;;  %v11299_v62 = vld [vmem:[#allocation130_spill] sm:$0xff] }
 0xe58   :  { %7067 = vmatpush1.bf16.msra.mxu0 %v11289_v47  ;;  %7131 = vmatpush1.bf16.msra.mxu1 %v11290_v0  ;;  %v11300_v47 = vld [vmem:[#allocation131_spill] sm:$0xff]  ;;  %v11301_v0 = vld [vmem:[#allocation132_spill] sm:$0xff] }
 0xe59   :  { %7069 = vmatprep.subr.bf16.mxu0 %v11291_v55  ;;  %7133 = vmatprep.subr.bf16.mxu1 %v11292_v49  ;;  %v11302_v55 = vld [vmem:[#allocation133_spill] sm:$0xff]  ;;  %v11303_v49 = vld [vmem:[#allocation134_spill] sm:$0xff] }
 0xe5c   :  { %7071 = vmatpush1.bf16.msra.mxu0 %v11293_v15  ;;  %7135 = vmatpush1.bf16.msra.mxu1 %v11294_v22  ;;  %v11304_v15 = vld [vmem:[#allocation135_spill] sm:$0xff]  ;;  %v11305_v22 = vld [vmem:[#allocation136_spill] sm:$0xff] }
 0xe5d   :  { %7073 = vmatprep.subr.bf16.mxu0 %v11295_v2  ;;  %7137 = vmatprep.subr.bf16.mxu1 %v11296_v35  ;;  %v11306_v2 = vld [vmem:[#allocation137_spill] sm:$0xff]  ;;  %v11307_v35 = vld [vmem:[#allocation138_spill] sm:$0xff] }
 0xe60   :  { %7075 = vmatpush1.bf16.msra.mxu0 %v11297_v18  ;;  %7139 = vmatpush1.bf16.msra.mxu1 %v11298_v36  ;;  %v11308_v18 = vld [vmem:[#allocation139_spill] sm:$0xff]  ;;  %v11309_v36 = vld [vmem:[#allocation140_spill] sm:$0xff] }
 0xe61   :  { %7077 = vmatprep.subr.bf16.mxu0 %v11299_v62  ;;  %7141 = vmatprep.subr.bf16.mxu1 %v11300_v47  ;;  %v11310_v62 = vld [vmem:[#allocation141_spill] sm:$0xff]  ;;  %v11311_v47 = vld [vmem:[#allocation142_spill] sm:$0xff] }
 0xe64   :  { %7079 = vmatpush1.bf16.msra.mxu0 %v11301_v0  ;;  %7143 = vmatpush1.bf16.msra.mxu1 %v11302_v55  ;;  %v11312_v0 = vld [vmem:[#allocation143_spill] sm:$0xff]  ;;  %v11313_v55 = vld [vmem:[#allocation144_spill] sm:$0xff] }
 0xe65   :  { %7081 = vmatprep.subr.bf16.mxu0 %v11303_v49  ;;  %7145 = vmatprep.subr.bf16.mxu1 %v11304_v15  ;;  %v11314_v49 = vld [vmem:[#allocation145_spill] sm:$0xff]  ;;  %v11315_v15 = vld [vmem:[#allocation146_spill] sm:$0xff] }
 0xe68   :  { %7083 = vmatpush1.bf16.msra.mxu0 %v11305_v22  ;;  %7147 = vmatpush1.bf16.msra.mxu1 %v11306_v2  ;;  %v11316_v22 = vld [vmem:[#allocation147_spill] sm:$0xff]  ;;  %v11317_v2 = vld [vmem:[#allocation148_spill] sm:$0xff] }
 0xe69   :  { %7085 = vmatprep.subr.bf16.mxu0 %v11307_v35  ;;  %7149 = vmatprep.subr.bf16.mxu1 %v11308_v18  ;;  %v11318_v35 = vld [vmem:[#allocation149_spill] sm:$0xff] }
 0xe6a   :  { %v11319_v18 = vld [vmem:[#allocation13_spill] sm:$0xff] }
 0xe6c   :  { %7087 = vmatpush1.bf16.msra.mxu0 %v11309_v36  ;;  %7151 = vmatpush1.bf16.msra.mxu1 %v11310_v62  ;;  %v11320_v36 = vld [vmem:[#allocation14_spill] sm:$0xff] }
 0xe6d   :  { %7089 = vmatprep.subr.bf16.mxu0 %v11311_v47  ;;  %7153 = vmatprep.subr.bf16.mxu1 %v11312_v0 }
 0xe70   :  { %7091 = vmatpush1.bf16.msra.mxu0 %v11313_v55  ;;  %7155 = vmatpush1.bf16.msra.mxu1 %v11314_v49 }
 0xe71   :  { %7093 = vmatprep.subr.bf16.mxu0 %v11315_v15  ;;  %7157 = vmatprep.subr.bf16.mxu1 %v11316_v22 }
 0xe74   :  { %7095 = vmatpush1.bf16.msra.mxu0 %v11317_v2  ;;  %7159 = vmatpush1.bf16.msra.mxu1 %v11318_v35 }
 0xe75   :  { %7161 = vmatprep.subr.bf16.mxu0 %v11319_v18  ;;  %7193 = vmatprep.subr.bf16.mxu1 %v11320_v36 }
 0xf09   :  { %v4039_v62 = vpop.f32.mrb[40].mxu0  ;;  %v4110_v47 = vpop.f32.mrb[40].mxu1 }
 0xf0a   :  { %v4040_v0 = vadd.f32 %v4039_v62, %v11321_v11  ;;  %v4041_v16 = vpop.f32.mrb[41].mxu0  ;;  %v4112_v55 = vpop.f32.mrb[41].mxu1  ;;  %v4111_v35 = vadd.f32 %v4110_v47, %v8741_v12 }
 0xf0b   :  { %v4042_v49 = vadd.f32 %v4041_v16, %v10675_v50  ;;  %v4113_v2 = vadd.f32 %v4112_v55, %v10676_v39 }
 0xf0c   :  { %v4905_v42 = vmul.f32 -1.442695, %v4040_v0 }
 0xf0d   :  { %v4906_v15 = vmul.f32 -1.442695, %v4042_v49  ;;  %v4907_v22 = vmul.f32 -1.442695, %v4113_v2 }
 0xf0e   :  { %7857 = vpow2.f32 %v4905_v42 }
 0xf0f   :  { %7859 = vpow2.f32 %v4906_v15 }
 0xf10   :  { %7861 = vpow2.f32 %v4907_v22 }
 0xf11   :  { %7863 = vtanh.f32 %v4111_v35  ;;  %v11356_v35 = vld [vmem:[#allocation49_spill] sm:$0xff] }
 0xf18   :  { %v7858_v18 = vpop.eup %7857 }
 0xf19   :  { %v7860_v1 = vpop.eup %7859  ;;  %v4118_v36 = vadd.f32 1.0, %v7858_v18  ;;  %v11357_v18 = vld [vmem:[#allocation50_spill] sm:$0xff] }
 0xf1a   :  { %v4124_v31 = vadd.f32 1.0, %v7860_v1  ;;  %v7862_v62 = vpop.eup %7861  ;;  %v11354_v1 = vld [vmem:[#allocation47_spill] sm:$0xff] }
 0xf1b   :  { %7865 = vrcp.f32 %v4118_v36  ;;  %v7864_v11 = vpop.eup %7863  ;;  %v4131_v42 = vadd.f32 1.0, %v7862_v62  ;;  %v11358_v36 = vld [vmem:[#allocation51_spill] sm:$0xff]  ;;  %v11359_v62 = vld [vmem:[#allocation52_spill] sm:$0xff] }
 0xf1c   :  { %7867 = vrcp.f32 %v4124_v31  ;;  %v11353_v31 = vld [vmem:[#allocation46_spill] sm:$0xff] }
 0xf1d   :  { %7869 = vrcp.f32 %v4131_v42  ;;  %v11363_v42 = vld [vmem:[#allocation56_spill] sm:$0xff] }
 0xf25   :  { %v7866_v16 = vpop.eup %7865 }
 0xf26   :  { %v7868_v0 = vpop.eup %7867  ;;  %v4135_v49 = vmul.f32 %v7866_v16, %v7864_v11  ;;  %v11355_v11 = vld [vmem:[#allocation48_spill] sm:$0xff]  ;;  %v11360_v16 = vld [vmem:[#allocation53_spill] sm:$0xff] }
 0xf27   :  { %v4134_v15 = vmul.f32 %v7868_v0, %v9718_v63  ;;  %v7870_v47 = vpop.eup %7869  ;;  %v11351_v63 = vld [vmem:[#allocation44_spill] sm:$0xff]  ;;  %v11361_v0 = vld [vmem:[#allocation54_spill] sm:$0xff] }
 0xf29   :  { %v9910_v55 = vadd.f32 %v4135_v49, %v4134_v15  ;;  %v11362_v49 = vld [vmem:[#allocation55_spill] sm:$0xff]  ;;  %v11364_v15 = vld [vmem:[#allocation57_spill] sm:$0xff] }
 0xf2b   :  { %7871 = vtanh.f32 %v9910_v55 }
 0xf35   :  { %v7872_v2 = vpop.eup %7871 }
 0xf36   :  { %v4138_v22 = vmul.f32 %v7872_v2, %v7870_v47  ;;  %v11365_v47 = vld [vmem:[#allocation58_spill] sm:$0xff]  ;;  %v11366_v2 = vld [vmem:[#allocation59_spill] sm:$0xff] }
 0xf38   :  { %4204 = vmatmul.mubr.f32.vlgmr.msra.gmra.mrb[42].mxu0 %v4138_v22  ;;  %4275 = vmatmul.mubr.f32.vlgmr.msra.gmra.mrb[42].mxu1 %v4138_v22 }
 0xf39   :  { %7163 = vmatpush1.bf16.msra.mxu0 %v8152_v14  ;;  %7195 = vmatpush1.bf16.msra.mxu1 %v8156_v17  ;;  %v11322_v14 = vld [vmem:[#allocation15_spill] sm:$0xff]  ;;  %v11323_v17 = vld [vmem:[#allocation16_spill] sm:$0xff] }
 0xf3a   :  { %7165 = vmatprep.subr.bf16.mxu0 %v8165_v25  ;;  %7197 = vmatprep.subr.bf16.mxu1 %v8167_v26  ;;  %v11324_v25 = vld [vmem:[#allocation17_spill] sm:$0xff]  ;;  %v11325_v26 = vld [vmem:[#allocation18_spill] sm:$0xff] }
 0xf3b   :  { %4373 = vmatprep.mubr.f32.mxu0 %v10489_v5  ;;  %4444 = vmatprep.mubr.f32.mxu1 %v10489_v5  ;;  %v11350_v5 = vld [vmem:[#allocation43_spill] sm:$0xff] }
 0xf3d   :  { %7167 = vmatpush1.bf16.msra.mxu0 %v8171_v29  ;;  %7199 = vmatpush1.bf16.msra.mxu1 %v8173_v30  ;;  %v11326_v29 = vld [vmem:[#allocation19_spill] sm:$0xff]  ;;  %v11327_v30 = vld [vmem:[#allocation20_spill] sm:$0xff] }
 0xf3e   :  { %7169 = vmatprep.subr.bf16.mxu0 %v8184_v40  ;;  %7201 = vmatprep.subr.bf16.mxu1 %v8186_v41  ;;  %v11328_v40 = vld [vmem:[#allocation21_spill] sm:$0xff]  ;;  %v11329_v41 = vld [vmem:[#allocation22_spill] sm:$0xff] }
 0xf41   :  { %7171 = vmatpush1.bf16.msra.mxu0 %v8190_v44  ;;  %7203 = vmatpush1.bf16.msra.mxu1 %v8192_v45  ;;  %v11330_v44 = vld [vmem:[#allocation23_spill] sm:$0xff]  ;;  %v11331_v45 = vld [vmem:[#allocation24_spill] sm:$0xff] }
 0xf42   :  { %7173 = vmatprep.subr.bf16.mxu0 %v8203_v53  ;;  %7205 = vmatprep.subr.bf16.mxu1 %v8205_v54  ;;  %v11332_v53 = vld [vmem:[#allocation25_spill] sm:$0xff]  ;;  %v11333_v54 = vld [vmem:[#allocation26_spill] sm:$0xff] }
 0xf45   :  { %7175 = vmatpush1.bf16.msra.mxu0 %v8209_v57  ;;  %7207 = vmatpush1.bf16.msra.mxu1 %v8211_v58  ;;  %v11334_v57 = vld [vmem:[#allocation27_spill] sm:$0xff]  ;;  %v11335_v58 = vld [vmem:[#allocation28_spill] sm:$0xff] }
 0xf46   :  { %7177 = vmatprep.subr.bf16.mxu0 %v8222_v3  ;;  %7209 = vmatprep.subr.bf16.mxu1 %v8224_v4  ;;  %v11336_v3 = vld [vmem:[#allocation29_spill] sm:$0xff]  ;;  %v11337_v4 = vld [vmem:[#allocation30_spill] sm:$0xff] }
 0xf49   :  { %7179 = vmatpush1.bf16.msra.mxu0 %v8228_v7  ;;  %7211 = vmatpush1.bf16.msra.mxu1 %v8230_v8  ;;  %v11338_v7 = vld [vmem:[#allocation31_spill] sm:$0xff]  ;;  %v11339_v8 = vld [vmem:[#allocation32_spill] sm:$0xff] }
 0xf4a   :  { %7181 = vmatprep.subr.bf16.mxu0 %v8241_v20  ;;  %7213 = vmatprep.subr.bf16.mxu1 %v8243_v21  ;;  %v11340_v20 = vld [vmem:[#allocation33_spill] sm:$0xff]  ;;  %v11341_v21 = vld [vmem:[#allocation34_spill] sm:$0xff] }
 0xf4d   :  { %7183 = vmatpush1.bf16.msra.mxu0 %v8247_v24  ;;  %7215 = vmatpush1.bf16.msra.mxu1 %v8249_v27  ;;  %v11342_v24 = vld [vmem:[#allocation35_spill] sm:$0xff]  ;;  %v11343_v27 = vld [vmem:[#allocation36_spill] sm:$0xff] }
 0xf4e   :  { %7185 = vmatprep.subr.bf16.mxu0 %v8260_v37  ;;  %7217 = vmatprep.subr.bf16.mxu1 %v8262_v38  ;;  %v11344_v37 = vld [vmem:[#allocation37_spill] sm:$0xff]  ;;  %v11345_v38 = vld [vmem:[#allocation38_spill] sm:$0xff] }
 0xf51   :  { %7187 = vmatpush1.bf16.msra.mxu0 %v8266_v43  ;;  %7219 = vmatpush1.bf16.msra.mxu1 %v8268_v46  ;;  %v11346_v43 = vld [vmem:[#allocation39_spill] sm:$0xff]  ;;  %v11347_v46 = vld [vmem:[#allocation40_spill] sm:$0xff] }
 0xf52   :  { %7189 = vmatprep.subr.bf16.mxu0 %v8279_v59  ;;  %7221 = vmatprep.subr.bf16.mxu1 %v8281_v60  ;;  %v11348_v59 = vld [vmem:[#allocation41_spill] sm:$0xff]  ;;  %v11349_v60 = vld [vmem:[#allocation42_spill] sm:$0xff] }
 0xf55   :  { %7191 = vmatpush1.bf16.msra.mxu0 %v11322_v14  ;;  %7223 = vmatpush1.bf16.msra.mxu1 %v11323_v17  ;;  %v11368_v14 = vld [vmem:[#allocation61_spill] sm:$0xff]  ;;  %v11369_v17 = vld [vmem:[#allocation62_spill] sm:$0xff] }
 0xf56   :  { %7225 = vmatprep.subr.bf16.mxu0 %v11324_v25  ;;  %7289 = vmatprep.subr.bf16.mxu1 %v11325_v26  ;;  %v11370_v25 = vld [vmem:[#allocation63_spill] sm:$0xff]  ;;  %v11371_v26 = vld [vmem:[#allocation64_spill] sm:$0xff] }
 0xf58   :  { %4374 = vmatmul.mubr.f32.vlgmr.msra.gmra.mrb[14].mxu0 %v9837_v34  ;;  %4445 = vmatmul.mubr.f32.vlgmr.msra.gmra.mrb[14].mxu1 %v9837_v34  ;;  %v11352_v34 = vld [vmem:[#allocation45_spill] sm:$0xff] }
 0xf59   :  { %4543 = vmatprep.mubr.f32.mxu0 %v4138_v22  ;;  %4614 = vmatprep.mubr.f32.mxu1 %v4138_v22  ;;  %v11367_v22 = vld [vmem:[#allocation60_spill] sm:$0xff] }
 0xf5a   :  { %7227 = vmatpush1.bf16.msra.mxu0 %v11326_v29  ;;  %7291 = vmatpush1.bf16.msra.mxu1 %v11327_v30  ;;  %v11372_v29 = vld [vmem:[#allocation65_spill] sm:$0xff]  ;;  %v11373_v30 = vld [vmem:[#allocation66_spill] sm:$0xff] }
 0xf5b   :  { %7229 = vmatprep.subr.bf16.mxu0 %v11328_v40  ;;  %7293 = vmatprep.subr.bf16.mxu1 %v11329_v41  ;;  %v11374_v40 = vld [vmem:[#allocation67_spill] sm:$0xff]  ;;  %v11375_v41 = vld [vmem:[#allocation68_spill] sm:$0xff] }
 0xf5e   :  { %7231 = vmatpush1.bf16.msra.mxu0 %v11330_v44  ;;  %7295 = vmatpush1.bf16.msra.mxu1 %v11331_v45  ;;  %v11376_v44 = vld [vmem:[#allocation69_spill] sm:$0xff]  ;;  %v11377_v45 = vld [vmem:[#allocation70_spill] sm:$0xff] }
 0xf5f   :  { %7233 = vmatprep.subr.bf16.mxu0 %v11332_v53  ;;  %7297 = vmatprep.subr.bf16.mxu1 %v11333_v54  ;;  %v11378_v53 = vld [vmem:[#allocation71_spill] sm:$0xff]  ;;  %v11379_v54 = vld [vmem:[#allocation72_spill] sm:$0xff] }
 0xf62   :  { %7235 = vmatpush1.bf16.msra.mxu0 %v11334_v57  ;;  %7299 = vmatpush1.bf16.msra.mxu1 %v11335_v58  ;;  %v11380_v57 = vld [vmem:[#allocation73_spill] sm:$0xff]  ;;  %v11381_v58 = vld [vmem:[#allocation74_spill] sm:$0xff] }
 0xf63   :  { %7237 = vmatprep.subr.bf16.mxu0 %v11336_v3  ;;  %7301 = vmatprep.subr.bf16.mxu1 %v11337_v4  ;;  %v11382_v3 = vld [vmem:[#allocation75_spill] sm:$0xff]  ;;  %v11383_v4 = vld [vmem:[#allocation76_spill] sm:$0xff] }
 0xf66   :  { %7239 = vmatpush1.bf16.msra.mxu0 %v11338_v7  ;;  %7303 = vmatpush1.bf16.msra.mxu1 %v11339_v8  ;;  %v11384_v7 = vld [vmem:[#allocation77_spill] sm:$0xff]  ;;  %v11385_v8 = vld [vmem:[#allocation78_spill] sm:$0xff] }
 0xf67   :  { %7241 = vmatprep.subr.bf16.mxu0 %v11340_v20  ;;  %7305 = vmatprep.subr.bf16.mxu1 %v11341_v21  ;;  %v11386_v20 = vld [vmem:[#allocation79_spill] sm:$0xff]  ;;  %v11387_v21 = vld [vmem:[#allocation80_spill] sm:$0xff] }
 0xf6a   :  { %7243 = vmatpush1.bf16.msra.mxu0 %v11342_v24  ;;  %7307 = vmatpush1.bf16.msra.mxu1 %v11343_v27  ;;  %v11388_v24 = vld [vmem:[#allocation81_spill] sm:$0xff]  ;;  %v11389_v27 = vld [vmem:[#allocation82_spill] sm:$0xff] }
 0xf6b   :  { %7245 = vmatprep.subr.bf16.mxu0 %v11344_v37  ;;  %7309 = vmatprep.subr.bf16.mxu1 %v11345_v38 }
 0xf6e   :  { %7247 = vmatpush1.bf16.msra.mxu0 %v11346_v43  ;;  %7311 = vmatpush1.bf16.msra.mxu1 %v11347_v46  ;;  %v11390_v43 = vld [vmem:[#allocation153_spill] sm:$0xff] }
 0xf6f   :  { %7249 = vmatprep.subr.bf16.mxu0 %v11348_v59  ;;  %7313 = vmatprep.subr.bf16.mxu1 %v11349_v60 }
 0xf72   :  { %7251 = vmatpush1.bf16.msra.mxu0 %v11350_v5  ;;  %7315 = vmatpush1.bf16.msra.mxu1 %v11351_v63 }
 0xf73   :  { %7253 = vmatprep.subr.bf16.mxu0 %v11352_v34  ;;  %7317 = vmatprep.subr.bf16.mxu1 %v11353_v31 }
 0xf76   :  { %7255 = vmatpush1.bf16.msra.mxu0 %v11354_v1  ;;  %7319 = vmatpush1.bf16.msra.mxu1 %v11355_v11 }
 0xf77   :  { %7257 = vmatprep.subr.bf16.mxu0 %v11356_v35  ;;  %7321 = vmatprep.subr.bf16.mxu1 %v11357_v18 }
 0xf7a   :  { %7259 = vmatpush1.bf16.msra.mxu0 %v11358_v36  ;;  %7323 = vmatpush1.bf16.msra.mxu1 %v11359_v62 }
 0xf7b   :  { %7261 = vmatprep.subr.bf16.mxu0 %v11360_v16  ;;  %7325 = vmatprep.subr.bf16.mxu1 %v11361_v0 }
 0xf7e   :  { %7263 = vmatpush1.bf16.msra.mxu0 %v11362_v49  ;;  %7327 = vmatpush1.bf16.msra.mxu1 %v11363_v42 }
 0xf7f   :  { %7265 = vmatprep.subr.bf16.mxu0 %v11364_v15  ;;  %7329 = vmatprep.subr.bf16.mxu1 %v11365_v47 }
 0xf82   :  { %7267 = vmatpush1.bf16.msra.mxu0 %v11366_v2  ;;  %7331 = vmatpush1.bf16.msra.mxu1 %v11367_v22 }
 0xf83   :  { %7269 = vmatprep.subr.bf16.mxu0 %v11368_v14  ;;  %7333 = vmatprep.subr.bf16.mxu1 %v11369_v17 }
 0xf86   :  { %7271 = vmatpush1.bf16.msra.mxu0 %v11370_v25  ;;  %7335 = vmatpush1.bf16.msra.mxu1 %v11371_v26 }
 0xf87   :  { %7273 = vmatprep.subr.bf16.mxu0 %v11372_v29  ;;  %7337 = vmatprep.subr.bf16.mxu1 %v11373_v30 }
 0xf8a   :  { %7275 = vmatpush1.bf16.msra.mxu0 %v11374_v40  ;;  %7339 = vmatpush1.bf16.msra.mxu1 %v11375_v41 }
 0xf8b   :  { %7277 = vmatprep.subr.bf16.mxu0 %v11376_v44  ;;  %7341 = vmatprep.subr.bf16.mxu1 %v11377_v45 }
 0xf8e   :  { %7279 = vmatpush1.bf16.msra.mxu0 %v11378_v53  ;;  %7343 = vmatpush1.bf16.msra.mxu1 %v11379_v54 }
 0xf8f   :  { %7281 = vmatprep.subr.bf16.mxu0 %v11380_v57  ;;  %7345 = vmatprep.subr.bf16.mxu1 %v11381_v58 }
 0xf92   :  { %7283 = vmatpush1.bf16.msra.mxu0 %v11382_v3  ;;  %7347 = vmatpush1.bf16.msra.mxu1 %v11383_v4 }
 0xf93   :  { %7285 = vmatprep.subr.bf16.mxu0 %v11384_v7  ;;  %7349 = vmatprep.subr.bf16.mxu1 %v11385_v8 }
 0xf96   :  { %7287 = vmatpush1.bf16.msra.mxu0 %v11386_v20  ;;  %7351 = vmatpush1.bf16.msra.mxu1 %v11387_v21 }
 0xf97   :  { %7353 = vmatprep.subr.bf16.mxu0 %v11388_v24  ;;  %7417 = vmatprep.subr.bf16.mxu1 %v11389_v27 }
0x100b   :  { %v4205_v37 = vpop.f32.mrb[42].mxu0  ;;  %v4276_v38 = vpop.f32.mrb[42].mxu1 }
0x100c   :  { %v4206_v46 = vadd.f32 %v4205_v37, %v11390_v43  ;;  %v4207_v59 = vpop.f32.mrb[43].mxu0  ;;  %v4278_v60 = vpop.f32.mrb[43].mxu1  ;;  %v4277_v31 = vadd.f32 %v4276_v38, %v10874_v6 }
0x100d   :  { %v4208_v5 = vadd.f32 %v4207_v59, %v10743_v56  ;;  %v4279_v29 = vadd.f32 %v4278_v60, %v8867_v61  ;;  %v11393_v59 = vld [vmem:[#allocation95_spill] sm:$0xff]  ;;  %v11394_v60 = vld [vmem:[#allocation96_spill] sm:$0xff] }
0x100e   :  { %v4908_v63 = vmul.f32 -1.442695, %v4206_v46  ;;  %v11392_v46 = vld [vmem:[#allocation94_spill] sm:$0xff] }
0x100f   :  { %v4909_v34 = vmul.f32 -1.442695, %v4208_v5  ;;  %v4910_v40 = vmul.f32 -1.442695, %v4279_v29  ;;  %v11395_v5 = vld [vmem:[#allocation97_spill] sm:$0xff]  ;;  %v11421_v29 = vld [vmem:[#allocation123_spill] sm:$0xff] }
0x1010   :  { %7873 = vpow2.f32 %v4908_v63  ;;  %v11396_v63 = vld [vmem:[#allocation98_spill] sm:$0xff] }
0x1011   :  { %7875 = vpow2.f32 %v4909_v34  ;;  %v11402_v34 = vld [vmem:[#allocation104_spill] sm:$0xff] }
0x1012   :  { %7877 = vtanh.f32 %v4277_v31  ;;  %v11403_v31 = vld [vmem:[#allocation105_spill] sm:$0xff] }
0x101a   :  { %v7874_v1 = vpop.eup %7873 }
0x101b   :  { %v7876_v11 = vpop.eup %7875  ;;  %v4284_v35 = vadd.f32 1.0, %v7874_v1  ;;  %v11404_v1 = vld [vmem:[#allocation106_spill] sm:$0xff] }
0x101c   :  { %v4290_v18 = vadd.f32 1.0, %v7876_v11  ;;  %v7878_v36 = vpop.eup %7877  ;;  %v11405_v11 = vld [vmem:[#allocation107_spill] sm:$0xff] }
0x101d   :  { %7879 = vrcp.f32 %v4284_v35  ;;  %v11406_v35 = vld [vmem:[#allocation108_spill] sm:$0xff] }
0x101e   :  { %7881 = vrcp.f32 %v4290_v18  ;;  %v11407_v18 = vld [vmem:[#allocation109_spill] sm:$0xff] }
0x1027   :  { %v7880_v62 = vpop.eup %7879 }
0x1028   :  { %v7882_v16 = vpop.eup %7881  ;;  %v4301_v0 = vmul.f32 %v7880_v62, %v7878_v36  ;;  %v11408_v36 = vld [vmem:[#allocation110_spill] sm:$0xff]  ;;  %v11409_v62 = vld [vmem:[#allocation111_spill] sm:$0xff] }
0x1029   :  { %v4300_v49 = vmul.f32 %v7882_v16, %v9825_v9  ;;  %v11410_v16 = vld [vmem:[#allocation112_spill] sm:$0xff] }
0x102b   :  { %v4375_v42 = vpop.f32.mrb[14].mxu0  ;;  %v4446_v15 = vpop.f32.mrb[14].mxu1  ;;  %v10017_v47 = vadd.f32 %v4301_v0, %v4300_v49  ;;  %v11411_v0 = vld [vmem:[#allocation113_spill] sm:$0xff]  ;;  %v11412_v49 = vld [vmem:[#allocation114_spill] sm:$0xff] }
0x102c   :  { %v7494_v2 = vadd.f32 %v4375_v42, %v10745_v19  ;;  %v4377_v22 = vpop.f32.mrb[15].mxu0  ;;  %v4448_v14 = vpop.f32.mrb[15].mxu1  ;;  %v7510_v41 = vadd.f32 %v4446_v15, %v10615_v48  ;;  %v11413_v42 = vld [vmem:[#allocation115_spill] sm:$0xff]  ;;  %v11414_v15 = vld [vmem:[#allocation116_spill] sm:$0xff] }
0x102d   :  { %v7495_v17 = vadd.f32 %v4377_v22, %v10613_v33  ;;  %v7511_v30 = vadd.f32 %v4448_v14, %v10614_v10  ;;  %v11416_v22 = vld [vmem:[#allocation118_spill] sm:$0xff]  ;;  %v11417_v14 = vld [vmem:[#allocation119_spill] sm:$0xff] }
0x102e   :  { %v4911_v25 = vmul.f32 -1.442695, %v7494_v2  ;;  %v11415_v2 = vld [vmem:[#allocation117_spill] sm:$0xff] }
0x102f   :  { %v4912_v26 = vmul.f32 -1.442695, %v7495_v17  ;;  %v4913_v9 = vmul.f32 -1.442695, %v7511_v30  ;;  %v11418_v17 = vld [vmem:[#allocation120_spill] sm:$0xff] }
0x1030   :  { %7883 = vpow2.f32 %v4911_v25  ;;  %v11419_v25 = vld [vmem:[#allocation121_spill] sm:$0xff]  ;;  %v11422_v30 = vld [vmem:[#allocation124_spill] sm:$0xff] }
0x1031   :  { %7885 = vpow2.f32 %v4912_v26  ;;  %v11420_v26 = vld [vmem:[#allocation122_spill] sm:$0xff] }
0x1032   :  { %7887 = vpow2.f32 %v4910_v40  ;;  %v11423_v40 = vld [vmem:[#allocation125_spill] sm:$0xff] }
0x1033   :  { %7889 = vpow2.f32 %v4913_v9  ;;  %v11424_v9 = vld [vmem:[#allocation126_spill] sm:$0xff] }
0x1034   :  { %7891 = vtanh.f32 %v7510_v41  ;;  %v11425_v41 = vld [vmem:[#allocation127_spill] sm:$0xff] }
0x103a   :  { %v7884_v44 = vpop.eup %7883 }
0x103b   :  { %v7886_v45 = vpop.eup %7885  ;;  %v4458_v19 = vadd.f32 1.0, %v7884_v44  ;;  %v11426_v44 = vld [vmem:[#allocation128_spill] sm:$0xff] }
0x103c   :  { %v4464_v53 = vadd.f32 1.0, %v7886_v45  ;;  %v7888_v33 = vpop.eup %7887  ;;  %v11427_v45 = vld [vmem:[#allocation129_spill] sm:$0xff] }
0x103d   :  { %7893 = vrcp.f32 %v4458_v19  ;;  %v7890_v54 = vpop.eup %7889  ;;  %v4297_v8 = vadd.f32 1.0, %v7888_v33  ;;  %v11428_v19 = vld [vmem:[#allocation130_spill] sm:$0xff]  ;;  %v11430_v33 = vld [vmem:[#allocation132_spill] sm:$0xff] }
0x103e   :  { %7895 = vrcp.f32 %v4464_v53  ;;  %v7892_v57 = vpop.eup %7891  ;;  %v4471_v10 = vadd.f32 1.0, %v7890_v54  ;;  %v11429_v53 = vld [vmem:[#allocation131_spill] sm:$0xff]  ;;  %v11431_v54 = vld [vmem:[#allocation133_spill] sm:$0xff] }
0x103f   :  { %7897 = vtanh.f32 %v10017_v47 }
0x1040   :  { %7899 = vrcp.f32 %v4471_v10  ;;  %v11436_v10 = vld [vmem:[#allocation138_spill] sm:$0xff] }
0x1047   :  { %v7894_v58 = vpop.eup %7893 }
0x1048   :  { %v7896_v3 = vpop.eup %7895  ;;  %v4475_v4 = vmul.f32 %v7894_v58, %v7892_v57  ;;  %v11432_v57 = vld [vmem:[#allocation134_spill] sm:$0xff]  ;;  %v11433_v58 = vld [vmem:[#allocation135_spill] sm:$0xff] }
0x1049   :  { %v4474_v7 = vmul.f32 %v7896_v3, %v9833_v32  ;;  %v7898_v20 = vpop.eup %7897  ;;  %v11391_v32 = vld [vmem:[#allocation93_spill] sm:$0xff]  ;;  %v11434_v3 = vld [vmem:[#allocation136_spill] sm:$0xff] }
0x104a   :  { %v7900_v21 = vpop.eup %7899 }
0x104b   :  { %v4476_v48 = vadd.f32 %v4475_v4, %v4474_v7  ;;  %v11435_v4 = vld [vmem:[#allocation137_spill] sm:$0xff]  ;;  %v11437_v7 = vld [vmem:[#allocation139_spill] sm:$0xff] }
0x104d   :  { %7901 = vtanh.f32 %v4476_v48  ;;  %v11439_v48 = vld [vmem:[#allocation141_spill] sm:$0xff] }
0x104e   :  { %7903 = vrcp.f32 %v4297_v8  ;;  %v11438_v8 = vld [vmem:[#allocation140_spill] sm:$0xff] }
0x1057   :  { %v7902_v24 = vpop.eup %7901 }
0x1058   :  { %v7904_v27 = vpop.eup %7903  ;;  %v4478_v37 = vmul.f32 %v7902_v24, %v7900_v21  ;;  %v11441_v21 = vld [vmem:[#allocation143_spill] sm:$0xff]  ;;  %v11442_v24 = vld [vmem:[#allocation144_spill] sm:$0xff] }
0x1059   :  { %v4304_v38 = vmul.f32 %v7904_v27, %v7898_v20  ;;  %v11440_v20 = vld [vmem:[#allocation142_spill] sm:$0xff]  ;;  %v11443_v27 = vld [vmem:[#allocation145_spill] sm:$0xff] }
0x105a   :  { %4544 = vmatmul.mubr.f32.vlgmr.msra.gmra.mrb[44].mxu0 %v4478_v37  ;;  %4615 = vmatmul.mubr.f32.vlgmr.msra.gmra.mrb[44].mxu1 %v4478_v37  ;;  %v11444_v37 = vld [vmem:[#allocation146_spill] sm:$0xff] }
0x105b   :  { %4709 = vmatprep.mubr.f32.mxu0 %v4304_v38  ;;  %4780 = vmatprep.mubr.f32.mxu1 %v4304_v38  ;;  %v11445_v38 = vld [vmem:[#allocation147_spill] sm:$0xff] }
0x105c   :  { %7355 = vmatpush1.bf16.msra.mxu0 %v10617_v28  ;;  %7419 = vmatpush1.bf16.msra.mxu1 %v10618_v23  ;;  %v11397_v28 = vld [vmem:[#allocation99_spill] sm:$0xff]  ;;  %v11398_v23 = vld [vmem:[#allocation100_spill] sm:$0xff] }
0x105d   :  { %7357 = vmatprep.subr.bf16.mxu0 %v10619_v51  ;;  %7421 = vmatprep.subr.bf16.mxu1 %v10620_v52  ;;  %v11399_v51 = vld [vmem:[#allocation101_spill] sm:$0xff]  ;;  %v11400_v52 = vld [vmem:[#allocation102_spill] sm:$0xff] }
0x1060   :  { %7359 = vmatpush1.bf16.msra.mxu0 %v10621_v13  ;;  %7423 = vmatpush1.bf16.msra.mxu1 %v11391_v32  ;;  %v11401_v13 = vld [vmem:[#allocation103_spill] sm:$0xff]  ;;  %v11446_v32 = vld [vmem:[#allocation148_spill] sm:$0xff] }
0x1061   :  { %7361 = vmatprep.subr.bf16.mxu0 %v11392_v46  ;;  %7425 = vmatprep.subr.bf16.mxu1 %v11393_v59  ;;  %v11447_v46 = vld [vmem:[#allocation149_spill] sm:$0xff] }
0x1064   :  { %7363 = vmatpush1.bf16.msra.mxu0 %v11394_v60  ;;  %7427 = vmatpush1.bf16.msra.mxu1 %v11395_v5  ;;  %v11448_v5 = vld [vmem:[#allocation150_spill] sm:$0xff] }
0x1065   :  { %7365 = vmatprep.subr.bf16.mxu0 %v11396_v63  ;;  %7429 = vmatprep.subr.bf16.mxu1 %v11397_v28 }
0x1068   :  { %7367 = vmatpush1.bf16.msra.mxu0 %v11398_v23  ;;  %7431 = vmatpush1.bf16.msra.mxu1 %v11399_v51 }
0x1069   :  { %7369 = vmatprep.subr.bf16.mxu0 %v11400_v52  ;;  %7433 = vmatprep.subr.bf16.mxu1 %v11401_v13 }
0x106c   :  { %7371 = vmatpush1.bf16.msra.mxu0 %v11402_v34  ;;  %7435 = vmatpush1.bf16.msra.mxu1 %v11403_v31 }
0x106d   :  { %7373 = vmatprep.subr.bf16.mxu0 %v11404_v1  ;;  %7437 = vmatprep.subr.bf16.mxu1 %v11405_v11 }
0x1070   :  { %7375 = vmatpush1.bf16.msra.mxu0 %v11406_v35  ;;  %7439 = vmatpush1.bf16.msra.mxu1 %v11407_v18 }
0x1071   :  { %7377 = vmatprep.subr.bf16.mxu0 %v11408_v36  ;;  %7441 = vmatprep.subr.bf16.mxu1 %v11409_v62 }
0x1074   :  { %7379 = vmatpush1.bf16.msra.mxu0 %v11410_v16  ;;  %7443 = vmatpush1.bf16.msra.mxu1 %v11411_v0 }
0x1075   :  { %7381 = vmatprep.subr.bf16.mxu0 %v11412_v49  ;;  %7445 = vmatprep.subr.bf16.mxu1 %v11413_v42 }
0x1078   :  { %7383 = vmatpush1.bf16.msra.mxu0 %v11414_v15  ;;  %7447 = vmatpush1.bf16.msra.mxu1 %v11415_v2 }
0x1079   :  { %7385 = vmatprep.subr.bf16.mxu0 %v11416_v22  ;;  %7449 = vmatprep.subr.bf16.mxu1 %v11417_v14 }
0x107c   :  { %7387 = vmatpush1.bf16.msra.mxu0 %v11418_v17  ;;  %7451 = vmatpush1.bf16.msra.mxu1 %v11419_v25 }
0x107d   :  { %7389 = vmatprep.subr.bf16.mxu0 %v11420_v26  ;;  %7453 = vmatprep.subr.bf16.mxu1 %v11421_v29 }
0x1080   :  { %7391 = vmatpush1.bf16.msra.mxu0 %v11422_v30  ;;  %7455 = vmatpush1.bf16.msra.mxu1 %v11423_v40 }
0x1081   :  { %7393 = vmatprep.subr.bf16.mxu0 %v11424_v9  ;;  %7457 = vmatprep.subr.bf16.mxu1 %v11425_v41 }
0x1084   :  { %7395 = vmatpush1.bf16.msra.mxu0 %v11426_v44  ;;  %7459 = vmatpush1.bf16.msra.mxu1 %v11427_v45 }
0x1085   :  { %7397 = vmatprep.subr.bf16.mxu0 %v11428_v19  ;;  %7461 = vmatprep.subr.bf16.mxu1 %v11429_v53 }
0x1088   :  { %7399 = vmatpush1.bf16.msra.mxu0 %v11430_v33  ;;  %7463 = vmatpush1.bf16.msra.mxu1 %v11431_v54 }
0x1089   :  { %7401 = vmatprep.subr.bf16.mxu0 %v11432_v57  ;;  %7465 = vmatprep.subr.bf16.mxu1 %v11433_v58 }
0x108c   :  { %7403 = vmatpush1.bf16.msra.mxu0 %v11434_v3  ;;  %7467 = vmatpush1.bf16.msra.mxu1 %v11435_v4 }
0x108d   :  { %7405 = vmatprep.subr.bf16.mxu0 %v11436_v10  ;;  %7469 = vmatprep.subr.bf16.mxu1 %v11437_v7 }
0x1090   :  { %7407 = vmatpush1.bf16.msra.mxu0 %v11438_v8  ;;  %7471 = vmatpush1.bf16.msra.mxu1 %v11439_v48 }
0x1091   :  { %7409 = vmatprep.subr.bf16.mxu0 %v11440_v20  ;;  %7473 = vmatprep.subr.bf16.mxu1 %v11441_v21 }
0x1094   :  { %7411 = vmatpush1.bf16.msra.mxu0 %v11442_v24  ;;  %7475 = vmatpush1.bf16.msra.mxu1 %v11443_v27 }
0x1095   :  { %7413 = vmatprep.subr.bf16.mxu0 %v11444_v37  ;;  %7477 = vmatprep.subr.bf16.mxu1 %v11445_v38 }
0x1098   :  { %7415 = vmatpush1.bf16.msra.mxu0 %v11446_v32  ;;  %7479 = vmatpush1.bf16.msra.mxu1 %v11447_v46 }
0x112d   :  { %v4545_v59 = vpop.f32.mrb[44].mxu0  ;;  %v4616_v60 = vpop.f32.mrb[44].mxu1 }
0x112e   :  { %v4546_v63 = vadd.f32 %v4545_v59, %v11448_v5  ;;  %v4547_v28 = vpop.f32.mrb[45].mxu0  ;;  %v4618_v23 = vpop.f32.mrb[45].mxu1  ;;  %v4617_v1 = vadd.f32 %v4616_v60, %v8741_v12 }
0x112f   :  { %v4548_v51 = vadd.f32 %v4547_v28, %v10675_v50  ;;  %v4619_v34 = vadd.f32 %v4618_v23, %v10676_v39 }
0x1130   :  { %v4914_v52 = vmul.f32 -1.442695, %v4546_v63 }
0x1131   :  { %v4915_v13 = vmul.f32 -1.442695, %v4548_v51  ;;  %v4916_v31 = vmul.f32 -1.442695, %v4619_v34 }
0x1132   :  { %7905 = vpow2.f32 %v4914_v52 }
0x1133   :  { %7907 = vpow2.f32 %v4915_v13 }
0x1134   :  { %7909 = vpow2.f32 %v4916_v31 }
0x1135   :  { %7911 = vtanh.f32 %v4617_v1 }
0x113c   :  { %v7906_v11 = vpop.eup %7905 }
0x113d   :  { %v7908_v35 = vpop.eup %7907  ;;  %v4624_v18 = vadd.f32 1.0, %v7906_v11 }
0x113e   :  { %v4630_v36 = vadd.f32 1.0, %v7908_v35  ;;  %v7910_v62 = vpop.eup %7909 }
0x113f   :  { %7913 = vrcp.f32 %v4624_v18  ;;  %v7912_v16 = vpop.eup %7911  ;;  %v4637_v42 = vadd.f32 1.0, %v7910_v62 }
0x1140   :  { %7915 = vrcp.f32 %v4630_v36 }
0x1141   :  { %7917 = vrcp.f32 %v4637_v42 }
0x1149   :  { %v7914_v50 = vpop.eup %7913 }
0x114a   :  { %v7916_v0 = vpop.eup %7915  ;;  %v4641_v49 = vmul.f32 %v7914_v50, %v7912_v16 }
0x114b   :  { %v4640_v15 = vmul.f32 %v7916_v0, %v9910_v55  ;;  %v7918_v12 = vpop.eup %7917 }
0x114d   :  { %v4642_v39 = vadd.f32 %v4641_v49, %v4640_v15 }
0x114f   :  { %7919 = vtanh.f32 %v4642_v39 }
0x1159   :  { %v7920_v2 = vpop.eup %7919 }
0x115a   :  { %v4644_v22 = vmul.f32 %v7920_v2, %v7918_v12 }
0x115c   :  { %4710 = vmatmul.mubr.f32.vlgmr.msra.gmra.mrb[46].mxu0 %v4644_v22  ;;  %4781 = vmatmul.mubr.f32.vlgmr.msra.gmra.mrb[46].mxu1 %v4644_v22 }
0x122f   :  { %v4711_v14 = vpop.f32.mrb[46].mxu0  ;;  %v4782_v17 = vpop.f32.mrb[46].mxu1 }
0x1230   :  { %v4712_v25 = vadd.f32 %v4711_v14, %v11390_v43  ;;  %v4713_v26 = vpop.f32.mrb[47].mxu0  ;;  %v4784_v29 = vpop.f32.mrb[47].mxu1  ;;  %v4783_v44 = vadd.f32 %v4782_v17, %v10874_v6 }
0x1231   :  { %v4714_v30 = vadd.f32 %v4713_v26, %v10743_v56  ;;  %v4785_v55 = vadd.f32 %v4784_v29, %v8867_v61 }
0x1232   :  { %v4917_v40 = vmul.f32 -1.442695, %v4712_v25 }
0x1233   :  { %v4918_v9 = vmul.f32 -1.442695, %v4714_v30  ;;  %v4919_v41 = vmul.f32 -1.442695, %v4785_v55 }
0x1234   :  { %7921 = vpow2.f32 %v4917_v40 }
0x1235   :  { %7923 = vpow2.f32 %v4918_v9 }
0x1236   :  { %7925 = vpow2.f32 %v4919_v41 }
0x1237   :  { %7927 = vtanh.f32 %v4783_v44 }
0x123e   :  { %v7922_v45 = vpop.eup %7921 }
0x123f   :  { %v7924_v19 = vpop.eup %7923  ;;  %v4790_v53 = vadd.f32 1.0, %v7922_v45 }
0x1240   :  { %v4796_v33 = vadd.f32 1.0, %v7924_v19  ;;  %v7926_v43 = vpop.eup %7925 }
0x1241   :  { %7929 = vrcp.f32 %v4790_v53  ;;  %v7928_v54 = vpop.eup %7927  ;;  %v4803_v3 = vadd.f32 1.0, %v7926_v43 }
0x1242   :  { %7931 = vrcp.f32 %v4796_v33 }
0x1243   :  { %7933 = vrcp.f32 %v4803_v3 }
0x124b   :  { %v7930_v56 = vpop.eup %7929 }
0x124c   :  { %v7932_v57 = vpop.eup %7931  ;;  %v4807_v58 = vmul.f32 %v7930_v56, %v7928_v54 }
0x124d   :  { %v4806_v4 = vmul.f32 %v7932_v57, %v10017_v47  ;;  %v7934_v6 = vpop.eup %7933 }
0x124f   :  { %v4808_v61 = vadd.f32 %v4807_v58, %v4806_v4 }
0x1251   :  { %7935 = vtanh.f32 %v4808_v61 }
0x125b   :  { %v7936_v10 = vpop.eup %7935 }
0x125c   :  { %v4810_v7 = vmul.f32 %v7936_v10, %v7934_v6 }
0x125e   :  { %4811 = vst [vmem:[#allocation9] sm:$0xff] %v4810_v7 }
0x125f   :  { %8014 = shalt.err (!%p8011_p0)
}
0x1260   :  { %s8015_s22 = scalar_lea.hbm %s10118_s8, 128 }
0x1261   :  { %p8016_p1 = scmp.ne.s32.totalorder %s10118_s8, %s8015_s22  ;;  %p8019_p2 = scmp.lt.u32.totalorder %s8015_s22, %s10118_s8 }
0x1263   :  { %p8021_p3 = pnand %p8019_p2, %p8016_p1 }
0x1265   :  { %8024 = shalt.err (!%p8021_p3)
}
0x1266   :  { %4821 = dma.vmem_to_hbm [thread:$0]  %s4819_s20, 128, %s10118_s8, [#allocation5]  }
0x1267   :  { %8029 = dma.done.wait [#allocation5], 128  }
0x1268   :  { %8030 = vsyncadd [#allocation5], 4294967168 }
0x1269   :  { %4825 = vsyncpa [#allocation4], 1 }
0x126a   :  { %4826 = vsyncpa [#allocation7], 1 }
0x126b   :  { %4827 = vsyncpa [#allocation5], 1 }

</bundles_post_ra>
